<compile_context>
chip_gen: v5e
topology: v5e:2x2
jax: 0.10.0
libtpu: 0.0.40
codegen_flags: <defaults>
</compile_context>

<pallas_src>
import jax
import jax.numpy as jnp
from jax.experimental import pallas as pl
from jax.experimental.pallas import tpu as pltpu

FEAT = 1024  # input_dim of DomainAdaptationLayer (RoBERTa-large hidden size)


def _adapter_kernel(x_ref, w1_ref, b1_ref, w2_ref, b2_ref, o_ref):
    # Whole adapter for one batch tile; weights are grid-invariant (VMEM-resident).
    x32 = x_ref[...]                                   # (TB, D) f32
    xb = x32.astype(jnp.bfloat16)                      # MXU-native input (once per tile)

    # Linear1 + ReLU (bias/ReLU in f32; hidden stays f32 for accuracy).
    h = jnp.dot(xb, w1_ref[...], preferred_element_type=jnp.float32) + b1_ref[...]
    h = jnp.maximum(h, 0.0)
    # Dropout(0.1) eval-mode == identity (see TODO above)

    # Linear2 + bias + residual, written directly to the f32 output block.
    y = jnp.dot(h.astype(jnp.bfloat16), w2_ref[...], preferred_element_type=jnp.float32)
    o_ref[...] = (y + b2_ref[...] + x32).astype(o_ref.dtype)


def _round_up(n, m):
    return ((n + m - 1) // m) * m


def domain_adapter(x, w1, b1, w2, b2, *, tile_b=None):
    """x: (B, D) f32; w1,w2: (D, D) bf16 stored as (in, out) == PyTorch weight.T;
    b1,b2: (1, D) f32."""
    B, D = x.shape
    assert w1.shape == (D, D) and w2.shape == (D, D)
    assert b1.shape == (1, D) and b2.shape == (1, D)

    # Batch tile selection:
    #   * small batches: one tile, rounded to the sublane (8)
    #   * large batches: 128-aligned (v5e MXU) and >= 2 tiles (v7x megacore),
    #     capped at 512 rows (footprint ~17 MiB with double-buffered x/out).
    if tile_b is None:
        if B <= 128:
            tile_b = _round_up(B, 8)
        else:
            tile_b = min(512, _round_up(pl.cdiv(B, 2), 128))
    tile_b = max(8, _round_up(tile_b, 8))

    # Pad ragged batches instead of asserting; slice the result back.
    B_pad = _round_up(B, tile_b)
    if B_pad != B:
        x = jnp.pad(x, ((0, B_pad - B), (0, 0)))
    grid = (B_pad // tile_b,)

    # VMEM footprint: double-buffered x/out streams + resident weights/biases.
    f32b, bf16b = 4, 2
    vmem_bytes = (
        2 * tile_b * D * f32b        # x tiles (double-buffered)
        + 2 * tile_b * D * f32b      # out tiles (double-buffered)
        + 2 * D * D * bf16b          # W1 (grid-invariant, default 2 buffers)
        + 2 * D * D * bf16b          # W2
        + 4 * D * f32b               # b1, b2
    )
    vmem_limit = min(48 << 20, int(vmem_bytes * 1.3) + (2 << 20))

    out = pl.pallas_call(
        _adapter_kernel,
        out_shape=jax.ShapeDtypeStruct((B_pad, D), jnp.float32),
        grid_spec=pltpu.PrefetchScalarGridSpec(
            num_scalar_prefetch=0,
            grid=grid,
            in_specs=[
                pl.BlockSpec((tile_b, D), lambda i: (i, 0)),   # x (streamed per tile)
                pl.BlockSpec((D, D), lambda i: (0, 0)),        # W1 (VMEM-resident)
                pl.BlockSpec((1, D), lambda i: (0, 0)),        # b1 (VMEM-resident)
                pl.BlockSpec((D, D), lambda i: (0, 0)),        # W2 (VMEM-resident)
                pl.BlockSpec((1, D), lambda i: (0, 0)),        # b2 (VMEM-resident)
            ],
            out_specs=pl.BlockSpec((tile_b, D), lambda i: (i, 0)),
        ),
        compiler_params=pltpu.CompilerParams(
            dimension_semantics=("parallel",),
            vmem_limit_bytes=vmem_limit,
        ),
    )(x, w1, b1, w2, b2)

    return out[:B] if B_pad != B else out


def init_params(key, feat=FEAT):
    """Mimics nn.Linear default init U(-1/sqrt(in), 1/sqrt(in)); weights bf16."""
    k1, k2, k3, k4 = jax.random.split(key, 4)
    bound = 1.0 / jnp.sqrt(jnp.float32(feat))
    # Stored as (in_features, out_features) == PyTorch weight.T
    w1 = jax.random.uniform(k1, (feat, feat), jnp.float32, -bound, bound).astype(jnp.bfloat16)
    b1 = jax.random.uniform(k2, (1, feat), jnp.float32, -bound, bound)
    w2 = jax.random.uniform(k3, (feat, feat), jnp.float32, -bound, bound).astype(jnp.bfloat16)
    b2 = jax.random.uniform(k4, (1, feat), jnp.float32, -bound, bound)
    return w1, b1, w2, b2


def reference(x, w1, b1, w2, b2):
    """Same math (bf16 MXU inputs, f32 accumulate) through plain XLA ops."""
    xb = x.astype(jnp.bfloat16)
    h = jnp.maximum(jnp.dot(xb, w1, preferred_element_type=jnp.float32) + b1, 0.0)
    y = jnp.dot(h.astype(jnp.bfloat16), w2, preferred_element_type=jnp.float32) + b2
    return y + x


if __name__ == "__main__":
    key = jax.random.PRNGKey(0)
    k_x, k_x2, k_p = jax.random.split(key, 3)

    w1, b1, w2, b2 = init_params(k_p)

    # Small "encode_batch"-style batch of base embeddings (single-tile path).
    batch = 8
    base_embedding = jax.random.normal(k_x, (batch, FEAT), jnp.float32)
    out = jax.block_until_ready(domain_adapter(base_embedding, w1, b1, w2, b2))
    ref = reference(base_embedding, w1, b1, w2, b2)
    assert out.shape == (batch, FEAT)
    assert jnp.allclose(out, ref, atol=2e-3, rtol=2e-3), "mismatch vs JAX reference (B=8)"

    # Ragged multi-tile batch (exercises padding + >=2 parallel batch tiles).
    batch2 = 300
    x2 = jax.random.normal(k_x2, (batch2, FEAT), jnp.float32)
    out2 = jax.block_until_ready(domain_adapter(x2, w1, b1, w2, b2))
    ref2 = reference(x2, w1, b1, w2, b2)
    assert out2.shape == (batch2, FEAT)
    assert jnp.allclose(out2, ref2, atol=2e-3, rtol=2e-3), "mismatch vs JAX reference (B=300)"

    print("KERNEL_OK")
</pallas_src>

<mosaic_0001>
module attributes {stable_mosaic.version = 11 : i64} {
  func.func @_adapter_kernel(%arg0: i32, %arg1: memref<8x1024xf32, #tpu.memory_space<vmem>>, %arg2: memref<1024x1024xbf16, #tpu.memory_space<vmem>>, %arg3: memref<1x1024xf32, #tpu.memory_space<vmem>>, %arg4: memref<1024x1024xbf16, #tpu.memory_space<vmem>>, %arg5: memref<1x1024xf32, #tpu.memory_space<vmem>>, %arg6: memref<8x1024xf32, #tpu.memory_space<vmem>>) attributes {dimension_semantics = [#tpu.dimension_semantics<parallel>], iteration_bounds = array<i64: 1>, scalar_prefetch = 0 : i64, scratch_operands = 0 : i64, tpu.core_type = #tpu.core_type<tc>, window_params = [{transform_indices = @transform_0, window_bounds = array<i64: 8, 1024>}, {pipeline_mode = #tpu.pipeline_mode<synchronous>, transform_indices = @transform_1, window_bounds = array<i64: 1024, 1024>}, {pipeline_mode = #tpu.pipeline_mode<synchronous>, transform_indices = @transform_2, window_bounds = array<i64: 1, 1024>}, {pipeline_mode = #tpu.pipeline_mode<synchronous>, transform_indices = @transform_3, window_bounds = array<i64: 1024, 1024>}, {pipeline_mode = #tpu.pipeline_mode<synchronous>, transform_indices = @transform_4, window_bounds = array<i64: 1, 1024>}, {transform_indices = @transform_5, window_bounds = array<i64: 8, 1024>}]} {
    %c0 = arith.constant 0 : index
    %c0_0 = arith.constant 0 : index
    %0 = vector.load %arg1[%c0, %c0_0] : memref<8x1024xf32, #tpu.memory_space<vmem>>, vector<8x1024xf32>
    %1 = arith.truncf %0 : vector<8x1024xf32> to vector<8x1024xbf16>
    %c0_1 = arith.constant 0 : index
    %c0_2 = arith.constant 0 : index
    %2 = vector.load %arg2[%c0_1, %c0_2] : memref<1024x1024xbf16, #tpu.memory_space<vmem>>, vector<1024x1024xbf16>
    %cst = arith.constant dense<0.000000e+00> : vector<8x1024xf32>
    %3 = tpu.matmul %1, %2, %cst {dimension_numbers = #tpu.dot_dimension_numbers<[1], [0], [0], [1], [0, 0, 1, 1], [], []>} : vector<8x1024xbf16>, vector<1024x1024xbf16>, vector<8x1024xf32> -> vector<8x1024xf32>
    %c0_3 = arith.constant 0 : index
    %c0_4 = arith.constant 0 : index
    %4 = vector.load %arg3[%c0_3, %c0_4] : memref<1x1024xf32, #tpu.memory_space<vmem>>, vector<1x1024xf32>
    %5 = vector.broadcast %4 : vector<1x1024xf32> to vector<8x1024xf32>
    %6 = arith.addf %3, %5 : vector<8x1024xf32>
    %cst_5 = arith.constant 0.000000e+00 : f32
    %7 = vector.broadcast %cst_5 : f32 to vector<8x1024xf32>
    %8 = arith.maximumf %6, %7 : vector<8x1024xf32>
    %9 = arith.truncf %8 : vector<8x1024xf32> to vector<8x1024xbf16>
    %c0_6 = arith.constant 0 : index
    %c0_7 = arith.constant 0 : index
    %10 = vector.load %arg4[%c0_6, %c0_7] : memref<1024x1024xbf16, #tpu.memory_space<vmem>>, vector<1024x1024xbf16>
    %cst_8 = arith.constant dense<0.000000e+00> : vector<8x1024xf32>
    %11 = tpu.matmul %9, %10, %cst_8 {dimension_numbers = #tpu.dot_dimension_numbers<[1], [0], [0], [1], [0, 0, 1, 1], [], []>} : vector<8x1024xbf16>, vector<1024x1024xbf16>, vector<8x1024xf32> -> vector<8x1024xf32>
    %c0_9 = arith.constant 0 : index
    %c0_10 = arith.constant 0 : index
    %12 = vector.load %arg5[%c0_9, %c0_10] : memref<1x1024xf32, #tpu.memory_space<vmem>>, vector<1x1024xf32>
    %13 = vector.broadcast %12 : vector<1x1024xf32> to vector<8x1024xf32>
    %14 = arith.addf %11, %13 : vector<8x1024xf32>
    %15 = arith.addf %14, %0 : vector<8x1024xf32>
    %c0_11 = arith.constant 0 : index
    %c0_12 = arith.constant 0 : index
    %16 = vector.load %arg6[%c0_11, %c0_12] : memref<8x1024xf32, #tpu.memory_space<vmem>>, vector<8x1024xf32>
    tpu.vector_store %arg6[%c0_11, %c0_12], %15 {strides = array<i32>} : memref<8x1024xf32, #tpu.memory_space<vmem>>, vector<8x1024xf32>,
    return
  }
  func.func @transform_0(%arg0: i32) -> (i32, i32) {
    %c0_i32 = arith.constant 0 : i32
    %c0_i32_0 = arith.constant 0 : i32
    return %arg0, %c0_i32 : i32, i32
  }
  func.func @transform_1(%arg0: i32) -> (i32, i32) {
    %c0_i32 = arith.constant 0 : i32
    %c0_i32_0 = arith.constant 0 : i32
    %c0_i32_1 = arith.constant 0 : i32
    return %c0_i32, %c0_i32_0 : i32, i32
  }
  func.func @transform_2(%arg0: i32) -> (i32, i32) {
    %c0_i32 = arith.constant 0 : i32
    %c0_i32_0 = arith.constant 0 : i32
    %c0_i32_1 = arith.constant 0 : i32
    return %c0_i32, %c0_i32_0 : i32, i32
  }
  func.func @transform_3(%arg0: i32) -> (i32, i32) {
    %c0_i32 = arith.constant 0 : i32
    %c0_i32_0 = arith.constant 0 : i32
    %c0_i32_1 = arith.constant 0 : i32
    return %c0_i32, %c0_i32_0 : i32, i32
  }
  func.func @transform_4(%arg0: i32) -> (i32, i32) {
    %c0_i32 = arith.constant 0 : i32
    %c0_i32_0 = arith.constant 0 : i32
    %c0_i32_1 = arith.constant 0 : i32
    return %c0_i32, %c0_i32_0 : i32, i32
  }
  func.func @transform_5(%arg0: i32) -> (i32, i32) {
    %c0_i32 = arith.constant 0 : i32
    %c0_i32_0 = arith.constant 0 : i32
    return %arg0, %c0_i32 : i32, i32
  }
}

</mosaic_0001>

<bundles_post_ra>
// kernel: tpu_custom_call.1
= control target key start
LH: loop header
LB: loop body
LE: loop exit
PB: predicated region body
PF: predicated region fallthrough
CT: control target
= control target key end

     0   :  { %10 = vsyncpa [#allocation3], 0  ;;  %s13699_s0 = inlined_call_operand.hbm [shape: f32[8,1024], index: 0, kind: input, shape index: {}]   ;;  %s13700_s1 = inlined_call_operand.hbm [shape: bf16[1024,1024], index: 1, kind: input, shape index: {}]   ;;  %s13701_s2 = inlined_call_operand.hbm [shape: f32[1,1024], index: 2, kind: input, shape index: {}]   ;;  %s13702_s3 = inlined_call_operand.hbm [shape: bf16[1024,1024], index: 3, kind: input, shape index: {}]   ;;  %s13703_s4 = inlined_call_operand.hbm [shape: f32[1,1024], index: 4, kind: input, shape index: {}]   ;;  %s13704_s5 = inlined_call_operand.hbm [shape: f32[8,1024], index: 5, kind: output, shape index: {}]  }
   0x1   :  { %11 = vsyncpa [#allocation6], 0 }
   0x2   :  { %12 = vsyncpa [#allocation9], 0  ;;  %s29_s20 = sshll.u32 %s13700_s1, 4  ;;  %s30_s20 = int_to_ptr.hbm [resolvable:$true] %s29_s20 }
   0x3   :  { %13 = vsyncpa [#allocation4], 0  ;;  %s13297_s21 = smov [#allocation5]   ;;  %s53_s25 = sshll.u32 %s13702_s3, 4  ;;  %s54_s25 = int_to_ptr.hbm [resolvable:$true] %s53_s25 }
   0x4   :  { %s31_s22 = sshll.u32 %s13297_s21, 4  ;;  %s13298_s26 = smov 512   ;;  %s32_s22 = int_to_ptr.vmem [resolvable:$true] %s31_s22 }
   0x5   :  { %s13299_s27 = smov 32   ;;  %s13300_s28 = smov [#allocation8]  }
   0x6   :  { %37 = dma.hbm_to_vmem [thread:$0]  %s30_s20, 65536, %s32_s22, [#allocation6], %s13298_s26, %s13298_s26, %s13299_s27  }
   0x7   :  { %s55_s29 = sshll.u32 %s13300_s28, 4  ;;  %s19_s7 = sshll.u32 %s13699_s0, 4  ;;  %s56_s29 = int_to_ptr.vmem [resolvable:$true] %s55_s29  ;;  %s20_s7 = int_to_ptr.hbm [resolvable:$true] %s19_s7 }
   0x8   :  { %61 = dma.hbm_to_vmem [thread:$0]  %s54_s25, 65536, %s56_s29, [#allocation9], %s13298_s26, %s13298_s26, %s13299_s27  }
   0x9   :  { %s43_s9 = sshll.u32 %s13701_s2, 4  ;;  %s13301_s10 = smov [#allocation2]   ;;  %s44_s9 = int_to_ptr.hbm [resolvable:$true] %s43_s9 }
   0xa   :  { %s21_s11 = sshll.u32 %s13301_s10, 4  ;;  %s13302_s3 = smov [#allocation7]   ;;  %s22_s11 = int_to_ptr.vmem [resolvable:$true] %s21_s11 }
   0xb   :  { %24 = dma.hbm_to_vmem [thread:$0]  %s20_s7, 1024, %s22_s11, [#allocation3]  }
   0xc   :  { %s45_s12 = sshll.u32 %s13302_s3, 4  ;;  %s67_s15 = sshll.u32 %s13703_s4, 4  ;;  %s46_s12 = int_to_ptr.vmem [resolvable:$true] %s45_s12  ;;  %s68_s15 = int_to_ptr.hbm [resolvable:$true] %s67_s15 }
   0xd   :  { %48 = dma.hbm_to_vmem [thread:$0]  %s44_s9, 128, %s46_s12, [#allocation6]  }
   0xe   :  { %s13303_s0 = smov [#allocation10]  }
   0xf   :  { %s69_s16 = sshll.u32 %s13303_s0, 4  ;;  %s70_s16 = int_to_ptr.vmem [resolvable:$true] %s69_s16 }
  0x10   :  { %72 = dma.hbm_to_vmem [thread:$0]  %s68_s15, 128, %s70_s16, [#allocation9]  }
  0x11   :  { %13289 = dma.done.wait [#allocation3], 1024  }
  0x12   :  { %13290 = vsyncadd [#allocation3], 4294966272 }
  0x13   :  { %13291 = dma.done.wait [#allocation6], 65664  }
  0x14   :  { %13292 = vsyncadd [#allocation6], 4294901632 }
  0x15   :  { %13293 = dma.done.wait [#allocation9], 65664  }
  0x16   :  { %13294 = vsyncadd [#allocation9], 4294901632  ;;  %v8230_v0 = vld [vmem:[#allocation5 + $0x1c0] sm:$0xf]  ;;  %s13304_s2 = smov [#allocation11]   ;;  %s7992_s19 = sshll.u32 %s13704_s5, 4  ;;  %s7993_s19 = int_to_ptr.hbm [resolvable:$true] %s7992_s19 }
  0x17   :  { %v12160_v1 = vld [vmem:[#allocation5 + $0x1dc] sm:$0xf0]  ;;  %s7990_s4 = sshll.u32 %s13304_s2, 4  ;;  %s7991_s4 = int_to_ptr.vmem [resolvable:$true] %s7990_s4 }
  0x18   :  { %v8486_v2 = vld [vmem:[#allocation5 + $0x3c0] sm:$0xf]  ;;  %v8231_v3 = vor.u32 %v12160_v1, %v8230_v0 }
  0x19   :  { %v12224_v4 = vld [vmem:[#allocation5 + $0x3dc] sm:$0xf0] }
  0x1a   :  { %v8742_v5 = vld [vmem:[#allocation5 + $0x5c0] sm:$0xf]  ;;  %v8487_v7 = vor.u32 %v12224_v4, %v8486_v2  ;;  %3199 = vmatpush.bf16.msra.mxu0 %v8231_v3 }
  0x1b   :  { %v12288_v6 = vld [vmem:[#allocation5 + $0x5dc] sm:$0xf0] }
  0x1c   :  { %v8743_v8 = vor.u32 %v12288_v6, %v8742_v5  ;;  %v8998_v9 = vld [vmem:[#allocation5 + $0x7c0] sm:$0xf]  ;;  %3212 = vmatpush.bf16.msra.mxu1 %v8487_v7 }
  0x1d   :  { %v12352_v10 = vld [vmem:[#allocation5 + $0x7dc] sm:$0xf0] }
  0x1e   :  { %v8198_v11 = vld [vmem:[#allocation5 + $0x180] sm:$0xf]  ;;  %v8999_v12 = vor.u32 %v12352_v10, %v8998_v9  ;;  %3225 = vmatpush.bf16.msra.mxu2 %v8743_v8 }
  0x1f   :  { %v12152_v13 = vld [vmem:[#allocation5 + $0x19c] sm:$0xf0] }
  0x20   :  { %v8454_v14 = vld [vmem:[#allocation5 + $0x380] sm:$0xf]  ;;  %v8199_v16 = vor.u32 %v12152_v13, %v8198_v11  ;;  %3238 = vmatpush.bf16.msra.mxu3 %v8999_v12 }
  0x21   :  { %v12216_v15 = vld [vmem:[#allocation5 + $0x39c] sm:$0xf0] }
  0x22   :  { %v8455_v17 = vor.u32 %v12216_v15, %v8454_v14  ;;  %v8710_v18 = vld [vmem:[#allocation5 + $0x580] sm:$0xf]  ;;  %3200 = vmatpush.bf16.msra.mxu0 %v8199_v16 }
  0x23   :  { %v12280_v19 = vld [vmem:[#allocation5 + $0x59c] sm:$0xf0] }
  0x24   :  { %v8966_v20 = vld [vmem:[#allocation5 + $0x780] sm:$0xf]  ;;  %v8711_v21 = vor.u32 %v12280_v19, %v8710_v18  ;;  %3213 = vmatpush.bf16.msra.mxu1 %v8455_v17 }
  0x25   :  { %v12344_v22 = vld [vmem:[#allocation5 + $0x79c] sm:$0xf0] }
  0x26   :  { %v8166_v23 = vld [vmem:[#allocation5 + $0x140] sm:$0xf]  ;;  %v8967_v25 = vor.u32 %v12344_v22, %v8966_v20  ;;  %3226 = vmatpush.bf16.msra.mxu2 %v8711_v21 }
  0x27   :  { %v12144_v24 = vld [vmem:[#allocation5 + $0x15c] sm:$0xf0] }
  0x28   :  { %v8422_v26 = vld [vmem:[#allocation5 + $0x340] sm:$0xf]  ;;  %v8167_v29 = vor.u32 %v12144_v24, %v8166_v23  ;;  %3239 = vmatpush.bf16.msra.mxu3 %v8967_v25 }
  0x29   :  { %v12208_v27 = vld [vmem:[#allocation5 + $0x35c] sm:$0xf0] }
  0x2a   :  { %v8678_v28 = vld [vmem:[#allocation5 + $0x540] sm:$0xf]  ;;  %v8423_v33 = vor.u32 %v12208_v27, %v8422_v26  ;;  %3201 = vmatpush.bf16.msra.mxu0 %v8167_v29 }
  0x2b   :  { %v12272_v30 = vld [vmem:[#allocation5 + $0x55c] sm:$0xf0] }
  0x2c   :  { %v8934_v31 = vld [vmem:[#allocation5 + $0x740] sm:$0xf]  ;;  %v8679_v34 = vor.u32 %v12272_v30, %v8678_v28  ;;  %3214 = vmatpush.bf16.msra.mxu1 %v8423_v33 }
  0x2d   :  { %v12336_v32 = vld [vmem:[#allocation5 + $0x75c] sm:$0xf0] }
  0x2e   :  { %v8134_v35 = vld [vmem:[#allocation5 + $0x100] sm:$0xf]  ;;  %v8935_v38 = vor.u32 %v12336_v32, %v8934_v31  ;;  %3227 = vmatpush.bf16.msra.mxu2 %v8679_v34 }
  0x2f   :  { %v12136_v36 = vld [vmem:[#allocation5 + $0x11c] sm:$0xf0] }
  0x30   :  { %v8390_v37 = vld [vmem:[#allocation5 + $0x300] sm:$0xf]  ;;  %v8135_v44 = vor.u32 %v12136_v36, %v8134_v35  ;;  %3240 = vmatpush.bf16.msra.mxu3 %v8935_v38 }
  0x31   :  { %v12200_v39 = vld [vmem:[#allocation5 + $0x31c] sm:$0xf0] }
  0x32   :  { %v8646_v40 = vld [vmem:[#allocation5 + $0x500] sm:$0xf]  ;;  %v8391_v45 = vor.u32 %v12200_v39, %v8390_v37  ;;  %3202 = vmatpush.bf16.msra.mxu0 %v8135_v44 }
  0x33   :  { %v12264_v41 = vld [vmem:[#allocation5 + $0x51c] sm:$0xf0] }
  0x34   :  { %v8902_v42 = vld [vmem:[#allocation5 + $0x700] sm:$0xf]  ;;  %v8647_v46 = vor.u32 %v12264_v41, %v8646_v40  ;;  %3215 = vmatpush.bf16.msra.mxu1 %v8391_v45 }
  0x35   :  { %v12328_v43 = vld [vmem:[#allocation5 + $0x71c] sm:$0xf0] }
  0x36   :  { %v8102_v47 = vld [vmem:[#allocation5 + $0xc0] sm:$0xf]  ;;  %v8903_v50 = vor.u32 %v12328_v43, %v8902_v42  ;;  %3228 = vmatpush.bf16.msra.mxu2 %v8647_v46 }
  0x37   :  { %v12128_v48 = vld [vmem:[#allocation5 + $0xdc] sm:$0xf0] }
  0x38   :  { %v8358_v49 = vld [vmem:[#allocation5 + $0x2c0] sm:$0xf]  ;;  %v8103_v56 = vor.u32 %v12128_v48, %v8102_v47  ;;  %3241 = vmatpush.bf16.msra.mxu3 %v8903_v50 }
  0x39   :  { %v12192_v51 = vld [vmem:[#allocation5 + $0x2dc] sm:$0xf0] }
  0x3a   :  { %v8614_v52 = vld [vmem:[#allocation5 + $0x4c0] sm:$0xf]  ;;  %v8359_v57 = vor.u32 %v12192_v51, %v8358_v49  ;;  %3203 = vmatpush.bf16.msra.mxu0 %v8103_v56 }
  0x3b   :  { %v12256_v53 = vld [vmem:[#allocation5 + $0x4dc] sm:$0xf0] }
  0x3c   :  { %v8870_v54 = vld [vmem:[#allocation5 + $0x6c0] sm:$0xf]  ;;  %v8615_v58 = vor.u32 %v12256_v53, %v8614_v52  ;;  %3216 = vmatpush.bf16.msra.mxu1 %v8359_v57 }
  0x3d   :  { %v12320_v55 = vld [vmem:[#allocation5 + $0x6dc] sm:$0xf0] }
  0x3e   :  { %v8070_v59 = vld [vmem:[#allocation5 + $0x80] sm:$0xf]  ;;  %v8871_v62 = vor.u32 %v12320_v55, %v8870_v54  ;;  %3229 = vmatpush.bf16.msra.mxu2 %v8615_v58 }
  0x3f   :  { %v12120_v60 = vld [vmem:[#allocation5 + $0x9c] sm:$0xf0] }
  0x40   :  { %v8326_v61 = vld [vmem:[#allocation5 + $0x280] sm:$0xf]  ;;  %v8071_v4 = vor.u32 %v12120_v60, %v8070_v59  ;;  %3242 = vmatpush.bf16.msra.mxu3 %v8871_v62 }
  0x41   :  { %v12184_v63 = vld [vmem:[#allocation5 + $0x29c] sm:$0xf0] }
  0x42   :  { %v8582_v0 = vld [vmem:[#allocation5 + $0x480] sm:$0xf]  ;;  %v8327_v5 = vor.u32 %v12184_v63, %v8326_v61  ;;  %3204 = vmatpush.bf16.msra.mxu0 %v8071_v4 }
  0x43   :  { %v12248_v1 = vld [vmem:[#allocation5 + $0x49c] sm:$0xf0] }
  0x44   :  { %v8838_v2 = vld [vmem:[#allocation5 + $0x680] sm:$0xf]  ;;  %v8583_v6 = vor.u32 %v12248_v1, %v8582_v0  ;;  %3217 = vmatpush.bf16.msra.mxu1 %v8327_v5 }
  0x45   :  { %v12312_v3 = vld [vmem:[#allocation5 + $0x69c] sm:$0xf0] }
  0x46   :  { %v8038_v7 = vld [vmem:[#allocation5 + $0x40] sm:$0xf]  ;;  %v8839_v10 = vor.u32 %v12312_v3, %v8838_v2  ;;  %3230 = vmatpush.bf16.msra.mxu2 %v8583_v6  ;;  %v95_v3 = vld [vmem:[#allocation2 + $0x10] sm:$0xff] }
  0x47   :  { %v12112_v8 = vld [vmem:[#allocation5 + $0x5c] sm:$0xf0] }
  0x48   :  { %v8294_v9 = vld [vmem:[#allocation5 + $0x240] sm:$0xf]  ;;  %v8039_v16 = vor.u32 %v12112_v8, %v8038_v7  ;;  %3243 = vmatpush.bf16.msra.mxu3 %v8839_v10  ;;  %v13350_v8 = vpack.c.bf16 %v95_v3, %v95_v3  ;;  %v96_v10 = vld [vmem:[#allocation2 + $0x18] sm:$0xff] }
  0x49   :  { %v12176_v11 = vld [vmem:[#allocation5 + $0x25c] sm:$0xf0] }
  0x4a   :  { %v8550_v12 = vld [vmem:[#allocation5 + $0x440] sm:$0xf]  ;;  %v8295_v19 = vor.u32 %v12176_v11, %v8294_v9  ;;  %3205 = vmatpush.bf16.msra.mxu0 %v8039_v16 }
  0x4b   :  { %v12240_v13 = vld [vmem:[#allocation5 + $0x45c] sm:$0xf0] }
  0x4c   :  { %v8806_v14 = vld [vmem:[#allocation5 + $0x640] sm:$0xf]  ;;  %v8551_v20 = vor.u32 %v12240_v13, %v8550_v12  ;;  %3218 = vmatpush.bf16.msra.mxu1 %v8295_v19  ;;  %v94_v19 = vld [vmem:[#allocation2 + $0x8] sm:$0xff] }
  0x4d   :  { %v12304_v15 = vld [vmem:[#allocation5 + $0x65c] sm:$0xf0] }
  0x4e   :  { %v8006_v17 = vld [vmem:[#allocation5] sm:$0xf]  ;;  %v8807_v24 = vor.u32 %v12304_v15, %v8806_v14  ;;  %3231 = vmatpush.bf16.msra.mxu2 %v8551_v20  ;;  %v13354_v15 = vpack.c.bf16 %v96_v10, %v96_v10  ;;  %v8488_v10 = vld [vmem:[#allocation5 + $0x3e0] sm:$0xf0] }
  0x4f   :  { %v12104_v18 = vld [vmem:[#allocation5 + $0x1c] sm:$0xf0] }
  0x50   :  { %v8262_v21 = vld [vmem:[#allocation5 + $0x200] sm:$0xf]  ;;  %v8007_v31 = vor.u32 %v12104_v18, %v8006_v17  ;;  %3244 = vmatpush.bf16.msra.mxu3 %v8807_v24 }
  0x51   :  { %v12168_v22 = vld [vmem:[#allocation5 + $0x21c] sm:$0xf0] }
  0x52   :  { %v8518_v23 = vld [vmem:[#allocation5 + $0x400] sm:$0xf]  ;;  %v8263_v35 = vor.u32 %v12168_v22, %v8262_v21  ;;  %3206 = vmatpush.bf16.msra.mxu0 %v8007_v31 }
  0x53   :  { %v12232_v25 = vld [vmem:[#allocation5 + $0x41c] sm:$0xf0] }
  0x54   :  { %v8774_v26 = vld [vmem:[#allocation5 + $0x600] sm:$0xf]  ;;  %v8519_v36 = vor.u32 %v12232_v25, %v8518_v23  ;;  %3219 = vmatpush.bf16.msra.mxu1 %v8263_v35  ;;  %v13359_v25 = vpack.c.bf16 %v94_v19, %v94_v19 }
  0x55   :  { %v12296_v27 = vld [vmem:[#allocation5 + $0x61c] sm:$0xf0] }
  0x56   :  { %v9254_v28 = vld [vmem:[#allocation5 + $0x9c0] sm:$0xf]  ;;  %v8775_v39 = vor.u32 %v12296_v27, %v8774_v26  ;;  %3232 = vmatpush.bf16.msra.mxu2 %v8519_v36 }
  0x57   :  { %v12416_v29 = vld [vmem:[#allocation5 + $0x9dc] sm:$0xf0]  ;;  %3220 = vmatmul.bf16.vlgmr.msra.gmra.mxu1 %v13359_v25 }
  0x58   :  { %v9510_v30 = vld [vmem:[#allocation5 + $0xbc0] sm:$0xf]  ;;  %v9255_v40 = vor.u32 %v12416_v29, %v9254_v28  ;;  %3245 = vmatpush.bf16.msra.mxu3 %v8775_v39 }
  0x59   :  { %v12480_v32 = vld [vmem:[#allocation5 + $0xbdc] sm:$0xf0]  ;;  %3233 = vmatmul.bf16.vlgmr.msra.gmra.mxu2 %v13350_v8 }
  0x5a   :  { %v9766_v33 = vld [vmem:[#allocation5 + $0xdc0] sm:$0xf]  ;;  %v9511_v41 = vor.u32 %v12480_v32, %v9510_v30  ;;  %3251 = vmatpush.bf16.msrb.mxu0 %v9255_v40 }
  0x5b   :  { %v12544_v34 = vld [vmem:[#allocation5 + $0xddc] sm:$0xf0]  ;;  %3246 = vmatmul.bf16.vlgmr.msra.gmra.mxu3 %v13354_v15 }
  0x5c   :  { %v10022_v37 = vld [vmem:[#allocation5 + $0xfc0] sm:$0xf]  ;;  %v9767_v42 = vor.u32 %v12544_v34, %v9766_v33  ;;  %3264 = vmatpush.bf16.msrb.mxu1 %v9511_v41 }
  0x5d   :  { %v12608_v38 = vld [vmem:[#allocation5 + $0xfdc] sm:$0xf0] }
  0x5e   :  { %v9222_v43 = vld [vmem:[#allocation5 + $0x980] sm:$0xf]  ;;  %v10023_v46 = vor.u32 %v12608_v38, %v10022_v37  ;;  %3277 = vmatpush.bf16.msrb.mxu2 %v9767_v42 }
  0x5f   :  { %v12408_v44 = vld [vmem:[#allocation5 + $0x99c] sm:$0xf0] }
  0x60   :  { %v9478_v45 = vld [vmem:[#allocation5 + $0xb80] sm:$0xf]  ;;  %v9223_v52 = vor.u32 %v12408_v44, %v9222_v43  ;;  %3290 = vmatpush.bf16.msrb.mxu3 %v10023_v46 }
  0x61   :  { %v12472_v47 = vld [vmem:[#allocation5 + $0xb9c] sm:$0xf0] }
  0x62   :  { %v9734_v48 = vld [vmem:[#allocation5 + $0xd80] sm:$0xf]  ;;  %v9479_v54 = vor.u32 %v12472_v47, %v9478_v45  ;;  %3252 = vmatpush.bf16.msrb.mxu0 %v9223_v52 }
  0x63   :  { %v12536_v49 = vld [vmem:[#allocation5 + $0xd9c] sm:$0xf0] }
  0x64   :  { %v9990_v50 = vld [vmem:[#allocation5 + $0xf80] sm:$0xf]  ;;  %v9735_v55 = vor.u32 %v12536_v49, %v9734_v48  ;;  %3265 = vmatpush.bf16.msrb.mxu1 %v9479_v54 }
  0x65   :  { %v12600_v51 = vld [vmem:[#allocation5 + $0xf9c] sm:$0xf0] }
  0x66   :  { %v9190_v53 = vld [vmem:[#allocation5 + $0x940] sm:$0xf]  ;;  %v9991_v59 = vor.u32 %v12600_v51, %v9990_v50  ;;  %3278 = vmatpush.bf16.msrb.mxu2 %v9735_v55 }
  0x67   :  { %v12400_v56 = vld [vmem:[#allocation5 + $0x95c] sm:$0xf0] }
  0x68   :  { %v9446_v57 = vld [vmem:[#allocation5 + $0xb40] sm:$0xf]  ;;  %v9191_v0 = vor.u32 %v12400_v56, %v9190_v53  ;;  %3291 = vmatpush.bf16.msrb.mxu3 %v9991_v59 }
  0x69   :  { %v12464_v58 = vld [vmem:[#allocation5 + $0xb5c] sm:$0xf0] }
  0x6a   :  { %v9702_v60 = vld [vmem:[#allocation5 + $0xd40] sm:$0xf]  ;;  %v9447_v1 = vor.u32 %v12464_v58, %v9446_v57  ;;  %3253 = vmatpush.bf16.msrb.mxu0 %v9191_v0 }
  0x6b   :  { %v12528_v61 = vld [vmem:[#allocation5 + $0xd5c] sm:$0xf0] }
  0x6c   :  { %v9958_v62 = vld [vmem:[#allocation5 + $0xf40] sm:$0xf]  ;;  %v9703_v5 = vor.u32 %v12528_v61, %v9702_v60  ;;  %3266 = vmatpush.bf16.msrb.mxu1 %v9447_v1 }
  0x6d   :  { %v12592_v63 = vld [vmem:[#allocation5 + $0xf5c] sm:$0xf0] }
  0x6e   :  { %v9158_v2 = vld [vmem:[#allocation5 + $0x900] sm:$0xf]  ;;  %v9959_v11 = vor.u32 %v12592_v63, %v9958_v62  ;;  %3279 = vmatpush.bf16.msrb.mxu2 %v9703_v5  ;;  %v8232_v5 = vld [vmem:[#allocation5 + $0x1e0] sm:$0xf0] }
  0x6f   :  { %v93_v4 = vld [vmem:[#allocation2] sm:$0xff] }
  0x70   :  { %v12392_v6 = vld [vmem:[#allocation5 + $0x91c] sm:$0xf0]  ;;  %v13352_v9 = vpack.c.bf16 %v93_v4, %v93_v4  ;;  %3292 = vmatpush.bf16.msrb.mxu3 %v9959_v11  ;;  %v12156_v4 = vld [vmem:[#allocation5 + $0x1c4] sm:$0xf] }
  0x71   :  { %v9414_v7 = vld [vmem:[#allocation5 + $0xb00] sm:$0xf]  ;;  %v9159_v18 = vor.u32 %v12392_v6, %v9158_v2  ;;  %v12220_v6 = vld [vmem:[#allocation5 + $0x3c4] sm:$0xf] }
  0x72   :  { %v12456_v12 = vld [vmem:[#allocation5 + $0xb1c] sm:$0xf0]  ;;  %3207 = vmatmul.bf16.vlgmr.msra.gmra.mxu0 %v13352_v9  ;;  %v12284_v11 = vld [vmem:[#allocation5 + $0x5c4] sm:$0xf] }
  0x73   :  { %v9670_v13 = vld [vmem:[#allocation5 + $0xd00] sm:$0xf]  ;;  %v9415_v20 = vor.u32 %v12456_v12, %v9414_v7  ;;  %3254 = vmatpush.bf16.msrb.mxu0 %v9159_v18  ;;  %v8744_v12 = vld [vmem:[#allocation5 + $0x5e0] sm:$0xf0]  ;;  %v99_v18 = vld [vmem:[#allocation2 + $0x30] sm:$0xff] }
  0x74   :  { %v12520_v14 = vld [vmem:[#allocation5 + $0xd1c] sm:$0xf0] }
  0x75   :  { %v9926_v16 = vld [vmem:[#allocation5 + $0xf00] sm:$0xf]  ;;  %v9671_v21 = vor.u32 %v12520_v14, %v9670_v13  ;;  %3267 = vmatpush.bf16.msrb.mxu1 %v9415_v20  ;;  %v8235_v20 = vor.u32 %v12156_v4, %v8232_v5  ;;  %v8104_v4 = vld [vmem:[#allocation5 + $0xe0] sm:$0xf0] }
  0x76   :  { %v12584_v17 = vld [vmem:[#allocation5 + $0xf1c] sm:$0xf0]  ;;  %v12188_v5 = vld [vmem:[#allocation5 + $0x2c4] sm:$0xf] }
  0x77   :  { %v9126_v22 = vld [vmem:[#allocation5 + $0x8c0] sm:$0xf]  ;;  %v9927_v26 = vor.u32 %v12584_v17, %v9926_v16  ;;  %3280 = vmatpush.bf16.msrb.mxu2 %v9671_v21  ;;  %v12348_v16 = vld [vmem:[#allocation5 + $0x7c4] sm:$0xf] }
  0x78   :  { %v12384_v23 = vld [vmem:[#allocation5 + $0x8dc] sm:$0xf0]  ;;  %v9000_v17 = vld [vmem:[#allocation5 + $0x7e0] sm:$0xf0] }
  0x79   :  { %v9382_v24 = vld [vmem:[#allocation5 + $0xac0] sm:$0xf]  ;;  %v9127_v32 = vor.u32 %v12384_v23, %v9126_v22  ;;  %3293 = vmatpush.bf16.msrb.mxu3 %v9927_v26  ;;  %v12148_v21 = vld [vmem:[#allocation5 + $0x184] sm:$0xf]  ;;  %v100_v23 = vld [vmem:[#allocation2 + $0x38] sm:$0xff]  ;;  %v8747_v26 = vor.u32 %v12284_v11, %v8744_v12 }
  0x7a   :  { %v12448_v27 = vld [vmem:[#allocation5 + $0xadc] sm:$0xf0]  ;;  %v8616_v11 = vld [vmem:[#allocation5 + $0x4e0] sm:$0xf0] }
  0x7b   :  { %v9638_v28 = vld [vmem:[#allocation5 + $0xcc0] sm:$0xf]  ;;  %v9383_v33 = vor.u32 %v12448_v27, %v9382_v24  ;;  %3255 = vmatpush.bf16.msrb.mxu0 %v9127_v32  ;;  %v8491_v24 = vor.u32 %v12220_v6, %v8488_v10  ;;  %v8200_v27 = vld [vmem:[#allocation5 + $0x1a0] sm:$0xf0] }
  0x7c   :  { %v12512_v29 = vld [vmem:[#allocation5 + $0xcdc] sm:$0xf0]  ;;  %v12276_v32 = vld [vmem:[#allocation5 + $0x584] sm:$0xf] }
  0x7d   :  { %v9894_v30 = vld [vmem:[#allocation5 + $0xec0] sm:$0xf]  ;;  %v9639_v34 = vor.u32 %v12512_v29, %v9638_v28  ;;  %3268 = vmatpush.bf16.msrb.mxu1 %v9383_v33  ;;  %v12212_v28 = vld [vmem:[#allocation5 + $0x384] sm:$0xf]  ;;  %v98_v29 = vld [vmem:[#allocation2 + $0x28] sm:$0xff] }
  0x7e   :  { %v12576_v31 = vld [vmem:[#allocation5 + $0xedc] sm:$0xf0]  ;;  %v8712_v33 = vld [vmem:[#allocation5 + $0x5a0] sm:$0xf0] }
  0x7f   :  { %v9094_v35 = vld [vmem:[#allocation5 + $0x880] sm:$0xf]  ;;  %v9895_v38 = vor.u32 %v12576_v31, %v9894_v30  ;;  %3281 = vmatpush.bf16.msrb.mxu2 %v9639_v34  ;;  %v9003_v30 = vor.u32 %v12348_v16, %v9000_v17  ;;  %v8456_v31 = vld [vmem:[#allocation5 + $0x3a0] sm:$0xf0]  ;;  %v13362_v34 = vpack.c.bf16 %v99_v18, %v99_v18 }
  0x80   :  { %v12376_v36 = vld [vmem:[#allocation5 + $0x89c] sm:$0xf0]  ;;  %v12252_v10 = vld [vmem:[#allocation5 + $0x4c4] sm:$0xf] }
  0x81   :  { %v9350_v37 = vld [vmem:[#allocation5 + $0xa80] sm:$0xf]  ;;  %v9095_v44 = vor.u32 %v12376_v36, %v9094_v35  ;;  %3294 = vmatpush.bf16.msrb.mxu3 %v9895_v38  ;;  %v12340_v35 = vld [vmem:[#allocation5 + $0x784] sm:$0xf]  ;;  %v13366_v38 = vpack.c.bf16 %v100_v23, %v100_v23  ;;  %v8619_v17 = vor.u32 %v12252_v10, %v8616_v11 }
  0x82   :  { %v12440_v39 = vld [vmem:[#allocation5 + $0xa9c] sm:$0xf0]  ;;  %v8968_v36 = vld [vmem:[#allocation5 + $0x7a0] sm:$0xf0] }
  0x83   :  { %v9606_v40 = vld [vmem:[#allocation5 + $0xc80] sm:$0xf]  ;;  %v9351_v45 = vor.u32 %v12440_v39, %v9350_v37  ;;  %3256 = vmatpush.bf16.msrb.mxu0 %v9095_v44  ;;  %v8203_v39 = vor.u32 %v12148_v21, %v8200_v27  ;;  %v8168_v44 = vld [vmem:[#allocation5 + $0x160] sm:$0xf0] }
  0x84   :  { %v12504_v41 = vld [vmem:[#allocation5 + $0xc9c] sm:$0xf0]  ;;  %v12316_v12 = vld [vmem:[#allocation5 + $0x6c4] sm:$0xf] }
  0x85   :  { %v9862_v42 = vld [vmem:[#allocation5 + $0xe80] sm:$0xf]  ;;  %v9607_v46 = vor.u32 %v12504_v41, %v9606_v40  ;;  %3269 = vmatpush.bf16.msrb.mxu1 %v9351_v45  ;;  %v13368_v40 = vpack.c.bf16 %v98_v29, %v98_v29  ;;  %v8459_v41 = vor.u32 %v12212_v28, %v8456_v31  ;;  %v12204_v45 = vld [vmem:[#allocation5 + $0x344] sm:$0xf] }
  0x86   :  { %v12568_v43 = vld [vmem:[#allocation5 + $0xe9c] sm:$0xf0]  ;;  %v12116_v18 = vld [vmem:[#allocation5 + $0x84] sm:$0xf] }
  0x87   :  { %v9062_v47 = vld [vmem:[#allocation5 + $0x840] sm:$0xf]  ;;  %v9863_v50 = vor.u32 %v12568_v43, %v9862_v42  ;;  %3282 = vmatpush.bf16.msrb.mxu2 %v9607_v46  ;;  %v8715_v42 = vor.u32 %v12276_v32, %v8712_v33  ;;  %v12140_v43 = vld [vmem:[#allocation5 + $0x144] sm:$0xf]  ;;  %v8971_v46 = vor.u32 %v12340_v35, %v8968_v36 }
  0x88   :  { %v12368_v48 = vld [vmem:[#allocation5 + $0x85c] sm:$0xf0]  ;;  %v12244_v23 = vld [vmem:[#allocation5 + $0x484] sm:$0xf] }
  0x89   :  { %v9318_v49 = vld [vmem:[#allocation5 + $0xa40] sm:$0xf]  ;;  %v9063_v56 = vor.u32 %v12368_v48, %v9062_v47  ;;  %3295 = vmatpush.bf16.msrb.mxu3 %v9863_v50  ;;  %v8424_v47 = vld [vmem:[#allocation5 + $0x360] sm:$0xf0] }
  0x8a   :  { %v12432_v51 = vld [vmem:[#allocation5 + $0xa5c] sm:$0xf0]  ;;  %v12268_v48 = vld [vmem:[#allocation5 + $0x544] sm:$0xf] }
  0x8b   :  { %v9574_v52 = vld [vmem:[#allocation5 + $0xc40] sm:$0xf]  ;;  %v9319_v59 = vor.u32 %v12432_v51, %v9318_v49  ;;  %3257 = vmatpush.bf16.msrb.mxu0 %v9063_v56  ;;  %v8680_v49 = vld [vmem:[#allocation5 + $0x560] sm:$0xf0] }
  0x8c   :  { %v12496_v53 = vld [vmem:[#allocation5 + $0xc5c] sm:$0xf0]  ;;  %v12332_v50 = vld [vmem:[#allocation5 + $0x744] sm:$0xf] }
  0x8d   :  { %v9830_v54 = vld [vmem:[#allocation5 + $0xe40] sm:$0xf]  ;;  %v9575_v60 = vor.u32 %v12496_v53, %v9574_v52  ;;  %3270 = vmatpush.bf16.msrb.mxu1 %v9319_v59  ;;  %v8936_v51 = vld [vmem:[#allocation5 + $0x760] sm:$0xf0]  ;;  %v8171_v52 = vor.u32 %v12140_v43, %v8168_v44  ;;  %v8427_v53 = vor.u32 %v12204_v45, %v8424_v47 }
  0x8e   :  { %v12560_v55 = vld [vmem:[#allocation5 + $0xe5c] sm:$0xf0]  ;;  %v8136_v56 = vld [vmem:[#allocation5 + $0x120] sm:$0xf0] }
  0x8f   :  { %v9030_v57 = vld [vmem:[#allocation5 + $0x800] sm:$0xf]  ;;  %v9831_v0 = vor.u32 %v12560_v55, %v9830_v54  ;;  %3283 = vmatpush.bf16.msrb.mxu2 %v9575_v60  ;;  %v8683_v54 = vor.u32 %v12268_v48, %v8680_v49  ;;  %v12132_v55 = vld [vmem:[#allocation5 + $0x104] sm:$0xf] }
  0x90   :  { %v12360_v58 = vld [vmem:[#allocation5 + $0x81c] sm:$0xf0]  ;;  %v8392_v59 = vld [vmem:[#allocation5 + $0x320] sm:$0xf0] }
  0x91   :  { %v9286_v61 = vld [vmem:[#allocation5 + $0xa00] sm:$0xf]  ;;  %v9031_v7 = vor.u32 %v12360_v58, %v9030_v57  ;;  %3296 = vmatpush.bf16.msrb.mxu3 %v9831_v0  ;;  %v12196_v57 = vld [vmem:[#allocation5 + $0x304] sm:$0xf]  ;;  %v8939_v58 = vor.u32 %v12332_v50, %v8936_v51  ;;  %v8139_v0 = vor.u32 %v12132_v55, %v8136_v56 }
  0x92   :  { %v12424_v62 = vld [vmem:[#allocation5 + $0xa1c] sm:$0xf0]  ;;  %v12260_v60 = vld [vmem:[#allocation5 + $0x504] sm:$0xf] }
  0x93   :  { %v9542_v63 = vld [vmem:[#allocation5 + $0xc00] sm:$0xf]  ;;  %v9287_v13 = vor.u32 %v12424_v62, %v9286_v61  ;;  %3258 = vmatpush.bf16.msrb.mxu0 %v9031_v7  ;;  %v8648_v61 = vld [vmem:[#allocation5 + $0x520] sm:$0xf0] }
  0x94   :  { %v12488_v1 = vld [vmem:[#allocation5 + $0xc1c] sm:$0xf0]  ;;  %v12324_v62 = vld [vmem:[#allocation5 + $0x704] sm:$0xf] }
  0x95   :  { %v9798_v2 = vld [vmem:[#allocation5 + $0xe00] sm:$0xf]  ;;  %v9543_v14 = vor.u32 %v12488_v1, %v9542_v63  ;;  %3271 = vmatpush.bf16.msrb.mxu1 %v9287_v13  ;;  %v8904_v63 = vld [vmem:[#allocation5 + $0x720] sm:$0xf0]  ;;  %v8395_v1 = vor.u32 %v12196_v57, %v8392_v59 }
  0x96   :  { %v12552_v3 = vld [vmem:[#allocation5 + $0xe1c] sm:$0xf0]  ;;  %v8907_v6 = vor.u32 %v12324_v62, %v8904_v63  ;;  %v8360_v7 = vld [vmem:[#allocation5 + $0x2e0] sm:$0xf0] }
  0x97   :  { %v9799_v19 = vor.u32 %v12552_v3, %v9798_v2  ;;  %v97_v22 = vld [vmem:[#allocation2 + $0x20] sm:$0xff]  ;;  %3284 = vmatpush.bf16.msrb.mxu2 %v9543_v14  ;;  %3303 = vmatpush.bf16.msra.mxu0 %v8235_v20  ;;  %v8651_v2 = vor.u32 %v12260_v60, %v8648_v61  ;;  %v8363_v16 = vor.u32 %v12188_v5, %v8360_v7 }
  0x98   :  { %v13364_v37 = vpack.c.bf16 %v97_v22, %v97_v22  ;;  %3272 = vmatmul.bf16.vlgmr.msrb.gmra.mxu1 %v13368_v40  ;;  %v12124_v3 = vld [vmem:[#allocation5 + $0xc4] sm:$0xf] }
  0x99   :  { %3297 = vmatpush.bf16.msrb.mxu3 %v9799_v19  ;;  %3316 = vmatpush.bf16.msra.mxu1 %v8491_v24  ;;  %v8872_v13 = vld [vmem:[#allocation5 + $0x6e0] sm:$0xf0]  ;;  %v8107_v14 = vor.u32 %v12124_v3, %v8104_v4 }
  0x9a   :  { %3285 = vmatmul.bf16.vlgmr.msrb.gmra.mxu2 %v13362_v34  ;;  %3259 = vmatmul.bf16.vlgmr.msrb.gmra.mxu0 %v13364_v37  ;;  %v8072_v19 = vld [vmem:[#allocation5 + $0xa0] sm:$0xf0]  ;;  %v8875_v21 = vor.u32 %v12316_v12, %v8872_v13 }
  0x9b   :  { %3329 = vmatpush.bf16.msra.mxu2 %v8747_v26  ;;  %3304 = vmatpush.bf16.msra.mxu0 %v8203_v39  ;;  %v12180_v20 = vld [vmem:[#allocation5 + $0x284] sm:$0xf]  ;;  %v8075_v28 = vor.u32 %v12116_v18, %v8072_v19 }
  0x9c   :  { %3298 = vmatmul.bf16.vlgmr.msrb.gmra.mxu3 %v13366_v38  ;;  %v8328_v22 = vld [vmem:[#allocation5 + $0x2a0] sm:$0xf0] }
  0x9d   :  { %3342 = vmatpush.bf16.msra.mxu3 %v9003_v30  ;;  %3317 = vmatpush.bf16.msra.mxu1 %v8459_v41  ;;  %v8584_v24 = vld [vmem:[#allocation5 + $0x4a0] sm:$0xf0]  ;;  %v8331_v29 = vor.u32 %v12180_v20, %v8328_v22 }
  0x9e   :  { %v12308_v26 = vld [vmem:[#allocation5 + $0x684] sm:$0xf]  ;;  %v8587_v30 = vor.u32 %v12244_v23, %v8584_v24 }
  0x9f   :  { %3330 = vmatpush.bf16.msra.mxu2 %v8715_v42  ;;  %3305 = vmatpush.bf16.msra.mxu0 %v8171_v52  ;;  %v8840_v27 = vld [vmem:[#allocation5 + $0x6a0] sm:$0xf0] }
  0xa0   :  { %v12108_v31 = vld [vmem:[#allocation5 + $0x44] sm:$0xf]  ;;  %v8843_v35 = vor.u32 %v12308_v26, %v8840_v27 }
  0xa1   :  { %3343 = vmatpush.bf16.msra.mxu3 %v8971_v46  ;;  %3318 = vmatpush.bf16.msra.mxu1 %v8427_v53  ;;  %v8040_v32 = vld [vmem:[#allocation5 + $0x60] sm:$0xf0] }
  0xa2   :  { %v12172_v33 = vld [vmem:[#allocation5 + $0x244] sm:$0xf]  ;;  %v8043_v44 = vor.u32 %v12108_v31, %v8040_v32 }
  0xa3   :  { %3331 = vmatpush.bf16.msra.mxu2 %v8683_v54  ;;  %3306 = vmatpush.bf16.msra.mxu0 %v8139_v0  ;;  %v8296_v36 = vld [vmem:[#allocation5 + $0x260] sm:$0xf0] }
  0xa4   :  { %v12236_v39 = vld [vmem:[#allocation5 + $0x444] sm:$0xf]  ;;  %v8299_v47 = vor.u32 %v12172_v33, %v8296_v36 }
  0xa5   :  { %3344 = vmatpush.bf16.msra.mxu3 %v8939_v58  ;;  %3319 = vmatpush.bf16.msra.mxu1 %v8395_v1  ;;  %v8552_v41 = vld [vmem:[#allocation5 + $0x460] sm:$0xf0] }
  0xa6   :  { %v12300_v42 = vld [vmem:[#allocation5 + $0x644] sm:$0xf]  ;;  %v8555_v48 = vor.u32 %v12236_v39, %v8552_v41 }
  0xa7   :  { %3332 = vmatpush.bf16.msra.mxu2 %v8651_v2  ;;  %3307 = vmatpush.bf16.msra.mxu0 %v8107_v14  ;;  %v8808_v43 = vld [vmem:[#allocation5 + $0x660] sm:$0xf0] }
  0xa8   :  { %v12100_v45 = vld [vmem:[#allocation5 + $0x4] sm:$0xf]  ;;  %v8811_v52 = vor.u32 %v12300_v42, %v8808_v43 }
  0xa9   :  { %3345 = vmatpush.bf16.msra.mxu3 %v8907_v6  ;;  %3320 = vmatpush.bf16.msra.mxu1 %v8363_v16  ;;  %v8008_v46 = vld [vmem:[#allocation5 + $0x20] sm:$0xf0] }
  0xaa   :  { %v12164_v49 = vld [vmem:[#allocation5 + $0x204] sm:$0xf]  ;;  %v8011_v59 = vor.u32 %v12100_v45, %v8008_v46 }
  0xab   :  { %3333 = vmatpush.bf16.msra.mxu2 %v8619_v17  ;;  %3308 = vmatpush.bf16.msra.mxu0 %v8075_v28  ;;  %v8264_v50 = vld [vmem:[#allocation5 + $0x220] sm:$0xf0] }
  0xac   :  { %v12228_v51 = vld [vmem:[#allocation5 + $0x404] sm:$0xf]  ;;  %v8267_v63 = vor.u32 %v12164_v49, %v8264_v50 }
  0xad   :  { %3346 = vmatpush.bf16.msra.mxu3 %v8875_v21  ;;  %3321 = vmatpush.bf16.msra.mxu1 %v8331_v29  ;;  %v8520_v53 = vld [vmem:[#allocation5 + $0x420] sm:$0xf0] }
  0xae   :  { %v12292_v54 = vld [vmem:[#allocation5 + $0x604] sm:$0xf]  ;;  %v8523_v0 = vor.u32 %v12228_v51, %v8520_v53 }
  0xaf   :  { %3334 = vmatpush.bf16.msra.mxu2 %v8587_v30  ;;  %v8776_v55 = vld [vmem:[#allocation5 + $0x620] sm:$0xf0]  ;;  %3309 = vmatpush.bf16.msra.mxu0 %v8043_v44 }
  0xb0   :  { %v12412_v56 = vld [vmem:[#allocation5 + $0x9c4] sm:$0xf]  ;;  %v8779_v3 = vor.u32 %v12292_v54, %v8776_v55 }
  0xb1   :  { %3347 = vmatpush.bf16.msra.mxu3 %v8843_v35  ;;  %v9256_v57 = vld [vmem:[#allocation5 + $0x9e0] sm:$0xf0]  ;;  %3322 = vmatpush.bf16.msra.mxu1 %v8299_v47 }
  0xb2   :  { %v12476_v58 = vld [vmem:[#allocation5 + $0xbc4] sm:$0xf]  ;;  %v9259_v4 = vor.u32 %v12412_v56, %v9256_v57 }
  0xb3   :  { %v9512_v60 = vld [vmem:[#allocation5 + $0xbe0] sm:$0xf0]  ;;  %3335 = vmatpush.bf16.msra.mxu2 %v8555_v48  ;;  %3310 = vmatpush.bf16.msra.mxu0 %v8011_v59 }
  0xb4   :  { %v12540_v61 = vld [vmem:[#allocation5 + $0xdc4] sm:$0xf]  ;;  %v9515_v5 = vor.u32 %v12476_v58, %v9512_v60 }
  0xb5   :  { %v9768_v62 = vld [vmem:[#allocation5 + $0xde0] sm:$0xf0]  ;;  %3348 = vmatpush.bf16.msra.mxu3 %v8811_v52  ;;  %3323 = vmatpush.bf16.msra.mxu1 %v8267_v63 }
  0xb6   :  { %v12604_v1 = vld [vmem:[#allocation5 + $0xfc4] sm:$0xf]  ;;  %v9771_v6 = vor.u32 %v12540_v61, %v9768_v62  ;;  %3311 = vmatmul.bf16.vlgmr.msra.gmra.mxu0 %v13352_v9 }
  0xb7   :  { %v10024_v2 = vld [vmem:[#allocation5 + $0xfe0] sm:$0xf0]  ;;  %3336 = vmatpush.bf16.msra.mxu2 %v8523_v0  ;;  %3355 = vmatpush.bf16.msrb.mxu0 %v9259_v4 }
  0xb8   :  { %v12404_v7 = vld [vmem:[#allocation5 + $0x984] sm:$0xf]  ;;  %v10027_v12 = vor.u32 %v12604_v1, %v10024_v2  ;;  %3324 = vmatmul.bf16.vlgmr.msra.gmra.mxu1 %v13359_v25 }
  0xb9   :  { %v9224_v10 = vld [vmem:[#allocation5 + $0x9a0] sm:$0xf0]  ;;  %3349 = vmatpush.bf16.msra.mxu3 %v8779_v3  ;;  %3368 = vmatpush.bf16.msrb.mxu1 %v9515_v5 }
  0xba   :  { %v12468_v11 = vld [vmem:[#allocation5 + $0xb84] sm:$0xf]  ;;  %v9227_v19 = vor.u32 %v12404_v7, %v9224_v10  ;;  %3337 = vmatmul.bf16.vlgmr.msra.gmra.mxu2 %v13350_v8 }
  0xbb   :  { %v9480_v13 = vld [vmem:[#allocation5 + $0xba0] sm:$0xf0]  ;;  %3381 = vmatpush.bf16.msrb.mxu2 %v9771_v6 }
  0xbc   :  { %v12532_v14 = vld [vmem:[#allocation5 + $0xd84] sm:$0xf]  ;;  %v9483_v20 = vor.u32 %v12468_v11, %v9480_v13  ;;  %3350 = vmatmul.bf16.vlgmr.msra.gmra.mxu3 %v13354_v15  ;;  %3356 = vmatpush.bf16.msrb.mxu0 %v9227_v19 }
  0xbd   :  { %v9736_v16 = vld [vmem:[#allocation5 + $0xda0] sm:$0xf0]  ;;  %3394 = vmatpush.bf16.msrb.mxu3 %v10027_v12 }
  0xbe   :  { %v12596_v17 = vld [vmem:[#allocation5 + $0xf84] sm:$0xf]  ;;  %v9739_v21 = vor.u32 %v12532_v14, %v9736_v16  ;;  %3369 = vmatpush.bf16.msrb.mxu1 %v9483_v20 }
  0xbf   :  { %v9992_v18 = vld [vmem:[#allocation5 + $0xfa0] sm:$0xf0] }
  0xc0   :  { %v12396_v22 = vld [vmem:[#allocation5 + $0x944] sm:$0xf]  ;;  %v9995_v26 = vor.u32 %v12596_v17, %v9992_v18  ;;  %3382 = vmatpush.bf16.msrb.mxu2 %v9739_v21 }
  0xc1   :  { %v9192_v23 = vld [vmem:[#allocation5 + $0x960] sm:$0xf0] }
  0xc2   :  { %v12460_v24 = vld [vmem:[#allocation5 + $0xb44] sm:$0xf]  ;;  %v9195_v32 = vor.u32 %v12396_v22, %v9192_v23  ;;  %3395 = vmatpush.bf16.msrb.mxu3 %v9995_v26 }
  0xc3   :  { %v9448_v27 = vld [vmem:[#allocation5 + $0xb60] sm:$0xf0] }
  0xc4   :  { %v12524_v28 = vld [vmem:[#allocation5 + $0xd44] sm:$0xf]  ;;  %v9451_v33 = vor.u32 %v12460_v24, %v9448_v27  ;;  %3357 = vmatpush.bf16.msrb.mxu0 %v9195_v32 }
  0xc5   :  { %v9704_v29 = vld [vmem:[#allocation5 + $0xd60] sm:$0xf0] }
  0xc6   :  { %v12588_v30 = vld [vmem:[#allocation5 + $0xf44] sm:$0xf]  ;;  %v9707_v35 = vor.u32 %v12524_v28, %v9704_v29  ;;  %3370 = vmatpush.bf16.msrb.mxu1 %v9451_v33 }
  0xc7   :  { %v9960_v31 = vld [vmem:[#allocation5 + $0xf60] sm:$0xf0] }
  0xc8   :  { %v12388_v36 = vld [vmem:[#allocation5 + $0x904] sm:$0xf]  ;;  %v9963_v42 = vor.u32 %v12588_v30, %v9960_v31  ;;  %3383 = vmatpush.bf16.msrb.mxu2 %v9707_v35 }
  0xc9   :  { %v9160_v39 = vld [vmem:[#allocation5 + $0x920] sm:$0xf0] }
  0xca   :  { %v12452_v41 = vld [vmem:[#allocation5 + $0xb04] sm:$0xf]  ;;  %v9163_v48 = vor.u32 %v12388_v36, %v9160_v39  ;;  %3396 = vmatpush.bf16.msrb.mxu3 %v9963_v42  ;;  %v8238_v39 = vld [vmem:[#allocation5 + $0x1c8] sm:$0xf] }
  0xcb   :  { %v9416_v43 = vld [vmem:[#allocation5 + $0xb20] sm:$0xf0]  ;;  %v8494_v42 = vld [vmem:[#allocation5 + $0x3c8] sm:$0xf] }
  0xcc   :  { %v12516_v44 = vld [vmem:[#allocation5 + $0xd04] sm:$0xf]  ;;  %v9419_v49 = vor.u32 %v12452_v41, %v9416_v43  ;;  %3358 = vmatpush.bf16.msrb.mxu0 %v9163_v48  ;;  %v12161_v41 = vld [vmem:[#allocation5 + $0x1e4] sm:$0xf0] }
  0xcd   :  { %v9672_v45 = vld [vmem:[#allocation5 + $0xd20] sm:$0xf0] }
  0xce   :  { %v12580_v46 = vld [vmem:[#allocation5 + $0xf04] sm:$0xf]  ;;  %v9675_v50 = vor.u32 %v12516_v44, %v9672_v45  ;;  %3371 = vmatpush.bf16.msrb.mxu1 %v9419_v49  ;;  %v12225_v44 = vld [vmem:[#allocation5 + $0x3e4] sm:$0xf0] }
  0xcf   :  { %v9928_v47 = vld [vmem:[#allocation5 + $0xf20] sm:$0xf0]  ;;  %v8750_v45 = vld [vmem:[#allocation5 + $0x5c8] sm:$0xf] }
  0xd0   :  { %v12380_v51 = vld [vmem:[#allocation5 + $0x8c4] sm:$0xf]  ;;  %v9931_v54 = vor.u32 %v12580_v46, %v9928_v47  ;;  %3384 = vmatpush.bf16.msrb.mxu2 %v9675_v50  ;;  %v12289_v46 = vld [vmem:[#allocation5 + $0x5e4] sm:$0xf0] }
  0xd1   :  { %v9128_v52 = vld [vmem:[#allocation5 + $0x8e0] sm:$0xf0]  ;;  %v9006_v49 = vld [vmem:[#allocation5 + $0x7c8] sm:$0xf] }
  0xd2   :  { %v12444_v53 = vld [vmem:[#allocation5 + $0xac4] sm:$0xf]  ;;  %v9131_v60 = vor.u32 %v12380_v51, %v9128_v52  ;;  %3397 = vmatpush.bf16.msrb.mxu3 %v9931_v54  ;;  %v12353_v50 = vld [vmem:[#allocation5 + $0x7e4] sm:$0xf0]  ;;  %v8239_v52 = vor.u32 %v12161_v41, %v8238_v39  ;;  %v8751_v54 = vor.u32 %v12289_v46, %v8750_v45 }
  0xd3   :  { %v9384_v55 = vld [vmem:[#allocation5 + $0xae0] sm:$0xf0]  ;;  %v8622_v39 = vld [vmem:[#allocation5 + $0x4c8] sm:$0xf] }
  0xd4   :  { %v12508_v56 = vld [vmem:[#allocation5 + $0xcc4] sm:$0xf]  ;;  %v9387_v61 = vor.u32 %v12444_v53, %v9384_v55  ;;  %3359 = vmatpush.bf16.msrb.mxu0 %v9131_v60  ;;  %v8495_v53 = vor.u32 %v12225_v44, %v8494_v42  ;;  %v8206_v55 = vld [vmem:[#allocation5 + $0x188] sm:$0xf] }
  0xd5   :  { %v9640_v57 = vld [vmem:[#allocation5 + $0xce0] sm:$0xf0]  ;;  %v8718_v60 = vld [vmem:[#allocation5 + $0x588] sm:$0xf] }
  0xd6   :  { %v12572_v58 = vld [vmem:[#allocation5 + $0xec4] sm:$0xf]  ;;  %v9643_v62 = vor.u32 %v12508_v56, %v9640_v57  ;;  %3372 = vmatpush.bf16.msrb.mxu1 %v9387_v61  ;;  %v12153_v56 = vld [vmem:[#allocation5 + $0x1a4] sm:$0xf0] }
  0xd7   :  { %v9896_v59 = vld [vmem:[#allocation5 + $0xee0] sm:$0xf0]  ;;  %v8462_v57 = vld [vmem:[#allocation5 + $0x388] sm:$0xf] }
  0xd8   :  { %v12372_v63 = vld [vmem:[#allocation5 + $0x884] sm:$0xf]  ;;  %v9899_v2 = vor.u32 %v12572_v58, %v9896_v59  ;;  %3385 = vmatpush.bf16.msrb.mxu2 %v9643_v62  ;;  %v9007_v58 = vor.u32 %v12353_v50, %v9006_v49  ;;  %v12217_v59 = vld [vmem:[#allocation5 + $0x3a4] sm:$0xf0] }
  0xd9   :  { %v9096_v0 = vld [vmem:[#allocation5 + $0x8a0] sm:$0xf0]  ;;  %v12281_v61 = vld [vmem:[#allocation5 + $0x5a4] sm:$0xf0] }
  0xda   :  { %v12436_v1 = vld [vmem:[#allocation5 + $0xa84] sm:$0xf]  ;;  %v9099_v10 = vor.u32 %v12372_v63, %v9096_v0  ;;  %3398 = vmatpush.bf16.msrb.mxu3 %v9899_v2  ;;  %v8974_v62 = vld [vmem:[#allocation5 + $0x788] sm:$0xf]  ;;  %v8207_v0 = vor.u32 %v12153_v56, %v8206_v55  ;;  %v8719_v2 = vor.u32 %v12281_v61, %v8718_v60 }
  0xdb   :  { %v9352_v3 = vld [vmem:[#allocation5 + $0xaa0] sm:$0xf0]  ;;  %v12345_v63 = vld [vmem:[#allocation5 + $0x7a4] sm:$0xf0] }
  0xdc   :  { %v12500_v4 = vld [vmem:[#allocation5 + $0xc84] sm:$0xf]  ;;  %v9355_v11 = vor.u32 %v12436_v1, %v9352_v3  ;;  %3360 = vmatpush.bf16.msrb.mxu0 %v9099_v10  ;;  %v8463_v1 = vor.u32 %v12217_v59, %v8462_v57  ;;  %v8174_v3 = vld [vmem:[#allocation5 + $0x148] sm:$0xf] }
  0xdd   :  { %v9608_v5 = vld [vmem:[#allocation5 + $0xca0] sm:$0xf0]  ;;  %v8686_v10 = vld [vmem:[#allocation5 + $0x548] sm:$0xf] }
  0xde   :  { %v12564_v6 = vld [vmem:[#allocation5 + $0xe84] sm:$0xf]  ;;  %v9611_v12 = vor.u32 %v12500_v4, %v9608_v5  ;;  %3373 = vmatpush.bf16.msrb.mxu1 %v9355_v11  ;;  %v12145_v4 = vld [vmem:[#allocation5 + $0x164] sm:$0xf0] }
  0xdf   :  { %v9864_v7 = vld [vmem:[#allocation5 + $0xea0] sm:$0xf0]  ;;  %v8430_v5 = vld [vmem:[#allocation5 + $0x348] sm:$0xf] }
  0xe0   :  { %v12364_v13 = vld [vmem:[#allocation5 + $0x844] sm:$0xf]  ;;  %v9867_v17 = vor.u32 %v12564_v6, %v9864_v7  ;;  %3386 = vmatpush.bf16.msrb.mxu2 %v9611_v12  ;;  %v8975_v6 = vor.u32 %v12345_v63, %v8974_v62  ;;  %v12209_v7 = vld [vmem:[#allocation5 + $0x364] sm:$0xf0] }
  0xe1   :  { %v9064_v14 = vld [vmem:[#allocation5 + $0x860] sm:$0xf0]  ;;  %v12273_v11 = vld [vmem:[#allocation5 + $0x564] sm:$0xf0] }
  0xe2   :  { %v12428_v16 = vld [vmem:[#allocation5 + $0xa44] sm:$0xf]  ;;  %v9067_v23 = vor.u32 %v12364_v13, %v9064_v14  ;;  %3399 = vmatpush.bf16.msrb.mxu3 %v9867_v17  ;;  %v8942_v12 = vld [vmem:[#allocation5 + $0x748] sm:$0xf]  ;;  %v8175_v14 = vor.u32 %v12145_v4, %v8174_v3  ;;  %v8687_v17 = vor.u32 %v12273_v11, %v8686_v10 }
  0xe3   :  { %v9320_v18 = vld [vmem:[#allocation5 + $0xa60] sm:$0xf0]  ;;  %v12337_v13 = vld [vmem:[#allocation5 + $0x764] sm:$0xf0] }
  0xe4   :  { %v12492_v19 = vld [vmem:[#allocation5 + $0xc44] sm:$0xf]  ;;  %v9323_v27 = vor.u32 %v12428_v16, %v9320_v18  ;;  %3361 = vmatpush.bf16.msrb.mxu0 %v9067_v23  ;;  %v8431_v16 = vor.u32 %v12209_v7, %v8430_v5  ;;  %v8142_v18 = vld [vmem:[#allocation5 + $0x108] sm:$0xf] }
  0xe5   :  { %v9576_v20 = vld [vmem:[#allocation5 + $0xc60] sm:$0xf0]  ;;  %v8654_v23 = vld [vmem:[#allocation5 + $0x508] sm:$0xf] }
  0xe6   :  { %v12556_v21 = vld [vmem:[#allocation5 + $0xe44] sm:$0xf]  ;;  %v9579_v28 = vor.u32 %v12492_v19, %v9576_v20  ;;  %3374 = vmatpush.bf16.msrb.mxu1 %v9323_v27  ;;  %v12137_v19 = vld [vmem:[#allocation5 + $0x124] sm:$0xf0] }
  0xe7   :  { %v9832_v22 = vld [vmem:[#allocation5 + $0xe60] sm:$0xf0]  ;;  %v8398_v20 = vld [vmem:[#allocation5 + $0x308] sm:$0xf] }
  0xe8   :  { %v12356_v24 = vld [vmem:[#allocation5 + $0x804] sm:$0xf]  ;;  %v9835_v32 = vor.u32 %v12556_v21, %v9832_v22  ;;  %3387 = vmatpush.bf16.msrb.mxu2 %v9579_v28  ;;  %v8943_v21 = vor.u32 %v12337_v13, %v8942_v12  ;;  %v12201_v22 = vld [vmem:[#allocation5 + $0x324] sm:$0xf0]  ;;  %v8143_v28 = vor.u32 %v12137_v19, %v8142_v18 }
  0xe9   :  { %v9032_v26 = vld [vmem:[#allocation5 + $0x820] sm:$0xf0]  ;;  %v12329_v27 = vld [vmem:[#allocation5 + $0x724] sm:$0xf0] }
  0xea   :  { %v12420_v29 = vld [vmem:[#allocation5 + $0xa04] sm:$0xf]  ;;  %v9035_v43 = vor.u32 %v12356_v24, %v9032_v26  ;;  %3400 = vmatpush.bf16.msrb.mxu3 %v9835_v32  ;;  %v12265_v24 = vld [vmem:[#allocation5 + $0x524] sm:$0xf0] }
  0xeb   :  { %v9288_v30 = vld [vmem:[#allocation5 + $0xa20] sm:$0xf0]  ;;  %v8910_v26 = vld [vmem:[#allocation5 + $0x708] sm:$0xf] }
  0xec   :  { %v12484_v31 = vld [vmem:[#allocation5 + $0xc04] sm:$0xf]  ;;  %v9291_v47 = vor.u32 %v12420_v29, %v9288_v30  ;;  %3362 = vmatpush.bf16.msrb.mxu0 %v9035_v43  ;;  %v8399_v29 = vor.u32 %v12201_v22, %v8398_v20  ;;  %v8655_v30 = vor.u32 %v12265_v24, %v8654_v23  ;;  %v12129_v32 = vld [vmem:[#allocation5 + $0xe4] sm:$0xf0] }
  0xed   :  { %v9544_v33 = vld [vmem:[#allocation5 + $0xc20] sm:$0xf0]  ;;  %v12257_v41 = vld [vmem:[#allocation5 + $0x4e4] sm:$0xf0] }
  0xee   :  { %v12548_v35 = vld [vmem:[#allocation5 + $0xe04] sm:$0xf]  ;;  %v9547_v48 = vor.u32 %v12484_v31, %v9544_v33  ;;  %3375 = vmatpush.bf16.msrb.mxu1 %v9291_v47  ;;  %v8110_v31 = vld [vmem:[#allocation5 + $0xc8] sm:$0xf]  ;;  %v8623_v46 = vor.u32 %v12257_v41, %v8622_v39 }
  0xef   :  { %v9800_v36 = vld [vmem:[#allocation5 + $0xe20] sm:$0xf0]  ;;  %3363 = vmatmul.bf16.vlgmr.msrb.gmra.mxu0 %v13364_v37  ;;  %v8366_v33 = vld [vmem:[#allocation5 + $0x2c8] sm:$0xf]  ;;  %v8111_v44 = vor.u32 %v12129_v32, %v8110_v31 }
  0xf0   :  { %v9803_v51 = vor.u32 %v12548_v35, %v9800_v36  ;;  %3388 = vmatpush.bf16.msrb.mxu2 %v9547_v48  ;;  %3407 = vmatpush.bf16.msra.mxu0 %v8239_v52  ;;  %v8911_v35 = vor.u32 %v12329_v27, %v8910_v26  ;;  %v12193_v36 = vld [vmem:[#allocation5 + $0x2e4] sm:$0xf0] }
  0xf1   :  { %3376 = vmatmul.bf16.vlgmr.msrb.gmra.mxu1 %v13368_v40  ;;  %v8878_v42 = vld [vmem:[#allocation5 + $0x6c8] sm:$0xf]  ;;  %v8367_v45 = vor.u32 %v12193_v36, %v8366_v33 }
  0xf2   :  { %3401 = vmatpush.bf16.msrb.mxu3 %v9803_v51  ;;  %3420 = vmatpush.bf16.msra.mxu1 %v8495_v53  ;;  %v12321_v43 = vld [vmem:[#allocation5 + $0x6e4] sm:$0xf0] }
  0xf3   :  { %3389 = vmatmul.bf16.vlgmr.msrb.gmra.mxu2 %v13362_v34  ;;  %v8078_v47 = vld [vmem:[#allocation5 + $0x88] sm:$0xf]  ;;  %v8879_v50 = vor.u32 %v12321_v43, %v8878_v42 }
  0xf4   :  { %3433 = vmatpush.bf16.msra.mxu2 %v8751_v54  ;;  %3408 = vmatpush.bf16.msra.mxu0 %v8207_v0  ;;  %v12121_v48 = vld [vmem:[#allocation5 + $0xa4] sm:$0xf0] }
  0xf5   :  { %3402 = vmatmul.bf16.vlgmr.msrb.gmra.mxu3 %v13366_v38  ;;  %v8334_v49 = vld [vmem:[#allocation5 + $0x288] sm:$0xf]  ;;  %v8079_v56 = vor.u32 %v12121_v48, %v8078_v47 }
  0xf6   :  { %3446 = vmatpush.bf16.msra.mxu3 %v9007_v58  ;;  %3421 = vmatpush.bf16.msra.mxu1 %v8463_v1  ;;  %v12185_v51 = vld [vmem:[#allocation5 + $0x2a4] sm:$0xf0] }
  0xf7   :  { %v8590_v52 = vld [vmem:[#allocation5 + $0x488] sm:$0xf]  ;;  %v8335_v57 = vor.u32 %v12185_v51, %v8334_v49 }
  0xf8   :  { %3434 = vmatpush.bf16.msra.mxu2 %v8719_v2  ;;  %3409 = vmatpush.bf16.msra.mxu0 %v8175_v14  ;;  %v12249_v53 = vld [vmem:[#allocation5 + $0x4a4] sm:$0xf0] }
  0xf9   :  { %v8846_v54 = vld [vmem:[#allocation5 + $0x688] sm:$0xf]  ;;  %v8591_v58 = vor.u32 %v12249_v53, %v8590_v52 }
  0xfa   :  { %3447 = vmatpush.bf16.msra.mxu3 %v8975_v6  ;;  %3422 = vmatpush.bf16.msra.mxu1 %v8431_v16  ;;  %v12313_v55 = vld [vmem:[#allocation5 + $0x6a4] sm:$0xf0] }
  0xfb   :  { %v8046_v59 = vld [vmem:[#allocation5 + $0x48] sm:$0xf]  ;;  %v8847_v62 = vor.u32 %v12313_v55, %v8846_v54 }
  0xfc   :  { %3435 = vmatpush.bf16.msra.mxu2 %v8687_v17  ;;  %3410 = vmatpush.bf16.msra.mxu0 %v8143_v28  ;;  %v12113_v60 = vld [vmem:[#allocation5 + $0x64] sm:$0xf0] }
  0xfd   :  { %v8302_v61 = vld [vmem:[#allocation5 + $0x248] sm:$0xf]  ;;  %v8047_v4 = vor.u32 %v12113_v60, %v8046_v59 }
  0xfe   :  { %3448 = vmatpush.bf16.msra.mxu3 %v8943_v21  ;;  %3423 = vmatpush.bf16.msra.mxu1 %v8399_v29  ;;  %v12177_v63 = vld [vmem:[#allocation5 + $0x264] sm:$0xf0] }
  0xff   :  { %v8558_v0 = vld [vmem:[#allocation5 + $0x448] sm:$0xf]  ;;  %v8303_v7 = vor.u32 %v12177_v63, %v8302_v61 }
 0x100   :  { %3436 = vmatpush.bf16.msra.mxu2 %v8655_v30  ;;  %3411 = vmatpush.bf16.msra.mxu0 %v8111_v44  ;;  %v12241_v1 = vld [vmem:[#allocation5 + $0x464] sm:$0xf0] }
 0x101   :  { %v8814_v2 = vld [vmem:[#allocation5 + $0x648] sm:$0xf]  ;;  %v8559_v10 = vor.u32 %v12241_v1, %v8558_v0 }
 0x102   :  { %3449 = vmatpush.bf16.msra.mxu3 %v8911_v35  ;;  %3424 = vmatpush.bf16.msra.mxu1 %v8367_v45  ;;  %v12305_v3 = vld [vmem:[#allocation5 + $0x664] sm:$0xf0] }
 0x103   :  { %v8014_v5 = vld [vmem:[#allocation5 + $0x8] sm:$0xf]  ;;  %v8815_v14 = vor.u32 %v12305_v3, %v8814_v2 }
 0x104   :  { %3437 = vmatpush.bf16.msra.mxu2 %v8623_v46  ;;  %3412 = vmatpush.bf16.msra.mxu0 %v8079_v56  ;;  %v12105_v6 = vld [vmem:[#allocation5 + $0x24] sm:$0xf0] }
 0x105   :  { %v8270_v11 = vld [vmem:[#allocation5 + $0x208] sm:$0xf]  ;;  %v8015_v22 = vor.u32 %v12105_v6, %v8014_v5  ;;  %v13386_v6 = vld [vmem:[#allocation7] sm:$0xff] }
 0x106   :  { %3450 = vmatpush.bf16.msra.mxu3 %v8879_v50  ;;  %3425 = vmatpush.bf16.msra.mxu1 %v8335_v57  ;;  %v12169_v12 = vld [vmem:[#allocation5 + $0x224] sm:$0xf0] }
 0x107   :  { %v8526_v13 = vld [vmem:[#allocation5 + $0x408] sm:$0xf]  ;;  %v8271_v27 = vor.u32 %v12169_v12, %v8270_v11 }
 0x108   :  { %3438 = vmatpush.bf16.msra.mxu2 %v8591_v58  ;;  %v12233_v16 = vld [vmem:[#allocation5 + $0x424] sm:$0xf0]  ;;  %3413 = vmatpush.bf16.msra.mxu0 %v8047_v4 }
 0x109   :  { %v8782_v17 = vld [vmem:[#allocation5 + $0x608] sm:$0xf]  ;;  %v8527_v28 = vor.u32 %v12233_v16, %v8526_v13 }
 0x10a   :  { %3451 = vmatpush.bf16.msra.mxu3 %v8847_v62  ;;  %v12297_v18 = vld [vmem:[#allocation5 + $0x624] sm:$0xf0]  ;;  %3426 = vmatpush.bf16.msra.mxu1 %v8303_v7 }
 0x10b   :  { %v9262_v19 = vld [vmem:[#allocation5 + $0x9c8] sm:$0xf]  ;;  %v8783_v31 = vor.u32 %v12297_v18, %v8782_v17  ;;  %v623_v18 = vperm.slane %v13386_v6, 0 }
 0x10c   :  { %v12417_v20 = vld [vmem:[#allocation5 + $0x9e4] sm:$0xf0]  ;;  %3439 = vmatpush.bf16.msra.mxu2 %v8559_v10  ;;  %3414 = vmatpush.bf16.msra.mxu0 %v8015_v22 }
 0x10d   :  { %v9518_v21 = vld [vmem:[#allocation5 + $0xbc8] sm:$0xf]  ;;  %v9263_v32 = vor.u32 %v12417_v20, %v9262_v19 }
 0x10e   :  { %v12481_v23 = vld [vmem:[#allocation5 + $0xbe4] sm:$0xf0]  ;;  %3452 = vmatpush.bf16.msra.mxu3 %v8815_v14  ;;  %3427 = vmatpush.bf16.msra.mxu1 %v8271_v27  ;;  %v3208_v27 = vpop.f32.mrf.mxu0 }
 0x10f   :  { %v9774_v24 = vld [vmem:[#allocation5 + $0xdc8] sm:$0xf]  ;;  %v9519_v33 = vor.u32 %v12481_v23, %v9518_v21  ;;  %3415 = vmatmul.bf16.vlgmr.msra.gmra.mxu0 %v13352_v9 }
 0x110   :  { %v12545_v26 = vld [vmem:[#allocation5 + $0xde4] sm:$0xf0]  ;;  %3440 = vmatpush.bf16.msra.mxu2 %v8527_v28  ;;  %3459 = vmatpush.bf16.msrb.mxu0 %v9263_v32 }
 0x111   :  { %v10030_v29 = vld [vmem:[#allocation5 + $0xfc8] sm:$0xf]  ;;  %v9775_v35 = vor.u32 %v12545_v26, %v9774_v24  ;;  %3428 = vmatmul.bf16.vlgmr.msra.gmra.mxu1 %v13359_v25 }
 0x112   :  { %v12609_v30 = vld [vmem:[#allocation5 + $0xfe4] sm:$0xf0]  ;;  %3453 = vmatpush.bf16.msra.mxu3 %v8783_v31  ;;  %3472 = vmatpush.bf16.msrb.mxu1 %v9519_v33  ;;  %v3209_v33 = vadd.f32 %v3208_v27, %v623_v18  ;;  %v9008_v27 = vld [vmem:[#allocation5 + $0x7e8] sm:$0xf0] }
 0x113   :  { %v9230_v36 = vld [vmem:[#allocation5 + $0x988] sm:$0xf]  ;;  %v10031_v42 = vor.u32 %v12609_v30, %v10030_v29  ;;  %3441 = vmatmul.bf16.vlgmr.msra.gmra.mxu2 %v13350_v8 }
 0x114   :  { %v12409_v39 = vld [vmem:[#allocation5 + $0x9a4] sm:$0xf0]  ;;  %3485 = vmatpush.bf16.msrb.mxu2 %v9775_v35 }
 0x115   :  { %v9486_v41 = vld [vmem:[#allocation5 + $0xb88] sm:$0xf]  ;;  %v9231_v48 = vor.u32 %v12409_v39, %v9230_v36  ;;  %3454 = vmatmul.bf16.vlgmr.msra.gmra.mxu3 %v13354_v15 }
 0x116   :  { %v12473_v43 = vld [vmem:[#allocation5 + $0xba4] sm:$0xf0]  ;;  %3498 = vmatpush.bf16.msrb.mxu3 %v10031_v42 }
 0x117   :  { %v9742_v44 = vld [vmem:[#allocation5 + $0xd88] sm:$0xf]  ;;  %v9487_v49 = vor.u32 %v12473_v43, %v9486_v41  ;;  %3460 = vmatpush.bf16.msrb.mxu0 %v9231_v48 }
 0x118   :  { %v12537_v45 = vld [vmem:[#allocation5 + $0xda4] sm:$0xf0] }
 0x119   :  { %v9998_v46 = vld [vmem:[#allocation5 + $0xf88] sm:$0xf]  ;;  %v9743_v50 = vor.u32 %v12537_v45, %v9742_v44  ;;  %3473 = vmatpush.bf16.msrb.mxu1 %v9487_v49  ;;  %v3221_v45 = vpop.f32.mrf.mxu1 }
 0x11a   :  { %v12601_v47 = vld [vmem:[#allocation5 + $0xfa4] sm:$0xf0] }
 0x11b   :  { %v9198_v51 = vld [vmem:[#allocation5 + $0x948] sm:$0xf]  ;;  %v9999_v54 = vor.u32 %v12601_v47, %v9998_v46  ;;  %3486 = vmatpush.bf16.msrb.mxu2 %v9743_v50 }
 0x11c   :  { %v12401_v52 = vld [vmem:[#allocation5 + $0x964] sm:$0xf0] }
 0x11d   :  { %v9454_v53 = vld [vmem:[#allocation5 + $0xb48] sm:$0xf]  ;;  %v9199_v60 = vor.u32 %v12401_v52, %v9198_v51  ;;  %3499 = vmatpush.bf16.msrb.mxu3 %v9999_v54  ;;  %v3222_v51 = vadd.f32 %v3221_v45, %v3209_v33  ;;  %v12149_v33 = vld [vmem:[#allocation5 + $0x18c] sm:$0xf] }
 0x11e   :  { %v12465_v55 = vld [vmem:[#allocation5 + $0xb64] sm:$0xf0]  ;;  %v12341_v45 = vld [vmem:[#allocation5 + $0x78c] sm:$0xf] }
 0x11f   :  { %v9710_v56 = vld [vmem:[#allocation5 + $0xd48] sm:$0xf]  ;;  %v9455_v62 = vor.u32 %v12465_v55, %v9454_v53  ;;  %3461 = vmatpush.bf16.msrb.mxu0 %v9199_v60  ;;  %v3247_v60 = vpop.f32.mrf.mxu3 }
 0x120   :  { %v12529_v57 = vld [vmem:[#allocation5 + $0xd64] sm:$0xf0] }
 0x121   :  { %v9966_v58 = vld [vmem:[#allocation5 + $0xf48] sm:$0xf]  ;;  %v9711_v63 = vor.u32 %v12529_v57, %v9710_v56  ;;  %3474 = vmatpush.bf16.msrb.mxu1 %v9455_v62  ;;  %v3234_v56 = vpop.f32.mrf.mxu2 }
 0x122   :  { %v12593_v59 = vld [vmem:[#allocation5 + $0xf64] sm:$0xf0] }
 0x123   :  { %v9166_v61 = vld [vmem:[#allocation5 + $0x908] sm:$0xf]  ;;  %v9967_v3 = vor.u32 %v12593_v59, %v9966_v58  ;;  %3487 = vmatpush.bf16.msrb.mxu2 %v9711_v63  ;;  %v3235_v59 = vadd.f32 %v3234_v56, %v3222_v51  ;;  %v8176_v51 = vld [vmem:[#allocation5 + $0x168] sm:$0xf0] }
 0x124   :  { %v12393_v0 = vld [vmem:[#allocation5 + $0x924] sm:$0xf0]  ;;  %v8688_v56 = vld [vmem:[#allocation5 + $0x568] sm:$0xf0] }
 0x125   :  { %v9422_v1 = vld [vmem:[#allocation5 + $0xb08] sm:$0xf]  ;;  %v9167_v11 = vor.u32 %v12393_v0, %v9166_v61  ;;  %3500 = vmatpush.bf16.msrb.mxu3 %v9967_v3  ;;  %v3210_v0 = vpop.f32.mrf.mxu0 }
 0x126   :  { %v12457_v2 = vld [vmem:[#allocation5 + $0xb24] sm:$0xf0]  ;;  %v12197_v0 = vld [vmem:[#allocation5 + $0x30c] sm:$0xf] }
 0x127   :  { %v9678_v4 = vld [vmem:[#allocation5 + $0xd08] sm:$0xf]  ;;  %v9423_v13 = vor.u32 %v12457_v2, %v9422_v1  ;;  %3462 = vmatpush.bf16.msrb.mxu0 %v9167_v11 }
 0x128   :  { %v12521_v5 = vld [vmem:[#allocation5 + $0xd24] sm:$0xf0] }
 0x129   :  { %v9934_v7 = vld [vmem:[#allocation5 + $0xf08] sm:$0xf]  ;;  %v9679_v14 = vor.u32 %v12521_v5, %v9678_v4  ;;  %3475 = vmatpush.bf16.msrb.mxu1 %v9423_v13 }
 0x12a   :  { %v12585_v10 = vld [vmem:[#allocation5 + $0xf24] sm:$0xf0] }
 0x12b   :  { %v9134_v12 = vld [vmem:[#allocation5 + $0x8c8] sm:$0xf]  ;;  %v9935_v19 = vor.u32 %v12585_v10, %v9934_v7  ;;  %3488 = vmatpush.bf16.msrb.mxu2 %v9679_v14  ;;  %v13389_v7 = vadd.f32 %v3247_v60, %v3235_v59  ;;  %v12157_v14 = vld [vmem:[#allocation5 + $0x1cc] sm:$0xf] }
 0x12c   :  { %v12385_v16 = vld [vmem:[#allocation5 + $0x8e4] sm:$0xf0] }
 0x12d   :  { %v9390_v17 = vld [vmem:[#allocation5 + $0xac8] sm:$0xf]  ;;  %v9135_v26 = vor.u32 %v12385_v16, %v9134_v12  ;;  %3501 = vmatpush.bf16.msrb.mxu3 %v9935_v19  ;;  %v8240_v16 = vld [vmem:[#allocation5 + $0x1e8] sm:$0xf0] }
 0x12e   :  { %v12449_v20 = vld [vmem:[#allocation5 + $0xae4] sm:$0xf0]  ;;  %v8496_v19 = vld [vmem:[#allocation5 + $0x3e8] sm:$0xf0] }
 0x12f   :  { %v9646_v21 = vld [vmem:[#allocation5 + $0xcc8] sm:$0xf]  ;;  %v9391_v28 = vor.u32 %v12449_v20, %v9390_v17  ;;  %3463 = vmatpush.bf16.msrb.mxu0 %v9135_v26  ;;  %v12221_v17 = vld [vmem:[#allocation5 + $0x3cc] sm:$0xf] }
 0x130   :  { %v12513_v22 = vld [vmem:[#allocation5 + $0xce4] sm:$0xf0]  ;;  %v12285_v20 = vld [vmem:[#allocation5 + $0x5cc] sm:$0xf] }
 0x131   :  { %v9902_v23 = vld [vmem:[#allocation5 + $0xec8] sm:$0xf]  ;;  %v9647_v29 = vor.u32 %v12513_v22, %v9646_v21  ;;  %3476 = vmatpush.bf16.msrb.mxu1 %v9391_v28  ;;  %v8752_v21 = vld [vmem:[#allocation5 + $0x5e8] sm:$0xf0]  ;;  %v3223_v22 = vpop.f32.mrf.mxu1 }
 0x132   :  { %v12577_v24 = vld [vmem:[#allocation5 + $0xee4] sm:$0xf0]  ;;  %v12349_v26 = vld [vmem:[#allocation5 + $0x7cc] sm:$0xf] }
 0x133   :  { %v9102_v30 = vld [vmem:[#allocation5 + $0x888] sm:$0xf]  ;;  %v9903_v35 = vor.u32 %v12577_v24, %v9902_v23  ;;  %3489 = vmatpush.bf16.msrb.mxu2 %v9647_v29  ;;  %v8243_v29 = vor.u32 %v12157_v14, %v8240_v16  ;;  %v12125_v16 = vld [vmem:[#allocation5 + $0xcc] sm:$0xf] }
 0x134   :  { %v12377_v31 = vld [vmem:[#allocation5 + $0x8a4] sm:$0xf0]  ;;  %v8368_v22 = vld [vmem:[#allocation5 + $0x2e8] sm:$0xf0] }
 0x135   :  { %v9358_v32 = vld [vmem:[#allocation5 + $0xa88] sm:$0xf]  ;;  %v9103_v44 = vor.u32 %v12377_v31, %v9102_v30  ;;  %3502 = vmatpush.bf16.msrb.mxu3 %v9903_v35  ;;  %v3236_v30 = vpop.f32.mrf.mxu2  ;;  %v8499_v31 = vor.u32 %v12221_v17, %v8496_v19  ;;  %v8208_v35 = vld [vmem:[#allocation5 + $0x1a8] sm:$0xf0] }
 0x136   :  { %v12441_v36 = vld [vmem:[#allocation5 + $0xaa4] sm:$0xf0]  ;;  %v8112_v17 = vld [vmem:[#allocation5 + $0xe8] sm:$0xf0] }
 0x137   :  { %v9614_v39 = vld [vmem:[#allocation5 + $0xc88] sm:$0xf]  ;;  %v9359_v46 = vor.u32 %v12441_v36, %v9358_v32  ;;  %3464 = vmatpush.bf16.msrb.mxu0 %v9103_v44  ;;  %v8755_v32 = vor.u32 %v12285_v20, %v8752_v21  ;;  %v12213_v36 = vld [vmem:[#allocation5 + $0x38c] sm:$0xf] }
 0x138   :  { %v12505_v41 = vld [vmem:[#allocation5 + $0xca4] sm:$0xf0]  ;;  %v8720_v44 = vld [vmem:[#allocation5 + $0x5a8] sm:$0xf0] }
 0x139   :  { %v9870_v42 = vld [vmem:[#allocation5 + $0xe88] sm:$0xf]  ;;  %v9615_v47 = vor.u32 %v12505_v41, %v9614_v39  ;;  %3477 = vmatpush.bf16.msrb.mxu1 %v9359_v46  ;;  %v3249_v39 = vpop.f32.mrf.mxu3  ;;  %v9011_v41 = vor.u32 %v12349_v26, %v9008_v27  ;;  %v8976_v46 = vld [vmem:[#allocation5 + $0x7a8] sm:$0xf0]  ;;  %v3273_v20 = vpop.f32.mrf.mxu1 }
 0x13a   :  { %v12569_v43 = vld [vmem:[#allocation5 + $0xea4] sm:$0xf0]  ;;  %v12317_v26 = vld [vmem:[#allocation5 + $0x6cc] sm:$0xf] }
 0x13b   :  { %v9070_v48 = vld [vmem:[#allocation5 + $0x848] sm:$0xf]  ;;  %v9871_v52 = vor.u32 %v12569_v43, %v9870_v42  ;;  %3490 = vmatpush.bf16.msrb.mxu2 %v9615_v47  ;;  %v8464_v42 = vld [vmem:[#allocation5 + $0x3a8] sm:$0xf0]  ;;  %v8211_v47 = vor.u32 %v12149_v33, %v8208_v35 }
 0x13c   :  { %v12369_v49 = vld [vmem:[#allocation5 + $0x864] sm:$0xf0]  ;;  %v12277_v43 = vld [vmem:[#allocation5 + $0x58c] sm:$0xf] }
 0x13d   :  { %v9326_v50 = vld [vmem:[#allocation5 + $0xa48] sm:$0xf]  ;;  %v9071_v61 = vor.u32 %v12369_v49, %v9070_v48  ;;  %3503 = vmatpush.bf16.msrb.mxu3 %v9871_v52  ;;  %v8467_v48 = vor.u32 %v12213_v36, %v8464_v42  ;;  %v8723_v49 = vor.u32 %v12277_v43, %v8720_v44  ;;  %v12205_v52 = vld [vmem:[#allocation5 + $0x34c] sm:$0xf]  ;;  %v3286_v36 = vpop.f32.mrf.mxu2 }
 0x13e   :  { %v12433_v53 = vld [vmem:[#allocation5 + $0xa64] sm:$0xf0]  ;;  %v8880_v27 = vld [vmem:[#allocation5 + $0x6e8] sm:$0xf0] }
 0x13f   :  { %v9582_v54 = vld [vmem:[#allocation5 + $0xc48] sm:$0xf]  ;;  %v9327_v1 = vor.u32 %v12433_v53, %v9326_v50  ;;  %3465 = vmatpush.bf16.msrb.mxu0 %v9071_v61  ;;  %v12141_v50 = vld [vmem:[#allocation5 + $0x14c] sm:$0xf]  ;;  %v8979_v53 = vor.u32 %v12341_v45, %v8976_v46 }
 0x140   :  { %v12497_v55 = vld [vmem:[#allocation5 + $0xc64] sm:$0xf0]  ;;  %v8179_v59 = vor.u32 %v12141_v50, %v8176_v51  ;;  %v8080_v33 = vld [vmem:[#allocation5 + $0xa8] sm:$0xf0] }
 0x141   :  { %v9838_v57 = vld [vmem:[#allocation5 + $0xe48] sm:$0xf]  ;;  %v9583_v2 = vor.u32 %v12497_v55, %v9582_v54  ;;  %3478 = vmatpush.bf16.msrb.mxu1 %v9327_v1  ;;  %v8432_v54 = vld [vmem:[#allocation5 + $0x368] sm:$0xf0]  ;;  %v3299_v44 = vpop.f32.mrf.mxu3 }
 0x142   :  { %v12561_v58 = vld [vmem:[#allocation5 + $0xe64] sm:$0xf0]  ;;  %v12269_v55 = vld [vmem:[#allocation5 + $0x54c] sm:$0xf]  ;;  %v8435_v60 = vor.u32 %v12205_v52, %v8432_v54 }
 0x143   :  { %v9038_v62 = vld [vmem:[#allocation5 + $0x808] sm:$0xf]  ;;  %v9839_v10 = vor.u32 %v12561_v58, %v9838_v57  ;;  %3491 = vmatpush.bf16.msrb.mxu2 %v9583_v2  ;;  %v12333_v57 = vld [vmem:[#allocation5 + $0x74c] sm:$0xf]  ;;  %v8691_v61 = vor.u32 %v12269_v55, %v8688_v56  ;;  %v3275_v55 = vpop.f32.mrf.mxu1 }
 0x144   :  { %v12361_v63 = vld [vmem:[#allocation5 + $0x824] sm:$0xf0]  ;;  %v8944_v58 = vld [vmem:[#allocation5 + $0x768] sm:$0xf0] }
 0x145   :  { %v9294_v3 = vld [vmem:[#allocation5 + $0xa08] sm:$0xf]  ;;  %v9039_v18 = vor.u32 %v12361_v63, %v9038_v62  ;;  %3504 = vmatpush.bf16.msrb.mxu3 %v9839_v10  ;;  %v12133_v62 = vld [vmem:[#allocation5 + $0x10c] sm:$0xf]  ;;  %v8947_v1 = vor.u32 %v12333_v57, %v8944_v58 }
 0x146   :  { %v12425_v4 = vld [vmem:[#allocation5 + $0xa24] sm:$0xf0]  ;;  %v8144_v63 = vld [vmem:[#allocation5 + $0x128] sm:$0xf0] }
 0x147   :  { %v9550_v5 = vld [vmem:[#allocation5 + $0xc08] sm:$0xf]  ;;  %v9295_v23 = vor.u32 %v12425_v4, %v9294_v3  ;;  %3466 = vmatpush.bf16.msrb.mxu0 %v9039_v18  ;;  %v8400_v2 = vld [vmem:[#allocation5 + $0x328] sm:$0xf0] }
 0x148   :  { %v12489_v11 = vld [vmem:[#allocation5 + $0xc24] sm:$0xf0]  ;;  %v12261_v3 = vld [vmem:[#allocation5 + $0x50c] sm:$0xf] }
 0x149   :  { %v9806_v12 = vld [vmem:[#allocation5 + $0xe08] sm:$0xf]  ;;  %v9551_v24 = vor.u32 %v12489_v11, %v9550_v5  ;;  %3479 = vmatpush.bf16.msrb.mxu1 %v9295_v23  ;;  %v8656_v4 = vld [vmem:[#allocation5 + $0x528] sm:$0xf0]  ;;  %v8147_v11 = vor.u32 %v12133_v62, %v8144_v63 }
 0x14a   :  { %v12553_v13 = vld [vmem:[#allocation5 + $0xe24] sm:$0xf0]  ;;  %3467 = vmatmul.bf16.vlgmr.msrb.gmra.mxu0 %v13364_v37  ;;  %v12325_v5 = vld [vmem:[#allocation5 + $0x70c] sm:$0xf]  ;;  %v8659_v14 = vor.u32 %v12261_v3, %v8656_v4 }
 0x14b   :  { %v9807_v28 = vor.u32 %v12553_v13, %v9806_v12  ;;  %3492 = vmatpush.bf16.msrb.mxu2 %v9551_v24  ;;  %3511 = vmatpush.bf16.msra.mxu0 %v8243_v29  ;;  %v8912_v10 = vld [vmem:[#allocation5 + $0x728] sm:$0xf0]  ;;  %v3260_v12 = vpop.f32.mrf.mxu0  ;;  %v8403_v13 = vor.u32 %v12197_v0, %v8400_v2  ;;  %v8115_v29 = vor.u32 %v12125_v16, %v8112_v17  ;;  %v3301_v16 = vpop.f32.mrf.mxu3 }
 0x14c   :  { %3480 = vmatmul.bf16.vlgmr.msrb.gmra.mxu1 %v13368_v40  ;;  %v12189_v18 = vld [vmem:[#allocation5 + $0x2cc] sm:$0xf]  ;;  %v3261_v19 = vadd.f32 %v3260_v12, %v13389_v7  ;;  %v8915_v21 = vor.u32 %v12325_v5, %v8912_v10  ;;  %v8883_v7 = vor.u32 %v12317_v26, %v8880_v27  ;;  %v3288_v10 = vpop.f32.mrf.mxu2 }
 0x14d   :  { %3505 = vmatpush.bf16.msrb.mxu3 %v9807_v28  ;;  %3524 = vmatpush.bf16.msra.mxu1 %v8499_v31  ;;  %v12253_v23 = vld [vmem:[#allocation5 + $0x4cc] sm:$0xf]  ;;  %v8371_v30 = vor.u32 %v12189_v18, %v8368_v22 }
 0x14e   :  { %3493 = vmatmul.bf16.vlgmr.msrb.gmra.mxu2 %v13362_v34  ;;  %v8624_v24 = vld [vmem:[#allocation5 + $0x4e8] sm:$0xf0]  ;;  %v3274_v28 = vadd.f32 %v3273_v20, %v3261_v19 }
 0x14f   :  { %3537 = vmatpush.bf16.msra.mxu2 %v8755_v32  ;;  %3512 = vmatpush.bf16.msra.mxu0 %v8211_v47  ;;  %v8627_v31 = vor.u32 %v12253_v23, %v8624_v24  ;;  %v12117_v32 = vld [vmem:[#allocation5 + $0x8c] sm:$0xf] }
 0x150   :  { %3506 = vmatmul.bf16.vlgmr.msrb.gmra.mxu3 %v13366_v38  ;;  %v12181_v35 = vld [vmem:[#allocation5 + $0x28c] sm:$0xf]  ;;  %v3287_v43 = vadd.f32 %v3286_v36, %v3274_v28  ;;  %v8083_v47 = vor.u32 %v12117_v32, %v8080_v33 }
 0x151   :  { %3550 = vmatpush.bf16.msra.mxu3 %v9011_v41  ;;  %3525 = vmatpush.bf16.msra.mxu1 %v8467_v48  ;;  %v8336_v39 = vld [vmem:[#allocation5 + $0x2a8] sm:$0xf0] }
 0x152   :  { %v12245_v41 = vld [vmem:[#allocation5 + $0x48c] sm:$0xf]  ;;  %v13396_v48 = vadd.f32 %v3299_v44, %v3287_v43  ;;  %v8339_v50 = vor.u32 %v12181_v35, %v8336_v39 }
 0x153   :  { %3538 = vmatpush.bf16.msra.mxu2 %v8723_v49  ;;  %3513 = vmatpush.bf16.msra.mxu0 %v8179_v59  ;;  %v8592_v42 = vld [vmem:[#allocation5 + $0x4a8] sm:$0xf0]  ;;  %v3262_v49 = vpop.f32.mrf.mxu0 }
 0x154   :  { %v12309_v45 = vld [vmem:[#allocation5 + $0x68c] sm:$0xf]  ;;  %v8595_v51 = vor.u32 %v12245_v41, %v8592_v42 }
 0x155   :  { %3551 = vmatpush.bf16.msra.mxu3 %v8979_v53  ;;  %3526 = vmatpush.bf16.msra.mxu1 %v8435_v60  ;;  %v8848_v46 = vld [vmem:[#allocation5 + $0x6a8] sm:$0xf0] }
 0x156   :  { %v12109_v52 = vld [vmem:[#allocation5 + $0x4c] sm:$0xf]  ;;  %v8851_v56 = vor.u32 %v12309_v45, %v8848_v46 }
 0x157   :  { %3539 = vmatpush.bf16.msra.mxu2 %v8691_v61  ;;  %3514 = vmatpush.bf16.msra.mxu0 %v8147_v11  ;;  %v8048_v53 = vld [vmem:[#allocation5 + $0x68] sm:$0xf0] }
 0x158   :  { %v12173_v54 = vld [vmem:[#allocation5 + $0x24c] sm:$0xf]  ;;  %v8051_v62 = vor.u32 %v12109_v52, %v8048_v53 }
 0x159   :  { %3552 = vmatpush.bf16.msra.mxu3 %v8947_v1  ;;  %3527 = vmatpush.bf16.msra.mxu1 %v8403_v13  ;;  %v8304_v57 = vld [vmem:[#allocation5 + $0x268] sm:$0xf0] }
 0x15a   :  { %v12237_v58 = vld [vmem:[#allocation5 + $0x44c] sm:$0xf]  ;;  %v8307_v1 = vor.u32 %v12173_v54, %v8304_v57 }
 0x15b   :  { %3540 = vmatpush.bf16.msra.mxu2 %v8659_v14  ;;  %3515 = vmatpush.bf16.msra.mxu0 %v8115_v29  ;;  %v8560_v59 = vld [vmem:[#allocation5 + $0x468] sm:$0xf0] }
 0x15c   :  { %v12301_v60 = vld [vmem:[#allocation5 + $0x64c] sm:$0xf]  ;;  %v8563_v2 = vor.u32 %v12237_v58, %v8560_v59 }
 0x15d   :  { %3553 = vmatpush.bf16.msra.mxu3 %v8915_v21  ;;  %3528 = vmatpush.bf16.msra.mxu1 %v8371_v30  ;;  %v8816_v61 = vld [vmem:[#allocation5 + $0x668] sm:$0xf0] }
 0x15e   :  { %v12101_v63 = vld [vmem:[#allocation5 + $0xc] sm:$0xf]  ;;  %v8819_v11 = vor.u32 %v12301_v60, %v8816_v61 }
 0x15f   :  { %3541 = vmatpush.bf16.msra.mxu2 %v8627_v31  ;;  %3516 = vmatpush.bf16.msra.mxu0 %v8083_v47  ;;  %v8016_v0 = vld [vmem:[#allocation5 + $0x28] sm:$0xf0] }
 0x160   :  { %v12165_v3 = vld [vmem:[#allocation5 + $0x20c] sm:$0xf]  ;;  %v8019_v20 = vor.u32 %v12101_v63, %v8016_v0  ;;  %v624_v0 = vperm.slane %v13386_v6, 1 }
 0x161   :  { %3554 = vmatpush.bf16.msra.mxu3 %v8883_v7  ;;  %3529 = vmatpush.bf16.msra.mxu1 %v8339_v50  ;;  %v8272_v4 = vld [vmem:[#allocation5 + $0x228] sm:$0xf0] }
 0x162   :  { %v12229_v5 = vld [vmem:[#allocation5 + $0x40c] sm:$0xf]  ;;  %v8275_v24 = vor.u32 %v12165_v3, %v8272_v4 }
 0x163   :  { %3542 = vmatpush.bf16.msra.mxu2 %v8595_v51  ;;  %v8528_v12 = vld [vmem:[#allocation5 + $0x428] sm:$0xf0]  ;;  %3517 = vmatpush.bf16.msra.mxu0 %v8051_v62 }
 0x164   :  { %v12293_v13 = vld [vmem:[#allocation5 + $0x60c] sm:$0xf]  ;;  %v8531_v26 = vor.u32 %v12229_v5, %v8528_v12  ;;  %v3312_v12 = vpop.f32.mrf.mxu0 }
 0x165   :  { %3555 = vmatpush.bf16.msra.mxu3 %v8851_v56  ;;  %v8784_v14 = vld [vmem:[#allocation5 + $0x628] sm:$0xf0]  ;;  %3530 = vmatpush.bf16.msra.mxu1 %v8307_v1 }
 0x166   :  { %v12413_v17 = vld [vmem:[#allocation5 + $0x9cc] sm:$0xf]  ;;  %v8787_v29 = vor.u32 %v12293_v13, %v8784_v14 }
 0x167   :  { %v9264_v18 = vld [vmem:[#allocation5 + $0x9e8] sm:$0xf0]  ;;  %3543 = vmatpush.bf16.msra.mxu2 %v8563_v2  ;;  %3518 = vmatpush.bf16.msra.mxu0 %v8019_v20  ;;  %v3325_v20 = vpop.f32.mrf.mxu1 }
 0x168   :  { %v12477_v19 = vld [vmem:[#allocation5 + $0xbcc] sm:$0xf]  ;;  %v9267_v30 = vor.u32 %v12413_v17, %v9264_v18 }
 0x169   :  { %v9520_v21 = vld [vmem:[#allocation5 + $0xbe8] sm:$0xf0]  ;;  %3556 = vmatpush.bf16.msra.mxu3 %v8819_v11  ;;  %3531 = vmatpush.bf16.msra.mxu1 %v8275_v24 }
 0x16a   :  { %v12541_v22 = vld [vmem:[#allocation5 + $0xdcc] sm:$0xf]  ;;  %v9523_v31 = vor.u32 %v12477_v19, %v9520_v21  ;;  %3519 = vmatmul.bf16.vlgmr.msra.gmra.mxu0 %v13352_v9  ;;  %v3313_v19 = vadd.f32 %v3312_v12, %v624_v0 }
 0x16b   :  { %v9776_v23 = vld [vmem:[#allocation5 + $0xde8] sm:$0xf0]  ;;  %3544 = vmatpush.bf16.msra.mxu2 %v8531_v26  ;;  %3563 = vmatpush.bf16.msrb.mxu0 %v9267_v30 }
 0x16c   :  { %v12605_v27 = vld [vmem:[#allocation5 + $0xfcc] sm:$0xf]  ;;  %v9779_v32 = vor.u32 %v12541_v22, %v9776_v23  ;;  %3532 = vmatmul.bf16.vlgmr.msra.gmra.mxu1 %v13359_v25 }
 0x16d   :  { %v10032_v28 = vld [vmem:[#allocation5 + $0xfe8] sm:$0xf0]  ;;  %3557 = vmatpush.bf16.msra.mxu3 %v8787_v29  ;;  %3576 = vmatpush.bf16.msrb.mxu1 %v9523_v31 }
 0x16e   :  { %v12405_v33 = vld [vmem:[#allocation5 + $0x98c] sm:$0xf]  ;;  %v10035_v7 = vor.u32 %v12605_v27, %v10032_v28  ;;  %3545 = vmatmul.bf16.vlgmr.msra.gmra.mxu2 %v13350_v8  ;;  %v3326_v27 = vadd.f32 %v3325_v20, %v3313_v19  ;;  %v8502_v19 = vld [vmem:[#allocation5 + $0x3d0] sm:$0xf] }
 0x16f   :  { %v9232_v35 = vld [vmem:[#allocation5 + $0x9a8] sm:$0xf0]  ;;  %3589 = vmatpush.bf16.msrb.mxu2 %v9779_v32 }
 0x170   :  { %v12469_v36 = vld [vmem:[#allocation5 + $0xb8c] sm:$0xf]  ;;  %v9235_v45 = vor.u32 %v12405_v33, %v9232_v35  ;;  %3558 = vmatmul.bf16.vlgmr.msra.gmra.mxu3 %v13354_v15  ;;  %v3338_v35 = vpop.f32.mrf.mxu2 }
 0x171   :  { %v9488_v39 = vld [vmem:[#allocation5 + $0xba8] sm:$0xf0]  ;;  %3602 = vmatpush.bf16.msrb.mxu3 %v10035_v7 }
 0x172   :  { %v12533_v41 = vld [vmem:[#allocation5 + $0xd8c] sm:$0xf]  ;;  %v9491_v46 = vor.u32 %v12469_v36, %v9488_v39  ;;  %3564 = vmatpush.bf16.msrb.mxu0 %v9235_v45 }
 0x173   :  { %v9744_v42 = vld [vmem:[#allocation5 + $0xda8] sm:$0xf0] }
 0x174   :  { %v12597_v43 = vld [vmem:[#allocation5 + $0xf8c] sm:$0xf]  ;;  %v9747_v47 = vor.u32 %v12533_v41, %v9744_v42  ;;  %3577 = vmatpush.bf16.msrb.mxu1 %v9491_v46  ;;  %v3339_v42 = vadd.f32 %v3338_v35, %v3326_v27  ;;  %v12354_v27 = vld [vmem:[#allocation5 + $0x7ec] sm:$0xf0] }
 0x175   :  { %v10000_v44 = vld [vmem:[#allocation5 + $0xfa8] sm:$0xf0]  ;;  %v8470_v35 = vld [vmem:[#allocation5 + $0x390] sm:$0xf] }
 0x176   :  { %v12397_v49 = vld [vmem:[#allocation5 + $0x94c] sm:$0xf]  ;;  %v10003_v52 = vor.u32 %v12597_v43, %v10000_v44  ;;  %3590 = vmatpush.bf16.msrb.mxu2 %v9747_v47  ;;  %v3351_v43 = vpop.f32.mrf.mxu3 }
 0x177   :  { %v9200_v50 = vld [vmem:[#allocation5 + $0x968] sm:$0xf0]  ;;  %v13403_v47 = vadd.f32 %v3351_v43, %v3339_v42  ;;  %v8982_v42 = vld [vmem:[#allocation5 + $0x790] sm:$0xf] }
 0x178   :  { %v12461_v51 = vld [vmem:[#allocation5 + $0xb4c] sm:$0xf]  ;;  %v9203_v58 = vor.u32 %v12397_v49, %v9200_v50  ;;  %3603 = vmatpush.bf16.msrb.mxu3 %v10003_v52  ;;  %v3314_v49 = vpop.f32.mrf.mxu0  ;;  %v12346_v43 = vld [vmem:[#allocation5 + $0x7ac] sm:$0xf0] }
 0x179   :  { %v9456_v53 = vld [vmem:[#allocation5 + $0xb68] sm:$0xf0]  ;;  %v8182_v49 = vld [vmem:[#allocation5 + $0x150] sm:$0xf] }
 0x17a   :  { %v12525_v54 = vld [vmem:[#allocation5 + $0xd4c] sm:$0xf]  ;;  %v9459_v60 = vor.u32 %v12461_v51, %v9456_v53  ;;  %3565 = vmatpush.bf16.msrb.mxu0 %v9203_v58 }
 0x17b   :  { %v9712_v55 = vld [vmem:[#allocation5 + $0xd68] sm:$0xf0] }
 0x17c   :  { %v12589_v56 = vld [vmem:[#allocation5 + $0xf4c] sm:$0xf]  ;;  %v9715_v61 = vor.u32 %v12525_v54, %v9712_v55  ;;  %3578 = vmatpush.bf16.msrb.mxu1 %v9459_v60  ;;  %v3327_v55 = vpop.f32.mrf.mxu1 }
 0x17d   :  { %v9968_v57 = vld [vmem:[#allocation5 + $0xf68] sm:$0xf0]  ;;  %v12274_v55 = vld [vmem:[#allocation5 + $0x56c] sm:$0xf0] }
 0x17e   :  { %v12389_v59 = vld [vmem:[#allocation5 + $0x90c] sm:$0xf]  ;;  %v9971_v1 = vor.u32 %v12589_v56, %v9968_v57  ;;  %3591 = vmatpush.bf16.msrb.mxu2 %v9715_v61 }
 0x17f   :  { %v9168_v62 = vld [vmem:[#allocation5 + $0x928] sm:$0xf0] }
 0x180   :  { %v12453_v63 = vld [vmem:[#allocation5 + $0xb0c] sm:$0xf]  ;;  %v9171_v11 = vor.u32 %v12389_v59, %v9168_v62  ;;  %3604 = vmatpush.bf16.msrb.mxu3 %v9971_v1 }
 0x181   :  { %v9424_v2 = vld [vmem:[#allocation5 + $0xb28] sm:$0xf0] }
 0x182   :  { %v12517_v3 = vld [vmem:[#allocation5 + $0xd0c] sm:$0xf]  ;;  %v9427_v13 = vor.u32 %v12453_v63, %v9424_v2  ;;  %3566 = vmatpush.bf16.msrb.mxu0 %v9171_v11 }
 0x183   :  { %v9680_v4 = vld [vmem:[#allocation5 + $0xd28] sm:$0xf0] }
 0x184   :  { %v12581_v5 = vld [vmem:[#allocation5 + $0xf0c] sm:$0xf]  ;;  %v9683_v14 = vor.u32 %v12517_v3, %v9680_v4  ;;  %3579 = vmatpush.bf16.msrb.mxu1 %v9427_v13 }
 0x185   :  { %v9936_v10 = vld [vmem:[#allocation5 + $0xf28] sm:$0xf0] }
 0x186   :  { %v12381_v16 = vld [vmem:[#allocation5 + $0x8cc] sm:$0xf]  ;;  %v9939_v6 = vor.u32 %v12581_v5, %v9936_v10  ;;  %3592 = vmatpush.bf16.msrb.mxu2 %v9683_v14  ;;  %v3340_v10 = vpop.f32.mrf.mxu2 }
 0x187   :  { %v9136_v17 = vld [vmem:[#allocation5 + $0x8e8] sm:$0xf0] }
 0x188   :  { %v12445_v18 = vld [vmem:[#allocation5 + $0xacc] sm:$0xf]  ;;  %v9139_v28 = vor.u32 %v12381_v16, %v9136_v17  ;;  %3605 = vmatpush.bf16.msrb.mxu3 %v9939_v6  ;;  %v3353_v16 = vpop.f32.mrf.mxu3  ;;  %v8246_v17 = vld [vmem:[#allocation5 + $0x1d0] sm:$0xf] }
 0x189   :  { %v9392_v21 = vld [vmem:[#allocation5 + $0xae8] sm:$0xf0]  ;;  %v12226_v6 = vld [vmem:[#allocation5 + $0x3ec] sm:$0xf0] }
 0x18a   :  { %v12509_v22 = vld [vmem:[#allocation5 + $0xccc] sm:$0xf]  ;;  %v9395_v29 = vor.u32 %v12445_v18, %v9392_v21  ;;  %3567 = vmatpush.bf16.msrb.mxu0 %v9139_v28  ;;  %v12162_v18 = vld [vmem:[#allocation5 + $0x1ec] sm:$0xf0] }
 0x18b   :  { %v9648_v23 = vld [vmem:[#allocation5 + $0xce8] sm:$0xf0]  ;;  %v8758_v21 = vld [vmem:[#allocation5 + $0x5d0] sm:$0xf] }
 0x18c   :  { %v12573_v24 = vld [vmem:[#allocation5 + $0xecc] sm:$0xf]  ;;  %v9651_v30 = vor.u32 %v12509_v22, %v9648_v23  ;;  %3580 = vmatpush.bf16.msrb.mxu1 %v9395_v29  ;;  %v12290_v22 = vld [vmem:[#allocation5 + $0x5ec] sm:$0xf0]  ;;  %v8247_v29 = vor.u32 %v12162_v18, %v8246_v17 }
 0x18d   :  { %v9904_v26 = vld [vmem:[#allocation5 + $0xee8] sm:$0xf0]  ;;  %v12130_v16 = vld [vmem:[#allocation5 + $0xec] sm:$0xf0] }
 0x18e   :  { %v12373_v31 = vld [vmem:[#allocation5 + $0x88c] sm:$0xf]  ;;  %v9907_v36 = vor.u32 %v12573_v24, %v9904_v26  ;;  %3593 = vmatpush.bf16.msrb.mxu2 %v9651_v30  ;;  %v9014_v26 = vld [vmem:[#allocation5 + $0x7d0] sm:$0xf]  ;;  %v8503_v30 = vor.u32 %v12226_v6, %v8502_v19  ;;  %v3377_v19 = vpop.f32.mrf.mxu1 }
 0x18f   :  { %v9104_v32 = vld [vmem:[#allocation5 + $0x8a8] sm:$0xf0]  ;;  %v8374_v17 = vld [vmem:[#allocation5 + $0x2d0] sm:$0xf] }
 0x190   :  { %v12437_v33 = vld [vmem:[#allocation5 + $0xa8c] sm:$0xf]  ;;  %v9107_v46 = vor.u32 %v12373_v31, %v9104_v32  ;;  %3606 = vmatpush.bf16.msrb.mxu3 %v9907_v36  ;;  %v8759_v31 = vor.u32 %v12290_v22, %v8758_v21  ;;  %v8214_v32 = vld [vmem:[#allocation5 + $0x190] sm:$0xf]  ;;  %v9015_v36 = vor.u32 %v12354_v27, %v9014_v26 }
 0x191   :  { %v9360_v7 = vld [vmem:[#allocation5 + $0xaa8] sm:$0xf0]  ;;  %v12194_v6 = vld [vmem:[#allocation5 + $0x2ec] sm:$0xf0] }
 0x192   :  { %v12501_v39 = vld [vmem:[#allocation5 + $0xc8c] sm:$0xf]  ;;  %v9363_v50 = vor.u32 %v12437_v33, %v9360_v7  ;;  %3568 = vmatpush.bf16.msrb.mxu0 %v9107_v46  ;;  %v12154_v33 = vld [vmem:[#allocation5 + $0x1ac] sm:$0xf0] }
 0x193   :  { %v9616_v41 = vld [vmem:[#allocation5 + $0xca8] sm:$0xf0]  ;;  %v12218_v7 = vld [vmem:[#allocation5 + $0x3ac] sm:$0xf0] }
 0x194   :  { %v12565_v44 = vld [vmem:[#allocation5 + $0xe8c] sm:$0xf]  ;;  %v9619_v51 = vor.u32 %v12501_v39, %v9616_v41  ;;  %3581 = vmatpush.bf16.msrb.mxu1 %v9363_v50  ;;  %v8726_v39 = vld [vmem:[#allocation5 + $0x590] sm:$0xf] }
 0x195   :  { %v9872_v45 = vld [vmem:[#allocation5 + $0xea8] sm:$0xf0]  ;;  %v12282_v41 = vld [vmem:[#allocation5 + $0x5ac] sm:$0xf0] }
 0x196   :  { %v12365_v52 = vld [vmem:[#allocation5 + $0x84c] sm:$0xf]  ;;  %v9875_v56 = vor.u32 %v12565_v44, %v9872_v45  ;;  %3594 = vmatpush.bf16.msrb.mxu2 %v9619_v51  ;;  %v8215_v44 = vor.u32 %v12154_v33, %v8214_v32  ;;  %v8471_v45 = vor.u32 %v12218_v7, %v8470_v35  ;;  %v8727_v46 = vor.u32 %v12282_v41, %v8726_v39  ;;  %v12146_v50 = vld [vmem:[#allocation5 + $0x16c] sm:$0xf0]  ;;  %v3390_v33 = vpop.f32.mrf.mxu2  ;;  %v3403_v41 = vpop.f32.mrf.mxu3 }
 0x197   :  { %v9072_v53 = vld [vmem:[#allocation5 + $0x868] sm:$0xf0]  ;;  %v8438_v51 = vld [vmem:[#allocation5 + $0x350] sm:$0xf] }
 0x198   :  { %v12429_v54 = vld [vmem:[#allocation5 + $0xa4c] sm:$0xf]  ;;  %v9075_v62 = vor.u32 %v12365_v52, %v9072_v53  ;;  %3607 = vmatpush.bf16.msrb.mxu3 %v9875_v56  ;;  %v8983_v52 = vor.u32 %v12346_v43, %v8982_v42  ;;  %v12210_v53 = vld [vmem:[#allocation5 + $0x36c] sm:$0xf0] }
 0x199   :  { %v9328_v57 = vld [vmem:[#allocation5 + $0xa68] sm:$0xf0]  ;;  %v8950_v56 = vld [vmem:[#allocation5 + $0x750] sm:$0xf] }
 0x19a   :  { %v12493_v58 = vld [vmem:[#allocation5 + $0xc4c] sm:$0xf]  ;;  %v9331_v1 = vor.u32 %v12429_v54, %v9328_v57  ;;  %3569 = vmatpush.bf16.msrb.mxu0 %v9075_v62  ;;  %v8694_v54 = vld [vmem:[#allocation5 + $0x550] sm:$0xf] }
 0x19b   :  { %v9584_v59 = vld [vmem:[#allocation5 + $0xc68] sm:$0xf0]  ;;  %v12338_v57 = vld [vmem:[#allocation5 + $0x76c] sm:$0xf0] }
 0x19c   :  { %v12557_v60 = vld [vmem:[#allocation5 + $0xe4c] sm:$0xf]  ;;  %v9587_v2 = vor.u32 %v12493_v58, %v9584_v59  ;;  %3582 = vmatpush.bf16.msrb.mxu1 %v9331_v1  ;;  %v8183_v58 = vor.u32 %v12146_v50, %v8182_v49  ;;  %v8439_v59 = vor.u32 %v12210_v53, %v8438_v51  ;;  %v12138_v62 = vld [vmem:[#allocation5 + $0x12c] sm:$0xf0] }
 0x19d   :  { %v9840_v61 = vld [vmem:[#allocation5 + $0xe68] sm:$0xf0]  ;;  %v12202_v1 = vld [vmem:[#allocation5 + $0x32c] sm:$0xf0] }
 0x19e   :  { %v12357_v63 = vld [vmem:[#allocation5 + $0x80c] sm:$0xf]  ;;  %v9843_v11 = vor.u32 %v12557_v60, %v9840_v61  ;;  %3595 = vmatpush.bf16.msrb.mxu2 %v9587_v2  ;;  %v8695_v60 = vor.u32 %v12274_v55, %v8694_v54  ;;  %v8150_v61 = vld [vmem:[#allocation5 + $0x110] sm:$0xf]  ;;  %v3379_v54 = vpop.f32.mrf.mxu1 }
 0x19f   :  { %v9040_v0 = vld [vmem:[#allocation5 + $0x828] sm:$0xf0]  ;;  %v8662_v2 = vld [vmem:[#allocation5 + $0x510] sm:$0xf]  ;;  %v8151_v10 = vor.u32 %v12138_v62, %v8150_v61 }
 0x1a0   :  { %v12421_v3 = vld [vmem:[#allocation5 + $0xa0c] sm:$0xf]  ;;  %v9043_v20 = vor.u32 %v12357_v63, %v9040_v0  ;;  %3608 = vmatpush.bf16.msrb.mxu3 %v9843_v11  ;;  %v8406_v63 = vld [vmem:[#allocation5 + $0x310] sm:$0xf]  ;;  %v8951_v0 = vor.u32 %v12338_v57, %v8950_v56  ;;  %v3364_v11 = vpop.f32.mrf.mxu0 }
 0x1a1   :  { %v9296_v4 = vld [vmem:[#allocation5 + $0xa28] sm:$0xf0]  ;;  %v3365_v18 = vadd.f32 %v3364_v11, %v13403_v47  ;;  %v8630_v21 = vld [vmem:[#allocation5 + $0x4d0] sm:$0xf] }
 0x1a2   :  { %v12485_v5 = vld [vmem:[#allocation5 + $0xc0c] sm:$0xf]  ;;  %v9299_v23 = vor.u32 %v12421_v3, %v9296_v4  ;;  %3570 = vmatpush.bf16.msrb.mxu0 %v9043_v20  ;;  %v12266_v3 = vld [vmem:[#allocation5 + $0x52c] sm:$0xf0] }
 0x1a3   :  { %v9552_v12 = vld [vmem:[#allocation5 + $0xc28] sm:$0xf0]  ;;  %v8918_v4 = vld [vmem:[#allocation5 + $0x710] sm:$0xf]  ;;  %v3378_v26 = vadd.f32 %v3377_v19, %v3365_v18 }
 0x1a4   :  { %v12549_v13 = vld [vmem:[#allocation5 + $0xe0c] sm:$0xf]  ;;  %v9555_v24 = vor.u32 %v12485_v5, %v9552_v12  ;;  %3583 = vmatpush.bf16.msrb.mxu1 %v9299_v23  ;;  %v12330_v5 = vld [vmem:[#allocation5 + $0x72c] sm:$0xf0]  ;;  %v8407_v12 = vor.u32 %v12202_v1, %v8406_v63 }
 0x1a5   :  { %v9808_v14 = vld [vmem:[#allocation5 + $0xe28] sm:$0xf0]  ;;  %3571 = vmatmul.bf16.vlgmr.msrb.gmra.mxu0 %v13364_v37  ;;  %v8919_v20 = vor.u32 %v12330_v5, %v8918_v4  ;;  %v12258_v22 = vld [vmem:[#allocation5 + $0x4ec] sm:$0xf0]  ;;  %v3391_v39 = vadd.f32 %v3390_v33, %v3378_v26  ;;  %v3392_v5 = vpop.f32.mrf.mxu2 }
 0x1a6   :  { %v9811_v28 = vor.u32 %v12549_v13, %v9808_v14  ;;  %3596 = vmatpush.bf16.msrb.mxu2 %v9555_v24  ;;  %3615 = vmatpush.bf16.msra.mxu0 %v8247_v29  ;;  %v8663_v13 = vor.u32 %v12266_v3, %v8662_v2  ;;  %v8118_v14 = vld [vmem:[#allocation5 + $0xd0] sm:$0xf]  ;;  %v8631_v29 = vor.u32 %v12258_v22, %v8630_v21 }
 0x1a7   :  { %3584 = vmatmul.bf16.vlgmr.msrb.gmra.mxu1 %v13368_v40  ;;  %v8886_v23 = vld [vmem:[#allocation5 + $0x6d0] sm:$0xf]  ;;  %v8119_v27 = vor.u32 %v12130_v16, %v8118_v14  ;;  %v3405_v14 = vpop.f32.mrf.mxu3 }
 0x1a8   :  { %3609 = vmatpush.bf16.msrb.mxu3 %v9811_v28  ;;  %3628 = vmatpush.bf16.msra.mxu1 %v8503_v30  ;;  %v12322_v24 = vld [vmem:[#allocation5 + $0x6ec] sm:$0xf0]  ;;  %v8375_v28 = vor.u32 %v12194_v6, %v8374_v17 }
 0x1a9   :  { %3597 = vmatmul.bf16.vlgmr.msrb.gmra.mxu2 %v13362_v34  ;;  %v8086_v30 = vld [vmem:[#allocation5 + $0x90] sm:$0xf]  ;;  %v8887_v47 = vor.u32 %v12322_v24, %v8886_v23 }
 0x1aa   :  { %3641 = vmatpush.bf16.msra.mxu2 %v8759_v31  ;;  %3616 = vmatpush.bf16.msra.mxu0 %v8215_v44  ;;  %v12122_v31 = vld [vmem:[#allocation5 + $0xac] sm:$0xf0] }
 0x1ab   :  { %3610 = vmatmul.bf16.vlgmr.msrb.gmra.mxu3 %v13366_v38  ;;  %v8342_v32 = vld [vmem:[#allocation5 + $0x290] sm:$0xf]  ;;  %v8087_v44 = vor.u32 %v12122_v31, %v8086_v30 }
 0x1ac   :  { %3654 = vmatpush.bf16.msra.mxu3 %v9015_v36  ;;  %3629 = vmatpush.bf16.msra.mxu1 %v8471_v45  ;;  %v12186_v35 = vld [vmem:[#allocation5 + $0x2ac] sm:$0xf0]  ;;  %v13410_v45 = vadd.f32 %v3403_v41, %v3391_v39 }
 0x1ad   :  { %v8598_v36 = vld [vmem:[#allocation5 + $0x490] sm:$0xf]  ;;  %v8343_v49 = vor.u32 %v12186_v35, %v8342_v32 }
 0x1ae   :  { %3642 = vmatpush.bf16.msra.mxu2 %v8727_v46  ;;  %3617 = vmatpush.bf16.msra.mxu0 %v8183_v58  ;;  %v12250_v7 = vld [vmem:[#allocation5 + $0x4ac] sm:$0xf0]  ;;  %v3366_v46 = vpop.f32.mrf.mxu0 }
 0x1af   :  { %v8854_v42 = vld [vmem:[#allocation5 + $0x690] sm:$0xf]  ;;  %v8599_v50 = vor.u32 %v12250_v7, %v8598_v36 }
 0x1b0   :  { %3655 = vmatpush.bf16.msra.mxu3 %v8983_v52  ;;  %3630 = vmatpush.bf16.msra.mxu1 %v8439_v59  ;;  %v12314_v43 = vld [vmem:[#allocation5 + $0x6ac] sm:$0xf0] }
 0x1b1   :  { %v8054_v51 = vld [vmem:[#allocation5 + $0x50] sm:$0xf]  ;;  %v8855_v55 = vor.u32 %v12314_v43, %v8854_v42 }
 0x1b2   :  { %3643 = vmatpush.bf16.msra.mxu2 %v8695_v60  ;;  %3618 = vmatpush.bf16.msra.mxu0 %v8151_v10  ;;  %v12114_v52 = vld [vmem:[#allocation5 + $0x6c] sm:$0xf0] }
 0x1b3   :  { %v8310_v53 = vld [vmem:[#allocation5 + $0x250] sm:$0xf]  ;;  %v8055_v61 = vor.u32 %v12114_v52, %v8054_v51 }
 0x1b4   :  { %3656 = vmatpush.bf16.msra.mxu3 %v8951_v0  ;;  %3631 = vmatpush.bf16.msra.mxu1 %v8407_v12  ;;  %v12178_v56 = vld [vmem:[#allocation5 + $0x26c] sm:$0xf0] }
 0x1b5   :  { %v8566_v57 = vld [vmem:[#allocation5 + $0x450] sm:$0xf]  ;;  %v8311_v0 = vor.u32 %v12178_v56, %v8310_v53 }
 0x1b6   :  { %3644 = vmatpush.bf16.msra.mxu2 %v8663_v13  ;;  %3619 = vmatpush.bf16.msra.mxu0 %v8119_v27  ;;  %v12242_v58 = vld [vmem:[#allocation5 + $0x46c] sm:$0xf0] }
 0x1b7   :  { %v8822_v59 = vld [vmem:[#allocation5 + $0x650] sm:$0xf]  ;;  %v8567_v1 = vor.u32 %v12242_v58, %v8566_v57 }
 0x1b8   :  { %3657 = vmatpush.bf16.msra.mxu3 %v8919_v20  ;;  %3632 = vmatpush.bf16.msra.mxu1 %v8375_v28  ;;  %v12306_v60 = vld [vmem:[#allocation5 + $0x66c] sm:$0xf0] }
 0x1b9   :  { %v8022_v62 = vld [vmem:[#allocation5 + $0x10] sm:$0xf]  ;;  %v8823_v10 = vor.u32 %v12306_v60, %v8822_v59 }
 0x1ba   :  { %3645 = vmatpush.bf16.msra.mxu2 %v8631_v29  ;;  %3620 = vmatpush.bf16.msra.mxu0 %v8087_v44  ;;  %v12106_v63 = vld [vmem:[#allocation5 + $0x2c] sm:$0xf0] }
 0x1bb   :  { %v8278_v2 = vld [vmem:[#allocation5 + $0x210] sm:$0xf]  ;;  %v8023_v19 = vor.u32 %v12106_v63, %v8022_v62  ;;  %v13416_v63 = vld [vmem:[#allocation7] sm:$0xff] }
 0x1bc   :  { %3658 = vmatpush.bf16.msra.mxu3 %v8887_v47  ;;  %3633 = vmatpush.bf16.msra.mxu1 %v8343_v49  ;;  %v12170_v3 = vld [vmem:[#allocation5 + $0x22c] sm:$0xf0] }
 0x1bd   :  { %v8534_v4 = vld [vmem:[#allocation5 + $0x410] sm:$0xf]  ;;  %v8279_v22 = vor.u32 %v12170_v3, %v8278_v2 }
 0x1be   :  { %3646 = vmatpush.bf16.msra.mxu2 %v8599_v50  ;;  %v12234_v11 = vld [vmem:[#allocation5 + $0x42c] sm:$0xf0]  ;;  %3621 = vmatpush.bf16.msra.mxu0 %v8055_v61 }
 0x1bf   :  { %v8790_v12 = vld [vmem:[#allocation5 + $0x610] sm:$0xf]  ;;  %v8535_v23 = vor.u32 %v12234_v11, %v8534_v4 }
 0x1c0   :  { %3659 = vmatpush.bf16.msra.mxu3 %v8855_v55  ;;  %v12298_v13 = vld [vmem:[#allocation5 + $0x62c] sm:$0xf0]  ;;  %3634 = vmatpush.bf16.msra.mxu1 %v8311_v0  ;;  %v625_v0 = vperm.slane %v13416_v63, 2 }
 0x1c1   :  { %v9270_v16 = vld [vmem:[#allocation5 + $0x9d0] sm:$0xf]  ;;  %v8791_v27 = vor.u32 %v12298_v13, %v8790_v12  ;;  %v3416_v12 = vpop.f32.mrf.mxu0 }
 0x1c2   :  { %v12418_v17 = vld [vmem:[#allocation5 + $0x9ec] sm:$0xf0]  ;;  %3647 = vmatpush.bf16.msra.mxu2 %v8567_v1  ;;  %3622 = vmatpush.bf16.msra.mxu0 %v8023_v19  ;;  %v3417_v19 = vadd.f32 %v3416_v12, %v625_v0 }
 0x1c3   :  { %v9526_v18 = vld [vmem:[#allocation5 + $0xbd0] sm:$0xf]  ;;  %v9271_v28 = vor.u32 %v12418_v17, %v9270_v16 }
 0x1c4   :  { %v12482_v20 = vld [vmem:[#allocation5 + $0xbec] sm:$0xf0]  ;;  %3660 = vmatpush.bf16.msra.mxu3 %v8823_v10  ;;  %3635 = vmatpush.bf16.msra.mxu1 %v8279_v22 }
 0x1c5   :  { %v9782_v6 = vld [vmem:[#allocation5 + $0xdd0] sm:$0xf]  ;;  %v9527_v29 = vor.u32 %v12482_v20, %v9526_v18  ;;  %3623 = vmatmul.bf16.vlgmr.msra.gmra.mxu0 %v13352_v9  ;;  %v3429_v20 = vpop.f32.mrf.mxu1 }
 0x1c6   :  { %v12546_v21 = vld [vmem:[#allocation5 + $0xdec] sm:$0xf0]  ;;  %3648 = vmatpush.bf16.msra.mxu2 %v8535_v23  ;;  %3667 = vmatpush.bf16.msrb.mxu0 %v9271_v28 }
 0x1c7   :  { %v10038_v24 = vld [vmem:[#allocation5 + $0xfd0] sm:$0xf]  ;;  %v9783_v30 = vor.u32 %v12546_v21, %v9782_v6  ;;  %3636 = vmatmul.bf16.vlgmr.msra.gmra.mxu1 %v13359_v25 }
 0x1c8   :  { %v12610_v26 = vld [vmem:[#allocation5 + $0xfec] sm:$0xf0]  ;;  %3661 = vmatpush.bf16.msra.mxu3 %v8791_v27  ;;  %3680 = vmatpush.bf16.msrb.mxu1 %v9527_v29  ;;  %v3430_v27 = vadd.f32 %v3429_v20, %v3417_v19  ;;  %v12158_v19 = vld [vmem:[#allocation5 + $0x1d4] sm:$0xf] }
 0x1c9   :  { %v9238_v31 = vld [vmem:[#allocation5 + $0x990] sm:$0xf]  ;;  %v10039_v47 = vor.u32 %v12610_v26, %v10038_v24  ;;  %3649 = vmatmul.bf16.vlgmr.msra.gmra.mxu2 %v13350_v8  ;;  %v8248_v20 = vld [vmem:[#allocation5 + $0x1f0] sm:$0xf0] }
 0x1ca   :  { %v12410_v32 = vld [vmem:[#allocation5 + $0x9ac] sm:$0xf0]  ;;  %3693 = vmatpush.bf16.msrb.mxu2 %v9783_v30 }
 0x1cb   :  { %v9494_v33 = vld [vmem:[#allocation5 + $0xb90] sm:$0xf]  ;;  %v9239_v42 = vor.u32 %v12410_v32, %v9238_v31  ;;  %3662 = vmatmul.bf16.vlgmr.msra.gmra.mxu3 %v13354_v15 }
 0x1cc   :  { %v12474_v35 = vld [vmem:[#allocation5 + $0xbac] sm:$0xf0]  ;;  %3706 = vmatpush.bf16.msrb.mxu3 %v10039_v47  ;;  %v3442_v47 = vpop.f32.mrf.mxu2 }
 0x1cd   :  { %v9750_v36 = vld [vmem:[#allocation5 + $0xd90] sm:$0xf]  ;;  %v9495_v43 = vor.u32 %v12474_v35, %v9494_v33  ;;  %3668 = vmatpush.bf16.msrb.mxu0 %v9239_v42  ;;  %v3455_v42 = vpop.f32.mrf.mxu3 }
 0x1ce   :  { %v12538_v7 = vld [vmem:[#allocation5 + $0xdac] sm:$0xf0] }
 0x1cf   :  { %v10006_v39 = vld [vmem:[#allocation5 + $0xf90] sm:$0xf]  ;;  %v9751_v44 = vor.u32 %v12538_v7, %v9750_v36  ;;  %3681 = vmatpush.bf16.msrb.mxu1 %v9495_v43 }
 0x1d0   :  { %v12602_v41 = vld [vmem:[#allocation5 + $0xfac] sm:$0xf0] }
 0x1d1   :  { %v9206_v46 = vld [vmem:[#allocation5 + $0x950] sm:$0xf]  ;;  %v10007_v51 = vor.u32 %v12602_v41, %v10006_v39  ;;  %3694 = vmatpush.bf16.msrb.mxu2 %v9751_v44  ;;  %v3443_v41 = vadd.f32 %v3442_v47, %v3430_v27  ;;  %v12150_v47 = vld [vmem:[#allocation5 + $0x194] sm:$0xf] }
 0x1d2   :  { %v12402_v49 = vld [vmem:[#allocation5 + $0x96c] sm:$0xf0] }
 0x1d3   :  { %v9462_v50 = vld [vmem:[#allocation5 + $0xb50] sm:$0xf]  ;;  %v9207_v57 = vor.u32 %v12402_v49, %v9206_v46  ;;  %3707 = vmatpush.bf16.msrb.mxu3 %v10007_v51  ;;  %v13419_v49 = vadd.f32 %v3455_v42, %v3443_v41  ;;  %v12278_v41 = vld [vmem:[#allocation5 + $0x594] sm:$0xf] }
 0x1d4   :  { %v12466_v52 = vld [vmem:[#allocation5 + $0xb6c] sm:$0xf0]  ;;  %v3444_v12 = vpop.f32.mrf.mxu2  ;;  %v8728_v42 = vld [vmem:[#allocation5 + $0x5b0] sm:$0xf0] }
 0x1d5   :  { %v9718_v53 = vld [vmem:[#allocation5 + $0xd50] sm:$0xf]  ;;  %v9463_v59 = vor.u32 %v12466_v52, %v9462_v50  ;;  %3669 = vmatpush.bf16.msrb.mxu0 %v9207_v57  ;;  %v3418_v50 = vpop.f32.mrf.mxu0  ;;  %v12326_v12 = vld [vmem:[#allocation5 + $0x714] sm:$0xf] }
 0x1d6   :  { %v12530_v54 = vld [vmem:[#allocation5 + $0xd6c] sm:$0xf0] }
 0x1d7   :  { %v9974_v55 = vld [vmem:[#allocation5 + $0xf50] sm:$0xf]  ;;  %v9719_v60 = vor.u32 %v12530_v54, %v9718_v53  ;;  %3682 = vmatpush.bf16.msrb.mxu1 %v9463_v59 }
 0x1d8   :  { %v12594_v56 = vld [vmem:[#allocation5 + $0xf6c] sm:$0xf0] }
 0x1d9   :  { %v9174_v58 = vld [vmem:[#allocation5 + $0x910] sm:$0xf]  ;;  %v9975_v1 = vor.u32 %v12594_v56, %v9974_v55  ;;  %3695 = vmatpush.bf16.msrb.mxu2 %v9719_v60  ;;  %v3431_v56 = vpop.f32.mrf.mxu1 }
 0x1da   :  { %v12394_v61 = vld [vmem:[#allocation5 + $0x92c] sm:$0xf0]  ;;  %v8440_v56 = vld [vmem:[#allocation5 + $0x370] sm:$0xf0] }
 0x1db   :  { %v9430_v62 = vld [vmem:[#allocation5 + $0xb10] sm:$0xf]  ;;  %v9175_v11 = vor.u32 %v12394_v61, %v9174_v58  ;;  %3708 = vmatpush.bf16.msrb.mxu3 %v9975_v1 }
 0x1dc   :  { %v12458_v2 = vld [vmem:[#allocation5 + $0xb2c] sm:$0xf0] }
 0x1dd   :  { %v9686_v3 = vld [vmem:[#allocation5 + $0xd10] sm:$0xf]  ;;  %v9431_v13 = vor.u32 %v12458_v2, %v9430_v62  ;;  %3670 = vmatpush.bf16.msrb.mxu0 %v9175_v11 }
 0x1de   :  { %v12522_v4 = vld [vmem:[#allocation5 + $0xd2c] sm:$0xf0] }
 0x1df   :  { %v9942_v5 = vld [vmem:[#allocation5 + $0xf10] sm:$0xf]  ;;  %v9687_v14 = vor.u32 %v12522_v4, %v9686_v3  ;;  %3683 = vmatpush.bf16.msrb.mxu1 %v9431_v13 }
 0x1e0   :  { %v12586_v10 = vld [vmem:[#allocation5 + $0xf2c] sm:$0xf0] }
 0x1e1   :  { %v9142_v16 = vld [vmem:[#allocation5 + $0x8d0] sm:$0xf]  ;;  %v9943_v6 = vor.u32 %v12586_v10, %v9942_v5  ;;  %3696 = vmatpush.bf16.msrb.mxu2 %v9687_v14 }
 0x1e2   :  { %v12386_v17 = vld [vmem:[#allocation5 + $0x8ec] sm:$0xf0] }
 0x1e3   :  { %v9398_v18 = vld [vmem:[#allocation5 + $0xad0] sm:$0xf]  ;;  %v9143_v28 = vor.u32 %v12386_v17, %v9142_v16  ;;  %3709 = vmatpush.bf16.msrb.mxu3 %v9943_v6  ;;  %v12222_v6 = vld [vmem:[#allocation5 + $0x3d4] sm:$0xf] }
 0x1e4   :  { %v12450_v21 = vld [vmem:[#allocation5 + $0xaec] sm:$0xf0] }
 0x1e5   :  { %v9654_v22 = vld [vmem:[#allocation5 + $0xcd0] sm:$0xf]  ;;  %v9399_v29 = vor.u32 %v12450_v21, %v9398_v18  ;;  %3671 = vmatpush.bf16.msrb.mxu0 %v9143_v28  ;;  %v3457_v18 = vpop.f32.mrf.mxu3  ;;  %v12350_v28 = vld [vmem:[#allocation5 + $0x7d4] sm:$0xf] }
 0x1e6   :  { %v12514_v23 = vld [vmem:[#allocation5 + $0xcec] sm:$0xf0] }
 0x1e7   :  { %v9910_v24 = vld [vmem:[#allocation5 + $0xed0] sm:$0xf]  ;;  %v9655_v30 = vor.u32 %v12514_v23, %v9654_v22  ;;  %3684 = vmatpush.bf16.msrb.mxu1 %v9399_v29  ;;  %v8504_v22 = vld [vmem:[#allocation5 + $0x3f0] sm:$0xf0] }
 0x1e8   :  { %v12578_v26 = vld [vmem:[#allocation5 + $0xeec] sm:$0xf0]  ;;  %v12286_v23 = vld [vmem:[#allocation5 + $0x5d4] sm:$0xf] }
 0x1e9   :  { %v9110_v31 = vld [vmem:[#allocation5 + $0x890] sm:$0xf]  ;;  %v9911_v35 = vor.u32 %v12578_v26, %v9910_v24  ;;  %3697 = vmatpush.bf16.msrb.mxu2 %v9655_v30  ;;  %v8760_v24 = vld [vmem:[#allocation5 + $0x5f0] sm:$0xf0] }
 0x1ea   :  { %v12378_v32 = vld [vmem:[#allocation5 + $0x8ac] sm:$0xf0]  ;;  %v9016_v29 = vld [vmem:[#allocation5 + $0x7f0] sm:$0xf0] }
 0x1eb   :  { %v9366_v33 = vld [vmem:[#allocation5 + $0xa90] sm:$0xf]  ;;  %v9111_v46 = vor.u32 %v12378_v32, %v9110_v31  ;;  %3710 = vmatpush.bf16.msrb.mxu3 %v9911_v35  ;;  %v8251_v31 = vor.u32 %v12158_v19, %v8248_v20  ;;  %v8507_v32 = vor.u32 %v12222_v6, %v8504_v22  ;;  %v8216_v35 = vld [vmem:[#allocation5 + $0x1b0] sm:$0xf0]  ;;  %v3481_v22 = vpop.f32.mrf.mxu1 }
 0x1ec   :  { %v12442_v36 = vld [vmem:[#allocation5 + $0xaac] sm:$0xf0]  ;;  %v12126_v19 = vld [vmem:[#allocation5 + $0xd4] sm:$0xf] }
 0x1ed   :  { %v9622_v7 = vld [vmem:[#allocation5 + $0xc90] sm:$0xf]  ;;  %v9367_v51 = vor.u32 %v12442_v36, %v9366_v33  ;;  %3672 = vmatpush.bf16.msrb.mxu0 %v9111_v46  ;;  %v8763_v33 = vor.u32 %v12286_v23, %v8760_v24  ;;  %v12214_v36 = vld [vmem:[#allocation5 + $0x394] sm:$0xf]  ;;  %v8219_v46 = vor.u32 %v12150_v47, %v8216_v35 }
 0x1ee   :  { %v12506_v39 = vld [vmem:[#allocation5 + $0xcac] sm:$0xf0]  ;;  %v8120_v20 = vld [vmem:[#allocation5 + $0xf0] sm:$0xf0] }
 0x1ef   :  { %v9878_v43 = vld [vmem:[#allocation5 + $0xe90] sm:$0xf]  ;;  %v9623_v52 = vor.u32 %v12506_v39, %v9622_v7  ;;  %3685 = vmatpush.bf16.msrb.mxu1 %v9367_v51  ;;  %v9019_v7 = vor.u32 %v12350_v28, %v9016_v29  ;;  %v8472_v39 = vld [vmem:[#allocation5 + $0x3b0] sm:$0xf0]  ;;  %v8731_v51 = vor.u32 %v12278_v41, %v8728_v42 }
 0x1f0   :  { %v12570_v44 = vld [vmem:[#allocation5 + $0xeac] sm:$0xf0]  ;;  %v8475_v50 = vor.u32 %v12214_v36, %v8472_v39  ;;  %v12190_v6 = vld [vmem:[#allocation5 + $0x2d4] sm:$0xf] }
 0x1f1   :  { %v9078_v53 = vld [vmem:[#allocation5 + $0x850] sm:$0xf]  ;;  %v9879_v57 = vor.u32 %v12570_v44, %v9878_v43  ;;  %3698 = vmatpush.bf16.msrb.mxu2 %v9623_v52  ;;  %v12342_v43 = vld [vmem:[#allocation5 + $0x794] sm:$0xf] }
 0x1f2   :  { %v12370_v54 = vld [vmem:[#allocation5 + $0x86c] sm:$0xf0]  ;;  %v8984_v44 = vld [vmem:[#allocation5 + $0x7b0] sm:$0xf0] }
 0x1f3   :  { %v9334_v55 = vld [vmem:[#allocation5 + $0xa50] sm:$0xf]  ;;  %v9079_v0 = vor.u32 %v12370_v54, %v9078_v53  ;;  %3711 = vmatpush.bf16.msrb.mxu3 %v9879_v57  ;;  %v12142_v52 = vld [vmem:[#allocation5 + $0x154] sm:$0xf] }
 0x1f4   :  { %v12434_v58 = vld [vmem:[#allocation5 + $0xa6c] sm:$0xf0]  ;;  %v8184_v53 = vld [vmem:[#allocation5 + $0x170] sm:$0xf0] }
 0x1f5   :  { %v9590_v59 = vld [vmem:[#allocation5 + $0xc50] sm:$0xf]  ;;  %v9335_v3 = vor.u32 %v12434_v58, %v9334_v55  ;;  %3673 = vmatpush.bf16.msrb.mxu0 %v9079_v0  ;;  %v12206_v54 = vld [vmem:[#allocation5 + $0x354] sm:$0xf]  ;;  %v8987_v55 = vor.u32 %v12342_v43, %v8984_v44  ;;  %v3507_v44 = vpop.f32.mrf.mxu3 }
 0x1f6   :  { %v12498_v60 = vld [vmem:[#allocation5 + $0xc6c] sm:$0xf0]  ;;  %v12270_v57 = vld [vmem:[#allocation5 + $0x554] sm:$0xf] }
 0x1f7   :  { %v9846_v61 = vld [vmem:[#allocation5 + $0xe50] sm:$0xf]  ;;  %v9591_v4 = vor.u32 %v12498_v60, %v9590_v59  ;;  %3686 = vmatpush.bf16.msrb.mxu1 %v9335_v3  ;;  %v8696_v58 = vld [vmem:[#allocation5 + $0x570] sm:$0xf0] }
 0x1f8   :  { %v12562_v62 = vld [vmem:[#allocation5 + $0xe6c] sm:$0xf0]  ;;  %v12334_v59 = vld [vmem:[#allocation5 + $0x754] sm:$0xf]  ;;  %v8699_v0 = vor.u32 %v12270_v57, %v8696_v58 }
 0x1f9   :  { %v9046_v1 = vld [vmem:[#allocation5 + $0x810] sm:$0xf]  ;;  %v9847_v13 = vor.u32 %v12562_v62, %v9846_v61  ;;  %3699 = vmatpush.bf16.msrb.mxu2 %v9591_v4  ;;  %v8952_v60 = vld [vmem:[#allocation5 + $0x770] sm:$0xf0]  ;;  %v8187_v61 = vor.u32 %v12142_v52, %v8184_v53  ;;  %v8443_v62 = vor.u32 %v12206_v54, %v8440_v56 }
 0x1fa   :  { %v12362_v2 = vld [vmem:[#allocation5 + $0x82c] sm:$0xf0]  ;;  %v12198_v3 = vld [vmem:[#allocation5 + $0x314] sm:$0xf]  ;;  %v8955_v4 = vor.u32 %v12334_v59, %v8952_v60  ;;  %v3483_v59 = vpop.f32.mrf.mxu1 }
 0x1fb   :  { %v9302_v5 = vld [vmem:[#allocation5 + $0xa10] sm:$0xf]  ;;  %v9047_v21 = vor.u32 %v12362_v2, %v9046_v1  ;;  %3712 = vmatpush.bf16.msrb.mxu3 %v9847_v13  ;;  %v12134_v1 = vld [vmem:[#allocation5 + $0x114] sm:$0xf] }
 0x1fc   :  { %v12426_v10 = vld [vmem:[#allocation5 + $0xa2c] sm:$0xf0]  ;;  %v8152_v2 = vld [vmem:[#allocation5 + $0x130] sm:$0xf0] }
 0x1fd   :  { %v9558_v11 = vld [vmem:[#allocation5 + $0xc10] sm:$0xf]  ;;  %v9303_v26 = vor.u32 %v12426_v10, %v9302_v5  ;;  %3674 = vmatpush.bf16.msrb.mxu0 %v9047_v21  ;;  %v8408_v5 = vld [vmem:[#allocation5 + $0x330] sm:$0xf0] }
 0x1fe   :  { %v12490_v14 = vld [vmem:[#allocation5 + $0xc2c] sm:$0xf0]  ;;  %v12262_v10 = vld [vmem:[#allocation5 + $0x514] sm:$0xf] }
 0x1ff   :  { %v9814_v16 = vld [vmem:[#allocation5 + $0xe10] sm:$0xf]  ;;  %v9559_v27 = vor.u32 %v12490_v14, %v9558_v11  ;;  %3687 = vmatpush.bf16.msrb.mxu1 %v9303_v26  ;;  %v8664_v11 = vld [vmem:[#allocation5 + $0x530] sm:$0xf0]  ;;  %v8155_v14 = vor.u32 %v12134_v1, %v8152_v2 }
 0x200   :  { %v12554_v17 = vld [vmem:[#allocation5 + $0xe2c] sm:$0xf0]  ;;  %3675 = vmatmul.bf16.vlgmr.msrb.gmra.mxu0 %v13364_v37  ;;  %v8920_v13 = vld [vmem:[#allocation5 + $0x730] sm:$0xf0]  ;;  %v8667_v18 = vor.u32 %v12262_v10, %v8664_v11 }
 0x201   :  { %v9815_v30 = vor.u32 %v12554_v17, %v9814_v16  ;;  %3700 = vmatpush.bf16.msrb.mxu2 %v9559_v27  ;;  %3719 = vmatpush.bf16.msra.mxu0 %v8251_v31  ;;  %v3468_v16 = vpop.f32.mrf.mxu0  ;;  %v8411_v17 = vor.u32 %v12198_v3, %v8408_v5  ;;  %v8923_v23 = vor.u32 %v12326_v12, %v8920_v13  ;;  %v8376_v24 = vld [vmem:[#allocation5 + $0x2f0] sm:$0xf0] }
 0x202   :  { %3688 = vmatmul.bf16.vlgmr.msrb.gmra.mxu1 %v13368_v40  ;;  %v3469_v21 = vadd.f32 %v3468_v16, %v13419_v49  ;;  %v12254_v26 = vld [vmem:[#allocation5 + $0x4d4] sm:$0xf]  ;;  %v8123_v31 = vor.u32 %v12126_v19, %v8120_v20 }
 0x203   :  { %3713 = vmatpush.bf16.msrb.mxu3 %v9815_v30  ;;  %3732 = vmatpush.bf16.msra.mxu1 %v8507_v32  ;;  %v8632_v27 = vld [vmem:[#allocation5 + $0x4f0] sm:$0xf0]  ;;  %v8379_v32 = vor.u32 %v12190_v6, %v8376_v24  ;;  %v3509_v6 = vpop.f32.mrf.mxu3 }
 0x204   :  { %3701 = vmatmul.bf16.vlgmr.msrb.gmra.mxu2 %v13362_v34  ;;  %v12318_v28 = vld [vmem:[#allocation5 + $0x6d4] sm:$0xf]  ;;  %v3482_v30 = vadd.f32 %v3481_v22, %v3469_v21 }
 0x205   :  { %3745 = vmatpush.bf16.msra.mxu2 %v8763_v33  ;;  %3720 = vmatpush.bf16.msra.mxu0 %v8219_v46  ;;  %v8888_v29 = vld [vmem:[#allocation5 + $0x6f0] sm:$0xf0]  ;;  %v8635_v33 = vor.u32 %v12254_v26, %v8632_v27 }
 0x206   :  { %3714 = vmatmul.bf16.vlgmr.msrb.gmra.mxu3 %v13366_v38  ;;  %v12118_v47 = vld [vmem:[#allocation5 + $0x94] sm:$0xf]  ;;  %v8891_v49 = vor.u32 %v12318_v28, %v8888_v29 }
 0x207   :  { %3758 = vmatpush.bf16.msra.mxu3 %v9019_v7  ;;  %3733 = vmatpush.bf16.msra.mxu1 %v8475_v50  ;;  %v8088_v35 = vld [vmem:[#allocation5 + $0xb0] sm:$0xf0]  ;;  %v3494_v7 = vpop.f32.mrf.mxu2 }
 0x208   :  { %v12182_v36 = vld [vmem:[#allocation5 + $0x294] sm:$0xf]  ;;  %v3495_v43 = vadd.f32 %v3494_v7, %v3482_v30 }
 0x209   :  { %3746 = vmatpush.bf16.msra.mxu2 %v8731_v51  ;;  %3721 = vmatpush.bf16.msra.mxu0 %v8187_v61  ;;  %v8344_v39 = vld [vmem:[#allocation5 + $0x2b0] sm:$0xf0]  ;;  %v8091_v51 = vor.u32 %v12118_v47, %v8088_v35  ;;  %v3470_v53 = vpop.f32.mrf.mxu0 }
 0x20a   :  { %v12246_v41 = vld [vmem:[#allocation5 + $0x494] sm:$0xf]  ;;  %v13426_v52 = vadd.f32 %v3507_v44, %v3495_v43  ;;  %v8347_v54 = vor.u32 %v12182_v36, %v8344_v39 }
 0x20b   :  { %3759 = vmatpush.bf16.msra.mxu3 %v8987_v55  ;;  %3734 = vmatpush.bf16.msra.mxu1 %v8443_v62  ;;  %v8600_v42 = vld [vmem:[#allocation5 + $0x4b0] sm:$0xf0] }
 0x20c   :  { %v12310_v46 = vld [vmem:[#allocation5 + $0x694] sm:$0xf]  ;;  %v8603_v55 = vor.u32 %v12246_v41, %v8600_v42 }
 0x20d   :  { %3747 = vmatpush.bf16.msra.mxu2 %v8699_v0  ;;  %3722 = vmatpush.bf16.msra.mxu0 %v8155_v14  ;;  %v8856_v50 = vld [vmem:[#allocation5 + $0x6b0] sm:$0xf0] }
 0x20e   :  { %v12110_v56 = vld [vmem:[#allocation5 + $0x54] sm:$0xf]  ;;  %v8859_v60 = vor.u32 %v12310_v46, %v8856_v50 }
 0x20f   :  { %3760 = vmatpush.bf16.msra.mxu3 %v8955_v4  ;;  %3735 = vmatpush.bf16.msra.mxu1 %v8411_v17  ;;  %v8056_v57 = vld [vmem:[#allocation5 + $0x70] sm:$0xf0]  ;;  %v3496_v16 = vpop.f32.mrf.mxu2 }
 0x210   :  { %v12174_v58 = vld [vmem:[#allocation5 + $0x254] sm:$0xf]  ;;  %v8059_v3 = vor.u32 %v12110_v56, %v8056_v57 }
 0x211   :  { %3748 = vmatpush.bf16.msra.mxu2 %v8667_v18  ;;  %3723 = vmatpush.bf16.msra.mxu0 %v8123_v31  ;;  %v8312_v61 = vld [vmem:[#allocation5 + $0x270] sm:$0xf0] }
 0x212   :  { %v12238_v62 = vld [vmem:[#allocation5 + $0x454] sm:$0xf]  ;;  %v8315_v10 = vor.u32 %v12174_v58, %v8312_v61 }
 0x213   :  { %3761 = vmatpush.bf16.msra.mxu3 %v8923_v23  ;;  %3736 = vmatpush.bf16.msra.mxu1 %v8379_v32  ;;  %v8568_v0 = vld [vmem:[#allocation5 + $0x470] sm:$0xf0] }
 0x214   :  { %v12302_v1 = vld [vmem:[#allocation5 + $0x654] sm:$0xf]  ;;  %v8571_v11 = vor.u32 %v12238_v62, %v8568_v0 }
 0x215   :  { %3749 = vmatpush.bf16.msra.mxu2 %v8635_v33  ;;  %v8824_v2 = vld [vmem:[#allocation5 + $0x670] sm:$0xf0]  ;;  %3724 = vmatpush.bf16.msra.mxu0 %v8091_v51 }
 0x216   :  { %v12102_v4 = vld [vmem:[#allocation5 + $0x14] sm:$0xf]  ;;  %v8827_v17 = vor.u32 %v12302_v1, %v8824_v2 }
 0x217   :  { %3762 = vmatpush.bf16.msra.mxu3 %v8891_v49  ;;  %v8024_v5 = vld [vmem:[#allocation5 + $0x30] sm:$0xf0]  ;;  %3737 = vmatpush.bf16.msra.mxu1 %v8347_v54 }
 0x218   :  { %v12166_v12 = vld [vmem:[#allocation5 + $0x214] sm:$0xf]  ;;  %v8027_v24 = vor.u32 %v12102_v4, %v8024_v5 }
 0x219   :  { %3750 = vmatpush.bf16.msra.mxu2 %v8603_v55  ;;  %v8280_v13 = vld [vmem:[#allocation5 + $0x230] sm:$0xf0]  ;;  %3725 = vmatpush.bf16.msra.mxu0 %v8059_v3 }
 0x21a   :  { %v12230_v14 = vld [vmem:[#allocation5 + $0x414] sm:$0xf]  ;;  %v8283_v29 = vor.u32 %v12166_v12, %v8280_v13 }
 0x21b   :  { %3763 = vmatpush.bf16.msra.mxu3 %v8859_v60  ;;  %v8536_v18 = vld [vmem:[#allocation5 + $0x430] sm:$0xf0]  ;;  %3738 = vmatpush.bf16.msra.mxu1 %v8315_v10 }
 0x21c   :  { %v12294_v19 = vld [vmem:[#allocation5 + $0x614] sm:$0xf]  ;;  %v8539_v30 = vor.u32 %v12230_v14, %v8536_v18 }
 0x21d   :  { %v8792_v20 = vld [vmem:[#allocation5 + $0x630] sm:$0xf0]  ;;  %3751 = vmatpush.bf16.msra.mxu2 %v8571_v11  ;;  %3726 = vmatpush.bf16.msra.mxu0 %v8027_v24  ;;  %v626_v11 = vperm.slane %v13416_v63, 3 }
 0x21e   :  { %v12414_v21 = vld [vmem:[#allocation5 + $0x9d4] sm:$0xf]  ;;  %v8795_v33 = vor.u32 %v12294_v19, %v8792_v20  ;;  %v3520_v20 = vpop.f32.mrf.mxu0 }
 0x21f   :  { %v9272_v22 = vld [vmem:[#allocation5 + $0x9f0] sm:$0xf0]  ;;  %3764 = vmatpush.bf16.msra.mxu3 %v8827_v17  ;;  %3739 = vmatpush.bf16.msra.mxu1 %v8283_v29 }
 0x220   :  { %v12478_v23 = vld [vmem:[#allocation5 + $0xbd4] sm:$0xf]  ;;  %v9275_v47 = vor.u32 %v12414_v21, %v9272_v22  ;;  %3727 = vmatmul.bf16.vlgmr.msra.gmra.mxu0 %v13352_v9 }
 0x221   :  { %v9528_v26 = vld [vmem:[#allocation5 + $0xbf0] sm:$0xf0]  ;;  %3752 = vmatpush.bf16.msra.mxu2 %v8539_v30 }
 0x222   :  { %v12542_v27 = vld [vmem:[#allocation5 + $0xdd4] sm:$0xf]  ;;  %v9531_v35 = vor.u32 %v12478_v23, %v9528_v26  ;;  %3771 = vmatpush.bf16.msrb.mxu0 %v9275_v47  ;;  %3740 = vmatmul.bf16.vlgmr.msra.gmra.mxu1 %v13359_v25  ;;  %v3521_v26 = vadd.f32 %v3520_v20, %v626_v11 }
 0x223   :  { %v9784_v28 = vld [vmem:[#allocation5 + $0xdf0] sm:$0xf0]  ;;  %3765 = vmatpush.bf16.msra.mxu3 %v8795_v33 }
 0x224   :  { %v12606_v31 = vld [vmem:[#allocation5 + $0xfd4] sm:$0xf]  ;;  %v9787_v36 = vor.u32 %v12542_v27, %v9784_v28  ;;  %3784 = vmatpush.bf16.msrb.mxu1 %v9531_v35  ;;  %3753 = vmatmul.bf16.vlgmr.msra.gmra.mxu2 %v13350_v8  ;;  %v3533_v27 = vpop.f32.mrf.mxu1 }
 0x225   :  { %v10040_v32 = vld [vmem:[#allocation5 + $0xff0] sm:$0xf0]  ;;  %v3534_v33 = vadd.f32 %v3533_v27, %v3521_v26  ;;  %v8254_v26 = vld [vmem:[#allocation5 + $0x1d8] sm:$0xf] }
 0x226   :  { %v12406_v7 = vld [vmem:[#allocation5 + $0x994] sm:$0xf]  ;;  %v10043_v41 = vor.u32 %v12606_v31, %v10040_v32  ;;  %3797 = vmatpush.bf16.msrb.mxu2 %v9787_v36  ;;  %3766 = vmatmul.bf16.vlgmr.msra.gmra.mxu3 %v13354_v15  ;;  %v12163_v27 = vld [vmem:[#allocation5 + $0x1f4] sm:$0xf0] }
 0x227   :  { %v9240_v49 = vld [vmem:[#allocation5 + $0x9b0] sm:$0xf0] }
 0x228   :  { %v12470_v39 = vld [vmem:[#allocation5 + $0xb94] sm:$0xf]  ;;  %v9243_v51 = vor.u32 %v12406_v7, %v9240_v49  ;;  %3810 = vmatpush.bf16.msrb.mxu3 %v10043_v41  ;;  %v3546_v41 = vpop.f32.mrf.mxu2 }
 0x229   :  { %v9496_v42 = vld [vmem:[#allocation5 + $0xbb0] sm:$0xf0] }
 0x22a   :  { %v12534_v43 = vld [vmem:[#allocation5 + $0xd94] sm:$0xf]  ;;  %v9499_v53 = vor.u32 %v12470_v39, %v9496_v42  ;;  %3772 = vmatpush.bf16.msrb.mxu0 %v9243_v51  ;;  %v3559_v51 = vpop.f32.mrf.mxu3 }
 0x22b   :  { %v9752_v44 = vld [vmem:[#allocation5 + $0xdb0] sm:$0xf0] }
 0x22c   :  { %v12598_v46 = vld [vmem:[#allocation5 + $0xf94] sm:$0xf]  ;;  %v9755_v54 = vor.u32 %v12534_v43, %v9752_v44  ;;  %3785 = vmatpush.bf16.msrb.mxu1 %v9499_v53 }
 0x22d   :  { %v10008_v50 = vld [vmem:[#allocation5 + $0xfb0] sm:$0xf0] }
 0x22e   :  { %v12398_v55 = vld [vmem:[#allocation5 + $0x954] sm:$0xf]  ;;  %v10011_v58 = vor.u32 %v12598_v46, %v10008_v50  ;;  %3798 = vmatpush.bf16.msrb.mxu2 %v9755_v54  ;;  %v3547_v50 = vadd.f32 %v3546_v41, %v3534_v33  ;;  %v8222_v41 = vld [vmem:[#allocation5 + $0x198] sm:$0xf] }
 0x22f   :  { %v9208_v56 = vld [vmem:[#allocation5 + $0x970] sm:$0xf0] }
 0x230   :  { %v12462_v57 = vld [vmem:[#allocation5 + $0xb54] sm:$0xf]  ;;  %v9211_v1 = vor.u32 %v12398_v55, %v9208_v56  ;;  %3811 = vmatpush.bf16.msrb.mxu3 %v10011_v58  ;;  %v13433_v56 = vadd.f32 %v3559_v51, %v3547_v50  ;;  %v3548_v20 = vpop.f32.mrf.mxu2  ;;  %v8734_v50 = vld [vmem:[#allocation5 + $0x598] sm:$0xf] }
 0x231   :  { %v9464_v59 = vld [vmem:[#allocation5 + $0xb70] sm:$0xf0]  ;;  %v12283_v51 = vld [vmem:[#allocation5 + $0x5b4] sm:$0xf0] }
 0x232   :  { %v12526_v60 = vld [vmem:[#allocation5 + $0xd54] sm:$0xf]  ;;  %v9467_v3 = vor.u32 %v12462_v57, %v9464_v59  ;;  %3773 = vmatpush.bf16.msrb.mxu0 %v9211_v1  ;;  %v3522_v57 = vpop.f32.mrf.mxu0  ;;  %v8926_v20 = vld [vmem:[#allocation5 + $0x718] sm:$0xf] }
 0x233   :  { %v9720_v61 = vld [vmem:[#allocation5 + $0xd70] sm:$0xf0] }
 0x234   :  { %v12590_v62 = vld [vmem:[#allocation5 + $0xf54] sm:$0xf]  ;;  %v9723_v4 = vor.u32 %v12526_v60, %v9720_v61  ;;  %3786 = vmatpush.bf16.msrb.mxu1 %v9467_v3 }
 0x235   :  { %v9976_v0 = vld [vmem:[#allocation5 + $0xf70] sm:$0xf0] }
 0x236   :  { %v12390_v2 = vld [vmem:[#allocation5 + $0x914] sm:$0xf]  ;;  %v9979_v12 = vor.u32 %v12590_v62, %v9976_v0  ;;  %3799 = vmatpush.bf16.msrb.mxu2 %v9723_v4  ;;  %v3535_v0 = vpop.f32.mrf.mxu1 }
 0x237   :  { %v9176_v5 = vld [vmem:[#allocation5 + $0x930] sm:$0xf0]  ;;  %v12211_v0 = vld [vmem:[#allocation5 + $0x374] sm:$0xf0] }
 0x238   :  { %v12454_v10 = vld [vmem:[#allocation5 + $0xb14] sm:$0xf]  ;;  %v9179_v19 = vor.u32 %v12390_v2, %v9176_v5  ;;  %3812 = vmatpush.bf16.msrb.mxu3 %v9979_v12 }
 0x239   :  { %v9432_v13 = vld [vmem:[#allocation5 + $0xb30] sm:$0xf0] }
 0x23a   :  { %v12518_v14 = vld [vmem:[#allocation5 + $0xd14] sm:$0xf]  ;;  %v9435_v6 = vor.u32 %v12454_v10, %v9432_v13  ;;  %3774 = vmatpush.bf16.msrb.mxu0 %v9179_v19 }
 0x23b   :  { %v9688_v16 = vld [vmem:[#allocation5 + $0xd30] sm:$0xf0] }
 0x23c   :  { %v12582_v17 = vld [vmem:[#allocation5 + $0xf14] sm:$0xf]  ;;  %v9691_v21 = vor.u32 %v12518_v14, %v9688_v16  ;;  %3787 = vmatpush.bf16.msrb.mxu1 %v9435_v6 }
 0x23d   :  { %v9944_v18 = vld [vmem:[#allocation5 + $0xf30] sm:$0xf0] }
 0x23e   :  { %v12382_v22 = vld [vmem:[#allocation5 + $0x8d4] sm:$0xf]  ;;  %v9947_v63 = vor.u32 %v12582_v17, %v9944_v18  ;;  %3800 = vmatpush.bf16.msrb.mxu2 %v9691_v21 }
 0x23f   :  { %v9144_v23 = vld [vmem:[#allocation5 + $0x8f0] sm:$0xf0] }
 0x240   :  { %v12446_v24 = vld [vmem:[#allocation5 + $0xad4] sm:$0xf]  ;;  %v9147_v47 = vor.u32 %v12382_v22, %v9144_v23  ;;  %3813 = vmatpush.bf16.msrb.mxu3 %v9947_v63  ;;  %v8510_v63 = vld [vmem:[#allocation5 + $0x3d8] sm:$0xf] }
 0x241   :  { %v9400_v28 = vld [vmem:[#allocation5 + $0xaf0] sm:$0xf0] }
 0x242   :  { %v12510_v29 = vld [vmem:[#allocation5 + $0xcd4] sm:$0xf]  ;;  %v9403_v35 = vor.u32 %v12446_v24, %v9400_v28  ;;  %3775 = vmatpush.bf16.msrb.mxu0 %v9147_v47  ;;  %v3561_v24 = vpop.f32.mrf.mxu3  ;;  %v9022_v47 = vld [vmem:[#allocation5 + $0x7d8] sm:$0xf] }
 0x243   :  { %v9656_v30 = vld [vmem:[#allocation5 + $0xcf0] sm:$0xf0] }
 0x244   :  { %v12574_v31 = vld [vmem:[#allocation5 + $0xed4] sm:$0xf]  ;;  %v9659_v36 = vor.u32 %v12510_v29, %v9656_v30  ;;  %3788 = vmatpush.bf16.msrb.mxu1 %v9403_v35  ;;  %v12227_v29 = vld [vmem:[#allocation5 + $0x3f4] sm:$0xf0] }
 0x245   :  { %v9912_v32 = vld [vmem:[#allocation5 + $0xef0] sm:$0xf0]  ;;  %v8766_v30 = vld [vmem:[#allocation5 + $0x5d8] sm:$0xf] }
 0x246   :  { %v12374_v7 = vld [vmem:[#allocation5 + $0x894] sm:$0xf]  ;;  %v9915_v42 = vor.u32 %v12574_v31, %v9912_v32  ;;  %3801 = vmatpush.bf16.msrb.mxu2 %v9659_v36  ;;  %v12291_v31 = vld [vmem:[#allocation5 + $0x5f4] sm:$0xf0] }
 0x247   :  { %v9112_v49 = vld [vmem:[#allocation5 + $0x8b0] sm:$0xf0]  ;;  %v12355_v35 = vld [vmem:[#allocation5 + $0x7f4] sm:$0xf0] }
 0x248   :  { %v12438_v39 = vld [vmem:[#allocation5 + $0xa94] sm:$0xf]  ;;  %v9115_v55 = vor.u32 %v12374_v7, %v9112_v49  ;;  %3814 = vmatpush.bf16.msrb.mxu3 %v9915_v42  ;;  %v8255_v7 = vor.u32 %v12163_v27, %v8254_v26  ;;  %v8511_v49 = vor.u32 %v12227_v29, %v8510_v63  ;;  %v12155_v42 = vld [vmem:[#allocation5 + $0x1b4] sm:$0xf0]  ;;  %v3585_v29 = vpop.f32.mrf.mxu1 }
 0x249   :  { %v9368_v43 = vld [vmem:[#allocation5 + $0xab0] sm:$0xf0]  ;;  %v8126_v26 = vld [vmem:[#allocation5 + $0xd8] sm:$0xf] }
 0x24a   :  { %v12502_v44 = vld [vmem:[#allocation5 + $0xc94] sm:$0xf]  ;;  %v9371_v58 = vor.u32 %v12438_v39, %v9368_v43  ;;  %3776 = vmatpush.bf16.msrb.mxu0 %v9115_v55  ;;  %v8767_v39 = vor.u32 %v12291_v31, %v8766_v30  ;;  %v8478_v43 = vld [vmem:[#allocation5 + $0x398] sm:$0xf]  ;;  %v8223_v55 = vor.u32 %v12155_v42, %v8222_v41 }
 0x24b   :  { %v9624_v46 = vld [vmem:[#allocation5 + $0xcb0] sm:$0xf0]  ;;  %v12131_v27 = vld [vmem:[#allocation5 + $0xf4] sm:$0xf0] }
 0x24c   :  { %v12566_v53 = vld [vmem:[#allocation5 + $0xe94] sm:$0xf]  ;;  %v9627_v59 = vor.u32 %v12502_v44, %v9624_v46  ;;  %3789 = vmatpush.bf16.msrb.mxu1 %v9371_v58  ;;  %v9023_v44 = vor.u32 %v12355_v35, %v9022_v47  ;;  %v12219_v46 = vld [vmem:[#allocation5 + $0x3b4] sm:$0xf0]  ;;  %v8735_v58 = vor.u32 %v12283_v51, %v8734_v50 }
 0x24d   :  { %v9880_v54 = vld [vmem:[#allocation5 + $0xeb0] sm:$0xf0]  ;;  %v8479_v57 = vor.u32 %v12219_v46, %v8478_v43  ;;  %v8382_v63 = vld [vmem:[#allocation5 + $0x2d8] sm:$0xf] }
 0x24e   :  { %v12366_v60 = vld [vmem:[#allocation5 + $0x854] sm:$0xf]  ;;  %v9883_v1 = vor.u32 %v12566_v53, %v9880_v54  ;;  %3802 = vmatpush.bf16.msrb.mxu2 %v9627_v59  ;;  %v8990_v53 = vld [vmem:[#allocation5 + $0x798] sm:$0xf] }
 0x24f   :  { %v9080_v61 = vld [vmem:[#allocation5 + $0x870] sm:$0xf0]  ;;  %v12347_v54 = vld [vmem:[#allocation5 + $0x7b4] sm:$0xf0] }
 0x250   :  { %v12430_v62 = vld [vmem:[#allocation5 + $0xa54] sm:$0xf]  ;;  %v9083_v11 = vor.u32 %v12366_v60, %v9080_v61  ;;  %3815 = vmatpush.bf16.msrb.mxu3 %v9883_v1  ;;  %v8190_v59 = vld [vmem:[#allocation5 + $0x158] sm:$0xf] }
 0x251   :  { %v9336_v2 = vld [vmem:[#allocation5 + $0xa70] sm:$0xf0]  ;;  %v12147_v60 = vld [vmem:[#allocation5 + $0x174] sm:$0xf0] }
 0x252   :  { %v12494_v3 = vld [vmem:[#allocation5 + $0xc54] sm:$0xf]  ;;  %v9339_v14 = vor.u32 %v12430_v62, %v9336_v2  ;;  %3777 = vmatpush.bf16.msrb.mxu0 %v9083_v11  ;;  %v8446_v61 = vld [vmem:[#allocation5 + $0x358] sm:$0xf]  ;;  %v8991_v62 = vor.u32 %v12347_v54, %v8990_v53  ;;  %v3611_v54 = vpop.f32.mrf.mxu3 }
 0x253   :  { %v9592_v4 = vld [vmem:[#allocation5 + $0xc70] sm:$0xf0]  ;;  %v8702_v1 = vld [vmem:[#allocation5 + $0x558] sm:$0xf] }
 0x254   :  { %v12558_v5 = vld [vmem:[#allocation5 + $0xe54] sm:$0xf]  ;;  %v9595_v16 = vor.u32 %v12494_v3, %v9592_v4  ;;  %3790 = vmatpush.bf16.msrb.mxu1 %v9339_v14  ;;  %v12275_v2 = vld [vmem:[#allocation5 + $0x574] sm:$0xf0] }
 0x255   :  { %v9848_v10 = vld [vmem:[#allocation5 + $0xe70] sm:$0xf0]  ;;  %v8958_v3 = vld [vmem:[#allocation5 + $0x758] sm:$0xf]  ;;  %v8703_v11 = vor.u32 %v12275_v2, %v8702_v1 }
 0x256   :  { %v12358_v12 = vld [vmem:[#allocation5 + $0x814] sm:$0xf]  ;;  %v9851_v6 = vor.u32 %v12558_v5, %v9848_v10  ;;  %3803 = vmatpush.bf16.msrb.mxu2 %v9595_v16  ;;  %v12339_v4 = vld [vmem:[#allocation5 + $0x774] sm:$0xf0]  ;;  %v8191_v5 = vor.u32 %v12147_v60, %v8190_v59  ;;  %v8447_v10 = vor.u32 %v12211_v0, %v8446_v61 }
 0x257   :  { %v9048_v13 = vld [vmem:[#allocation5 + $0x830] sm:$0xf0]  ;;  %v8414_v14 = vld [vmem:[#allocation5 + $0x318] sm:$0xf]  ;;  %v8959_v16 = vor.u32 %v12339_v4, %v8958_v3  ;;  %v3587_v3 = vpop.f32.mrf.mxu1 }
 0x258   :  { %v12422_v17 = vld [vmem:[#allocation5 + $0xa14] sm:$0xf]  ;;  %v9051_v28 = vor.u32 %v12358_v12, %v9048_v13  ;;  %3816 = vmatpush.bf16.msrb.mxu3 %v9851_v6  ;;  %v8158_v12 = vld [vmem:[#allocation5 + $0x118] sm:$0xf] }
 0x259   :  { %v9304_v18 = vld [vmem:[#allocation5 + $0xa30] sm:$0xf0]  ;;  %v12139_v13 = vld [vmem:[#allocation5 + $0x134] sm:$0xf0] }
 0x25a   :  { %v12486_v19 = vld [vmem:[#allocation5 + $0xc14] sm:$0xf]  ;;  %v9307_v32 = vor.u32 %v12422_v17, %v9304_v18  ;;  %3778 = vmatpush.bf16.msrb.mxu0 %v9051_v28  ;;  %v12203_v17 = vld [vmem:[#allocation5 + $0x334] sm:$0xf0] }
 0x25b   :  { %v9560_v21 = vld [vmem:[#allocation5 + $0xc30] sm:$0xf0]  ;;  %v8670_v18 = vld [vmem:[#allocation5 + $0x518] sm:$0xf] }
 0x25c   :  { %v12550_v22 = vld [vmem:[#allocation5 + $0xe14] sm:$0xf]  ;;  %v9563_v33 = vor.u32 %v12486_v19, %v9560_v21  ;;  %3791 = vmatpush.bf16.msrb.mxu1 %v9307_v32  ;;  %v12267_v19 = vld [vmem:[#allocation5 + $0x534] sm:$0xf0]  ;;  %v8159_v21 = vor.u32 %v12139_v13, %v8158_v12 }
 0x25d   :  { %v9816_v23 = vld [vmem:[#allocation5 + $0xe30] sm:$0xf0]  ;;  %3779 = vmatmul.bf16.vlgmr.msrb.gmra.mxu0 %v13364_v37  ;;  %v12331_v6 = vld [vmem:[#allocation5 + $0x734] sm:$0xf0]  ;;  %v8671_v24 = vor.u32 %v12267_v19, %v8670_v18 }
 0x25e   :  { %v9819_v36 = vor.u32 %v12550_v22, %v9816_v23  ;;  %3804 = vmatpush.bf16.msrb.mxu2 %v9563_v33  ;;  %3823 = vmatpush.bf16.msra.mxu0 %v8255_v7  ;;  %v3572_v22 = vpop.f32.mrf.mxu0  ;;  %v8415_v23 = vor.u32 %v12203_v17, %v8414_v14  ;;  %v8927_v30 = vor.u32 %v12331_v6, %v8926_v20  ;;  %v12195_v31 = vld [vmem:[#allocation5 + $0x2f4] sm:$0xf0] }
 0x25f   :  { %3792 = vmatmul.bf16.vlgmr.msrb.gmra.mxu1 %v13368_v40  ;;  %v3573_v28 = vadd.f32 %v3572_v22, %v13433_v56  ;;  %v8638_v32 = vld [vmem:[#allocation5 + $0x4d8] sm:$0xf]  ;;  %v8127_v7 = vor.u32 %v12131_v27, %v8126_v26 }
 0x260   :  { %3817 = vmatpush.bf16.msrb.mxu3 %v9819_v36  ;;  %3836 = vmatpush.bf16.msra.mxu1 %v8511_v49  ;;  %v12259_v33 = vld [vmem:[#allocation5 + $0x4f4] sm:$0xf0]  ;;  %v8383_v49 = vor.u32 %v12195_v31, %v8382_v63  ;;  %v3613_v63 = vpop.f32.mrf.mxu3 }
 0x261   :  { %3805 = vmatmul.bf16.vlgmr.msrb.gmra.mxu2 %v13362_v34  ;;  %v8894_v47 = vld [vmem:[#allocation5 + $0x6d8] sm:$0xf]  ;;  %v3586_v36 = vadd.f32 %v3585_v29, %v3573_v28 }
 0x262   :  { %3849 = vmatpush.bf16.msra.mxu2 %v8767_v39  ;;  %3824 = vmatpush.bf16.msra.mxu0 %v8223_v55  ;;  %v12323_v35 = vld [vmem:[#allocation5 + $0x6f4] sm:$0xf0]  ;;  %v8639_v39 = vor.u32 %v12259_v33, %v8638_v32 }
 0x263   :  { %3818 = vmatmul.bf16.vlgmr.msrb.gmra.mxu3 %v13366_v38  ;;  %v8094_v41 = vld [vmem:[#allocation5 + $0x98] sm:$0xf]  ;;  %v8895_v56 = vor.u32 %v12323_v35, %v8894_v47 }
 0x264   :  { %3862 = vmatpush.bf16.msra.mxu3 %v9023_v44  ;;  %3837 = vmatpush.bf16.msra.mxu1 %v8479_v57  ;;  %v12123_v42 = vld [vmem:[#allocation5 + $0xb4] sm:$0xf0]  ;;  %v3598_v44 = vpop.f32.mrf.mxu2 }
 0x265   :  { %v8350_v43 = vld [vmem:[#allocation5 + $0x298] sm:$0xf]  ;;  %v3599_v53 = vadd.f32 %v3598_v44, %v3586_v36 }
 0x266   :  { %3850 = vmatpush.bf16.msra.mxu2 %v8735_v58  ;;  %3825 = vmatpush.bf16.msra.mxu0 %v8191_v5  ;;  %v12187_v46 = vld [vmem:[#allocation5 + $0x2b4] sm:$0xf0]  ;;  %v8095_v58 = vor.u32 %v12123_v42, %v8094_v41  ;;  %v3574_v60 = vpop.f32.mrf.mxu0 }
 0x267   :  { %v8606_v50 = vld [vmem:[#allocation5 + $0x498] sm:$0xf]  ;;  %v13440_v59 = vadd.f32 %v3611_v54, %v3599_v53  ;;  %v8351_v61 = vor.u32 %v12187_v46, %v8350_v43 }
 0x268   :  { %3863 = vmatpush.bf16.msra.mxu3 %v8991_v62  ;;  %3838 = vmatpush.bf16.msra.mxu1 %v8447_v10  ;;  %v12251_v51 = vld [vmem:[#allocation5 + $0x4b4] sm:$0xf0] }
 0x269   :  { %v8862_v55 = vld [vmem:[#allocation5 + $0x698] sm:$0xf]  ;;  %v8607_v62 = vor.u32 %v12251_v51, %v8606_v50 }
 0x26a   :  { %3851 = vmatpush.bf16.msra.mxu2 %v8703_v11  ;;  %3826 = vmatpush.bf16.msra.mxu0 %v8159_v21  ;;  %v12315_v57 = vld [vmem:[#allocation5 + $0x6b4] sm:$0xf0] }
 0x26b   :  { %v8062_v0 = vld [vmem:[#allocation5 + $0x58] sm:$0xf]  ;;  %v8863_v4 = vor.u32 %v12315_v57, %v8862_v55 }
 0x26c   :  { %3864 = vmatpush.bf16.msra.mxu3 %v8959_v16  ;;  %3839 = vmatpush.bf16.msra.mxu1 %v8415_v23  ;;  %v12115_v1 = vld [vmem:[#allocation5 + $0x74] sm:$0xf0]  ;;  %v3600_v22 = vpop.f32.mrf.mxu2 }
 0x26d   :  { %v8318_v2 = vld [vmem:[#allocation5 + $0x258] sm:$0xf]  ;;  %v8063_v14 = vor.u32 %v12115_v1, %v8062_v0 }
 0x26e   :  { %3852 = vmatpush.bf16.msra.mxu2 %v8671_v24  ;;  %3827 = vmatpush.bf16.msra.mxu0 %v8127_v7  ;;  %v12179_v5 = vld [vmem:[#allocation5 + $0x274] sm:$0xf0]  ;;  %v3624_v63 = vpop.f32.mrf.mxu0 }
 0x26f   :  { %v8574_v10 = vld [vmem:[#allocation5 + $0x458] sm:$0xf]  ;;  %v8319_v18 = vor.u32 %v12179_v5, %v8318_v2 }
 0x270   :  { %3865 = vmatpush.bf16.msra.mxu3 %v8927_v30  ;;  %3840 = vmatpush.bf16.msra.mxu1 %v8383_v49  ;;  %v12243_v11 = vld [vmem:[#allocation5 + $0x474] sm:$0xf0] }
 0x271   :  { %v8830_v12 = vld [vmem:[#allocation5 + $0x658] sm:$0xf]  ;;  %v8575_v19 = vor.u32 %v12243_v11, %v8574_v10 }
 0x272   :  { %3853 = vmatpush.bf16.msra.mxu2 %v8639_v39  ;;  %v12307_v13 = vld [vmem:[#allocation5 + $0x674] sm:$0xf0]  ;;  %3828 = vmatpush.bf16.msra.mxu0 %v8095_v58 }
 0x273   :  { %v8030_v16 = vld [vmem:[#allocation5 + $0x18] sm:$0xf]  ;;  %v8831_v23 = vor.u32 %v12307_v13, %v8830_v12 }
 0x274   :  { %3866 = vmatpush.bf16.msra.mxu3 %v8895_v56  ;;  %v12107_v17 = vld [vmem:[#allocation5 + $0x34] sm:$0xf0]  ;;  %3841 = vmatpush.bf16.msra.mxu1 %v8351_v61 }
 0x275   :  { %v8286_v20 = vld [vmem:[#allocation5 + $0x218] sm:$0xf]  ;;  %v8031_v31 = vor.u32 %v12107_v17, %v8030_v16 }
 0x276   :  { %3854 = vmatpush.bf16.msra.mxu2 %v8607_v62  ;;  %v12171_v6 = vld [vmem:[#allocation5 + $0x234] sm:$0xf0]  ;;  %3829 = vmatpush.bf16.msra.mxu0 %v8063_v14 }
 0x277   :  { %v8542_v21 = vld [vmem:[#allocation5 + $0x418] sm:$0xf]  ;;  %v8287_v35 = vor.u32 %v12171_v6, %v8286_v20 }
 0x278   :  { %3867 = vmatpush.bf16.msra.mxu3 %v8863_v4  ;;  %v12235_v24 = vld [vmem:[#allocation5 + $0x434] sm:$0xf0]  ;;  %3842 = vmatpush.bf16.msra.mxu1 %v8319_v18 }
 0x279   :  { %v8798_v26 = vld [vmem:[#allocation5 + $0x618] sm:$0xf]  ;;  %v8543_v36 = vor.u32 %v12235_v24, %v8542_v21 }
 0x27a   :  { %v12299_v27 = vld [vmem:[#allocation5 + $0x634] sm:$0xf0]  ;;  %3855 = vmatpush.bf16.msra.mxu2 %v8575_v19  ;;  %3830 = vmatpush.bf16.msra.mxu0 %v8031_v31  ;;  %v13446_v19 = vld [vmem:[#allocation7] sm:$0xff] }
 0x27b   :  { %v9278_v28 = vld [vmem:[#allocation5 + $0x9d8] sm:$0xf]  ;;  %v8799_v39 = vor.u32 %v12299_v27, %v8798_v26  ;;  %v627_v20 = vperm.slane %v13446_v19, 4 }
 0x27c   :  { %v12419_v29 = vld [vmem:[#allocation5 + $0x9f4] sm:$0xf0]  ;;  %3868 = vmatpush.bf16.msra.mxu3 %v8831_v23  ;;  %3843 = vmatpush.bf16.msra.mxu1 %v8287_v35 }
 0x27d   :  { %v9534_v30 = vld [vmem:[#allocation5 + $0xbd8] sm:$0xf]  ;;  %v9279_v41 = vor.u32 %v12419_v29, %v9278_v28  ;;  %3831 = vmatmul.bf16.vlgmr.msra.gmra.mxu0 %v13352_v9 }
 0x27e   :  { %v12483_v32 = vld [vmem:[#allocation5 + $0xbf4] sm:$0xf0]  ;;  %3856 = vmatpush.bf16.msra.mxu2 %v8543_v36 }
 0x27f   :  { %v9790_v33 = vld [vmem:[#allocation5 + $0xdd8] sm:$0xf]  ;;  %v9535_v42 = vor.u32 %v12483_v32, %v9534_v30  ;;  %3875 = vmatpush.bf16.msrb.mxu0 %v9279_v41  ;;  %3844 = vmatmul.bf16.vlgmr.msra.gmra.mxu1 %v13359_v25 }
 0x280   :  { %v12547_v47 = vld [vmem:[#allocation5 + $0xdf4] sm:$0xf0]  ;;  %3869 = vmatpush.bf16.msra.mxu3 %v8799_v39 }
 0x281   :  { %v10046_v7 = vld [vmem:[#allocation5 + $0xfd8] sm:$0xf]  ;;  %v9791_v43 = vor.u32 %v12547_v47, %v9790_v33  ;;  %3888 = vmatpush.bf16.msrb.mxu1 %v9535_v42  ;;  %3857 = vmatmul.bf16.vlgmr.msra.gmra.mxu2 %v13350_v8  ;;  %v3625_v33 = vadd.f32 %v3624_v63, %v627_v20  ;;  %v3637_v47 = vpop.f32.mrf.mxu1 }
 0x282   :  { %v12611_v49 = vld [vmem:[#allocation5 + $0xff4] sm:$0xf0] }
 0x283   :  { %v9246_v44 = vld [vmem:[#allocation5 + $0x998] sm:$0xf]  ;;  %v10047_v50 = vor.u32 %v12611_v49, %v10046_v7  ;;  %3901 = vmatpush.bf16.msrb.mxu2 %v9791_v43  ;;  %3870 = vmatmul.bf16.vlgmr.msra.gmra.mxu3 %v13354_v15  ;;  %v3638_v42 = vadd.f32 %v3637_v47, %v3625_v33 }
 0x284   :  { %v12411_v56 = vld [vmem:[#allocation5 + $0x9b4] sm:$0xf0] }
 0x285   :  { %v9502_v46 = vld [vmem:[#allocation5 + $0xb98] sm:$0xf]  ;;  %v9247_v58 = vor.u32 %v12411_v56, %v9246_v44  ;;  %3914 = vmatpush.bf16.msrb.mxu3 %v10047_v50 }
 0x286   :  { %v12475_v51 = vld [vmem:[#allocation5 + $0xbb4] sm:$0xf0] }
 0x287   :  { %v9758_v53 = vld [vmem:[#allocation5 + $0xd98] sm:$0xf]  ;;  %v9503_v60 = vor.u32 %v12475_v51, %v9502_v46  ;;  %3876 = vmatpush.bf16.msrb.mxu0 %v9247_v58 }
 0x288   :  { %v12539_v54 = vld [vmem:[#allocation5 + $0xdb4] sm:$0xf0] }
 0x289   :  { %v10014_v55 = vld [vmem:[#allocation5 + $0xf98] sm:$0xf]  ;;  %v9759_v61 = vor.u32 %v12539_v54, %v9758_v53  ;;  %3889 = vmatpush.bf16.msrb.mxu1 %v9503_v60  ;;  %v3650_v53 = vpop.f32.mrf.mxu2 }
 0x28a   :  { %v12603_v57 = vld [vmem:[#allocation5 + $0xfb4] sm:$0xf0]  ;;  %v3651_v60 = vadd.f32 %v3650_v53, %v3638_v42  ;;  %v8768_v42 = vld [vmem:[#allocation5 + $0x5f8] sm:$0xf0] }
 0x28b   :  { %v9214_v62 = vld [vmem:[#allocation5 + $0x958] sm:$0xf]  ;;  %v10015_v2 = vor.u32 %v12603_v57, %v10014_v55  ;;  %3902 = vmatpush.bf16.msrb.mxu2 %v9759_v61  ;;  %v3663_v61 = vpop.f32.mrf.mxu3 }
 0x28c   :  { %v12403_v0 = vld [vmem:[#allocation5 + $0x974] sm:$0xf0] }
 0x28d   :  { %v9470_v1 = vld [vmem:[#allocation5 + $0xb58] sm:$0xf]  ;;  %v9215_v12 = vor.u32 %v12403_v0, %v9214_v62  ;;  %3915 = vmatpush.bf16.msrb.mxu3 %v10015_v2  ;;  %v13449_v2 = vadd.f32 %v3663_v61, %v3651_v60  ;;  %v8480_v61 = vld [vmem:[#allocation5 + $0x3b8] sm:$0xf0] }
 0x28e   :  { %v12467_v3 = vld [vmem:[#allocation5 + $0xb74] sm:$0xf0] }
 0x28f   :  { %v9726_v4 = vld [vmem:[#allocation5 + $0xd58] sm:$0xf]  ;;  %v9471_v14 = vor.u32 %v12467_v3, %v9470_v1  ;;  %3877 = vmatpush.bf16.msrb.mxu0 %v9215_v12  ;;  %v3626_v3 = vpop.f32.mrf.mxu0 }
 0x290   :  { %v12531_v5 = vld [vmem:[#allocation5 + $0xd74] sm:$0xf0]  ;;  %v8992_v3 = vld [vmem:[#allocation5 + $0x7b8] sm:$0xf0] }
 0x291   :  { %v9982_v10 = vld [vmem:[#allocation5 + $0xf58] sm:$0xf]  ;;  %v9727_v16 = vor.u32 %v12531_v5, %v9726_v4  ;;  %3890 = vmatpush.bf16.msrb.mxu1 %v9471_v14 }
 0x292   :  { %v12595_v11 = vld [vmem:[#allocation5 + $0xf74] sm:$0xf0] }
 0x293   :  { %v9182_v13 = vld [vmem:[#allocation5 + $0x918] sm:$0xf]  ;;  %v9983_v6 = vor.u32 %v12595_v11, %v9982_v10  ;;  %3903 = vmatpush.bf16.msrb.mxu2 %v9727_v16  ;;  %v3665_v47 = vpop.f32.mrf.mxu3 }
 0x294   :  { %v12395_v17 = vld [vmem:[#allocation5 + $0x934] sm:$0xf0] }
 0x295   :  { %v9438_v18 = vld [vmem:[#allocation5 + $0xb18] sm:$0xf]  ;;  %v9183_v27 = vor.u32 %v12395_v17, %v9182_v13  ;;  %3916 = vmatpush.bf16.msrb.mxu3 %v9983_v6  ;;  %v3639_v13 = vpop.f32.mrf.mxu1 }
 0x296   :  { %v12459_v21 = vld [vmem:[#allocation5 + $0xb34] sm:$0xf0]  ;;  %v12207_v13 = vld [vmem:[#allocation5 + $0x35c] sm:$0xf] }
 0x297   :  { %v9694_v22 = vld [vmem:[#allocation5 + $0xd18] sm:$0xf]  ;;  %v9439_v28 = vor.u32 %v12459_v21, %v9438_v18  ;;  %3878 = vmatpush.bf16.msrb.mxu0 %v9183_v27  ;;  %v3676_v47 = vpop.f32.mrf.mxu0 }
 0x298   :  { %v12523_v23 = vld [vmem:[#allocation5 + $0xd34] sm:$0xf0] }
 0x299   :  { %v9950_v24 = vld [vmem:[#allocation5 + $0xf18] sm:$0xf]  ;;  %v9695_v29 = vor.u32 %v12523_v23, %v9694_v22  ;;  %3891 = vmatpush.bf16.msrb.mxu1 %v9439_v28 }
 0x29a   :  { %v12587_v26 = vld [vmem:[#allocation5 + $0xf34] sm:$0xf0] }
 0x29b   :  { %v9150_v30 = vld [vmem:[#allocation5 + $0x8d8] sm:$0xf]  ;;  %v9951_v35 = vor.u32 %v12587_v26, %v9950_v24  ;;  %3904 = vmatpush.bf16.msrb.mxu2 %v9695_v29  ;;  %v3652_v29 = vpop.f32.mrf.mxu2 }
 0x29c   :  { %v12387_v31 = vld [vmem:[#allocation5 + $0x8f4] sm:$0xf0]  ;;  %v12263_v29 = vld [vmem:[#allocation5 + $0x51c] sm:$0xf] }
 0x29d   :  { %v9406_v32 = vld [vmem:[#allocation5 + $0xad8] sm:$0xf]  ;;  %v9151_v43 = vor.u32 %v12387_v31, %v9150_v30  ;;  %3917 = vmatpush.bf16.msrb.mxu3 %v9951_v35  ;;  %v12159_v35 = vld [vmem:[#allocation5 + $0x1dc] sm:$0xf] }
 0x29e   :  { %v12451_v36 = vld [vmem:[#allocation5 + $0xaf4] sm:$0xf0] }
 0x29f   :  { %v9662_v7 = vld [vmem:[#allocation5 + $0xcd8] sm:$0xf]  ;;  %v9407_v44 = vor.u32 %v12451_v36, %v9406_v32  ;;  %3879 = vmatpush.bf16.msrb.mxu0 %v9151_v43  ;;  %v8256_v36 = vld [vmem:[#allocation5 + $0x1f8] sm:$0xf0] }
 0x2a0   :  { %v12515_v49 = vld [vmem:[#allocation5 + $0xcf4] sm:$0xf0] }
 0x2a1   :  { %v9918_v39 = vld [vmem:[#allocation5 + $0xed8] sm:$0xf]  ;;  %v9663_v56 = vor.u32 %v12515_v49, %v9662_v7  ;;  %3892 = vmatpush.bf16.msrb.mxu1 %v9407_v44  ;;  %v12223_v7 = vld [vmem:[#allocation5 + $0x3dc] sm:$0xf] }
 0x2a2   :  { %v12579_v41 = vld [vmem:[#allocation5 + $0xef4] sm:$0xf0] }
 0x2a3   :  { %v9118_v46 = vld [vmem:[#allocation5 + $0x898] sm:$0xf]  ;;  %v9919_v54 = vor.u32 %v12579_v41, %v9918_v39  ;;  %3905 = vmatpush.bf16.msrb.mxu2 %v9663_v56  ;;  %v8512_v39 = vld [vmem:[#allocation5 + $0x3f8] sm:$0xf0] }
 0x2a4   :  { %v12379_v50 = vld [vmem:[#allocation5 + $0x8b4] sm:$0xf0]  ;;  %v12287_v41 = vld [vmem:[#allocation5 + $0x5dc] sm:$0xf]  ;;  %v8515_v53 = vor.u32 %v12223_v7, %v8512_v39 }
 0x2a5   :  { %v9374_v51 = vld [vmem:[#allocation5 + $0xa98] sm:$0xf]  ;;  %v9119_v1 = vor.u32 %v12379_v50, %v9118_v46  ;;  %3918 = vmatpush.bf16.msrb.mxu3 %v9919_v54  ;;  %v12351_v56 = vld [vmem:[#allocation5 + $0x7dc] sm:$0xf]  ;;  %v8771_v54 = vor.u32 %v12287_v41, %v8768_v42  ;;  %v3677_v41 = vadd.f32 %v3676_v47, %v13449_v2  ;;  %v3689_v42 = vpop.f32.mrf.mxu1 }
 0x2a6   :  { %v12443_v55 = vld [vmem:[#allocation5 + $0xab4] sm:$0xf0]  ;;  %v9024_v46 = vld [vmem:[#allocation5 + $0x7f8] sm:$0xf0] }
 0x2a7   :  { %v9630_v57 = vld [vmem:[#allocation5 + $0xc98] sm:$0xf]  ;;  %v9375_v4 = vor.u32 %v12443_v55, %v9374_v51  ;;  %3880 = vmatpush.bf16.msrb.mxu0 %v9119_v1  ;;  %v8259_v51 = vor.u32 %v12159_v35, %v8256_v36  ;;  %v12151_v55 = vld [vmem:[#allocation5 + $0x19c] sm:$0xf]  ;;  %v9027_v60 = vor.u32 %v12351_v56, %v9024_v46 }
 0x2a8   :  { %v12507_v58 = vld [vmem:[#allocation5 + $0xcb4] sm:$0xf0]  ;;  %v12343_v1 = vld [vmem:[#allocation5 + $0x79c] sm:$0xf] }
 0x2a9   :  { %v9886_v62 = vld [vmem:[#allocation5 + $0xe98] sm:$0xf]  ;;  %v9631_v5 = vor.u32 %v12507_v58, %v9630_v57  ;;  %3893 = vmatpush.bf16.msrb.mxu1 %v9375_v4  ;;  %v8224_v57 = vld [vmem:[#allocation5 + $0x1b8] sm:$0xf0] }
 0x2aa   :  { %v12571_v0 = vld [vmem:[#allocation5 + $0xeb4] sm:$0xf0]  ;;  %v12215_v58 = vld [vmem:[#allocation5 + $0x39c] sm:$0xf]  ;;  %v8227_v4 = vor.u32 %v12151_v55, %v8224_v57 }
 0x2ab   :  { %v9086_v10 = vld [vmem:[#allocation5 + $0x858] sm:$0xf]  ;;  %v9887_v14 = vor.u32 %v12571_v0, %v9886_v62  ;;  %3906 = vmatpush.bf16.msrb.mxu2 %v9631_v5  ;;  %v12279_v62 = vld [vmem:[#allocation5 + $0x59c] sm:$0xf]  ;;  %v8483_v5 = vor.u32 %v12215_v58, %v8480_v61 }
 0x2ac   :  { %v12371_v11 = vld [vmem:[#allocation5 + $0x874] sm:$0xf0]  ;;  %v8736_v0 = vld [vmem:[#allocation5 + $0x5b8] sm:$0xf0] }
 0x2ad   :  { %v9342_v12 = vld [vmem:[#allocation5 + $0xa58] sm:$0xf]  ;;  %v9087_v21 = vor.u32 %v12371_v11, %v9086_v10  ;;  %3919 = vmatpush.bf16.msrb.mxu3 %v9887_v14  ;;  %v8739_v10 = vor.u32 %v12279_v62, %v8736_v0  ;;  %v12143_v11 = vld [vmem:[#allocation5 + $0x15c] sm:$0xf]  ;;  %v8995_v14 = vor.u32 %v12343_v1, %v8992_v3  ;;  %v3702_v62 = vpop.f32.mrf.mxu2 }
 0x2ae   :  { %v12435_v16 = vld [vmem:[#allocation5 + $0xa74] sm:$0xf0]  ;;  %v12127_v7 = vld [vmem:[#allocation5 + $0xdc] sm:$0xf] }
 0x2af   :  { %v9598_v17 = vld [vmem:[#allocation5 + $0xc58] sm:$0xf]  ;;  %v9343_v24 = vor.u32 %v12435_v16, %v9342_v12  ;;  %3881 = vmatpush.bf16.msrb.mxu0 %v9087_v21  ;;  %v8192_v12 = vld [vmem:[#allocation5 + $0x178] sm:$0xf0] }
 0x2b0   :  { %v12499_v18 = vld [vmem:[#allocation5 + $0xc74] sm:$0xf0]  ;;  %v8448_v16 = vld [vmem:[#allocation5 + $0x378] sm:$0xf0]  ;;  %v8195_v21 = vor.u32 %v12143_v11, %v8192_v12 }
 0x2b1   :  { %v9854_v20 = vld [vmem:[#allocation5 + $0xe58] sm:$0xf]  ;;  %v9599_v26 = vor.u32 %v12499_v18, %v9598_v17  ;;  %3894 = vmatpush.bf16.msrb.mxu1 %v9343_v24  ;;  %v12271_v17 = vld [vmem:[#allocation5 + $0x55c] sm:$0xf] }
 0x2b2   :  { %v12563_v6 = vld [vmem:[#allocation5 + $0xe74] sm:$0xf0]  ;;  %v8704_v18 = vld [vmem:[#allocation5 + $0x578] sm:$0xf0] }
 0x2b3   :  { %v9054_v22 = vld [vmem:[#allocation5 + $0x818] sm:$0xf]  ;;  %v9855_v30 = vor.u32 %v12563_v6, %v9854_v20  ;;  %3907 = vmatpush.bf16.msrb.mxu2 %v9599_v26  ;;  %v12335_v20 = vld [vmem:[#allocation5 + $0x75c] sm:$0xf] }
 0x2b4   :  { %v12363_v23 = vld [vmem:[#allocation5 + $0x834] sm:$0xf0]  ;;  %v8960_v6 = vld [vmem:[#allocation5 + $0x778] sm:$0xf0] }
 0x2b5   :  { %v9310_v27 = vld [vmem:[#allocation5 + $0xa18] sm:$0xf]  ;;  %v9055_v49 = vor.u32 %v12363_v23, %v9054_v22  ;;  %3920 = vmatpush.bf16.msrb.mxu3 %v9855_v30  ;;  %v8451_v22 = vor.u32 %v12207_v13, %v8448_v16  ;;  %v8707_v23 = vor.u32 %v12271_v17, %v8704_v18  ;;  %v12135_v24 = vld [vmem:[#allocation5 + $0x11c] sm:$0xf] }
 0x2b6   :  { %v12427_v63 = vld [vmem:[#allocation5 + $0xa34] sm:$0xf0]  ;;  %v8160_v26 = vld [vmem:[#allocation5 + $0x138] sm:$0xf0] }
 0x2b7   :  { %v9566_v28 = vld [vmem:[#allocation5 + $0xc18] sm:$0xf]  ;;  %v9311_v43 = vor.u32 %v12427_v63, %v9310_v27  ;;  %3882 = vmatpush.bf16.msrb.mxu0 %v9055_v49  ;;  %v12199_v27 = vld [vmem:[#allocation5 + $0x31c] sm:$0xf]  ;;  %v8963_v63 = vor.u32 %v12335_v20, %v8960_v6 }
 0x2b8   :  { %v12491_v31 = vld [vmem:[#allocation5 + $0xc34] sm:$0xf0]  ;;  %v8672_v30 = vld [vmem:[#allocation5 + $0x538] sm:$0xf0] }
 0x2b9   :  { %v9822_v32 = vld [vmem:[#allocation5 + $0xe18] sm:$0xf]  ;;  %v9567_v44 = vor.u32 %v12491_v31, %v9566_v28  ;;  %3895 = vmatpush.bf16.msrb.mxu1 %v9311_v43  ;;  %v8416_v28 = vld [vmem:[#allocation5 + $0x338] sm:$0xf0]  ;;  %v8675_v36 = vor.u32 %v12263_v29, %v8672_v30 }
 0x2ba   :  { %v12555_v33 = vld [vmem:[#allocation5 + $0xe34] sm:$0xf0]  ;;  %3883 = vmatmul.bf16.vlgmr.msrb.gmra.mxu0 %v13364_v37  ;;  %v12327_v31 = vld [vmem:[#allocation5 + $0x71c] sm:$0xf]  ;;  %v8419_v35 = vor.u32 %v12199_v27, %v8416_v28 }
 0x2bb   :  { %v9823_v50 = vor.u32 %v12555_v33, %v9822_v32  ;;  %3908 = vmatpush.bf16.msrb.mxu2 %v9567_v44  ;;  %3927 = vmatpush.bf16.msra.mxu0 %v8259_v51  ;;  %v8928_v32 = vld [vmem:[#allocation5 + $0x738] sm:$0xf0]  ;;  %v8163_v33 = vor.u32 %v12135_v24, %v8160_v26 }
 0x2bc   :  { %3896 = vmatmul.bf16.vlgmr.msrb.gmra.mxu1 %v13368_v40  ;;  %v8128_v49 = vld [vmem:[#allocation5 + $0xf8] sm:$0xf0]  ;;  %v8931_v43 = vor.u32 %v12327_v31, %v8928_v32 }
 0x2bd   :  { %3921 = vmatpush.bf16.msrb.mxu3 %v9823_v50  ;;  %3940 = vmatpush.bf16.msra.mxu1 %v8515_v53  ;;  %v12191_v39 = vld [vmem:[#allocation5 + $0x2dc] sm:$0xf]  ;;  %v3690_v53 = vadd.f32 %v3689_v42, %v3677_v41 }
 0x2be   :  { %3909 = vmatmul.bf16.vlgmr.msrb.gmra.mxu2 %v13362_v34  ;;  %v8384_v44 = vld [vmem:[#allocation5 + $0x2f8] sm:$0xf0] }
 0x2bf   :  { %3953 = vmatpush.bf16.msra.mxu2 %v8771_v54  ;;  %3928 = vmatpush.bf16.msra.mxu0 %v8227_v4  ;;  %v12255_v56 = vld [vmem:[#allocation5 + $0x4dc] sm:$0xf]  ;;  %v8131_v54 = vor.u32 %v12127_v7, %v8128_v49  ;;  %v8387_v55 = vor.u32 %v12191_v39, %v8384_v44  ;;  %v3703_v4 = vadd.f32 %v3702_v62, %v3690_v53 }
 0x2c0   :  { %3922 = vmatmul.bf16.vlgmr.msrb.gmra.mxu3 %v13366_v38  ;;  %v8640_v46 = vld [vmem:[#allocation5 + $0x4f8] sm:$0xf0] }
 0x2c1   :  { %3966 = vmatpush.bf16.msra.mxu3 %v9027_v60  ;;  %3941 = vmatpush.bf16.msra.mxu1 %v8483_v5  ;;  %v12319_v50 = vld [vmem:[#allocation5 + $0x6dc] sm:$0xf]  ;;  %v8643_v57 = vor.u32 %v12255_v56, %v8640_v46  ;;  %v3715_v5 = vpop.f32.mrf.mxu3 }
 0x2c2   :  { %v8896_v51 = vld [vmem:[#allocation5 + $0x6f8] sm:$0xf0]  ;;  %v13456_v13 = vadd.f32 %v3715_v5, %v3703_v4 }
 0x2c3   :  { %3954 = vmatpush.bf16.msra.mxu2 %v8739_v10  ;;  %3929 = vmatpush.bf16.msra.mxu0 %v8195_v21  ;;  %v12119_v58 = vld [vmem:[#allocation5 + $0x9c] sm:$0xf]  ;;  %v8899_v2 = vor.u32 %v12319_v50, %v8896_v51  ;;  %v3691_v21 = vpop.f32.mrf.mxu1 }
 0x2c4   :  { %v8096_v60 = vld [vmem:[#allocation5 + $0xb8] sm:$0xf0] }
 0x2c5   :  { %3967 = vmatpush.bf16.msra.mxu3 %v8995_v14  ;;  %3942 = vmatpush.bf16.msra.mxu1 %v8451_v22  ;;  %v12183_v61 = vld [vmem:[#allocation5 + $0x29c] sm:$0xf]  ;;  %v8099_v12 = vor.u32 %v12119_v58, %v8096_v60  ;;  %v3678_v14 = vpop.f32.mrf.mxu0 }
 0x2c6   :  { %v8352_v0 = vld [vmem:[#allocation5 + $0x2b8] sm:$0xf0] }
 0x2c7   :  { %3955 = vmatpush.bf16.msra.mxu2 %v8707_v23  ;;  %3930 = vmatpush.bf16.msra.mxu0 %v8163_v33  ;;  %v12247_v1 = vld [vmem:[#allocation5 + $0x49c] sm:$0xf]  ;;  %v8355_v16 = vor.u32 %v12183_v61, %v8352_v0 }
 0x2c8   :  { %v8608_v3 = vld [vmem:[#allocation5 + $0x4b8] sm:$0xf0] }
 0x2c9   :  { %3968 = vmatpush.bf16.msra.mxu3 %v8963_v63  ;;  %3943 = vmatpush.bf16.msra.mxu1 %v8419_v35  ;;  %v12311_v10 = vld [vmem:[#allocation5 + $0x69c] sm:$0xf]  ;;  %v8611_v17 = vor.u32 %v12247_v1, %v8608_v3  ;;  %v3717_v42 = vpop.f32.mrf.mxu3 }
 0x2ca   :  { %v8864_v11 = vld [vmem:[#allocation5 + $0x6b8] sm:$0xf0] }
 0x2cb   :  { %3956 = vmatpush.bf16.msra.mxu2 %v8675_v36  ;;  %3931 = vmatpush.bf16.msra.mxu0 %v8131_v54  ;;  %v12111_v18 = vld [vmem:[#allocation5 + $0x5c] sm:$0xf]  ;;  %v8867_v22 = vor.u32 %v12311_v10, %v8864_v11  ;;  %v3704_v36 = vpop.f32.mrf.mxu2 }
 0x2cc   :  { %v8064_v20 = vld [vmem:[#allocation5 + $0x78] sm:$0xf0] }
 0x2cd   :  { %3969 = vmatpush.bf16.msra.mxu3 %v8931_v43  ;;  %3944 = vmatpush.bf16.msra.mxu1 %v8387_v55  ;;  %v12175_v6 = vld [vmem:[#allocation5 + $0x25c] sm:$0xf]  ;;  %v8067_v28 = vor.u32 %v12111_v18, %v8064_v20 }
 0x2ce   :  { %v8320_v23 = vld [vmem:[#allocation5 + $0x278] sm:$0xf0] }
 0x2cf   :  { %3957 = vmatpush.bf16.msra.mxu2 %v8643_v57  ;;  %v12239_v24 = vld [vmem:[#allocation5 + $0x45c] sm:$0xf]  ;;  %3932 = vmatpush.bf16.msra.mxu0 %v8099_v12  ;;  %v8323_v31 = vor.u32 %v12175_v6, %v8320_v23 }
 0x2d0   :  { %v8576_v26 = vld [vmem:[#allocation5 + $0x478] sm:$0xf0] }
 0x2d1   :  { %3970 = vmatpush.bf16.msra.mxu3 %v8899_v2  ;;  %v12303_v27 = vld [vmem:[#allocation5 + $0x65c] sm:$0xf]  ;;  %3945 = vmatpush.bf16.msra.mxu1 %v8355_v16  ;;  %v8579_v32 = vor.u32 %v12239_v24, %v8576_v26 }
 0x2d2   :  { %v8832_v63 = vld [vmem:[#allocation5 + $0x678] sm:$0xf0] }
 0x2d3   :  { %v12103_v29 = vld [vmem:[#allocation5 + $0x1c] sm:$0xf]  ;;  %3958 = vmatpush.bf16.msra.mxu2 %v8611_v17  ;;  %v8835_v7 = vor.u32 %v12303_v27, %v8832_v63  ;;  %3933 = vmatpush.bf16.msra.mxu0 %v8067_v28 }
 0x2d4   :  { %v8032_v30 = vld [vmem:[#allocation5 + $0x38] sm:$0xf0] }
 0x2d5   :  { %v12167_v33 = vld [vmem:[#allocation5 + $0x21c] sm:$0xf]  ;;  %3971 = vmatpush.bf16.msra.mxu3 %v8867_v22  ;;  %v8035_v46 = vor.u32 %v12103_v29, %v8032_v30  ;;  %3946 = vmatpush.bf16.msra.mxu1 %v8323_v31 }
 0x2d6   :  { %v8288_v47 = vld [vmem:[#allocation5 + $0x238] sm:$0xf0] }
 0x2d7   :  { %v12231_v35 = vld [vmem:[#allocation5 + $0x41c] sm:$0xf]  ;;  %3959 = vmatpush.bf16.msra.mxu2 %v8579_v32  ;;  %v8291_v54 = vor.u32 %v12167_v33, %v8288_v47  ;;  %3934 = vmatpush.bf16.msra.mxu0 %v8035_v46 }
 0x2d8   :  { %v8544_v49 = vld [vmem:[#allocation5 + $0x438] sm:$0xf0] }
 0x2d9   :  { %v12295_v39 = vld [vmem:[#allocation5 + $0x61c] sm:$0xf]  ;;  %v8547_v55 = vor.u32 %v12231_v35, %v8544_v49  ;;  %3972 = vmatpush.bf16.msra.mxu3 %v8835_v7  ;;  %3947 = vmatpush.bf16.msra.mxu1 %v8291_v54  ;;  %v13462_v49 = vpop.f32.mrf.mxu0 }
 0x2da   :  { %v8800_v41 = vld [vmem:[#allocation5 + $0x638] sm:$0xf0]  ;;  %3935 = vmatmul.bf16.vlgmr.msra.gmra.mxu0 %v13352_v9 }
 0x2db   :  { %v12415_v43 = vld [vmem:[#allocation5 + $0x9dc] sm:$0xf]  ;;  %v8803_v60 = vor.u32 %v12295_v39, %v8800_v41  ;;  %3960 = vmatpush.bf16.msra.mxu2 %v8547_v55 }
 0x2dc   :  { %v9280_v44 = vld [vmem:[#allocation5 + $0x9f8] sm:$0xf0]  ;;  %3948 = vmatmul.bf16.vlgmr.msra.gmra.mxu1 %v13359_v25 }
 0x2dd   :  { %v12479_v56 = vld [vmem:[#allocation5 + $0xbdc] sm:$0xf]  ;;  %v9283_v61 = vor.u32 %v12415_v43, %v9280_v44  ;;  %3973 = vmatpush.bf16.msra.mxu3 %v8803_v60  ;;  %v13464_v44 = vpop.f32.mrf.mxu1 }
 0x2de   :  { %v9536_v50 = vld [vmem:[#allocation5 + $0xbf8] sm:$0xf0]  ;;  %3961 = vmatmul.bf16.vlgmr.msra.gmra.mxu2 %v13350_v8 }
 0x2df   :  { %v12543_v51 = vld [vmem:[#allocation5 + $0xddc] sm:$0xf]  ;;  %v9539_v62 = vor.u32 %v12479_v56, %v9536_v50  ;;  %3979 = vmatpush.bf16.msrb.mxu0 %v9283_v61 }
 0x2e0   :  { %v9792_v53 = vld [vmem:[#allocation5 + $0xdf8] sm:$0xf0]  ;;  %3974 = vmatmul.bf16.vlgmr.msra.gmra.mxu3 %v13354_v15 }
 0x2e1   :  { %v12607_v57 = vld [vmem:[#allocation5 + $0xfdc] sm:$0xf]  ;;  %v9795_v2 = vor.u32 %v12543_v51, %v9792_v53  ;;  %3992 = vmatpush.bf16.msrb.mxu1 %v9539_v62 }
 0x2e2   :  { %v10048_v58 = vld [vmem:[#allocation5 + $0xff8] sm:$0xf0] }
 0x2e3   :  { %v12407_v0 = vld [vmem:[#allocation5 + $0x99c] sm:$0xf]  ;;  %v10051_v4 = vor.u32 %v12607_v57, %v10048_v58  ;;  %4005 = vmatpush.bf16.msrb.mxu2 %v9795_v2  ;;  %v13466_v2 = vpop.f32.mrf.mxu2 }
 0x2e4   :  { %v9248_v1 = vld [vmem:[#allocation5 + $0x9b8] sm:$0xf0] }
 0x2e5   :  { %v12471_v3 = vld [vmem:[#allocation5 + $0xb9c] sm:$0xf]  ;;  %v9251_v16 = vor.u32 %v12407_v0, %v9248_v1  ;;  %4018 = vmatpush.bf16.msrb.mxu3 %v10051_v4 }
 0x2e6   :  { %v9504_v5 = vld [vmem:[#allocation5 + $0xbb8] sm:$0xf0] }
 0x2e7   :  { %v12535_v10 = vld [vmem:[#allocation5 + $0xd9c] sm:$0xf]  ;;  %v9507_v17 = vor.u32 %v12471_v3, %v9504_v5  ;;  %3980 = vmatpush.bf16.msrb.mxu0 %v9251_v16  ;;  %v13468_v5 = vpop.f32.mrf.mxu3 }
 0x2e8   :  { %v9760_v11 = vld [vmem:[#allocation5 + $0xdb8] sm:$0xf0] }
 0x2e9   :  { %v12599_v12 = vld [vmem:[#allocation5 + $0xf9c] sm:$0xf]  ;;  %v9763_v18 = vor.u32 %v12535_v10, %v9760_v11  ;;  %3993 = vmatpush.bf16.msrb.mxu1 %v9507_v17 }
 0x2ea   :  { %v10016_v14 = vld [vmem:[#allocation5 + $0xfb8] sm:$0xf0] }
 0x2eb   :  { %v12399_v20 = vld [vmem:[#allocation5 + $0x95c] sm:$0xf]  ;;  %v10019_v22 = vor.u32 %v12599_v12, %v10016_v14  ;;  %4006 = vmatpush.bf16.msrb.mxu2 %v9763_v18  ;;  %v3730_v14 = vpop.f32.mrf.mxu0 }
 0x2ec   :  { %v9216_v6 = vld [vmem:[#allocation5 + $0x978] sm:$0xf0]  ;;  %v12856_v14 = vld [vmem:[#allocation8 + $0x79c] sm:$0xf0] }
 0x2ed   :  { %v12463_v21 = vld [vmem:[#allocation5 + $0xb5c] sm:$0xf]  ;;  %v9219_v28 = vor.u32 %v12399_v20, %v9216_v6  ;;  %4019 = vmatpush.bf16.msrb.mxu3 %v10019_v22 }
 0x2ee   :  { %v9472_v23 = vld [vmem:[#allocation5 + $0xb78] sm:$0xf0] }
 0x2ef   :  { %v12527_v24 = vld [vmem:[#allocation5 + $0xd5c] sm:$0xf]  ;;  %v9475_v29 = vor.u32 %v12463_v21, %v9472_v23  ;;  %3981 = vmatpush.bf16.msrb.mxu0 %v9219_v28  ;;  %v3743_v21 = vpop.f32.mrf.mxu1 }
 0x2f0   :  { %v9728_v26 = vld [vmem:[#allocation5 + $0xd78] sm:$0xf0]  ;;  %v10470_v21 = vld [vmem:[#allocation8 + $0x340] sm:$0xf] }
 0x2f1   :  { %v12591_v27 = vld [vmem:[#allocation5 + $0xf5c] sm:$0xf]  ;;  %v9731_v30 = vor.u32 %v12527_v24, %v9728_v26  ;;  %3994 = vmatpush.bf16.msrb.mxu1 %v9475_v29 }
 0x2f2   :  { %v9984_v63 = vld [vmem:[#allocation5 + $0xf78] sm:$0xf0] }
 0x2f3   :  { %v12391_v31 = vld [vmem:[#allocation5 + $0x91c] sm:$0xf]  ;;  %v9987_v33 = vor.u32 %v12591_v27, %v9984_v63  ;;  %4007 = vmatpush.bf16.msrb.mxu2 %v9731_v30 }
 0x2f4   :  { %v9184_v32 = vld [vmem:[#allocation5 + $0x938] sm:$0xf0] }
 0x2f5   :  { %v12455_v8 = vld [vmem:[#allocation5 + $0xb1c] sm:$0xf]  ;;  %v9187_v15 = vor.u32 %v12391_v31, %v9184_v32  ;;  %4020 = vmatpush.bf16.msrb.mxu3 %v9987_v33 }
 0x2f6   :  { %v9440_v47 = vld [vmem:[#allocation5 + $0xb38] sm:$0xf0] }
 0x2f7   :  { %v12519_v35 = vld [vmem:[#allocation5 + $0xd1c] sm:$0xf]  ;;  %v9443_v25 = vor.u32 %v12455_v8, %v9440_v47  ;;  %3982 = vmatpush.bf16.msrb.mxu0 %v9187_v15 }
 0x2f8   :  { %v9696_v36 = vld [vmem:[#allocation5 + $0xd38] sm:$0xf0] }
 0x2f9   :  { %v12583_v7 = vld [vmem:[#allocation5 + $0xf1c] sm:$0xf]  ;;  %v9699_v39 = vor.u32 %v12519_v35, %v9696_v36  ;;  %3995 = vmatpush.bf16.msrb.mxu1 %v9443_v25  ;;  %v3756_v35 = vpop.f32.mrf.mxu2  ;;  %v3769_v25 = vpop.f32.mrf.mxu3 }
 0x2fa   :  { %v9952_v9 = vld [vmem:[#allocation5 + $0xf38] sm:$0xf0]  ;;  %v10950_v35 = vld [vmem:[#allocation8 + $0x700] sm:$0xf] }
 0x2fb   :  { %v12383_v41 = vld [vmem:[#allocation5 + $0x8dc] sm:$0xf]  ;;  %v9955_v56 = vor.u32 %v12583_v7, %v9952_v9  ;;  %4008 = vmatpush.bf16.msrb.mxu2 %v9699_v39  ;;  %v10278_v39 = vld [vmem:[#allocation8 + $0x1c0] sm:$0xf] }
 0x2fc   :  { %v9152_v42 = vld [vmem:[#allocation5 + $0x8f8] sm:$0xf0]  ;;  %v12640_v25 = vld [vmem:[#allocation8 + $0xdc] sm:$0xf0] }
 0x2fd   :  { %v12447_v43 = vld [vmem:[#allocation5 + $0xadc] sm:$0xf]  ;;  %v9155_v55 = vor.u32 %v12383_v41, %v9152_v42  ;;  %4021 = vmatpush.bf16.msrb.mxu3 %v9955_v56  ;;  %v12672_v41 = vld [vmem:[#allocation8 + $0x1dc] sm:$0xf0] }
 0x2fe   :  { %v9408_v46 = vld [vmem:[#allocation5 + $0xaf8] sm:$0xf0]  ;;  %v10534_v42 = vld [vmem:[#allocation8 + $0x3c0] sm:$0xf] }
 0x2ff   :  { %v12511_v50 = vld [vmem:[#allocation5 + $0xcdc] sm:$0xf]  ;;  %v9411_v57 = vor.u32 %v12447_v43, %v9408_v46  ;;  %3983 = vmatpush.bf16.msrb.mxu0 %v9155_v55  ;;  %v12736_v56 = vld [vmem:[#allocation8 + $0x3dc] sm:$0xf0] }
 0x300   :  { %v9664_v51 = vld [vmem:[#allocation5 + $0xcf8] sm:$0xf0]  ;;  %v10790_v46 = vld [vmem:[#allocation8 + $0x5c0] sm:$0xf] }
 0x301   :  { %v12575_v53 = vld [vmem:[#allocation5 + $0xedc] sm:$0xf]  ;;  %v9667_v58 = vor.u32 %v12511_v50, %v9664_v51  ;;  %3996 = vmatpush.bf16.msrb.mxu1 %v9411_v57  ;;  %v12800_v50 = vld [vmem:[#allocation8 + $0x5dc] sm:$0xf0] }
 0x302   :  { %v9920_v54 = vld [vmem:[#allocation5 + $0xef8] sm:$0xf0]  ;;  %v12864_v55 = vld [vmem:[#allocation8 + $0x7dc] sm:$0xf0] }
 0x303   :  { %v12375_v60 = vld [vmem:[#allocation5 + $0x89c] sm:$0xf]  ;;  %v9923_v0 = vor.u32 %v12575_v53, %v9920_v54  ;;  %4009 = vmatpush.bf16.msrb.mxu2 %v9667_v58  ;;  %v11046_v54 = vld [vmem:[#allocation8 + $0x7c0] sm:$0xf]  ;;  %v10279_v58 = vor.u32 %v12672_v41, %v10278_v39  ;;  %v13476_v41 = vpop.f32.mrf.mxu1 }
 0x304   :  { %v9120_v61 = vld [vmem:[#allocation5 + $0x8b8] sm:$0xf0]  ;;  %v10406_v39 = vld [vmem:[#allocation8 + $0x2c0] sm:$0xf] }
 0x305   :  { %v12439_v62 = vld [vmem:[#allocation5 + $0xa9c] sm:$0xf]  ;;  %v9123_v12 = vor.u32 %v12375_v60, %v9120_v61  ;;  %4022 = vmatpush.bf16.msrb.mxu3 %v9923_v0  ;;  %v10535_v60 = vor.u32 %v12736_v56, %v10534_v42  ;;  %v10791_v61 = vor.u32 %v12800_v50, %v10790_v46  ;;  %v12664_v0 = vld [vmem:[#allocation8 + $0x19c] sm:$0xf0] }
 0x306   :  { %v9376_v1 = vld [vmem:[#allocation5 + $0xab8] sm:$0xf0]  ;;  %v10662_v56 = vld [vmem:[#allocation8 + $0x4c0] sm:$0xf] }
 0x307   :  { %v12503_v3 = vld [vmem:[#allocation5 + $0xc9c] sm:$0xf]  ;;  %v9379_v16 = vor.u32 %v12439_v62, %v9376_v1  ;;  %3984 = vmatpush.bf16.msrb.mxu0 %v9123_v12  ;;  %v10246_v62 = vld [vmem:[#allocation8 + $0x180] sm:$0xf] }
 0x308   :  { %v9632_v4 = vld [vmem:[#allocation5 + $0xcb8] sm:$0xf0]  ;;  %v10502_v1 = vld [vmem:[#allocation8 + $0x380] sm:$0xf] }
 0x309   :  { %v12567_v10 = vld [vmem:[#allocation5 + $0xe9c] sm:$0xf]  ;;  %v9635_v17 = vor.u32 %v12503_v3, %v9632_v4  ;;  %3997 = vmatpush.bf16.msrb.mxu1 %v9379_v16  ;;  %v11047_v3 = vor.u32 %v12864_v55, %v11046_v54  ;;  %v12728_v4 = vld [vmem:[#allocation8 + $0x39c] sm:$0xf0]  ;;  %v10247_v16 = vor.u32 %v12664_v0, %v10246_v62 }
 0x30a   :  { %v9888_v11 = vld [vmem:[#allocation5 + $0xeb8] sm:$0xf0]  ;;  %v11014_v12 = vld [vmem:[#allocation8 + $0x780] sm:$0xf] }
 0x30b   :  { %v12367_v18 = vld [vmem:[#allocation5 + $0x85c] sm:$0xf]  ;;  %v9891_v22 = vor.u32 %v12567_v10, %v9888_v11  ;;  %4010 = vmatpush.bf16.msrb.mxu2 %v9635_v17  ;;  %v10758_v10 = vld [vmem:[#allocation8 + $0x580] sm:$0xf]  ;;  %v10503_v17 = vor.u32 %v12728_v4, %v10502_v1  ;;  %v13480_v4 = vpop.f32.mrf.mxu3 }
 0x30c   :  { %v9088_v20 = vld [vmem:[#allocation5 + $0x878] sm:$0xf0]  ;;  %v12792_v11 = vld [vmem:[#allocation8 + $0x59c] sm:$0xf0] }
 0x30d   :  { %v12431_v6 = vld [vmem:[#allocation5 + $0xa5c] sm:$0xf]  ;;  %v9091_v28 = vor.u32 %v12367_v18, %v9088_v20  ;;  %4023 = vmatpush.bf16.msrb.mxu3 %v9891_v22  ;;  %v10759_v18 = vor.u32 %v12792_v11, %v10758_v10  ;;  %v10214_v20 = vld [vmem:[#allocation8 + $0x140] sm:$0xf]  ;;  %v11015_v22 = vor.u32 %v12856_v14, %v11014_v12 }
 0x30e   :  { %v9344_v23 = vld [vmem:[#allocation5 + $0xa78] sm:$0xf0]  ;;  %v12768_v46 = vld [vmem:[#allocation8 + $0x4dc] sm:$0xf0] }
 0x30f   :  { %v12495_v24 = vld [vmem:[#allocation5 + $0xc5c] sm:$0xf]  ;;  %v9347_v31 = vor.u32 %v12431_v6, %v9344_v23  ;;  %3985 = vmatpush.bf16.msrb.mxu0 %v9091_v28  ;;  %v12656_v6 = vld [vmem:[#allocation8 + $0x15c] sm:$0xf0]  ;;  %v10663_v55 = vor.u32 %v12768_v46, %v10662_v56 }
 0x310   :  { %v9600_v26 = vld [vmem:[#allocation5 + $0xc78] sm:$0xf0]  ;;  %v12720_v23 = vld [vmem:[#allocation8 + $0x35c] sm:$0xf0]  ;;  %v10215_v28 = vor.u32 %v12656_v6, %v10214_v20 }
 0x311   :  { %v12559_v27 = vld [vmem:[#allocation5 + $0xe5c] sm:$0xf]  ;;  %v9603_v32 = vor.u32 %v12495_v24, %v9600_v26  ;;  %3998 = vmatpush.bf16.msrb.mxu1 %v9347_v31  ;;  %v10726_v24 = vld [vmem:[#allocation8 + $0x540] sm:$0xf] }
 0x312   :  { %v9856_v63 = vld [vmem:[#allocation5 + $0xe78] sm:$0xf0]  ;;  %v12784_v26 = vld [vmem:[#allocation8 + $0x55c] sm:$0xf0] }
 0x313   :  { %v12359_v29 = vld [vmem:[#allocation5 + $0x81c] sm:$0xf]  ;;  %v9859_v36 = vor.u32 %v12559_v27, %v9856_v63  ;;  %4011 = vmatpush.bf16.msrb.mxu2 %v9603_v32  ;;  %v10982_v27 = vld [vmem:[#allocation8 + $0x740] sm:$0xf] }
 0x314   :  { %v9056_v30 = vld [vmem:[#allocation5 + $0x838] sm:$0xf0]  ;;  %v12848_v63 = vld [vmem:[#allocation8 + $0x75c] sm:$0xf0] }
 0x315   :  { %v12423_v8 = vld [vmem:[#allocation5 + $0xa1c] sm:$0xf]  ;;  %v9059_v43 = vor.u32 %v12359_v29, %v9056_v30  ;;  %4024 = vmatpush.bf16.msrb.mxu3 %v9859_v36  ;;  %v10471_v29 = vor.u32 %v12720_v23, %v10470_v21  ;;  %v10727_v30 = vor.u32 %v12784_v26, %v10726_v24  ;;  %v10182_v31 = vld [vmem:[#allocation8 + $0x100] sm:$0xf]  ;;  %v3795_v21 = vpop.f32.mrf.mxu1 }
 0x316   :  { %v9312_v33 = vld [vmem:[#allocation5 + $0xa38] sm:$0xf0]  ;;  %v10438_v32 = vld [vmem:[#allocation8 + $0x300] sm:$0xf] }
 0x317   :  { %v12487_v47 = vld [vmem:[#allocation5 + $0xc1c] sm:$0xf]  ;;  %v9315_v51 = vor.u32 %v12423_v8, %v9312_v33  ;;  %3986 = vmatpush.bf16.msrb.mxu0 %v9059_v43  ;;  %v10983_v8 = vor.u32 %v12848_v63, %v10982_v27  ;;  %v12712_v33 = vld [vmem:[#allocation8 + $0x31c] sm:$0xf0]  ;;  %v628_v27 = vperm.slane %v13446_v19, 5  ;;  %v3821_v19 = vpop.f32.mrf.mxu3 }
 0x318   :  { %v9568_v7 = vld [vmem:[#allocation5 + $0xc38] sm:$0xf0]  ;;  %v12704_v43 = vld [vmem:[#allocation8 + $0x2dc] sm:$0xf0] }
 0x319   :  { %v12551_v9 = vld [vmem:[#allocation5 + $0xe1c] sm:$0xf]  ;;  %v9571_v53 = vor.u32 %v12487_v47, %v9568_v7  ;;  %3999 = vmatpush.bf16.msrb.mxu1 %v9315_v51  ;;  %v10694_v47 = vld [vmem:[#allocation8 + $0x500] sm:$0xf]  ;;  %v13474_v7 = vpop.f32.mrf.mxu0  ;;  %v10407_v54 = vor.u32 %v12704_v43, %v10406_v39 }
 0x31a   :  { %v9824_v15 = vld [vmem:[#allocation5 + $0xe38] sm:$0xf0]  ;;  %3987 = vmatmul.bf16.vlgmr.msrb.gmra.mxu0 %v13364_v37  ;;  %v12648_v37 = vld [vmem:[#allocation8 + $0x11c] sm:$0xf0] }
 0x31b   :  { %v9827_v57 = vor.u32 %v12551_v9, %v9824_v15  ;;  %4012 = vmatpush.bf16.msrb.mxu2 %v9571_v53  ;;  %7137 = vmatpush.bf16.msra.mxu0 %v10279_v58  ;;  %v10183_v36 = vor.u32 %v12648_v37, %v10182_v31  ;;  %v10150_v15 = vld [vmem:[#allocation8 + $0xc0] sm:$0xf] }
 0x31c   :  { %4000 = vmatmul.bf16.vlgmr.msrb.gmra.mxu1 %v13368_v40  ;;  %v12776_v40 = vld [vmem:[#allocation8 + $0x51c] sm:$0xf0]  ;;  %v10151_v53 = vor.u32 %v12640_v25, %v10150_v15 }
 0x31d   :  { %4025 = vmatpush.bf16.msrb.mxu3 %v9827_v57  ;;  %7150 = vmatpush.bf16.msra.mxu1 %v10535_v60  ;;  %v10695_v9 = vor.u32 %v12776_v40, %v10694_v47  ;;  %v10918_v50 = vld [vmem:[#allocation8 + $0x6c0] sm:$0xf] }
 0x31e   :  { %4013 = vmatmul.bf16.vlgmr.msrb.gmra.mxu2 %v13362_v34  ;;  %v12840_v34 = vld [vmem:[#allocation8 + $0x71c] sm:$0xf0] }
 0x31f   :  { %7163 = vmatpush.bf16.msra.mxu2 %v10791_v61  ;;  %7138 = vmatpush.bf16.msra.mxu0 %v10247_v16  ;;  %v10951_v42 = vor.u32 %v12840_v34, %v10950_v35  ;;  %v12832_v51 = vld [vmem:[#allocation8 + $0x6dc] sm:$0xf0]  ;;  %v13478_v61 = vpop.f32.mrf.mxu2 }
 0x320   :  { %4026 = vmatmul.bf16.vlgmr.msrb.gmra.mxu3 %v13366_v38  ;;  %v10439_v38 = vor.u32 %v12712_v33, %v10438_v32  ;;  %v10118_v57 = vld [vmem:[#allocation8 + $0x80] sm:$0xf]  ;;  %v10919_v62 = vor.u32 %v12832_v51, %v10918_v50  ;;  %v4031_v50 = vmax.f32 %v13396_v48, 0.0  ;;  %v4032_v51 = vmax.f32 %v13410_v45, 0.0 }
 0x321   :  { %7176 = vmatpush.bf16.msra.mxu3 %v11047_v3  ;;  %7151 = vmatpush.bf16.msra.mxu1 %v10503_v17  ;;  %v12632_v58 = vld [vmem:[#allocation8 + $0x9c] sm:$0xf0]  ;;  %v3782_v14 = vpop.f32.mrf.mxu0 }
 0x322   :  { %v10374_v60 = vld [vmem:[#allocation8 + $0x280] sm:$0xf]  ;;  %v10119_v12 = vor.u32 %v12632_v58, %v10118_v57  ;;  %v13491_v14 = vpack.c.bf16 %v4032_v51, %v4032_v51 }
 0x323   :  { %7164 = vmatpush.bf16.msra.mxu2 %v10759_v18  ;;  %7139 = vmatpush.bf16.msra.mxu0 %v10215_v28  ;;  %v12696_v0 = vld [vmem:[#allocation8 + $0x29c] sm:$0xf0] }
 0x324   :  { %v10630_v1 = vld [vmem:[#allocation8 + $0x480] sm:$0xf]  ;;  %v10375_v16 = vor.u32 %v12696_v0, %v10374_v60 }
 0x325   :  { %7177 = vmatpush.bf16.msra.mxu3 %v11015_v22  ;;  %7152 = vmatpush.bf16.msra.mxu1 %v10471_v29  ;;  %v12760_v3 = vld [vmem:[#allocation8 + $0x49c] sm:$0xf0] }
 0x326   :  { %v10886_v10 = vld [vmem:[#allocation8 + $0x680] sm:$0xf]  ;;  %v10631_v17 = vor.u32 %v12760_v3, %v10630_v1 }
 0x327   :  { %7165 = vmatpush.bf16.msra.mxu2 %v10727_v30  ;;  %7140 = vmatpush.bf16.msra.mxu0 %v10183_v36  ;;  %v12824_v11 = vld [vmem:[#allocation8 + $0x69c] sm:$0xf0]  ;;  %v3808_v40 = vpop.f32.mrf.mxu2 }
 0x328   :  { %v10086_v18 = vld [vmem:[#allocation8 + $0x40] sm:$0xf]  ;;  %v10887_v22 = vor.u32 %v12824_v11, %v10886_v10 }
 0x329   :  { %7178 = vmatpush.bf16.msra.mxu3 %v10983_v8  ;;  %7153 = vmatpush.bf16.msra.mxu1 %v10439_v38  ;;  %v12624_v20 = vld [vmem:[#allocation8 + $0x5c] sm:$0xf0] }
 0x32a   :  { %v10342_v6 = vld [vmem:[#allocation8 + $0x240] sm:$0xf]  ;;  %v10087_v29 = vor.u32 %v12624_v20, %v10086_v18 }
 0x32b   :  { %7166 = vmatpush.bf16.msra.mxu2 %v10695_v9  ;;  %7141 = vmatpush.bf16.msra.mxu0 %v10151_v53  ;;  %v12688_v23 = vld [vmem:[#allocation8 + $0x25c] sm:$0xf0]  ;;  %v3729_v9 = vadd.f32 %v13462_v49, %v628_v27  ;;  %v4034_v49 = vmax.f32 %v13440_v59, 0.0 }
 0x32c   :  { %v10598_v24 = vld [vmem:[#allocation8 + $0x440] sm:$0xf]  ;;  %v10343_v37 = vor.u32 %v12688_v23, %v10342_v6 }
 0x32d   :  { %7179 = vmatpush.bf16.msra.mxu3 %v10951_v42  ;;  %7154 = vmatpush.bf16.msra.mxu1 %v10407_v54  ;;  %v12752_v26 = vld [vmem:[#allocation8 + $0x45c] sm:$0xf0]  ;;  %v3742_v60 = vadd.f32 %v13464_v44, %v3729_v9  ;;  %v13495_v59 = vpack.c.bf16 %v4034_v49, %v4034_v49 }
 0x32e   :  { %v10854_v63 = vld [vmem:[#allocation8 + $0x640] sm:$0xf]  ;;  %v10599_v32 = vor.u32 %v12752_v26, %v10598_v24 }
 0x32f   :  { %7167 = vmatpush.bf16.msra.mxu2 %v10663_v55  ;;  %v12816_v28 = vld [vmem:[#allocation8 + $0x65c] sm:$0xf0]  ;;  %7142 = vmatpush.bf16.msra.mxu0 %v10119_v12  ;;  %v4033_v55 = vmax.f32 %v13426_v52, 0.0  ;;  %v13489_v12 = vpack.c.bf16 %v4031_v50, %v4031_v50  ;;  %v13509_v50 = vpop.f32.mrf.mxu2 }
 0x330   :  { %v10054_v30 = vld [vmem:[#allocation8] sm:$0xf]  ;;  %v10855_v35 = vor.u32 %v12816_v28, %v10854_v63 }
 0x331   :  { %7180 = vmatpush.bf16.msra.mxu3 %v10919_v62  ;;  %v12616_v31 = vld [vmem:[#allocation8 + $0x1c] sm:$0xf0]  ;;  %7155 = vmatpush.bf16.msra.mxu1 %v10375_v16  ;;  %v13493_v52 = vpack.c.bf16 %v4033_v55, %v4033_v55  ;;  %v3755_v16 = vadd.f32 %v13466_v2, %v3742_v60  ;;  %v13511_v55 = vpop.f32.mrf.mxu3 }
 0x332   :  { %v10310_v8 = vld [vmem:[#allocation8 + $0x200] sm:$0xf]  ;;  %v10055_v42 = vor.u32 %v12616_v31, %v10054_v30 }
 0x333   :  { %7168 = vmatpush.bf16.msra.mxu2 %v10631_v17  ;;  %v12680_v33 = vld [vmem:[#allocation8 + $0x21c] sm:$0xf0]  ;;  %7143 = vmatpush.bf16.msra.mxu0 %v10087_v29  ;;  %v3768_v26 = vadd.f32 %v13468_v5, %v3755_v16 }
 0x334   :  { %v10566_v47 = vld [vmem:[#allocation8 + $0x400] sm:$0xf]  ;;  %v10311_v53 = vor.u32 %v12680_v33, %v10310_v8  ;;  %v13503_v33 = vpop.f32.mrf.mxu0 }
 0x335   :  { %7181 = vmatpush.bf16.msra.mxu3 %v10887_v22  ;;  %v12744_v34 = vld [vmem:[#allocation8 + $0x41c] sm:$0xf0]  ;;  %7156 = vmatpush.bf16.msra.mxu1 %v10343_v37 }
 0x336   :  { %v10822_v36 = vld [vmem:[#allocation8 + $0x600] sm:$0xf]  ;;  %v10567_v54 = vor.u32 %v12744_v34, %v10566_v47  ;;  %v3781_v47 = vadd.f32 %v13474_v7, %v3768_v26  ;;  %v12668_v26 = vld [vmem:[#allocation8 + $0x1c4] sm:$0xf] }
 0x337   :  { %v12808_v38 = vld [vmem:[#allocation8 + $0x61c] sm:$0xf0]  ;;  %7169 = vmatpush.bf16.msra.mxu2 %v10599_v32  ;;  %7144 = vmatpush.bf16.msra.mxu0 %v10055_v42 }
 0x338   :  { %v11302_v15 = vld [vmem:[#allocation8 + $0x9c0] sm:$0xf]  ;;  %v10823_v57 = vor.u32 %v12808_v38, %v10822_v36  ;;  %v13506_v38 = vpop.f32.mrf.mxu1 }
 0x339   :  { %v12928_v25 = vld [vmem:[#allocation8 + $0x9dc] sm:$0xf0]  ;;  %7182 = vmatpush.bf16.msra.mxu3 %v10855_v35  ;;  %7157 = vmatpush.bf16.msra.mxu1 %v10311_v53 }
 0x33a   :  { %v11558_v39 = vld [vmem:[#allocation8 + $0xbc0] sm:$0xf]  ;;  %v11303_v58 = vor.u32 %v12928_v25, %v11302_v15  ;;  %7145 = vmatmul.bf16.vlgmr.msra.gmra.mxu0 %v13489_v12 }
 0x33b   :  { %v12992_v43 = vld [vmem:[#allocation8 + $0xbdc] sm:$0xf0]  ;;  %7170 = vmatpush.bf16.msra.mxu2 %v10567_v54 }
 0x33c   :  { %v11814_v56 = vld [vmem:[#allocation8 + $0xdc0] sm:$0xf]  ;;  %v11559_v62 = vor.u32 %v12992_v43, %v11558_v39  ;;  %7189 = vmatpush.bf16.msrb.mxu0 %v11303_v58  ;;  %7158 = vmatmul.bf16.vlgmr.msra.gmra.mxu1 %v13491_v14  ;;  %v3794_v39 = vadd.f32 %v13476_v41, %v3781_v47  ;;  %v10792_v47 = vld [vmem:[#allocation8 + $0x5e0] sm:$0xf0] }
 0x33d   :  { %v13056_v46 = vld [vmem:[#allocation8 + $0xddc] sm:$0xf0]  ;;  %7183 = vmatpush.bf16.msra.mxu3 %v10823_v57  ;;  %v3834_v57 = vpop.f32.mrf.mxu0 }
 0x33e   :  { %v11815_v0 = vor.u32 %v13056_v46, %v11814_v56  ;;  %v11270_v1 = vld [vmem:[#allocation8 + $0x980] sm:$0xf]  ;;  %7202 = vmatpush.bf16.msrb.mxu1 %v11559_v62  ;;  %7171 = vmatmul.bf16.vlgmr.msra.gmra.mxu2 %v13493_v52  ;;  %v3807_v58 = vadd.f32 %v13478_v61, %v3794_v39  ;;  %v12652_v57 = vld [vmem:[#allocation8 + $0x144] sm:$0xf] }
 0x33f   :  { %v12920_v3 = vld [vmem:[#allocation8 + $0x99c] sm:$0xf0] }
 0x340   :  { %v11526_v48 = vld [vmem:[#allocation8 + $0xb80] sm:$0xf]  ;;  %v11271_v44 = vor.u32 %v12920_v3, %v11270_v1  ;;  %7215 = vmatpush.bf16.msrb.mxu2 %v11815_v0  ;;  %7184 = vmatmul.bf16.vlgmr.msra.gmra.mxu3 %v13495_v59  ;;  %v3847_v3 = vpop.f32.mrf.mxu1 }
 0x341   :  { %v12984_v45 = vld [vmem:[#allocation8 + $0xb9c] sm:$0xf0]  ;;  %v12780_v3 = vld [vmem:[#allocation8 + $0x544] sm:$0xf] }
 0x342   :  { %v11782_v10 = vld [vmem:[#allocation8 + $0xd80] sm:$0xf]  ;;  %v11527_v17 = vor.u32 %v12984_v45, %v11526_v48  ;;  %7190 = vmatpush.bf16.msrb.mxu0 %v11271_v44 }
 0x343   :  { %v13048_v11 = vld [vmem:[#allocation8 + $0xd9c] sm:$0xf0] }
 0x344   :  { %v11783_v18 = vor.u32 %v13048_v11, %v11782_v10  ;;  %v11238_v20 = vld [vmem:[#allocation8 + $0x940] sm:$0xf]  ;;  %7203 = vmatpush.bf16.msrb.mxu1 %v11527_v17  ;;  %v13514_v11 = vld [vmem:[#allocation7] sm:$0xff] }
 0x345   :  { %v12912_v6 = vld [vmem:[#allocation8 + $0x95c] sm:$0xf0]  ;;  %v629_v44 = vperm.slane %v13514_v11, 6 }
 0x346   :  { %v11494_v21 = vld [vmem:[#allocation8 + $0xb40] sm:$0xf]  ;;  %v11239_v2 = vor.u32 %v12912_v6, %v11238_v20  ;;  %7216 = vmatpush.bf16.msrb.mxu2 %v11783_v18  ;;  %v3820_v20 = vadd.f32 %v13480_v4, %v3807_v58  ;;  %v12716_v58 = vld [vmem:[#allocation8 + $0x344] sm:$0xf] }
 0x347   :  { %v12976_v22 = vld [vmem:[#allocation8 + $0xb5c] sm:$0xf0] }
 0x348   :  { %v11750_v23 = vld [vmem:[#allocation8 + $0xd40] sm:$0xf]  ;;  %v11495_v27 = vor.u32 %v12976_v22, %v11494_v21  ;;  %7191 = vmatpush.bf16.msrb.mxu0 %v11239_v2  ;;  %v3860_v2 = vpop.f32.mrf.mxu2 }
 0x349   :  { %v13040_v24 = vld [vmem:[#allocation8 + $0xd5c] sm:$0xf0] }
 0x34a   :  { %v11751_v63 = vor.u32 %v13040_v24, %v11750_v23  ;;  %v11206_v28 = vld [vmem:[#allocation8 + $0x900] sm:$0xf]  ;;  %7204 = vmatpush.bf16.msrb.mxu1 %v11495_v27  ;;  %v3873_v27 = vpop.f32.mrf.mxu3 }
 0x34b   :  { %v12904_v29 = vld [vmem:[#allocation8 + $0x91c] sm:$0xf0]  ;;  %v3884_v27 = vpop.f32.mrf.mxu0 }
 0x34c   :  { %v11462_v30 = vld [vmem:[#allocation8 + $0xb00] sm:$0xf]  ;;  %v11207_v8 = vor.u32 %v12904_v29, %v11206_v28  ;;  %7217 = vmatpush.bf16.msrb.mxu2 %v11751_v63  ;;  %v3833_v29 = vadd.f32 %v13503_v33, %v629_v44  ;;  %v12724_v33 = vld [vmem:[#allocation8 + $0x384] sm:$0xf] }
 0x34d   :  { %v12968_v31 = vld [vmem:[#allocation8 + $0xb1c] sm:$0xf0] }
 0x34e   :  { %v11718_v37 = vld [vmem:[#allocation8 + $0xd00] sm:$0xf]  ;;  %v11463_v40 = vor.u32 %v12968_v31, %v11462_v30  ;;  %7192 = vmatpush.bf16.msrb.mxu0 %v11207_v8  ;;  %v10280_v30 = vld [vmem:[#allocation8 + $0x1e0] sm:$0xf0] }
 0x34f   :  { %v13032_v32 = vld [vmem:[#allocation8 + $0xd1c] sm:$0xf0]  ;;  %v12732_v31 = vld [vmem:[#allocation8 + $0x3c4] sm:$0xf] }
 0x350   :  { %v11719_v5 = vor.u32 %v13032_v32, %v11718_v37  ;;  %v11174_v35 = vld [vmem:[#allocation8 + $0x8c0] sm:$0xf]  ;;  %7205 = vmatpush.bf16.msrb.mxu1 %v11463_v40  ;;  %v10536_v37 = vld [vmem:[#allocation8 + $0x3e0] sm:$0xf0]  ;;  %v4035_v40 = vmax.f32 %v13456_v13, 0.0 }
 0x351   :  { %v12896_v34 = vld [vmem:[#allocation8 + $0x8dc] sm:$0xf0]  ;;  %v12796_v8 = vld [vmem:[#allocation8 + $0x5c4] sm:$0xf] }
 0x352   :  { %v11430_v36 = vld [vmem:[#allocation8 + $0xac0] sm:$0xf]  ;;  %v11175_v25 = vor.u32 %v12896_v34, %v11174_v35  ;;  %7218 = vmatpush.bf16.msrb.mxu2 %v11719_v5  ;;  %v4036_v5 = vmax.f32 %v3820_v20, 0.0  ;;  %v10795_v39 = vor.u32 %v12796_v8, %v10792_v47  ;;  %v10760_v13 = vld [vmem:[#allocation8 + $0x5a0] sm:$0xf0] }
 0x353   :  { %v12960_v19 = vld [vmem:[#allocation8 + $0xadc] sm:$0xf0]  ;;  %v10184_v20 = vld [vmem:[#allocation8 + $0x120] sm:$0xf0] }
 0x354   :  { %v11686_v9 = vld [vmem:[#allocation8 + $0xcc0] sm:$0xf]  ;;  %v11431_v42 = vor.u32 %v12960_v19, %v11430_v36  ;;  %7193 = vmatpush.bf16.msrb.mxu0 %v11175_v25  ;;  %v10283_v36 = vor.u32 %v12668_v26, %v10280_v30  ;;  %v10539_v19 = vor.u32 %v12732_v31, %v10536_v37  ;;  %v3846_v25 = vadd.f32 %v13506_v38, %v3833_v29  ;;  %v10216_v38 = vld [vmem:[#allocation8 + $0x160] sm:$0xf0]  ;;  %v3897_v31 = vpop.f32.mrf.mxu1 }
 0x355   :  { %v13024_v15 = vld [vmem:[#allocation8 + $0xcdc] sm:$0xf0]  ;;  %v10152_v37 = vld [vmem:[#allocation8 + $0xe0] sm:$0xf0] }
 0x356   :  { %v11687_v7 = vor.u32 %v13024_v15, %v11686_v9  ;;  %v11142_v43 = vld [vmem:[#allocation8 + $0x880] sm:$0xf]  ;;  %7206 = vmatpush.bf16.msrb.mxu1 %v11431_v42  ;;  %v12660_v9 = vld [vmem:[#allocation8 + $0x184] sm:$0xf] }
 0x357   :  { %v12888_v56 = vld [vmem:[#allocation8 + $0x89c] sm:$0xf0]  ;;  %v10248_v15 = vld [vmem:[#allocation8 + $0x1a0] sm:$0xf0] }
 0x358   :  { %v11398_v46 = vld [vmem:[#allocation8 + $0xa80] sm:$0xf]  ;;  %v11143_v49 = vor.u32 %v12888_v56, %v11142_v43  ;;  %7219 = vmatpush.bf16.msrb.mxu2 %v11687_v7  ;;  %v10504_v42 = vld [vmem:[#allocation8 + $0x3a0] sm:$0xf0] }
 0x359   :  { %v12952_v51 = vld [vmem:[#allocation8 + $0xa9c] sm:$0xf0]  ;;  %v12788_v56 = vld [vmem:[#allocation8 + $0x584] sm:$0xf] }
 0x35a   :  { %v11654_v53 = vld [vmem:[#allocation8 + $0xc80] sm:$0xf]  ;;  %v11399_v41 = vor.u32 %v12952_v51, %v11398_v46  ;;  %7194 = vmatpush.bf16.msrb.mxu0 %v11143_v49  ;;  %v13521_v51 = vpack.c.bf16 %v4035_v40, %v4035_v40  ;;  %v10507_v49 = vor.u32 %v12724_v33, %v10504_v42  ;;  %v12764_v8 = vld [vmem:[#allocation8 + $0x4c4] sm:$0xf]  ;;  %v3910_v33 = vpop.f32.mrf.mxu2 }
 0x35b   :  { %v13016_v54 = vld [vmem:[#allocation8 + $0xc9c] sm:$0xf0]  ;;  %v10664_v47 = vld [vmem:[#allocation8 + $0x4e0] sm:$0xf0] }
 0x35c   :  { %v11655_v60 = vor.u32 %v13016_v54, %v11654_v53  ;;  %v11110_v62 = vld [vmem:[#allocation8 + $0x840] sm:$0xf]  ;;  %7207 = vmatpush.bf16.msrb.mxu1 %v11399_v41  ;;  %v13523_v53 = vpack.c.bf16 %v4036_v5, %v4036_v5  ;;  %v10251_v54 = vor.u32 %v12660_v9, %v10248_v15  ;;  %v3859_v41 = vadd.f32 %v13509_v50, %v3846_v25  ;;  %v10120_v25 = vld [vmem:[#allocation8 + $0xa0] sm:$0xf0] }
 0x35d   :  { %v12880_v0 = vld [vmem:[#allocation8 + $0x85c] sm:$0xf0]  ;;  %v10667_v15 = vor.u32 %v12764_v8, %v10664_v47  ;;  %v10376_v42 = vld [vmem:[#allocation8 + $0x2a0] sm:$0xf0] }
 0x35e   :  { %v11366_v1 = vld [vmem:[#allocation8 + $0xa40] sm:$0xf]  ;;  %v11111_v16 = vor.u32 %v12880_v0, %v11110_v62  ;;  %7220 = vmatpush.bf16.msrb.mxu2 %v11655_v60  ;;  %v10763_v60 = vor.u32 %v12788_v56, %v10760_v13  ;;  %v10472_v62 = vld [vmem:[#allocation8 + $0x360] sm:$0xf0]  ;;  %v3872_v50 = vadd.f32 %v13511_v55, %v3859_v41 }
 0x35f   :  { %v12944_v48 = vld [vmem:[#allocation8 + $0xa5c] sm:$0xf0]  ;;  %v10475_v44 = vor.u32 %v12716_v58, %v10472_v62  ;;  %v12756_v56 = vld [vmem:[#allocation8 + $0x484] sm:$0xf]  ;;  %v3886_v58 = vpop.f32.mrf.mxu0 }
 0x360   :  { %v11622_v45 = vld [vmem:[#allocation8 + $0xc40] sm:$0xf]  ;;  %v11367_v6 = vor.u32 %v12944_v48, %v11366_v1  ;;  %7195 = vmatpush.bf16.msrb.mxu0 %v11111_v16  ;;  %v10728_v48 = vld [vmem:[#allocation8 + $0x560] sm:$0xf0]  ;;  %v3885_v55 = vadd.f32 %v3884_v27, %v3872_v50 }
 0x361   :  { %v13008_v10 = vld [vmem:[#allocation8 + $0xc5c] sm:$0xf0]  ;;  %v12644_v16 = vld [vmem:[#allocation8 + $0x104] sm:$0xf] }
 0x362   :  { %v11078_v17 = vld [vmem:[#allocation8 + $0x800] sm:$0xf]  ;;  %v11623_v21 = vor.u32 %v13008_v10, %v11622_v45  ;;  %7208 = vmatpush.bf16.msrb.mxu1 %v11367_v6  ;;  %v10219_v10 = vor.u32 %v12652_v57, %v10216_v38  ;;  %v12708_v6 = vld [vmem:[#allocation8 + $0x304] sm:$0xf]  ;;  %v10187_v2 = vor.u32 %v12644_v16, %v10184_v20  ;;  %v3898_v5 = vadd.f32 %v3897_v31, %v3885_v55  ;;  %v3912_v27 = vpop.f32.mrf.mxu2 }
 0x363   :  { %v12872_v18 = vld [vmem:[#allocation8 + $0x81c] sm:$0xf0]  ;;  %v10632_v13 = vld [vmem:[#allocation8 + $0x4a0] sm:$0xf0] }
 0x364   :  { %v11334_v61 = vld [vmem:[#allocation8 + $0xa00] sm:$0xf]  ;;  %v11079_v4 = vor.u32 %v12872_v18, %v11078_v17  ;;  %7221 = vmatpush.bf16.msrb.mxu2 %v11623_v21  ;;  %v10440_v21 = vld [vmem:[#allocation8 + $0x320] sm:$0xf0]  ;;  %v10635_v62 = vor.u32 %v12756_v56, %v10632_v13 }
 0x365   :  { %v12936_v22 = vld [vmem:[#allocation8 + $0xa1c] sm:$0xf0]  ;;  %v10443_v26 = vor.u32 %v12708_v6, %v10440_v21  ;;  %v12620_v38 = vld [vmem:[#allocation8 + $0x44] sm:$0xf] }
 0x366   :  { %v11590_v23 = vld [vmem:[#allocation8 + $0xc00] sm:$0xf]  ;;  %v11335_v35 = vor.u32 %v12936_v22, %v11334_v61  ;;  %7196 = vmatpush.bf16.msrb.mxu0 %v11079_v4  ;;  %v10731_v61 = vor.u32 %v12780_v3, %v10728_v48  ;;  %v12772_v22 = vld [vmem:[#allocation8 + $0x504] sm:$0xf]  ;;  %v3899_v48 = vpop.f32.mrf.mxu1 }
 0x367   :  { %v13000_v24 = vld [vmem:[#allocation8 + $0xc1c] sm:$0xf0]  ;;  %v10408_v4 = vld [vmem:[#allocation8 + $0x2e0] sm:$0xf0] }
 0x368   :  { %v12070_v63 = vld [vmem:[#allocation8 + $0xfc0] sm:$0xf]  ;;  %v11591_v34 = vor.u32 %v13000_v24, %v11590_v23  ;;  %7209 = vmatpush.bf16.msrb.mxu1 %v11335_v35  ;;  %v10696_v23 = vld [vmem:[#allocation8 + $0x520] sm:$0xf0] }
 0x369   :  { %v13120_v28 = vld [vmem:[#allocation8 + $0xfdc] sm:$0xf0]  ;;  %7197 = vmatmul.bf16.vlgmr.msrb.gmra.mxu0 %v13521_v51  ;;  %v10699_v30 = vor.u32 %v12772_v22, %v10696_v23  ;;  %v10344_v3 = vld [vmem:[#allocation8 + $0x260] sm:$0xf0] }
 0x36a   :  { %v12071_v32 = vor.u32 %v13120_v28, %v12070_v63  ;;  %v12038_v7 = vld [vmem:[#allocation8 + $0xf80] sm:$0xf]  ;;  %7222 = vmatpush.bf16.msrb.mxu2 %v11591_v34  ;;  %7241 = vmatpush.bf16.msra.mxu0 %v10283_v36  ;;  %v12636_v63 = vld [vmem:[#allocation8 + $0xc4] sm:$0xf] }
 0x36b   :  { %v13112_v43 = vld [vmem:[#allocation8 + $0xf9c] sm:$0xf0]  ;;  %7210 = vmatmul.bf16.vlgmr.msrb.gmra.mxu1 %v13523_v53  ;;  %v10155_v35 = vor.u32 %v12636_v63, %v10152_v37  ;;  %v12628_v36 = vld [vmem:[#allocation8 + $0x84] sm:$0xf] }
 0x36c   :  { %7228 = vmatpush.bf16.msrb.mxu3 %v12071_v32  ;;  %v12039_v46 = vor.u32 %v13112_v43, %v12038_v7  ;;  %7254 = vmatpush.bf16.msra.mxu1 %v10539_v19  ;;  %v12006_v0 = vld [vmem:[#allocation8 + $0xf40] sm:$0xf]  ;;  %v12700_v32 = vld [vmem:[#allocation8 + $0x2c4] sm:$0xf]  ;;  %v3911_v7 = vadd.f32 %v3910_v33, %v3898_v5  ;;  %v3923_v43 = vpop.f32.mrf.mxu3 }
 0x36d   :  { %v13104_v1 = vld [vmem:[#allocation8 + $0xf5c] sm:$0xf0]  ;;  %v10411_v34 = vor.u32 %v12700_v32, %v10408_v4  ;;  %v12676_v50 = vld [vmem:[#allocation8 + $0x204] sm:$0xf] }
 0x36e   :  { %7267 = vmatpush.bf16.msra.mxu2 %v10795_v39  ;;  %v12007_v45 = vor.u32 %v13104_v1, %v12006_v0  ;;  %7242 = vmatpush.bf16.msra.mxu0 %v10251_v54  ;;  %v11974_v17 = vld [vmem:[#allocation8 + $0xf00] sm:$0xf]  ;;  %v12692_v39 = vld [vmem:[#allocation8 + $0x284] sm:$0xf]  ;;  %v3924_v54 = vadd.f32 %v3923_v43, %v3911_v7 }
 0x36f   :  { %v13096_v18 = vld [vmem:[#allocation8 + $0xf1c] sm:$0xf0]  ;;  %v10379_v57 = vor.u32 %v12692_v39, %v10376_v42  ;;  %v10088_v0 = vld [vmem:[#allocation8 + $0x60] sm:$0xf0] }
 0x370   :  { %7229 = vmatpush.bf16.msrb.mxu3 %v12039_v46  ;;  %7255 = vmatpush.bf16.msra.mxu1 %v10507_v49  ;;  %v11975_v24 = vor.u32 %v13096_v18, %v11974_v17  ;;  %v11942_v28 = vld [vmem:[#allocation8 + $0xec0] sm:$0xf]  ;;  %v10123_v49 = vor.u32 %v12628_v36, %v10120_v25  ;;  %v12684_v1 = vld [vmem:[#allocation8 + $0x244] sm:$0xf]  ;;  %v10091_v6 = vor.u32 %v12620_v38, %v10088_v0 }
 0x371   :  { %v13088_v29 = vld [vmem:[#allocation8 + $0xedc] sm:$0xf0]  ;;  %v12612_v17 = vld [vmem:[#allocation8 + $0x4] sm:$0xf]  ;;  %v10347_v21 = vor.u32 %v12684_v1, %v10344_v3 }
 0x372   :  { %7268 = vmatpush.bf16.msra.mxu2 %v10763_v60  ;;  %7243 = vmatpush.bf16.msra.mxu0 %v10219_v10  ;;  %v11943_v40 = vor.u32 %v13088_v29, %v11942_v28  ;;  %v11910_v19 = vld [vmem:[#allocation8 + $0xe80] sm:$0xf]  ;;  %v12748_v10 = vld [vmem:[#allocation8 + $0x444] sm:$0xf] }
 0x373   :  { %v13080_v9 = vld [vmem:[#allocation8 + $0xe9c] sm:$0xf0]  ;;  %v10056_v18 = vld [vmem:[#allocation8 + $0x20] sm:$0xf0] }
 0x374   :  { %7230 = vmatpush.bf16.msrb.mxu3 %v12007_v45  ;;  %7256 = vmatpush.bf16.msra.mxu1 %v10475_v44  ;;  %v11911_v46 = vor.u32 %v13080_v9, %v11910_v19  ;;  %v11878_v41 = vld [vmem:[#allocation8 + $0xe40] sm:$0xf]  ;;  %v4037_v45 = vmax.f32 %v3924_v54, 0.0  ;;  %v10600_v44 = vld [vmem:[#allocation8 + $0x460] sm:$0xf0]  ;;  %v3925_v31 = vpop.f32.mrf.mxu3 }
 0x375   :  { %v13072_v60 = vld [vmem:[#allocation8 + $0xe5c] sm:$0xf0]  ;;  %v12740_v22 = vld [vmem:[#allocation8 + $0x404] sm:$0xf] }
 0x376   :  { %7269 = vmatpush.bf16.msra.mxu2 %v10731_v61  ;;  %7244 = vmatpush.bf16.msra.mxu0 %v10187_v2  ;;  %v11879_v16 = vor.u32 %v13072_v60, %v11878_v41  ;;  %v10312_v61 = vld [vmem:[#allocation8 + $0x220] sm:$0xf0]  ;;  %v13529_v20 = vpack.c.bf16 %v4037_v45, %v4037_v45  ;;  %v11846_v23 = vld [vmem:[#allocation8 + $0xe00] sm:$0xf]  ;;  %v10603_v2 = vor.u32 %v12748_v10, %v10600_v44 }
 0x377   :  { %v12860_v63 = vld [vmem:[#allocation8 + $0x7c4] sm:$0xf]  ;;  %v10315_v5 = vor.u32 %v12676_v50, %v10312_v61 }
 0x378   :  { %7231 = vmatpush.bf16.msrb.mxu3 %v11975_v24  ;;  %7257 = vmatpush.bf16.msra.mxu1 %v10443_v26  ;;  %v13064_v24 = vld [vmem:[#allocation8 + $0xe1c] sm:$0xf0]  ;;  %v10568_v26 = vld [vmem:[#allocation8 + $0x420] sm:$0xf0] }
 0x379   :  { %v11048_v28 = vld [vmem:[#allocation8 + $0x7e0] sm:$0xf0]  ;;  %7223 = vmatmul.bf16.vlgmr.msrb.gmra.mxu2 %v13529_v20  ;;  %v11847_v37 = vor.u32 %v13064_v24, %v11846_v23 }
 0x37a   :  { %7270 = vmatpush.bf16.msra.mxu2 %v10699_v30  ;;  %7245 = vmatpush.bf16.msra.mxu0 %v10155_v35  ;;  %v12924_v29 = vld [vmem:[#allocation8 + $0x9c4] sm:$0xf]  ;;  %v11051_v47 = vor.u32 %v12860_v63, %v11048_v28  ;;  %v10571_v35 = vor.u32 %v12740_v22, %v10568_v26 }
 0x37b   :  { %v11304_v30 = vld [vmem:[#allocation8 + $0x9e0] sm:$0xf0] }
 0x37c   :  { %7232 = vmatpush.bf16.msrb.mxu3 %v11943_v40  ;;  %7258 = vmatpush.bf16.msra.mxu1 %v10411_v34  ;;  %v12988_v55 = vld [vmem:[#allocation8 + $0xbc4] sm:$0xf]  ;;  %v10059_v40 = vor.u32 %v12612_v17, %v10056_v18  ;;  %v11307_v34 = vor.u32 %v12924_v29, %v11304_v30  ;;  %v13534_v29 = vpop.f32.mrf.mxu0 }
 0x37d   :  { %v11560_v32 = vld [vmem:[#allocation8 + $0xbe0] sm:$0xf0] }
 0x37e   :  { %7271 = vmatpush.bf16.msra.mxu2 %v10667_v15  ;;  %7246 = vmatpush.bf16.msra.mxu0 %v10123_v49  ;;  %v13052_v4 = vld [vmem:[#allocation8 + $0xdc4] sm:$0xf]  ;;  %v11563_v9 = vor.u32 %v12988_v55, %v11560_v32  ;;  %v13537_v55 = vpop.f32.mrf.mxu1 }
 0x37f   :  { %v11816_v8 = vld [vmem:[#allocation8 + $0xde0] sm:$0xf0] }
 0x380   :  { %7233 = vmatpush.bf16.msrb.mxu3 %v11911_v46  ;;  %7259 = vmatpush.bf16.msra.mxu1 %v10379_v57  ;;  %v12916_v36 = vld [vmem:[#allocation8 + $0x984] sm:$0xf]  ;;  %v11819_v15 = vor.u32 %v13052_v4, %v11816_v8 }
 0x381   :  { %v11272_v19 = vld [vmem:[#allocation8 + $0x9a0] sm:$0xf0] }
 0x382   :  { %7272 = vmatpush.bf16.msra.mxu2 %v10635_v62  ;;  %7247 = vmatpush.bf16.msra.mxu0 %v10091_v6  ;;  %v12980_v33 = vld [vmem:[#allocation8 + $0xb84] sm:$0xf]  ;;  %v11275_v13 = vor.u32 %v12916_v36, %v11272_v19 }
 0x383   :  { %v12852_v25 = vld [vmem:[#allocation8 + $0x784] sm:$0xf] }
 0x384   :  { %7234 = vmatpush.bf16.msrb.mxu3 %v11879_v16  ;;  %7260 = vmatpush.bf16.msra.mxu1 %v10347_v21  ;;  %v11016_v39 = vld [vmem:[#allocation8 + $0x7a0] sm:$0xf0] }
 0x385   :  { %v11528_v42 = vld [vmem:[#allocation8 + $0xba0] sm:$0xf0]  ;;  %v11019_v56 = vor.u32 %v12852_v25, %v11016_v39  ;;  %v13541_v25 = vpop.f32.mrf.mxu3 }
 0x386   :  { %7273 = vmatpush.bf16.msra.mxu2 %v10603_v2  ;;  %v13044_v7 = vld [vmem:[#allocation8 + $0xd84] sm:$0xf]  ;;  %7248 = vmatpush.bf16.msra.mxu0 %v10059_v40  ;;  %v11531_v49 = vor.u32 %v12980_v33, %v11528_v42  ;;  %v13539_v33 = vpop.f32.mrf.mxu2 }
 0x387   :  { %v11784_v43 = vld [vmem:[#allocation8 + $0xda0] sm:$0xf0] }
 0x388   :  { %7235 = vmatpush.bf16.msrb.mxu3 %v11847_v37  ;;  %7261 = vmatpush.bf16.msra.mxu1 %v10315_v5  ;;  %v12908_v46 = vld [vmem:[#allocation8 + $0x944] sm:$0xf]  ;;  %v11787_v57 = vor.u32 %v13044_v7, %v11784_v43 }
 0x389   :  { %v11240_v54 = vld [vmem:[#allocation8 + $0x960] sm:$0xf0]  ;;  %7249 = vmatmul.bf16.vlgmr.msra.gmra.mxu0 %v13489_v12 }
 0x38a   :  { %7274 = vmatpush.bf16.msra.mxu2 %v10571_v35  ;;  %7293 = vmatpush.bf16.msrb.mxu0 %v11307_v34  ;;  %v12972_v38 = vld [vmem:[#allocation8 + $0xb44] sm:$0xf]  ;;  %v11243_v3 = vor.u32 %v12908_v46, %v11240_v54 }
 0x38b   :  { %v11496_v58 = vld [vmem:[#allocation8 + $0xb60] sm:$0xf0]  ;;  %7262 = vmatmul.bf16.vlgmr.msra.gmra.mxu1 %v13491_v14 }
 0x38c   :  { %7280 = vmatpush.bf16.msra.mxu3 %v11051_v47  ;;  %7306 = vmatpush.bf16.msrb.mxu1 %v11563_v9  ;;  %v13036_v41 = vld [vmem:[#allocation8 + $0xd44] sm:$0xf]  ;;  %v11499_v10 = vor.u32 %v12972_v38, %v11496_v58  ;;  %v3951_v58 = vpop.f32.mrf.mxu1 }
 0x38d   :  { %v11752_v60 = vld [vmem:[#allocation8 + $0xd60] sm:$0xf0]  ;;  %7275 = vmatmul.bf16.vlgmr.msra.gmra.mxu2 %v13493_v52  ;;  %v12713_v58 = vld [vmem:[#allocation8 + $0x324] sm:$0xf0] }
 0x38e   :  { %7319 = vmatpush.bf16.msrb.mxu2 %v11819_v15  ;;  %v12844_v62 = vld [vmem:[#allocation8 + $0x744] sm:$0xf]  ;;  %7294 = vmatpush.bf16.msrb.mxu0 %v11275_v13  ;;  %v11755_v44 = vor.u32 %v13036_v41, %v11752_v60 }
 0x38f   :  { %v10984_v0 = vld [vmem:[#allocation8 + $0x760] sm:$0xf0] }
 0x390   :  { %7281 = vmatpush.bf16.msra.mxu3 %v11019_v56  ;;  %v10987_v1 = vor.u32 %v12844_v62, %v10984_v0  ;;  %v12900_v48 = vld [vmem:[#allocation8 + $0x904] sm:$0xf]  ;;  %7307 = vmatpush.bf16.msrb.mxu1 %v11531_v49  ;;  %v630_v62 = vperm.slane %v13514_v11, 7  ;;  %v10542_v11 = vld [vmem:[#allocation8 + $0x3c8] sm:$0xf] }
 0x391   :  { %v11208_v45 = vld [vmem:[#allocation8 + $0x920] sm:$0xf0] }
 0x392   :  { %7320 = vmatpush.bf16.msrb.mxu2 %v11787_v57  ;;  %v12964_v16 = vld [vmem:[#allocation8 + $0xb04] sm:$0xf]  ;;  %7295 = vmatpush.bf16.msrb.mxu0 %v11243_v3  ;;  %v11211_v22 = vor.u32 %v12900_v48, %v11208_v45  ;;  %v3938_v57 = vpop.f32.mrf.mxu0 }
 0x393   :  { %v12836_v17 = vld [vmem:[#allocation8 + $0x704] sm:$0xf]  ;;  %v12649_v57 = vld [vmem:[#allocation8 + $0x124] sm:$0xf0] }
 0x394   :  { %v10952_v18 = vld [vmem:[#allocation8 + $0x720] sm:$0xf0]  ;;  %7282 = vmatpush.bf16.msra.mxu3 %v10987_v1  ;;  %7308 = vmatpush.bf16.msrb.mxu1 %v11499_v10 }
 0x395   :  { %v11464_v50 = vld [vmem:[#allocation8 + $0xb20] sm:$0xf0]  ;;  %v10955_v21 = vor.u32 %v12836_v17, %v10952_v18 }
 0x396   :  { %v13028_v61 = vld [vmem:[#allocation8 + $0xd04] sm:$0xf]  ;;  %7321 = vmatpush.bf16.msrb.mxu2 %v11755_v44  ;;  %v11467_v2 = vor.u32 %v12964_v16, %v11464_v50  ;;  %7296 = vmatpush.bf16.msrb.mxu0 %v11211_v22  ;;  %v10286_v50 = vld [vmem:[#allocation8 + $0x1c8] sm:$0xf] }
 0x397   :  { %v11720_v6 = vld [vmem:[#allocation8 + $0xd20] sm:$0xf0]  ;;  %v12673_v22 = vld [vmem:[#allocation8 + $0x1e4] sm:$0xf0] }
 0x398   :  { %v12892_v23 = vld [vmem:[#allocation8 + $0x8c4] sm:$0xf]  ;;  %v11723_v26 = vor.u32 %v13028_v61, %v11720_v6  ;;  %7283 = vmatpush.bf16.msra.mxu3 %v10955_v21  ;;  %7309 = vmatpush.bf16.msrb.mxu1 %v11467_v2  ;;  %v3964_v61 = vpop.f32.mrf.mxu2 }
 0x399   :  { %v11176_v24 = vld [vmem:[#allocation8 + $0x8e0] sm:$0xf0] }
 0x39a   :  { %v12956_v27 = vld [vmem:[#allocation8 + $0xac4] sm:$0xf]  ;;  %v11179_v4 = vor.u32 %v12892_v23, %v11176_v24  ;;  %7322 = vmatpush.bf16.msrb.mxu2 %v11723_v26  ;;  %v12737_v23 = vld [vmem:[#allocation8 + $0x3e4] sm:$0xf0]  ;;  %v3977_v24 = vpop.f32.mrf.mxu3 }
 0x39b   :  { %v11432_v63 = vld [vmem:[#allocation8 + $0xae0] sm:$0xf0] }
 0x39c   :  { %v13020_v28 = vld [vmem:[#allocation8 + $0xcc4] sm:$0xf]  ;;  %v11435_v40 = vor.u32 %v12956_v27, %v11432_v63  ;;  %7297 = vmatpush.bf16.msrb.mxu0 %v11179_v4  ;;  %v10798_v27 = vld [vmem:[#allocation8 + $0x5c8] sm:$0xf] }
 0x39d   :  { %v11688_v30 = vld [vmem:[#allocation8 + $0xce0] sm:$0xf0]  ;;  %v12801_v63 = vld [vmem:[#allocation8 + $0x5e4] sm:$0xf0] }
 0x39e   :  { %v12828_v31 = vld [vmem:[#allocation8 + $0x6c4] sm:$0xf]  ;;  %v11691_v5 = vor.u32 %v13020_v28, %v11688_v30  ;;  %7310 = vmatpush.bf16.msrb.mxu1 %v11435_v40  ;;  %v10254_v4 = vld [vmem:[#allocation8 + $0x188] sm:$0xf] }
 0x39f   :  { %v10920_v37 = vld [vmem:[#allocation8 + $0x6e0] sm:$0xf0]  ;;  %v10510_v40 = vld [vmem:[#allocation8 + $0x388] sm:$0xf] }
 0x3a0   :  { %v10923_v32 = vor.u32 %v12828_v31, %v10920_v37  ;;  %v12884_v8 = vld [vmem:[#allocation8 + $0x884] sm:$0xf]  ;;  %7323 = vmatpush.bf16.msrb.mxu2 %v11691_v5  ;;  %v3937_v31 = vadd.f32 %v13534_v29, %v630_v62  ;;  %v10287_v37 = vor.u32 %v12673_v22, %v10286_v50  ;;  %v12729_v5 = vld [vmem:[#allocation8 + $0x3a4] sm:$0xf0] }
 0x3a1   :  { %v11144_v47 = vld [vmem:[#allocation8 + $0x8a0] sm:$0xf0]  ;;  %v10222_v29 = vld [vmem:[#allocation8 + $0x148] sm:$0xf] }
 0x3a2   :  { %v12948_v35 = vld [vmem:[#allocation8 + $0xa84] sm:$0xf]  ;;  %7284 = vmatpush.bf16.msra.mxu3 %v10923_v32  ;;  %v11147_v42 = vor.u32 %v12884_v8, %v11144_v47  ;;  %v10543_v32 = vor.u32 %v12737_v23, %v10542_v11  ;;  %v10799_v8 = vor.u32 %v12801_v63, %v10798_v27  ;;  %v12665_v47 = vld [vmem:[#allocation8 + $0x1a4] sm:$0xf0]  ;;  %v4014_v27 = vpop.f32.mrf.mxu2 }
 0x3a3   :  { %v12820_v34 = vld [vmem:[#allocation8 + $0x684] sm:$0xf]  ;;  %v12769_v50 = vld [vmem:[#allocation8 + $0x4e4] sm:$0xf0] }
 0x3a4   :  { %v10888_v36 = vld [vmem:[#allocation8 + $0x6a0] sm:$0xf0]  ;;  %7298 = vmatpush.bf16.msrb.mxu0 %v11147_v42  ;;  %v10478_v42 = vld [vmem:[#allocation8 + $0x348] sm:$0xf] }
 0x3a5   :  { %v11400_v19 = vld [vmem:[#allocation8 + $0xaa0] sm:$0xf0]  ;;  %v10891_v39 = vor.u32 %v12820_v34, %v10888_v36  ;;  %v12793_v34 = vld [vmem:[#allocation8 + $0x5a4] sm:$0xf0]  ;;  %v3950_v36 = vadd.f32 %v13537_v55, %v3937_v31 }
 0x3a6   :  { %v13012_v9 = vld [vmem:[#allocation8 + $0xc84] sm:$0xf]  ;;  %v11403_v56 = vor.u32 %v12948_v35, %v11400_v19  ;;  %v10766_v35 = vld [vmem:[#allocation8 + $0x588] sm:$0xf]  ;;  %v10255_v19 = vor.u32 %v12665_v47, %v10254_v4 }
 0x3a7   :  { %v11656_v15 = vld [vmem:[#allocation8 + $0xca0] sm:$0xf0]  ;;  %7285 = vmatpush.bf16.msra.mxu3 %v10891_v39  ;;  %v12657_v39 = vld [vmem:[#allocation8 + $0x164] sm:$0xf0]  ;;  %v3963_v55 = vadd.f32 %v13539_v33, %v3950_v36 }
 0x3a8   :  { %v12876_v7 = vld [vmem:[#allocation8 + $0x844] sm:$0xf]  ;;  %v11659_v13 = vor.u32 %v13012_v9, %v11656_v15  ;;  %7311 = vmatpush.bf16.msrb.mxu1 %v11403_v56  ;;  %v10511_v9 = vor.u32 %v12729_v5, %v10510_v40  ;;  %v10767_v15 = vor.u32 %v12793_v34, %v10766_v35  ;;  %v12785_v56 = vld [vmem:[#allocation8 + $0x564] sm:$0xf0] }
 0x3a9   :  { %v11112_v43 = vld [vmem:[#allocation8 + $0x860] sm:$0xf0]  ;;  %v3976_v62 = vadd.f32 %v13541_v25, %v3963_v55  ;;  %v10158_v33 = vld [vmem:[#allocation8 + $0xc8] sm:$0xf] }
 0x3aa   :  { %v12940_v46 = vld [vmem:[#allocation8 + $0xa44] sm:$0xf]  ;;  %v11115_v1 = vor.u32 %v12876_v7, %v11112_v43  ;;  %7324 = vmatpush.bf16.msrb.mxu2 %v11659_v13  ;;  %v12721_v7 = vld [vmem:[#allocation8 + $0x364] sm:$0xf0]  ;;  %v10223_v13 = vor.u32 %v12657_v39, %v10222_v29 }
 0x3ab   :  { %v11368_v54 = vld [vmem:[#allocation8 + $0xa60] sm:$0xf0]  ;;  %v10734_v43 = vld [vmem:[#allocation8 + $0x548] sm:$0xf] }
 0x3ac   :  { %v13004_v49 = vld [vmem:[#allocation8 + $0xc44] sm:$0xf]  ;;  %v11371_v10 = vor.u32 %v12940_v46, %v11368_v54  ;;  %7299 = vmatpush.bf16.msrb.mxu0 %v11115_v1  ;;  %v10479_v46 = vor.u32 %v12721_v7, %v10478_v42  ;;  %v10190_v54 = vld [vmem:[#allocation8 + $0x108] sm:$0xf] }
 0x3ad   :  { %v11624_v38 = vld [vmem:[#allocation8 + $0xc60] sm:$0xf0]  ;;  %v10191_v1 = vor.u32 %v12649_v57, %v10190_v54  ;;  %v10126_v25 = vld [vmem:[#allocation8 + $0x88] sm:$0xf] }
 0x3ae   :  { %v12812_v41 = vld [vmem:[#allocation8 + $0x644] sm:$0xf]  ;;  %v11627_v44 = vor.u32 %v13004_v49, %v11624_v38  ;;  %7312 = vmatpush.bf16.msrb.mxu1 %v11371_v10  ;;  %v10735_v49 = vor.u32 %v12785_v56, %v10734_v43  ;;  %v10446_v38 = vld [vmem:[#allocation8 + $0x308] sm:$0xf] }
 0x3af   :  { %v10856_v60 = vld [vmem:[#allocation8 + $0x660] sm:$0xf0]  ;;  %v12641_v10 = vld [vmem:[#allocation8 + $0xe4] sm:$0xf0] }
 0x3b0   :  { %v10859_v0 = vor.u32 %v12812_v41, %v10856_v60  ;;  %v12868_v3 = vld [vmem:[#allocation8 + $0x804] sm:$0xf]  ;;  %7325 = vmatpush.bf16.msrb.mxu2 %v11627_v44  ;;  %v10702_v41 = vld [vmem:[#allocation8 + $0x508] sm:$0xf]  ;;  %v10159_v61 = vor.u32 %v12641_v10, %v10158_v33 }
 0x3b1   :  { %v11080_v48 = vld [vmem:[#allocation8 + $0x820] sm:$0xf0]  ;;  %v12777_v60 = vld [vmem:[#allocation8 + $0x524] sm:$0xf0] }
 0x3b2   :  { %v12932_v45 = vld [vmem:[#allocation8 + $0xa04] sm:$0xf]  ;;  %7286 = vmatpush.bf16.msra.mxu3 %v10859_v0  ;;  %v11083_v26 = vor.u32 %v12868_v3, %v11080_v48  ;;  %v3988_v0 = vpop.f32.mrf.mxu0  ;;  %v10447_v3 = vor.u32 %v12713_v58, %v10446_v38  ;;  %v4001_v48 = vpop.f32.mrf.mxu1  ;;  %v10414_v44 = vld [vmem:[#allocation8 + $0x2c8] sm:$0xf] }
 0x3b3   :  { %v11336_v16 = vld [vmem:[#allocation8 + $0xa20] sm:$0xf0]  ;;  %v12633_v22 = vld [vmem:[#allocation8 + $0xa4] sm:$0xf0] }
 0x3b4   :  { %v12996_v17 = vld [vmem:[#allocation8 + $0xc04] sm:$0xf]  ;;  %v11339_v28 = vor.u32 %v12932_v45, %v11336_v16  ;;  %7300 = vmatpush.bf16.msrb.mxu0 %v11083_v26  ;;  %v10703_v45 = vor.u32 %v12777_v60, %v10702_v41  ;;  %v12705_v16 = vld [vmem:[#allocation8 + $0x2e4] sm:$0xf0]  ;;  %v10127_v31 = vor.u32 %v12633_v22, %v10126_v25  ;;  %v4016_v41 = vpop.f32.mrf.mxu2 }
 0x3b5   :  { %v11592_v18 = vld [vmem:[#allocation8 + $0xc20] sm:$0xf0]  ;;  %v10382_v11 = vld [vmem:[#allocation8 + $0x288] sm:$0xf] }
 0x3b6   :  { %v12804_v6 = vld [vmem:[#allocation8 + $0x604] sm:$0xf]  ;;  %v11595_v30 = vor.u32 %v12996_v17, %v11592_v18  ;;  %7313 = vmatpush.bf16.msrb.mxu1 %v11339_v28  ;;  %v3989_v17 = vadd.f32 %v3988_v0, %v3976_v62  ;;  %v10670_v18 = vld [vmem:[#allocation8 + $0x4c8] sm:$0xf]  ;;  %v4027_v28 = vpop.f32.mrf.mxu3 }
 0x3b7   :  { %v10824_v21 = vld [vmem:[#allocation8 + $0x620] sm:$0xf0]  ;;  %7301 = vmatmul.bf16.vlgmr.msrb.gmra.mxu0 %v13521_v51  ;;  %v12697_v23 = vld [vmem:[#allocation8 + $0x2a4] sm:$0xf0] }
 0x3b8   :  { %v10827_v2 = vor.u32 %v12804_v6, %v10824_v21  ;;  %7326 = vmatpush.bf16.msrb.mxu2 %v11595_v30  ;;  %7345 = vmatpush.bf16.msra.mxu0 %v10287_v37  ;;  %v10415_v6 = vor.u32 %v12705_v16, %v10414_v44  ;;  %v10671_v21 = vor.u32 %v12769_v50, %v10670_v18  ;;  %v12761_v26 = vld [vmem:[#allocation8 + $0x4a4] sm:$0xf0] }
 0x3b9   :  { %7314 = vmatmul.bf16.vlgmr.msrb.gmra.mxu1 %v13523_v53  ;;  %v4002_v24 = vadd.f32 %v4001_v48, %v3989_v17  ;;  %v10383_v37 = vor.u32 %v12697_v23, %v10382_v11  ;;  %v12625_v47 = vld [vmem:[#allocation8 + $0x64] sm:$0xf0]  ;;  %v13108_v48 = vld [vmem:[#allocation8 + $0xf84] sm:$0xf] }
 0x3ba   :  { %7287 = vmatpush.bf16.msra.mxu3 %v10827_v2  ;;  %7358 = vmatpush.bf16.msra.mxu1 %v10543_v32  ;;  %v10638_v2 = vld [vmem:[#allocation8 + $0x488] sm:$0xf]  ;;  %v3990_v30 = vpop.f32.mrf.mxu0  ;;  %v4003_v4 = vpop.f32.mrf.mxu1  ;;  %v13100_v11 = vld [vmem:[#allocation8 + $0xf44] sm:$0xf] }
 0x3bb   :  { %7327 = vmatmul.bf16.vlgmr.msrb.gmra.mxu2 %v13529_v20  ;;  %v4015_v63 = vadd.f32 %v4014_v27, %v4002_v24  ;;  %v10094_v32 = vld [vmem:[#allocation8 + $0x48] sm:$0xf]  ;;  %v12008_v23 = vld [vmem:[#allocation8 + $0xf60] sm:$0xf0] }
 0x3bc   :  { %7371 = vmatpush.bf16.msra.mxu2 %v10799_v8  ;;  %7346 = vmatpush.bf16.msra.mxu0 %v10255_v19  ;;  %v10639_v8 = vor.u32 %v12761_v26, %v10638_v2  ;;  %v10350_v40 = vld [vmem:[#allocation8 + $0x248] sm:$0xf]  ;;  %v13116_v19 = vld [vmem:[#allocation8 + $0xfc4] sm:$0xf]  ;;  %v10095_v39 = vor.u32 %v12625_v47, %v10094_v32 }
 0x3bd   :  { %v12689_v5 = vld [vmem:[#allocation8 + $0x264] sm:$0xf0]  ;;  %v4028_v35 = vadd.f32 %v4027_v28, %v4015_v63  ;;  %v13555_v4 = vld [vmem:[#allocation10] sm:$0xff] }
 0x3be   :  { %7359 = vmatpush.bf16.msra.mxu1 %v10511_v9  ;;  %v10606_v34 = vld [vmem:[#allocation8 + $0x448] sm:$0xf]  ;;  %v12072_v9 = vld [vmem:[#allocation8 + $0xfe0] sm:$0xf0]  ;;  %v10351_v42 = vor.u32 %v12689_v5, %v10350_v40 }
 0x3bf   :  { %v12753_v36 = vld [vmem:[#allocation8 + $0x464] sm:$0xf0]  ;;  %v11976_v47 = vld [vmem:[#allocation8 + $0xf20] sm:$0xf0] }
 0x3c0   :  { %7372 = vmatpush.bf16.msra.mxu2 %v10767_v15  ;;  %7347 = vmatpush.bf16.msra.mxu0 %v10223_v13  ;;  %v10062_v29 = vld [vmem:[#allocation8 + $0x8] sm:$0xf]  ;;  %v4038_v15 = vmax.f32 %v4028_v35, 0.0  ;;  %v10607_v56 = vor.u32 %v12753_v36, %v10606_v34  ;;  %v4561_v36 = vperm.slane %v13555_v4, 0 }
 0x3c1   :  { %v12617_v7 = vld [vmem:[#allocation8 + $0x24] sm:$0xf0] }
 0x3c2   :  { %7360 = vmatpush.bf16.msra.mxu1 %v10479_v46  ;;  %v10318_v43 = vld [vmem:[#allocation8 + $0x208] sm:$0xf]  ;;  %v13551_v54 = vpack.c.bf16 %v4038_v15, %v4038_v15 }
 0x3c3   :  { %v12681_v55 = vld [vmem:[#allocation8 + $0x224] sm:$0xf0] }
 0x3c4   :  { %7373 = vmatpush.bf16.msra.mxu2 %v10735_v49  ;;  %7348 = vmatpush.bf16.msra.mxu0 %v10191_v1  ;;  %v10574_v13 = vld [vmem:[#allocation8 + $0x408] sm:$0xf]  ;;  %v12075_v49 = vor.u32 %v13116_v19, %v12072_v9  ;;  %v4029_v1 = vpop.f32.mrf.mxu3  ;;  %v10319_v33 = vor.u32 %v12681_v55, %v10318_v43  ;;  %v11944_v43 = vld [vmem:[#allocation8 + $0xee0] sm:$0xf0]  ;;  %v7146_v55 = vpop.f32.mrf.mxu0 }
 0x3c5   :  { %v12745_v46 = vld [vmem:[#allocation8 + $0x424] sm:$0xf0]  ;;  %7236 = vmatmul.bf16.vlgmr.msrb.gmra.mxu3 %v13551_v54  ;;  %v7147_v41 = vadd.f32 %v7146_v55, %v4561_v36 }
 0x3c6   :  { %7361 = vmatpush.bf16.msra.mxu1 %v10447_v3  ;;  %v11310_v57 = vld [vmem:[#allocation8 + $0x9c8] sm:$0xf]  ;;  %v10063_v3 = vor.u32 %v12617_v7, %v10062_v29  ;;  %v10575_v10 = vor.u32 %v12745_v46, %v10574_v13  ;;  %7332 = vmatpush.bf16.msrb.mxu3 %v12075_v49  ;;  %v13084_v7 = vld [vmem:[#allocation8 + $0xec4] sm:$0xf]  ;;  %v7159_v13 = vpop.f32.mrf.mxu1 }
 0x3c7   :  { %v12929_v38 = vld [vmem:[#allocation8 + $0x9e4] sm:$0xf0] }
 0x3c8   :  { %7374 = vmatpush.bf16.msra.mxu2 %v10703_v45  ;;  %7349 = vmatpush.bf16.msra.mxu0 %v10159_v61  ;;  %v11566_v58 = vld [vmem:[#allocation8 + $0xbc8] sm:$0xf]  ;;  %v12040_v45 = vld [vmem:[#allocation8 + $0xfa0] sm:$0xf0]  ;;  %v11311_v44 = vor.u32 %v12929_v38, %v11310_v57 }
 0x3c9   :  { %v12993_v60 = vld [vmem:[#allocation8 + $0xbe4] sm:$0xf0] }
 0x3ca   :  { %7362 = vmatpush.bf16.msra.mxu1 %v10415_v6  ;;  %v11822_v62 = vld [vmem:[#allocation8 + $0xdc8] sm:$0xf]  ;;  %v11567_v16 = vor.u32 %v12993_v60, %v11566_v58  ;;  %v12043_v6 = vor.u32 %v13108_v48, %v12040_v45  ;;  %v11947_v60 = vor.u32 %v13084_v7, %v11944_v43  ;;  %v7160_v48 = vadd.f32 %v7159_v13, %v7147_v41 }
 0x3cb   :  { %v13057_v0 = vld [vmem:[#allocation8 + $0xde4] sm:$0xf0] }
 0x3cc   :  { %7375 = vmatpush.bf16.msra.mxu2 %v10671_v21  ;;  %7350 = vmatpush.bf16.msra.mxu0 %v10127_v31  ;;  %v11823_v17 = vor.u32 %v13057_v0, %v11822_v62  ;;  %v11278_v18 = vld [vmem:[#allocation8 + $0x988] sm:$0xf]  ;;  %v12011_v31 = vor.u32 %v13100_v11, %v12008_v23  ;;  %v7172_v11 = vpop.f32.mrf.mxu2  ;;  %v7185_v23 = vpop.f32.mrf.mxu3 }
 0x3cd   :  { %v12921_v50 = vld [vmem:[#allocation8 + $0x9a4] sm:$0xf0]  ;;  %7333 = vmatpush.bf16.msrb.mxu3 %v12043_v6 }
 0x3ce   :  { %7363 = vmatpush.bf16.msra.mxu1 %v10383_v37  ;;  %v11534_v61 = vld [vmem:[#allocation8 + $0xb88] sm:$0xf]  ;;  %v11279_v24 = vor.u32 %v12921_v50, %v11278_v18 }
 0x3cf   :  { %v12985_v25 = vld [vmem:[#allocation8 + $0xba4] sm:$0xf0] }
 0x3d0   :  { %7376 = vmatpush.bf16.msra.mxu2 %v10639_v8  ;;  %7351 = vmatpush.bf16.msra.mxu0 %v10095_v39  ;;  %v11790_v21 = vld [vmem:[#allocation8 + $0xd88] sm:$0xf]  ;;  %v11535_v26 = vor.u32 %v12985_v25, %v11534_v61  ;;  %v13092_v8 = vld [vmem:[#allocation8 + $0xf04] sm:$0xf] }
 0x3d1   :  { %v13049_v22 = vld [vmem:[#allocation8 + $0xda4] sm:$0xf0]  ;;  %7334 = vmatpush.bf16.msrb.mxu3 %v12011_v31  ;;  %v11979_v29 = vor.u32 %v13092_v8, %v11976_v47 }
 0x3d2   :  { %7364 = vmatpush.bf16.msra.mxu1 %v10351_v42  ;;  %v11246_v2 = vld [vmem:[#allocation8 + $0x948] sm:$0xf]  ;;  %v11791_v27 = vor.u32 %v13049_v22, %v11790_v21  ;;  %v13068_v21 = vld [vmem:[#allocation8 + $0xe44] sm:$0xf] }
 0x3d3   :  { %v12913_v63 = vld [vmem:[#allocation8 + $0x964] sm:$0xf0]  ;;  %v11880_v22 = vld [vmem:[#allocation8 + $0xe60] sm:$0xf0] }
 0x3d4   :  { %7377 = vmatpush.bf16.msra.mxu2 %v10607_v56  ;;  %7352 = vmatpush.bf16.msra.mxu0 %v10063_v3  ;;  %v11502_v28 = vld [vmem:[#allocation8 + $0xb48] sm:$0xf]  ;;  %v11247_v40 = vor.u32 %v12913_v63, %v11246_v2  ;;  %v13076_v3 = vld [vmem:[#allocation8 + $0xe84] sm:$0xf]  ;;  %v7173_v2 = vadd.f32 %v7172_v11, %v7160_v48  ;;  %v7187_v41 = vpop.f32.mrf.mxu3 }
 0x3d5   :  { %v12977_v30 = vld [vmem:[#allocation8 + $0xb64] sm:$0xf0]  ;;  %7335 = vmatpush.bf16.msrb.mxu3 %v11979_v29 }
 0x3d6   :  { %7365 = vmatpush.bf16.msra.mxu1 %v10319_v33  ;;  %v11758_v37 = vld [vmem:[#allocation8 + $0xd48] sm:$0xf]  ;;  %v11503_v35 = vor.u32 %v12977_v30, %v11502_v28  ;;  %v11912_v33 = vld [vmem:[#allocation8 + $0xea0] sm:$0xf0]  ;;  %7288 = vmatmul.bf16.vlgmr.msra.gmra.mxu3 %v13495_v59 }
 0x3d7   :  { %7353 = vmatmul.bf16.vlgmr.msra.gmra.mxu0 %v13489_v12  ;;  %v13041_v32 = vld [vmem:[#allocation8 + $0xd64] sm:$0xf0]  ;;  %v11915_v50 = vor.u32 %v13076_v3, %v11912_v33 }
 0x3d8   :  { %7378 = vmatpush.bf16.msra.mxu2 %v10575_v10  ;;  %7397 = vmatpush.bf16.msrb.mxu0 %v11311_v44  ;;  %v11214_v5 = vld [vmem:[#allocation8 + $0x908] sm:$0xf]  ;;  %v11759_v34 = vor.u32 %v13041_v32, %v11758_v37  ;;  %v11883_v32 = vor.u32 %v13068_v21, %v11880_v22  ;;  %v10768_v21 = vld [vmem:[#allocation8 + $0x5a8] sm:$0xf0] }
 0x3d9   :  { %7366 = vmatmul.bf16.vlgmr.msra.gmra.mxu1 %v13491_v14  ;;  %v12905_v19 = vld [vmem:[#allocation8 + $0x924] sm:$0xf0]  ;;  %7336 = vmatpush.bf16.msrb.mxu3 %v11947_v60 }
 0x3da   :  { %7410 = vmatpush.bf16.msrb.mxu1 %v11567_v16  ;;  %v11470_v9 = vld [vmem:[#allocation8 + $0xb08] sm:$0xf]  ;;  %v11215_v56 = vor.u32 %v12905_v19, %v11214_v5  ;;  %v13561_v5 = vadd.f32 %v7185_v23, %v7173_v2 }
 0x3db   :  { %7379 = vmatmul.bf16.vlgmr.msra.gmra.mxu2 %v13493_v52  ;;  %v12969_v15 = vld [vmem:[#allocation8 + $0xb24] sm:$0xf0] }
 0x3dc   :  { %7423 = vmatpush.bf16.msrb.mxu2 %v11823_v17  ;;  %7398 = vmatpush.bf16.msrb.mxu0 %v11279_v24  ;;  %v11726_v39 = vld [vmem:[#allocation8 + $0xd08] sm:$0xf]  ;;  %v11471_v46 = vor.u32 %v12969_v15, %v11470_v9 }
 0x3dd   :  { %v13033_v42 = vld [vmem:[#allocation8 + $0xd24] sm:$0xf0]  ;;  %7337 = vmatpush.bf16.msrb.mxu3 %v11915_v50  ;;  %v12725_v50 = vld [vmem:[#allocation8 + $0x38c] sm:$0xf] }
 0x3de   :  { %7411 = vmatpush.bf16.msrb.mxu1 %v11535_v26  ;;  %v11727_v49 = vor.u32 %v13033_v42, %v11726_v39  ;;  %v11182_v57 = vld [vmem:[#allocation8 + $0x8c8] sm:$0xf]  ;;  %v7148_v26 = vpop.f32.mrf.mxu0 }
 0x3df   :  { %v12897_v38 = vld [vmem:[#allocation8 + $0x8e4] sm:$0xf0]  ;;  %v12653_v26 = vld [vmem:[#allocation8 + $0x14c] sm:$0xf] }
 0x3e0   :  { %7424 = vmatpush.bf16.msrb.mxu2 %v11791_v27  ;;  %7399 = vmatpush.bf16.msrb.mxu0 %v11247_v40  ;;  %v11438_v58 = vld [vmem:[#allocation8 + $0xac8] sm:$0xf]  ;;  %v11183_v45 = vor.u32 %v12897_v38, %v11182_v57  ;;  %v7161_v27 = vpop.f32.mrf.mxu1  ;;  %v10288_v57 = vld [vmem:[#allocation8 + $0x1e8] sm:$0xf0] }
 0x3e1   :  { %v12961_v62 = vld [vmem:[#allocation8 + $0xae4] sm:$0xf0]  ;;  %7338 = vmatpush.bf16.msrb.mxu3 %v11883_v32  ;;  %v12733_v38 = vld [vmem:[#allocation8 + $0x3cc] sm:$0xf] }
 0x3e2   :  { %7412 = vmatpush.bf16.msrb.mxu1 %v11503_v35  ;;  %v11694_v0 = vld [vmem:[#allocation8 + $0xcc8] sm:$0xf]  ;;  %v11439_v10 = vor.u32 %v12961_v62, %v11438_v58  ;;  %v13060_v35 = vld [vmem:[#allocation8 + $0xe04] sm:$0xf]  ;;  %v7174_v58 = vpop.f32.mrf.mxu2  ;;  %v10544_v62 = vld [vmem:[#allocation8 + $0x3e8] sm:$0xf0] }
 0x3e3   :  { %v13025_v1 = vld [vmem:[#allocation8 + $0xce4] sm:$0xf0]  ;;  %v10224_v27 = vld [vmem:[#allocation8 + $0x168] sm:$0xf0] }
 0x3e4   :  { %7425 = vmatpush.bf16.msrb.mxu2 %v11759_v34  ;;  %7400 = vmatpush.bf16.msrb.mxu0 %v11215_v56  ;;  %v11695_v44 = vor.u32 %v13025_v1, %v11694_v0  ;;  %v11150_v16 = vld [vmem:[#allocation8 + $0x888] sm:$0xf]  ;;  %v11848_v34 = vld [vmem:[#allocation8 + $0xe20] sm:$0xf0]  ;;  %v12797_v0 = vld [vmem:[#allocation8 + $0x5cc] sm:$0xf] }
 0x3e5   :  { %v12889_v17 = vld [vmem:[#allocation8 + $0x8a4] sm:$0xf0]  ;;  %v11851_v43 = vor.u32 %v13060_v35, %v11848_v34  ;;  %v10800_v1 = vld [vmem:[#allocation8 + $0x5e8] sm:$0xf0] }
 0x3e6   :  { %7413 = vmatpush.bf16.msrb.mxu1 %v11471_v46  ;;  %v11406_v18 = vld [vmem:[#allocation8 + $0xa88] sm:$0xf]  ;;  %v11151_v24 = vor.u32 %v12889_v17, %v11150_v16  ;;  %v10803_v16 = vor.u32 %v12797_v0, %v10800_v1  ;;  %v12661_v17 = vld [vmem:[#allocation8 + $0x18c] sm:$0xf] }
 0x3e7   :  { %v12953_v61 = vld [vmem:[#allocation8 + $0xaa4] sm:$0xf0]  ;;  %7339 = vmatpush.bf16.msrb.mxu3 %v11851_v43  ;;  %v12645_v34 = vld [vmem:[#allocation8 + $0x10c] sm:$0xf]  ;;  %v7198_v43 = vpop.f32.mrf.mxu0 }
 0x3e8   :  { %7426 = vmatpush.bf16.msrb.mxu2 %v11727_v49  ;;  %v11662_v6 = vld [vmem:[#allocation8 + $0xc88] sm:$0xf]  ;;  %7401 = vmatpush.bf16.msrb.mxu0 %v11183_v45  ;;  %v11407_v63 = vor.u32 %v12953_v61, %v11406_v18  ;;  %v12669_v49 = vld [vmem:[#allocation8 + $0x1cc] sm:$0xf] }
 0x3e9   :  { %v13017_v25 = vld [vmem:[#allocation8 + $0xca4] sm:$0xf0]  ;;  %v10256_v18 = vld [vmem:[#allocation8 + $0x1a8] sm:$0xf0] }
 0x3ea   :  { %7414 = vmatpush.bf16.msrb.mxu1 %v11439_v10  ;;  %v11663_v28 = vor.u32 %v13017_v25, %v11662_v6  ;;  %v11118_v30 = vld [vmem:[#allocation8 + $0x848] sm:$0xf]  ;;  %v10291_v10 = vor.u32 %v12669_v49, %v10288_v57  ;;  %v10512_v6 = vld [vmem:[#allocation8 + $0x3a8] sm:$0xf0]  ;;  %7340 = vmatmul.bf16.vlgmr.msrb.gmra.mxu3 %v13551_v54  ;;  %v10259_v23 = vor.u32 %v12661_v17, %v10256_v18 }
 0x3eb   :  { %v12881_v31 = vld [vmem:[#allocation8 + $0x864] sm:$0xf0]  ;;  %v12789_v25 = vld [vmem:[#allocation8 + $0x58c] sm:$0xf] }
 0x3ec   :  { %7427 = vmatpush.bf16.msrb.mxu2 %v11695_v44  ;;  %v11374_v37 = vld [vmem:[#allocation8 + $0xa48] sm:$0xf]  ;;  %7402 = vmatpush.bf16.msrb.mxu0 %v11151_v24  ;;  %v11119_v36 = vor.u32 %v12881_v31, %v11118_v30  ;;  %v10547_v44 = vor.u32 %v12733_v38, %v10544_v62  ;;  %v10515_v24 = vor.u32 %v12725_v50, %v10512_v6  ;;  %v10480_v30 = vld [vmem:[#allocation8 + $0x368] sm:$0xf0] }
 0x3ed   :  { %v12945_v8 = vld [vmem:[#allocation8 + $0xa64] sm:$0xf0]  ;;  %v10771_v2 = vor.u32 %v12789_v25, %v10768_v21  ;;  %v12781_v31 = vld [vmem:[#allocation8 + $0x54c] sm:$0xf] }
 0x3ee   :  { %v11630_v47 = vld [vmem:[#allocation8 + $0xc48] sm:$0xf]  ;;  %7415 = vmatpush.bf16.msrb.mxu1 %v11407_v63  ;;  %v11375_v29 = vor.u32 %v12945_v8, %v11374_v37  ;;  %v12717_v63 = vld [vmem:[#allocation8 + $0x34c] sm:$0xf] }
 0x3ef   :  { %v13009_v40 = vld [vmem:[#allocation8 + $0xc64] sm:$0xf0]  ;;  %v10736_v37 = vld [vmem:[#allocation8 + $0x568] sm:$0xf0]  ;;  %v7200_v21 = vpop.f32.mrf.mxu0 }
 0x3f0   :  { %v11054_v19 = vld [vmem:[#allocation8 + $0x7c8] sm:$0xf]  ;;  %7428 = vmatpush.bf16.msrb.mxu2 %v11663_v28  ;;  %v11631_v15 = vor.u32 %v13009_v40, %v11630_v47  ;;  %7403 = vmatpush.bf16.msrb.mxu0 %v11119_v36  ;;  %v10227_v47 = vor.u32 %v12653_v26, %v10224_v27  ;;  %v10483_v40 = vor.u32 %v12717_v63, %v10480_v30  ;;  %v10192_v36 = vld [vmem:[#allocation8 + $0x128] sm:$0xf0] }
 0x3f1   :  { %v12865_v9 = vld [vmem:[#allocation8 + $0x7e4] sm:$0xf0]  ;;  %v10739_v35 = vor.u32 %v12781_v31, %v10736_v37  ;;  %v12637_v57 = vld [vmem:[#allocation8 + $0xcc] sm:$0xf] }
 0x3f2   :  { %v11086_v39 = vld [vmem:[#allocation8 + $0x808] sm:$0xf]  ;;  %v11055_v46 = vor.u32 %v12865_v9, %v11054_v19  ;;  %7416 = vmatpush.bf16.msrb.mxu1 %v11375_v29  ;;  %v12709_v19 = vld [vmem:[#allocation8 + $0x30c] sm:$0xf] }
 0x3f3   :  { %v12873_v42 = vld [vmem:[#allocation8 + $0x824] sm:$0xf0]  ;;  %v10448_v29 = vld [vmem:[#allocation8 + $0x328] sm:$0xf0] }
 0x3f4   :  { %v11342_v7 = vld [vmem:[#allocation8 + $0xa08] sm:$0xf]  ;;  %v11087_v60 = vor.u32 %v12873_v42, %v11086_v39  ;;  %7429 = vmatpush.bf16.msrb.mxu2 %v11631_v15  ;;  %7384 = vmatpush.bf16.msra.mxu3 %v11055_v46  ;;  %v12773_v15 = vld [vmem:[#allocation8 + $0x50c] sm:$0xf]  ;;  %v10451_v46 = vor.u32 %v12709_v19, %v10448_v29 }
 0x3f5   :  { %v12937_v56 = vld [vmem:[#allocation8 + $0xa24] sm:$0xf0]  ;;  %v10704_v39 = vld [vmem:[#allocation8 + $0x528] sm:$0xf0] }
 0x3f6   :  { %v11598_v55 = vld [vmem:[#allocation8 + $0xc08] sm:$0xf]  ;;  %v11343_v3 = vor.u32 %v12937_v56, %v11342_v7  ;;  %7404 = vmatpush.bf16.msrb.mxu0 %v11087_v60  ;;  %v10195_v56 = vor.u32 %v12645_v34, %v10192_v36  ;;  %v10707_v49 = vor.u32 %v12773_v15, %v10704_v39  ;;  %v10160_v38 = vld [vmem:[#allocation8 + $0xe8] sm:$0xf0] }
 0x3f7   :  { %v13001_v13 = vld [vmem:[#allocation8 + $0xc24] sm:$0xf0]  ;;  %v12701_v58 = vld [vmem:[#allocation8 + $0x2cc] sm:$0xf] }
 0x3f8   :  { %v11599_v33 = vor.u32 %v13001_v13, %v11598_v55  ;;  %v11022_v48 = vld [vmem:[#allocation8 + $0x788] sm:$0xf]  ;;  %7417 = vmatpush.bf16.msrb.mxu1 %v11343_v3  ;;  %v7199_v55 = vadd.f32 %v7198_v43, %v13561_v5  ;;  %v7211_v13 = vpop.f32.mrf.mxu1  ;;  %v10416_v60 = vld [vmem:[#allocation8 + $0x2e8] sm:$0xf0] }
 0x3f9   :  { %v12857_v45 = vld [vmem:[#allocation8 + $0x7a4] sm:$0xf0]  ;;  %7405 = vmatmul.bf16.vlgmr.msrb.gmra.mxu0 %v13521_v51  ;;  %v12765_v62 = vld [vmem:[#allocation8 + $0x4cc] sm:$0xf]  ;;  %v10419_v5 = vor.u32 %v12701_v58, %v10416_v60 }
 0x3fa   :  { %v11023_v61 = vor.u32 %v12857_v45, %v11022_v48  ;;  %7430 = vmatpush.bf16.msrb.mxu2 %v11599_v33  ;;  %v10990_v22 = vld [vmem:[#allocation8 + $0x748] sm:$0xf]  ;;  %7449 = vmatpush.bf16.msra.mxu0 %v10291_v10  ;;  %v10672_v0 = vld [vmem:[#allocation8 + $0x4e8] sm:$0xf0]  ;;  %v13568_v1 = vadd.f32 %v7211_v13, %v7199_v55  ;;  %v10163_v48 = vor.u32 %v12637_v57, %v10160_v38 }
 0x3fb   :  { %v12849_v11 = vld [vmem:[#allocation8 + $0x764] sm:$0xf0]  ;;  %7418 = vmatmul.bf16.vlgmr.msrb.gmra.mxu1 %v13523_v53  ;;  %v10675_v45 = vor.u32 %v12765_v62, %v10672_v0  ;;  %v12629_v10 = vld [vmem:[#allocation8 + $0x8c] sm:$0xf] }
 0x3fc   :  { %7462 = vmatpush.bf16.msra.mxu1 %v10547_v44  ;;  %7385 = vmatpush.bf16.msra.mxu3 %v11023_v61  ;;  %v10991_v28 = vor.u32 %v12849_v11, %v10990_v22  ;;  %v10958_v32 = vld [vmem:[#allocation8 + $0x708] sm:$0xf]  ;;  %v10128_v44 = vld [vmem:[#allocation8 + $0xa8] sm:$0xf0] }
 0x3fd   :  { %7431 = vmatmul.bf16.vlgmr.msrb.gmra.mxu2 %v13529_v20  ;;  %v12841_v8 = vld [vmem:[#allocation8 + $0x724] sm:$0xf0]  ;;  %v10384_v18 = vld [vmem:[#allocation8 + $0x2a8] sm:$0xf0]  ;;  %v10131_v22 = vor.u32 %v12629_v10, %v10128_v44 }
 0x3fe   :  { %7475 = vmatpush.bf16.msra.mxu2 %v10803_v16  ;;  %7450 = vmatpush.bf16.msra.mxu0 %v10259_v23  ;;  %v10959_v9 = vor.u32 %v12841_v8, %v10958_v32  ;;  %v10926_v42 = vld [vmem:[#allocation8 + $0x6c8] sm:$0xf]  ;;  %v12693_v16 = vld [vmem:[#allocation8 + $0x28c] sm:$0xf] }
 0x3ff   :  { %v12833_v7 = vld [vmem:[#allocation8 + $0x6e4] sm:$0xf0]  ;;  %v12757_v50 = vld [vmem:[#allocation8 + $0x48c] sm:$0xf]  ;;  %v10387_v23 = vor.u32 %v12693_v16, %v10384_v18 }
 0x400   :  { %7463 = vmatpush.bf16.msra.mxu1 %v10515_v24  ;;  %7386 = vmatpush.bf16.msra.mxu3 %v10991_v28  ;;  %v10927_v41 = vor.u32 %v12833_v7, %v10926_v42  ;;  %v10894_v3 = vld [vmem:[#allocation8 + $0x688] sm:$0xf]  ;;  %v10640_v61 = vld [vmem:[#allocation8 + $0x4a8] sm:$0xf0]  ;;  %v7213_v11 = vpop.f32.mrf.mxu1 }
 0x401   :  { %v12825_v33 = vld [vmem:[#allocation8 + $0x6a4] sm:$0xf0]  ;;  %v10643_v24 = vor.u32 %v12757_v50, %v10640_v61  ;;  %v10096_v26 = vld [vmem:[#allocation8 + $0x68] sm:$0xf0] }
 0x402   :  { %7476 = vmatpush.bf16.msra.mxu2 %v10771_v2  ;;  %7451 = vmatpush.bf16.msra.mxu0 %v10227_v47  ;;  %v10895_v17 = vor.u32 %v12825_v33, %v10894_v3  ;;  %v10862_v6 = vld [vmem:[#allocation8 + $0x648] sm:$0xf]  ;;  %v12621_v2 = vld [vmem:[#allocation8 + $0x4c] sm:$0xf] }
 0x403   :  { %v12817_v25 = vld [vmem:[#allocation8 + $0x664] sm:$0xf0]  ;;  %v12685_v27 = vld [vmem:[#allocation8 + $0x24c] sm:$0xf]  ;;  %v10099_v8 = vor.u32 %v12621_v2, %v10096_v26 }
 0x404   :  { %7464 = vmatpush.bf16.msra.mxu1 %v10483_v40  ;;  %7387 = vmatpush.bf16.msra.mxu3 %v10959_v9  ;;  %v10863_v63 = vor.u32 %v12817_v25, %v10862_v6  ;;  %v10352_v28 = vld [vmem:[#allocation8 + $0x268] sm:$0xf0]  ;;  %v10830_v37 = vld [vmem:[#allocation8 + $0x608] sm:$0xf] }
 0x405   :  { %v12749_v30 = vld [vmem:[#allocation8 + $0x44c] sm:$0xf]  ;;  %v12809_v32 = vld [vmem:[#allocation8 + $0x624] sm:$0xf0] }
 0x406   :  { %7477 = vmatpush.bf16.msra.mxu2 %v10739_v35  ;;  %7452 = vmatpush.bf16.msra.mxu0 %v10195_v56  ;;  %v10608_v31 = vld [vmem:[#allocation8 + $0x468] sm:$0xf0]  ;;  %v12078_v47 = vld [vmem:[#allocation8 + $0xfc8] sm:$0xf]  ;;  %v10355_v35 = vor.u32 %v12685_v27, %v10352_v28  ;;  %v10831_v29 = vor.u32 %v12809_v32, %v10830_v37  ;;  %v4562_v28 = vperm.slane %v13555_v4, 1  ;;  %v13575_v37 = vpop.f32.mrf.mxu2 }
 0x407   :  { %v13121_v40 = vld [vmem:[#allocation8 + $0xfe4] sm:$0xf0]  ;;  %v10611_v34 = vor.u32 %v12749_v30, %v10608_v31  ;;  %v12613_v36 = vld [vmem:[#allocation8 + $0xc] sm:$0xf] }
 0x408   :  { %7465 = vmatpush.bf16.msra.mxu1 %v10451_v46  ;;  %7388 = vmatpush.bf16.msra.mxu3 %v10927_v41  ;;  %v10064_v19 = vld [vmem:[#allocation8 + $0x28] sm:$0xf0]  ;;  %v12079_v7 = vor.u32 %v13121_v40, %v12078_v47  ;;  %v12046_v58 = vld [vmem:[#allocation8 + $0xf88] sm:$0xf] }
 0x409   :  { %v12677_v9 = vld [vmem:[#allocation8 + $0x20c] sm:$0xf]  ;;  %v10067_v13 = vor.u32 %v12613_v36, %v10064_v19  ;;  %v13113_v41 = vld [vmem:[#allocation8 + $0xfa4] sm:$0xf0] }
 0x40a   :  { %7478 = vmatpush.bf16.msra.mxu2 %v10707_v49  ;;  %7453 = vmatpush.bf16.msra.mxu0 %v10163_v48  ;;  %v10320_v15 = vld [vmem:[#allocation8 + $0x228] sm:$0xf0]  ;;  %v13105_v18 = vld [vmem:[#allocation8 + $0xf64] sm:$0xf0] }
 0x40b   :  { %v12741_v39 = vld [vmem:[#allocation8 + $0x40c] sm:$0xf]  ;;  %v10323_v38 = vor.u32 %v12677_v9, %v10320_v15  ;;  %v11982_v26 = vld [vmem:[#allocation8 + $0xf08] sm:$0xf]  ;;  %v7263_v15 = vpop.f32.mrf.mxu1 }
 0x40c   :  { %7466 = vmatpush.bf16.msra.mxu1 %v10419_v5  ;;  %7389 = vmatpush.bf16.msra.mxu3 %v10895_v17  ;;  %v10576_v42 = vld [vmem:[#allocation8 + $0x428] sm:$0xf0]  ;;  %v12014_v17 = vld [vmem:[#allocation8 + $0xf48] sm:$0xf] }
 0x40d   :  { %v12925_v43 = vld [vmem:[#allocation8 + $0x9cc] sm:$0xf]  ;;  %v10579_v60 = vor.u32 %v12741_v39, %v10576_v42  ;;  %v12015_v11 = vor.u32 %v13105_v18, %v12014_v17  ;;  %v13097_v27 = vld [vmem:[#allocation8 + $0xf24] sm:$0xf0] }
 0x40e   :  { %7479 = vmatpush.bf16.msra.mxu2 %v10675_v45  ;;  %7454 = vmatpush.bf16.msra.mxu0 %v10131_v22  ;;  %v11312_v56 = vld [vmem:[#allocation8 + $0x9e8] sm:$0xf0]  ;;  %v12047_v45 = vor.u32 %v13113_v41, %v12046_v58  ;;  %v11983_v40 = vor.u32 %v13097_v27, %v11982_v26  ;;  %v11950_v19 = vld [vmem:[#allocation8 + $0xec8] sm:$0xf] }
 0x40f   :  { %v12989_v55 = vld [vmem:[#allocation8 + $0xbcc] sm:$0xf]  ;;  %v11315_v62 = vor.u32 %v12925_v43, %v11312_v56  ;;  %v13089_v9 = vld [vmem:[#allocation8 + $0xee4] sm:$0xf0] }
 0x410   :  { %7467 = vmatpush.bf16.msra.mxu1 %v10387_v23  ;;  %7390 = vmatpush.bf16.msra.mxu3 %v10863_v63  ;;  %v11568_v46 = vld [vmem:[#allocation8 + $0xbe8] sm:$0xf0]  ;;  %v11918_v58 = vld [vmem:[#allocation8 + $0xe88] sm:$0xf] }
 0x411   :  { %v13053_v49 = vld [vmem:[#allocation8 + $0xdcc] sm:$0xf]  ;;  %v11571_v0 = vor.u32 %v12989_v55, %v11568_v46  ;;  %v13081_v41 = vld [vmem:[#allocation8 + $0xea4] sm:$0xf0] }
 0x412   :  { %7480 = vmatpush.bf16.msra.mxu2 %v10643_v24  ;;  %7455 = vmatpush.bf16.msra.mxu0 %v10099_v8  ;;  %v11824_v57 = vld [vmem:[#allocation8 + $0xde8] sm:$0xf0]  ;;  %v11886_v17 = vld [vmem:[#allocation8 + $0xe48] sm:$0xf] }
 0x413   :  { %v11827_v3 = vor.u32 %v13053_v49, %v11824_v57  ;;  %v12917_v33 = vld [vmem:[#allocation8 + $0x98c] sm:$0xf]  ;;  %v13073_v18 = vld [vmem:[#allocation8 + $0xe64] sm:$0xf0] }
 0x414   :  { %7468 = vmatpush.bf16.msra.mxu1 %v10355_v35  ;;  %7391 = vmatpush.bf16.msra.mxu3 %v10831_v29  ;;  %v11280_v48 = vld [vmem:[#allocation8 + $0x9a8] sm:$0xf0]  ;;  %v7250_v29 = vpop.f32.mrf.mxu0 }
 0x415   :  { %v12981_v5 = vld [vmem:[#allocation8 + $0xb8c] sm:$0xf]  ;;  %v11283_v50 = vor.u32 %v12917_v33, %v11280_v48  ;;  %v7251_v39 = vadd.f32 %v7250_v29, %v4562_v28  ;;  %v13065_v28 = vld [vmem:[#allocation8 + $0xe24] sm:$0xf0] }
 0x416   :  { %7481 = vmatpush.bf16.msra.mxu2 %v10611_v34  ;;  %7456 = vmatpush.bf16.msra.mxu0 %v10067_v13  ;;  %v11536_v10 = vld [vmem:[#allocation8 + $0xba8] sm:$0xf0]  ;;  %v11951_v13 = vor.u32 %v13089_v9, %v11950_v19 }
 0x417   :  { %v13045_v44 = vld [vmem:[#allocation8 + $0xd8c] sm:$0xf]  ;;  %7392 = vmatmul.bf16.vlgmr.msra.gmra.mxu3 %v13495_v59  ;;  %v11539_v61 = vor.u32 %v12981_v5, %v11536_v10 }
 0x418   :  { %7436 = vmatpush.bf16.msrb.mxu3 %v12079_v7  ;;  %v11792_v16 = vld [vmem:[#allocation8 + $0xda8] sm:$0xf0]  ;;  %7469 = vmatpush.bf16.msra.mxu1 %v10323_v38  ;;  %v7264_v38 = vadd.f32 %v7263_v15, %v7251_v39 }
 0x419   :  { %v11795_v6 = vor.u32 %v13045_v44, %v11792_v16  ;;  %v12909_v25 = vld [vmem:[#allocation8 + $0x94c] sm:$0xf]  ;;  %7457 = vmatmul.bf16.vlgmr.msra.gmra.mxu0 %v13489_v12 }
 0x41a   :  { %7482 = vmatpush.bf16.msra.mxu2 %v10579_v60  ;;  %7501 = vmatpush.bf16.msrb.mxu0 %v11315_v62  ;;  %v11248_v21 = vld [vmem:[#allocation8 + $0x968] sm:$0xf0] }
 0x41b   :  { %v12973_v22 = vld [vmem:[#allocation8 + $0xb4c] sm:$0xf]  ;;  %7470 = vmatmul.bf16.vlgmr.msra.gmra.mxu1 %v13491_v14  ;;  %v11251_v63 = vor.u32 %v12909_v25, %v11248_v21 }
 0x41c   :  { %7514 = vmatpush.bf16.msrb.mxu1 %v11571_v0  ;;  %7437 = vmatpush.bf16.msrb.mxu3 %v12047_v45  ;;  %v11504_v23 = vld [vmem:[#allocation8 + $0xb68] sm:$0xf0]  ;;  %v11919_v45 = vor.u32 %v13081_v41, %v11918_v58 }
 0x41d   :  { %v13037_v24 = vld [vmem:[#allocation8 + $0xd4c] sm:$0xf]  ;;  %7483 = vmatmul.bf16.vlgmr.msra.gmra.mxu2 %v13493_v52  ;;  %v11507_v30 = vor.u32 %v12973_v22, %v11504_v23 }
 0x41e   :  { %7527 = vmatpush.bf16.msrb.mxu2 %v11827_v3  ;;  %v11760_v2 = vld [vmem:[#allocation8 + $0xd68] sm:$0xf0]  ;;  %7502 = vmatpush.bf16.msrb.mxu0 %v11283_v50  ;;  %v7226_v3 = vpop.f32.mrf.mxu2  ;;  %v7252_v50 = vpop.f32.mrf.mxu0 }
 0x41f   :  { %v11763_v31 = vor.u32 %v13037_v24, %v11760_v2  ;;  %v12901_v32 = vld [vmem:[#allocation8 + $0x90c] sm:$0xf]  ;;  %v11887_v24 = vor.u32 %v13073_v18, %v11886_v17  ;;  %v12666_v3 = vld [vmem:[#allocation8 + $0x1ac] sm:$0xf0] }
 0x420   :  { %7515 = vmatpush.bf16.msrb.mxu1 %v11539_v61  ;;  %v11216_v8 = vld [vmem:[#allocation8 + $0x928] sm:$0xf0]  ;;  %7438 = vmatpush.bf16.msrb.mxu3 %v12015_v11  ;;  %v7265_v61 = vpop.f32.mrf.mxu1 }
 0x421   :  { %v12965_v47 = vld [vmem:[#allocation8 + $0xb0c] sm:$0xf]  ;;  %v11219_v4 = vor.u32 %v12901_v32, %v11216_v8 }
 0x422   :  { %7528 = vmatpush.bf16.msrb.mxu2 %v11795_v6  ;;  %v11472_v35 = vld [vmem:[#allocation8 + $0xb28] sm:$0xf0]  ;;  %7503 = vmatpush.bf16.msrb.mxu0 %v11251_v63  ;;  %v11854_v63 = vld [vmem:[#allocation8 + $0xe08] sm:$0xf] }
 0x423   :  { %v13029_v34 = vld [vmem:[#allocation8 + $0xd0c] sm:$0xf]  ;;  %v11475_v42 = vor.u32 %v12965_v47, %v11472_v35 }
 0x424   :  { %v11728_v36 = vld [vmem:[#allocation8 + $0xd28] sm:$0xf0]  ;;  %7516 = vmatpush.bf16.msrb.mxu1 %v11507_v30  ;;  %7439 = vmatpush.bf16.msrb.mxu3 %v11983_v40 }
 0x425   :  { %v11731_v7 = vor.u32 %v13029_v34, %v11728_v36  ;;  %v12893_v43 = vld [vmem:[#allocation8 + $0x8cc] sm:$0xf]  ;;  %v11855_v36 = vor.u32 %v13065_v28, %v11854_v63 }
 0x426   :  { %7529 = vmatpush.bf16.msrb.mxu2 %v11763_v31  ;;  %v11184_v56 = vld [vmem:[#allocation8 + $0x8e8] sm:$0xf0]  ;;  %7504 = vmatpush.bf16.msrb.mxu0 %v11219_v4  ;;  %v7276_v19 = vpop.f32.mrf.mxu2 }
 0x427   :  { %v12957_v55 = vld [vmem:[#allocation8 + $0xacc] sm:$0xf]  ;;  %v11187_v60 = vor.u32 %v12893_v43, %v11184_v56  ;;  %v13577_v39 = vadd.f32 %v7276_v19, %v7264_v38  ;;  %v10550_v43 = vld [vmem:[#allocation8 + $0x3d0] sm:$0xf] }
 0x428   :  { %v11440_v46 = vld [vmem:[#allocation8 + $0xae8] sm:$0xf0]  ;;  %7517 = vmatpush.bf16.msrb.mxu1 %v11475_v42  ;;  %7440 = vmatpush.bf16.msrb.mxu3 %v11951_v13  ;;  %v10294_v42 = vld [vmem:[#allocation8 + $0x1d0] sm:$0xf] }
 0x429   :  { %v13021_v49 = vld [vmem:[#allocation8 + $0xccc] sm:$0xf]  ;;  %v11443_v62 = vor.u32 %v12957_v55, %v11440_v46  ;;  %v12738_v55 = vld [vmem:[#allocation8 + $0x3ec] sm:$0xf0] }
 0x42a   :  { %v11696_v57 = vld [vmem:[#allocation8 + $0xce8] sm:$0xf0]  ;;  %7530 = vmatpush.bf16.msrb.mxu2 %v11731_v7  ;;  %7505 = vmatpush.bf16.msrb.mxu0 %v11187_v60  ;;  %v12674_v7 = vld [vmem:[#allocation8 + $0x1ec] sm:$0xf0] }
 0x42b   :  { %v11699_v0 = vor.u32 %v13021_v49, %v11696_v57  ;;  %v12885_v33 = vld [vmem:[#allocation8 + $0x88c] sm:$0xf]  ;;  %v10806_v13 = vld [vmem:[#allocation8 + $0x5d0] sm:$0xf]  ;;  %v10295_v60 = vor.u32 %v12674_v7, %v10294_v42 }
 0x42c   :  { %v11152_v48 = vld [vmem:[#allocation8 + $0x8a8] sm:$0xf0]  ;;  %7518 = vmatpush.bf16.msrb.mxu1 %v11443_v62  ;;  %7441 = vmatpush.bf16.msrb.mxu3 %v11919_v45  ;;  %v12802_v46 = vld [vmem:[#allocation8 + $0x5ec] sm:$0xf0]  ;;  %v10551_v62 = vor.u32 %v12738_v55, %v10550_v43 }
 0x42d   :  { %v12949_v5 = vld [vmem:[#allocation8 + $0xa8c] sm:$0xf]  ;;  %v11155_v6 = vor.u32 %v12885_v33, %v11152_v48  ;;  %v10807_v38 = vor.u32 %v12802_v46, %v10806_v13  ;;  %v10518_v33 = vld [vmem:[#allocation8 + $0x390] sm:$0xf] }
 0x42e   :  { %v11408_v10 = vld [vmem:[#allocation8 + $0xaa8] sm:$0xf0]  ;;  %7531 = vmatpush.bf16.msrb.mxu2 %v11699_v0  ;;  %v10262_v0 = vld [vmem:[#allocation8 + $0x190] sm:$0xf]  ;;  %v7278_v18 = vpop.f32.mrf.mxu2 }
 0x42f   :  { %v13013_v44 = vld [vmem:[#allocation8 + $0xc8c] sm:$0xf]  ;;  %v11411_v25 = vor.u32 %v12949_v5, %v11408_v10  ;;  %7506 = vmatpush.bf16.msrb.mxu0 %v11155_v6  ;;  %v12730_v5 = vld [vmem:[#allocation8 + $0x3ac] sm:$0xf0]  ;;  %v10263_v17 = vor.u32 %v12666_v3, %v10262_v0 }
 0x430   :  { %v11664_v16 = vld [vmem:[#allocation8 + $0xca8] sm:$0xf0]  ;;  %7442 = vmatpush.bf16.msrb.mxu3 %v11887_v24  ;;  %v10774_v45 = vld [vmem:[#allocation8 + $0x590] sm:$0xf]  ;;  %v10519_v50 = vor.u32 %v12730_v5, %v10518_v33 }
 0x431   :  { %v11667_v21 = vor.u32 %v13013_v44, %v11664_v16  ;;  %v12877_v22 = vld [vmem:[#allocation8 + $0x84c] sm:$0xf]  ;;  %7519 = vmatpush.bf16.msrb.mxu1 %v11411_v25  ;;  %v12794_v10 = vld [vmem:[#allocation8 + $0x5ac] sm:$0xf0] }
 0x432   :  { %v11120_v11 = vld [vmem:[#allocation8 + $0x868] sm:$0xf0]  ;;  %v10775_v61 = vor.u32 %v12794_v10, %v10774_v45  ;;  %v10230_v6 = vld [vmem:[#allocation8 + $0x150] sm:$0xf] }
 0x433   :  { %v12941_v23 = vld [vmem:[#allocation8 + $0xa4c] sm:$0xf]  ;;  %v11123_v30 = vor.u32 %v12877_v22, %v11120_v11  ;;  %7532 = vmatpush.bf16.msrb.mxu2 %v11667_v21  ;;  %v12658_v25 = vld [vmem:[#allocation8 + $0x16c] sm:$0xf0] }
 0x434   :  { %v11376_v2 = vld [vmem:[#allocation8 + $0xa68] sm:$0xf0]  ;;  %7443 = vmatpush.bf16.msrb.mxu3 %v11855_v36  ;;  %v10486_v21 = vld [vmem:[#allocation8 + $0x350] sm:$0xf] }
 0x435   :  { %v13005_v26 = vld [vmem:[#allocation8 + $0xc4c] sm:$0xf]  ;;  %v11379_v8 = vor.u32 %v12941_v23, %v11376_v2  ;;  %7507 = vmatpush.bf16.msrb.mxu0 %v11123_v30  ;;  %v12722_v11 = vld [vmem:[#allocation8 + $0x36c] sm:$0xf0] }
 0x436   :  { %v11632_v27 = vld [vmem:[#allocation8 + $0xc68] sm:$0xf0]  ;;  %v10742_v23 = vld [vmem:[#allocation8 + $0x550] sm:$0xf]  ;;  %v10487_v63 = vor.u32 %v12722_v11, %v10486_v21 }
 0x437   :  { %v12861_v31 = vld [vmem:[#allocation8 + $0x7cc] sm:$0xf]  ;;  %v11635_v47 = vor.u32 %v13005_v26, %v11632_v27  ;;  %7520 = vmatpush.bf16.msrb.mxu1 %v11379_v8  ;;  %7444 = vmatmul.bf16.vlgmr.msrb.gmra.mxu3 %v13551_v54  ;;  %v12786_v24 = vld [vmem:[#allocation8 + $0x56c] sm:$0xf0]  ;;  %v10231_v27 = vor.u32 %v12658_v25, %v10230_v6 }
 0x438   :  { %v11056_v32 = vld [vmem:[#allocation8 + $0x7e8] sm:$0xf0]  ;;  %v10743_v28 = vor.u32 %v12786_v24, %v10742_v23  ;;  %v10198_v30 = vld [vmem:[#allocation8 + $0x110] sm:$0xf] }
 0x439   :  { %v12869_v40 = vld [vmem:[#allocation8 + $0x80c] sm:$0xf]  ;;  %v11059_v4 = vor.u32 %v12861_v31, %v11056_v32  ;;  %7533 = vmatpush.bf16.msrb.mxu2 %v11635_v47  ;;  %v12650_v31 = vld [vmem:[#allocation8 + $0x12c] sm:$0xf0] }
 0x43a   :  { %v11088_v35 = vld [vmem:[#allocation8 + $0x828] sm:$0xf0]  ;;  %v10454_v32 = vld [vmem:[#allocation8 + $0x310] sm:$0xf] }
 0x43b   :  { %v12933_v34 = vld [vmem:[#allocation8 + $0xa0c] sm:$0xf]  ;;  %v11091_v56 = vor.u32 %v12869_v40, %v11088_v35  ;;  %7488 = vmatpush.bf16.msra.mxu3 %v11059_v4  ;;  %v12714_v47 = vld [vmem:[#allocation8 + $0x32c] sm:$0xf0] }
 0x43c   :  { %v11344_v9 = vld [vmem:[#allocation8 + $0xa28] sm:$0xf0]  ;;  %v10710_v40 = vld [vmem:[#allocation8 + $0x510] sm:$0xf] }
 0x43d   :  { %v12997_v29 = vld [vmem:[#allocation8 + $0xc0c] sm:$0xf]  ;;  %v11347_v49 = vor.u32 %v12933_v34, %v11344_v9  ;;  %7508 = vmatpush.bf16.msrb.mxu0 %v11091_v56  ;;  %v12778_v35 = vld [vmem:[#allocation8 + $0x52c] sm:$0xf0]  ;;  %v13583_v34 = vpop.f32.mrf.mxu0  ;;  %v13585_v9 = vpop.f32.mrf.mxu1 }
 0x43e   :  { %v11600_v15 = vld [vmem:[#allocation8 + $0xc28] sm:$0xf0]  ;;  %v10711_v4 = vor.u32 %v12778_v35, %v10710_v40  ;;  %v10166_v42 = vld [vmem:[#allocation8 + $0xd0] sm:$0xf]  ;;  %v13587_v3 = vpop.f32.mrf.mxu2 }
 0x43f   :  { %v12853_v57 = vld [vmem:[#allocation8 + $0x78c] sm:$0xf]  ;;  %v11603_v41 = vor.u32 %v12997_v29, %v11600_v15  ;;  %7521 = vmatpush.bf16.msrb.mxu1 %v11347_v49  ;;  %v10199_v29 = vor.u32 %v12650_v31, %v10198_v30  ;;  %v10455_v15 = vor.u32 %v12714_v47, %v10454_v32  ;;  %v12642_v7 = vld [vmem:[#allocation8 + $0xec] sm:$0xf0] }
 0x440   :  { %v11024_v58 = vld [vmem:[#allocation8 + $0x7a8] sm:$0xf0]  ;;  %7509 = vmatmul.bf16.vlgmr.msrb.gmra.mxu0 %v13521_v51  ;;  %v10422_v43 = vld [vmem:[#allocation8 + $0x2d0] sm:$0xf] }
 0x441   :  { %v11027_v48 = vor.u32 %v12853_v57, %v11024_v58  ;;  %v12845_v44 = vld [vmem:[#allocation8 + $0x74c] sm:$0xf]  ;;  %7534 = vmatpush.bf16.msrb.mxu2 %v11603_v41  ;;  %7553 = vmatpush.bf16.msra.mxu0 %v10295_v60  ;;  %v12706_v55 = vld [vmem:[#allocation8 + $0x2ec] sm:$0xf0]  ;;  %v10167_v58 = vor.u32 %v12642_v7, %v10166_v42 }
 0x442   :  { %v10992_v16 = vld [vmem:[#allocation8 + $0x768] sm:$0xf0]  ;;  %7522 = vmatmul.bf16.vlgmr.msrb.gmra.mxu1 %v13523_v53  ;;  %v10678_v13 = vld [vmem:[#allocation8 + $0x4d0] sm:$0xf]  ;;  %v10423_v41 = vor.u32 %v12706_v55, %v10422_v43 }
 0x443   :  { %7566 = vmatpush.bf16.msra.mxu1 %v10551_v62  ;;  %7489 = vmatpush.bf16.msra.mxu3 %v11027_v48  ;;  %v10995_v22 = vor.u32 %v12845_v44, %v10992_v16  ;;  %v12837_v2 = vld [vmem:[#allocation8 + $0x70c] sm:$0xf]  ;;  %v12770_v46 = vld [vmem:[#allocation8 + $0x4ec] sm:$0xf0] }
 0x444   :  { %7535 = vmatmul.bf16.vlgmr.msrb.gmra.mxu2 %v13529_v20  ;;  %v10960_v26 = vld [vmem:[#allocation8 + $0x728] sm:$0xf0]  ;;  %v10679_v60 = vor.u32 %v12770_v46, %v10678_v13  ;;  %v10134_v62 = vld [vmem:[#allocation8 + $0x90] sm:$0xf] }
 0x445   :  { %7579 = vmatpush.bf16.msra.mxu2 %v10807_v38  ;;  %7554 = vmatpush.bf16.msra.mxu0 %v10263_v17  ;;  %v10963_v8 = vor.u32 %v12837_v2, %v10960_v26  ;;  %v12829_v36 = vld [vmem:[#allocation8 + $0x6cc] sm:$0xf]  ;;  %v12634_v38 = vld [vmem:[#allocation8 + $0xac] sm:$0xf0]  ;;  %v7304_v10 = vpop.f32.mrf.mxu0  ;;  %v7317_v17 = vpop.f32.mrf.mxu1 }
 0x446   :  { %v10928_v19 = vld [vmem:[#allocation8 + $0x6e8] sm:$0xf0]  ;;  %v10390_v0 = vld [vmem:[#allocation8 + $0x290] sm:$0xf]  ;;  %v10135_v18 = vor.u32 %v12634_v38, %v10134_v62  ;;  %v7330_v40 = vpop.f32.mrf.mxu2 }
 0x447   :  { %7567 = vmatpush.bf16.msra.mxu1 %v10519_v50  ;;  %7490 = vmatpush.bf16.msra.mxu3 %v10995_v22  ;;  %v10931_v56 = vor.u32 %v12829_v36, %v10928_v19  ;;  %v12821_v49 = vld [vmem:[#allocation8 + $0x68c] sm:$0xf]  ;;  %v12698_v48 = vld [vmem:[#allocation8 + $0x2ac] sm:$0xf0] }
 0x448   :  { %v10896_v57 = vld [vmem:[#allocation8 + $0x6a8] sm:$0xf0]  ;;  %v10646_v5 = vld [vmem:[#allocation8 + $0x490] sm:$0xf]  ;;  %v10391_v50 = vor.u32 %v12698_v48, %v10390_v0 }
 0x449   :  { %7580 = vmatpush.bf16.msra.mxu2 %v10775_v61  ;;  %7555 = vmatpush.bf16.msra.mxu0 %v10231_v27  ;;  %v10899_v33 = vor.u32 %v12821_v49, %v10896_v57  ;;  %v12762_v45 = vld [vmem:[#allocation8 + $0x4ac] sm:$0xf0]  ;;  %v12813_v44 = vld [vmem:[#allocation8 + $0x64c] sm:$0xf] }
 0x44a   :  { %v10864_v16 = vld [vmem:[#allocation8 + $0x668] sm:$0xf0]  ;;  %v10647_v61 = vor.u32 %v12762_v45, %v10646_v5  ;;  %v10102_v6 = vld [vmem:[#allocation8 + $0x50] sm:$0xf] }
 0x44b   :  { %7568 = vmatpush.bf16.msra.mxu1 %v10487_v63  ;;  %7491 = vmatpush.bf16.msra.mxu3 %v10963_v8  ;;  %v12626_v25 = vld [vmem:[#allocation8 + $0x6c] sm:$0xf0]  ;;  %v10867_v22 = vor.u32 %v12813_v44, %v10864_v16  ;;  %v12805_v2 = vld [vmem:[#allocation8 + $0x60c] sm:$0xf] }
 0x44c   :  { %v10358_v21 = vld [vmem:[#allocation8 + $0x250] sm:$0xf]  ;;  %v10832_v26 = vld [vmem:[#allocation8 + $0x628] sm:$0xf0]  ;;  %v10103_v27 = vor.u32 %v12626_v25, %v10102_v6 }
 0x44d   :  { %7581 = vmatpush.bf16.msra.mxu2 %v10743_v28  ;;  %7556 = vmatpush.bf16.msra.mxu0 %v10199_v29  ;;  %v12690_v11 = vld [vmem:[#allocation8 + $0x26c] sm:$0xf0]  ;;  %v13117_v63 = vld [vmem:[#allocation8 + $0xfcc] sm:$0xf]  ;;  %v10835_v35 = vor.u32 %v12805_v2, %v10832_v26 }
 0x44e   :  { %v10614_v23 = vld [vmem:[#allocation8 + $0x450] sm:$0xf]  ;;  %v12080_v28 = vld [vmem:[#allocation8 + $0xfe8] sm:$0xf0]  ;;  %v10359_v30 = vor.u32 %v12690_v11, %v10358_v21 }
 0x44f   :  { %7569 = vmatpush.bf16.msra.mxu1 %v10455_v15  ;;  %7492 = vmatpush.bf16.msra.mxu3 %v10931_v56  ;;  %v12754_v24 = vld [vmem:[#allocation8 + $0x46c] sm:$0xf0]  ;;  %v12083_v15 = vor.u32 %v13117_v63, %v12080_v28  ;;  %v13109_v49 = vld [vmem:[#allocation8 + $0xf8c] sm:$0xf] }
 0x450   :  { %v10615_v31 = vor.u32 %v12754_v24, %v10614_v23  ;;  %v10070_v32 = vld [vmem:[#allocation8 + $0x10] sm:$0xf]  ;;  %v12048_v57 = vld [vmem:[#allocation8 + $0xfa8] sm:$0xf0] }
 0x451   :  { %7582 = vmatpush.bf16.msra.mxu2 %v10711_v4  ;;  %7557 = vmatpush.bf16.msra.mxu0 %v10167_v58  ;;  %v12618_v8 = vld [vmem:[#allocation8 + $0x2c] sm:$0xf0]  ;;  %v12051_v48 = vor.u32 %v13109_v49, %v12048_v57  ;;  %v13101_v44 = vld [vmem:[#allocation8 + $0xf4c] sm:$0xf] }
 0x452   :  { %v10326_v47 = vld [vmem:[#allocation8 + $0x210] sm:$0xf]  ;;  %v10071_v43 = vor.u32 %v12618_v8, %v10070_v32  ;;  %v12016_v16 = vld [vmem:[#allocation8 + $0xf68] sm:$0xf0] }
 0x453   :  { %7570 = vmatpush.bf16.msra.mxu1 %v10423_v41  ;;  %7493 = vmatpush.bf16.msra.mxu3 %v10899_v33  ;;  %v12682_v36 = vld [vmem:[#allocation8 + $0x22c] sm:$0xf0]  ;;  %v12019_v21 = vor.u32 %v13101_v44, %v12016_v16  ;;  %v13093_v24 = vld [vmem:[#allocation8 + $0xf0c] sm:$0xf] }
 0x454   :  { %v10582_v19 = vld [vmem:[#allocation8 + $0x410] sm:$0xf]  ;;  %v10327_v46 = vor.u32 %v12682_v36, %v10326_v47  ;;  %v11984_v2 = vld [vmem:[#allocation8 + $0xf28] sm:$0xf0]  ;;  %v7225_v47 = vadd.f32 %v13575_v37, %v13568_v1 }
 0x455   :  { %7583 = vmatpush.bf16.msra.mxu2 %v10679_v60  ;;  %7558 = vmatpush.bf16.msra.mxu0 %v10135_v18  ;;  %v12746_v29 = vld [vmem:[#allocation8 + $0x42c] sm:$0xf0]  ;;  %v11987_v40 = vor.u32 %v13093_v24, %v11984_v2  ;;  %v11888_v24 = vld [vmem:[#allocation8 + $0xe68] sm:$0xf0] }
 0x456   :  { %v11318_v4 = vld [vmem:[#allocation8 + $0x9d0] sm:$0xf]  ;;  %v10583_v58 = vor.u32 %v12746_v29, %v10582_v19  ;;  %v7354_v29 = vpop.f32.mrf.mxu0 }
 0x457   :  { %7571 = vmatpush.bf16.msra.mxu1 %v10391_v50  ;;  %7494 = vmatpush.bf16.msra.mxu3 %v10867_v22  ;;  %v12930_v42 = vld [vmem:[#allocation8 + $0x9ec] sm:$0xf0] }
 0x458   :  { %v11574_v7 = vld [vmem:[#allocation8 + $0xbd0] sm:$0xf]  ;;  %v11319_v41 = vor.u32 %v12930_v42, %v11318_v4  ;;  %v13085_v4 = vld [vmem:[#allocation8 + $0xecc] sm:$0xf] }
 0x459   :  { %7584 = vmatpush.bf16.msra.mxu2 %v10647_v61  ;;  %7559 = vmatpush.bf16.msra.mxu0 %v10103_v27  ;;  %v12994_v56 = vld [vmem:[#allocation8 + $0xbec] sm:$0xf0]  ;;  %v13593_v27 = vld [vmem:[#allocation10] sm:$0xff]  ;;  %v11952_v42 = vld [vmem:[#allocation8 + $0xee8] sm:$0xf0] }
 0x45a   :  { %v11830_v55 = vld [vmem:[#allocation8 + $0xdd0] sm:$0xf]  ;;  %v11575_v60 = vor.u32 %v12994_v56, %v11574_v7  ;;  %v4563_v63 = vperm.slane %v13593_v27, 2 }
 0x45b   :  { %v13058_v13 = vld [vmem:[#allocation8 + $0xdec] sm:$0xf0]  ;;  %7572 = vmatpush.bf16.msra.mxu1 %v10359_v30  ;;  %7495 = vmatpush.bf16.msra.mxu3 %v10835_v35 }
 0x45c   :  { %v11831_v62 = vor.u32 %v13058_v13, %v11830_v55  ;;  %v11286_v38 = vld [vmem:[#allocation8 + $0x990] sm:$0xf]  ;;  %v7355_v7 = vadd.f32 %v7354_v29, %v4563_v63 }
 0x45d   :  { %7585 = vmatpush.bf16.msra.mxu2 %v10615_v31  ;;  %v12922_v0 = vld [vmem:[#allocation8 + $0x9ac] sm:$0xf0]  ;;  %7560 = vmatpush.bf16.msra.mxu0 %v10071_v43  ;;  %v7367_v43 = vpop.f32.mrf.mxu1 }
 0x45e   :  { %v11542_v33 = vld [vmem:[#allocation8 + $0xb90] sm:$0xf]  ;;  %7496 = vmatmul.bf16.vlgmr.msra.gmra.mxu3 %v13495_v59  ;;  %v11287_v17 = vor.u32 %v12922_v0, %v11286_v38  ;;  %v7368_v57 = vadd.f32 %v7367_v43, %v7355_v7 }
 0x45f   :  { %7540 = vmatpush.bf16.msrb.mxu3 %v12083_v15  ;;  %v12986_v5 = vld [vmem:[#allocation8 + $0xbac] sm:$0xf0]  ;;  %7573 = vmatpush.bf16.msra.mxu1 %v10327_v46  ;;  %v7237_v15 = vpop.f32.mrf.mxu3 }
 0x460   :  { %v11798_v45 = vld [vmem:[#allocation8 + $0xd90] sm:$0xf]  ;;  %v11543_v18 = vor.u32 %v12986_v5, %v11542_v33  ;;  %7561 = vmatmul.bf16.vlgmr.msra.gmra.mxu0 %v13489_v12  ;;  %v7238_v56 = vadd.f32 %v7237_v15, %v7225_v47  ;;  %v13077_v33 = vld [vmem:[#allocation8 + $0xe8c] sm:$0xf] }
 0x461   :  { %v13050_v10 = vld [vmem:[#allocation8 + $0xdac] sm:$0xf0]  ;;  %7586 = vmatpush.bf16.msra.mxu2 %v10583_v58  ;;  %7605 = vmatpush.bf16.msrb.mxu0 %v11319_v41  ;;  %v13136_v58 = vld [vmem:[#allocation2] sm:$0xff] }
 0x462   :  { %v11799_v50 = vor.u32 %v13050_v10, %v11798_v45  ;;  %v11254_v61 = vld [vmem:[#allocation8 + $0x950] sm:$0xf]  ;;  %7574 = vmatmul.bf16.vlgmr.msra.gmra.mxu1 %v13491_v14  ;;  %v7969_v41 = vadd.f32 %v13136_v58, %v7238_v56 }
 0x463   :  { %7618 = vmatpush.bf16.msrb.mxu1 %v11575_v60  ;;  %v12914_v6 = vld [vmem:[#allocation8 + $0x96c] sm:$0xf0]  ;;  %7541 = vmatpush.bf16.msrb.mxu3 %v12051_v48  ;;  %v11955_v60 = vor.u32 %v13085_v4, %v11952_v42  ;;  %v11920_v48 = vld [vmem:[#allocation8 + $0xea8] sm:$0xf0] }
 0x464   :  { %v11510_v25 = vld [vmem:[#allocation8 + $0xb50] sm:$0xf]  ;;  %7587 = vmatmul.bf16.vlgmr.msra.gmra.mxu2 %v13493_v52  ;;  %v11255_v26 = vor.u32 %v12914_v6, %v11254_v61  ;;  %7977 = vst [vmem:[#allocation11] sm:$0xff] %v7969_v41  ;;  %v12670_v41 = vld [vmem:[#allocation8 + $0x1d4] sm:$0xf] }
 0x465   :  { %7631 = vmatpush.bf16.msrb.mxu2 %v11831_v62  ;;  %v12978_v22 = vld [vmem:[#allocation8 + $0xb6c] sm:$0xf0]  ;;  %7606 = vmatpush.bf16.msrb.mxu0 %v11287_v17  ;;  %v7369_v2 = vpop.f32.mrf.mxu1 }
 0x466   :  { %v11766_v11 = vld [vmem:[#allocation8 + $0xd50] sm:$0xf]  ;;  %v11511_v28 = vor.u32 %v12978_v22, %v11510_v25  ;;  %v7356_v22 = vpop.f32.mrf.mxu0 }
 0x467   :  { %v13042_v23 = vld [vmem:[#allocation8 + $0xd6c] sm:$0xf0]  ;;  %7619 = vmatpush.bf16.msrb.mxu1 %v11543_v18  ;;  %7542 = vmatpush.bf16.msrb.mxu3 %v12019_v21  ;;  %v7380_v18 = vpop.f32.mrf.mxu2 }
 0x468   :  { %v11767_v30 = vor.u32 %v13042_v23, %v11766_v11  ;;  %v11222_v31 = vld [vmem:[#allocation8 + $0x910] sm:$0xf]  ;;  %v13598_v21 = vadd.f32 %v7380_v18, %v7368_v57  ;;  %v7239_v11 = vpop.f32.mrf.mxu3  ;;  %v13069_v23 = vld [vmem:[#allocation8 + $0xe4c] sm:$0xf] }
 0x469   :  { %7632 = vmatpush.bf16.msrb.mxu2 %v11799_v50  ;;  %v12906_v32 = vld [vmem:[#allocation8 + $0x92c] sm:$0xf0]  ;;  %7607 = vmatpush.bf16.msrb.mxu0 %v11255_v26  ;;  %v11923_v50 = vor.u32 %v13077_v33, %v11920_v48  ;;  %v12798_v33 = vld [vmem:[#allocation8 + $0x5d4] sm:$0xf] }
 0x46a   :  { %v11478_v8 = vld [vmem:[#allocation8 + $0xb10] sm:$0xf]  ;;  %v11223_v55 = vor.u32 %v12906_v32, %v11222_v31  ;;  %v10808_v48 = vld [vmem:[#allocation8 + $0x5f0] sm:$0xf0] }
 0x46b   :  { %v12970_v35 = vld [vmem:[#allocation8 + $0xb2c] sm:$0xf0]  ;;  %7620 = vmatpush.bf16.msrb.mxu1 %v11511_v28  ;;  %7543 = vmatpush.bf16.msrb.mxu3 %v11987_v40  ;;  %v10811_v18 = vor.u32 %v12798_v33, %v10808_v48  ;;  %v10520_v11 = vld [vmem:[#allocation8 + $0x3b0] sm:$0xf0] }
 0x46c   :  { %v11734_v36 = vld [vmem:[#allocation8 + $0xd10] sm:$0xf]  ;;  %v11479_v13 = vor.u32 %v12970_v35, %v11478_v8  ;;  %v11891_v8 = vor.u32 %v13069_v23, %v11888_v24  ;;  %v12790_v23 = vld [vmem:[#allocation8 + $0x594] sm:$0xf] }
 0x46d   :  { %v13034_v19 = vld [vmem:[#allocation8 + $0xd2c] sm:$0xf0]  ;;  %7633 = vmatpush.bf16.msrb.mxu2 %v11767_v30  ;;  %7608 = vmatpush.bf16.msrb.mxu0 %v11223_v55  ;;  %v10776_v24 = vld [vmem:[#allocation8 + $0x5b0] sm:$0xf0] }
 0x46e   :  { %v11735_v46 = vor.u32 %v13034_v19, %v11734_v36  ;;  %v11190_v49 = vld [vmem:[#allocation8 + $0x8d0] sm:$0xf]  ;;  %v13061_v36 = vld [vmem:[#allocation8 + $0xe0c] sm:$0xf]  ;;  %v10168_v33 = vld [vmem:[#allocation8 + $0xf0] sm:$0xf0] }
 0x46f   :  { %v12898_v1 = vld [vmem:[#allocation8 + $0x8ec] sm:$0xf0]  ;;  %7621 = vmatpush.bf16.msrb.mxu1 %v11479_v13  ;;  %7544 = vmatpush.bf16.msrb.mxu3 %v11955_v60  ;;  %v11856_v19 = vld [vmem:[#allocation8 + $0xe28] sm:$0xf0]  ;;  %v7382_v13 = vpop.f32.mrf.mxu2  ;;  %v10296_v60 = vld [vmem:[#allocation8 + $0x1f0] sm:$0xf0] }
 0x470   :  { %v11446_v37 = vld [vmem:[#allocation8 + $0xad0] sm:$0xf]  ;;  %v11191_v5 = vor.u32 %v12898_v1, %v11190_v49  ;;  %v7289_v58 = vpop.f32.mrf.mxu3  ;;  %v10456_v13 = vld [vmem:[#allocation8 + $0x330] sm:$0xf0] }
 0x471   :  { %v12962_v62 = vld [vmem:[#allocation8 + $0xaec] sm:$0xf0]  ;;  %7634 = vmatpush.bf16.msrb.mxu2 %v11735_v46  ;;  %v11859_v46 = vor.u32 %v13061_v36, %v11856_v19  ;;  %v12782_v36 = vld [vmem:[#allocation8 + $0x554] sm:$0xf] }
 0x472   :  { %v11702_v38 = vld [vmem:[#allocation8 + $0xcd0] sm:$0xf]  ;;  %v11447_v45 = vor.u32 %v12962_v62, %v11446_v37  ;;  %7609 = vmatpush.bf16.msrb.mxu0 %v11191_v5  ;;  %v12734_v62 = vld [vmem:[#allocation8 + $0x3d4] sm:$0xf] }
 0x473   :  { %v13026_v0 = vld [vmem:[#allocation8 + $0xcec] sm:$0xf0]  ;;  %7545 = vmatpush.bf16.msrb.mxu3 %v11923_v50  ;;  %v12662_v50 = vld [vmem:[#allocation8 + $0x194] sm:$0xf] }
 0x474   :  { %v11703_v10 = vor.u32 %v13026_v0, %v11702_v38  ;;  %v11158_v44 = vld [vmem:[#allocation8 + $0x890] sm:$0xf]  ;;  %7622 = vmatpush.bf16.msrb.mxu1 %v11447_v45  ;;  %v10552_v0 = vld [vmem:[#allocation8 + $0x3f0] sm:$0xf0] }
 0x475   :  { %v12890_v16 = vld [vmem:[#allocation8 + $0x8ac] sm:$0xf0]  ;;  %v10744_v19 = vld [vmem:[#allocation8 + $0x570] sm:$0xf0] }
 0x476   :  { %v11414_v17 = vld [vmem:[#allocation8 + $0xa90] sm:$0xf]  ;;  %v11159_v26 = vor.u32 %v12890_v16, %v11158_v44  ;;  %7635 = vmatpush.bf16.msrb.mxu2 %v11703_v10  ;;  %v10299_v16 = vor.u32 %v12670_v41, %v10296_v60  ;;  %v12702_v48 = vld [vmem:[#allocation8 + $0x2d4] sm:$0xf] }
 0x477   :  { %v12954_v61 = vld [vmem:[#allocation8 + $0xaac] sm:$0xf0]  ;;  %7546 = vmatpush.bf16.msrb.mxu3 %v11891_v8  ;;  %v12718_v8 = vld [vmem:[#allocation8 + $0x354] sm:$0xf] }
 0x478   :  { %v11670_v6 = vld [vmem:[#allocation8 + $0xc90] sm:$0xf]  ;;  %v11415_v63 = vor.u32 %v12954_v61, %v11414_v17  ;;  %7610 = vmatpush.bf16.msrb.mxu0 %v11159_v26  ;;  %v10555_v17 = vor.u32 %v12734_v62, %v10552_v0  ;;  %v10264_v61 = vld [vmem:[#allocation8 + $0x1b0] sm:$0xf0]  ;;  %v13609_v41 = vpop.f32.mrf.mxu1 }
 0x479   :  { %v13018_v25 = vld [vmem:[#allocation8 + $0xcac] sm:$0xf0]  ;;  %v12638_v0 = vld [vmem:[#allocation8 + $0xd4] sm:$0xf] }
 0x47a   :  { %v11671_v28 = vor.u32 %v13018_v25, %v11670_v6  ;;  %v11126_v30 = vld [vmem:[#allocation8 + $0x850] sm:$0xf]  ;;  %7623 = vmatpush.bf16.msrb.mxu1 %v11415_v63  ;;  %v12726_v6 = vld [vmem:[#allocation8 + $0x394] sm:$0xf]  ;;  %v7290_v25 = vadd.f32 %v7289_v58, %v13577_v39  ;;  %v10267_v63 = vor.u32 %v12662_v50, %v10264_v61  ;;  %v10171_v61 = vor.u32 %v12638_v0, %v10168_v33 }
 0x47b   :  { %v12882_v31 = vld [vmem:[#allocation8 + $0x86c] sm:$0xf0]  ;;  %7547 = vmatpush.bf16.msrb.mxu3 %v11859_v46  ;;  %v10232_v39 = vld [vmem:[#allocation8 + $0x170] sm:$0xf0] }
 0x47c   :  { %v11382_v32 = vld [vmem:[#allocation8 + $0xa50] sm:$0xf]  ;;  %v11127_v29 = vor.u32 %v12882_v31, %v11126_v30  ;;  %7636 = vmatpush.bf16.msrb.mxu2 %v11671_v28  ;;  %v10523_v28 = vor.u32 %v12726_v6, %v10520_v11  ;;  %v10779_v30 = vor.u32 %v12790_v23, %v10776_v24  ;;  %v7291_v31 = vpop.f32.mrf.mxu3  ;;  %v12774_v46 = vld [vmem:[#allocation8 + $0x514] sm:$0xf]  ;;  %v13137_v24 = vld [vmem:[#allocation2 + $0x8] sm:$0xff] }
 0x47d   :  { %v12946_v47 = vld [vmem:[#allocation8 + $0xa6c] sm:$0xf0]  ;;  %v10136_v11 = vld [vmem:[#allocation8 + $0xb0] sm:$0xf0] }
 0x47e   :  { %v11638_v40 = vld [vmem:[#allocation8 + $0xc50] sm:$0xf]  ;;  %v11383_v42 = vor.u32 %v12946_v47, %v11382_v32  ;;  %7611 = vmatpush.bf16.msrb.mxu0 %v11127_v29  ;;  %7548 = vmatmul.bf16.vlgmr.msrb.gmra.mxu3 %v13551_v54  ;;  %v12654_v32 = vld [vmem:[#allocation8 + $0x154] sm:$0xf]  ;;  %v7303_v47 = vadd.f32 %v13583_v34, %v7290_v25 }
 0x47f   :  { %v13010_v35 = vld [vmem:[#allocation8 + $0xc6c] sm:$0xf0]  ;;  %v12646_v34 = vld [vmem:[#allocation8 + $0x114] sm:$0xf] }
 0x480   :  { %v11062_v15 = vld [vmem:[#allocation8 + $0x7d0] sm:$0xf]  ;;  %v11639_v7 = vor.u32 %v13010_v35, %v11638_v40  ;;  %7624 = vmatpush.bf16.msrb.mxu1 %v11383_v42  ;;  %v10488_v35 = vld [vmem:[#allocation8 + $0x370] sm:$0xf0] }
 0x481   :  { %v12866_v4 = vld [vmem:[#allocation8 + $0x7ec] sm:$0xf0]  ;;  %v10491_v42 = vor.u32 %v12718_v8, %v10488_v35  ;;  %v12694_v23 = vld [vmem:[#allocation8 + $0x294] sm:$0xf]  ;;  %v7421_v8 = vpop.f32.mrf.mxu1 }
 0x482   :  { %v11094_v43 = vld [vmem:[#allocation8 + $0x810] sm:$0xf]  ;;  %v11063_v57 = vor.u32 %v12866_v4, %v11062_v15  ;;  %7637 = vmatpush.bf16.msrb.mxu2 %v11639_v7  ;;  %v10235_v4 = vor.u32 %v12654_v32, %v10232_v39  ;;  %v10747_v7 = vor.u32 %v12782_v36, %v10744_v19  ;;  %v12622_v36 = vld [vmem:[#allocation8 + $0x54] sm:$0xf] }
 0x483   :  { %v12874_v56 = vld [vmem:[#allocation8 + $0x82c] sm:$0xf0]  ;;  %v10104_v19 = vld [vmem:[#allocation8 + $0x70] sm:$0xf0] }
 0x484   :  { %v11350_v55 = vld [vmem:[#allocation8 + $0xa10] sm:$0xf]  ;;  %v11095_v38 = vor.u32 %v12874_v56, %v11094_v43  ;;  %7592 = vmatpush.bf16.msra.mxu3 %v11063_v57  ;;  %v10200_v43 = vld [vmem:[#allocation8 + $0x130] sm:$0xf0] }
 0x485   :  { %v12938_v49 = vld [vmem:[#allocation8 + $0xa2c] sm:$0xf0]  ;;  %v12710_v56 = vld [vmem:[#allocation8 + $0x314] sm:$0xf]  ;;  %v10203_v60 = vor.u32 %v12646_v34, %v10200_v43 }
 0x486   :  { %v11606_v1 = vld [vmem:[#allocation8 + $0xc10] sm:$0xf]  ;;  %v11351_v5 = vor.u32 %v12938_v49, %v11350_v55  ;;  %7612 = vmatpush.bf16.msrb.mxu0 %v11095_v38  ;;  %v10712_v49 = vld [vmem:[#allocation8 + $0x530] sm:$0xf0]  ;;  %v10459_v62 = vor.u32 %v12710_v56, %v10456_v13 }
 0x487   :  { %v13002_v37 = vld [vmem:[#allocation8 + $0xc2c] sm:$0xf0]  ;;  %v10715_v38 = vor.u32 %v12774_v46, %v10712_v49  ;;  %v10328_v0 = vld [vmem:[#allocation8 + $0x230] sm:$0xf0] }
 0x488   :  { %v11030_v45 = vld [vmem:[#allocation8 + $0x790] sm:$0xf]  ;;  %v11607_v44 = vor.u32 %v13002_v37, %v11606_v1  ;;  %7625 = vmatpush.bf16.msrb.mxu1 %v11351_v5  ;;  %v7316_v1 = vadd.f32 %v13585_v9, %v7303_v47  ;;  %v13607_v37 = vpop.f32.mrf.mxu0  ;;  %v10424_v9 = vld [vmem:[#allocation8 + $0x2f0] sm:$0xf0] }
 0x489   :  { %v12858_v10 = vld [vmem:[#allocation8 + $0x7ac] sm:$0xf0]  ;;  %7613 = vmatmul.bf16.vlgmr.msrb.gmra.mxu0 %v13521_v51  ;;  %v10427_v6 = vor.u32 %v12702_v48, %v10424_v9  ;;  %v12742_v33 = vld [vmem:[#allocation8 + $0x414] sm:$0xf] }
 0x48a   :  { %v11031_v22 = vor.u32 %v12858_v10, %v11030_v45  ;;  %v10998_v2 = vld [vmem:[#allocation8 + $0x750] sm:$0xf]  ;;  %7638 = vmatpush.bf16.msrb.mxu2 %v11607_v44  ;;  %7657 = vmatpush.bf16.msra.mxu0 %v10299_v16  ;;  %v7329_v45 = vadd.f32 %v13587_v3, %v7316_v1  ;;  %v12766_v10 = vld [vmem:[#allocation8 + $0x4d4] sm:$0xf]  ;;  %v7341_v16 = vpop.f32.mrf.mxu3  ;;  %v13612_v3 = vpop.f32.mrf.mxu2 }
 0x48b   :  { %v12850_v26 = vld [vmem:[#allocation8 + $0x76c] sm:$0xf0]  ;;  %7626 = vmatmul.bf16.vlgmr.msrb.gmra.mxu1 %v13523_v53  ;;  %v10680_v44 = vld [vmem:[#allocation8 + $0x4f0] sm:$0xf0] }
 0x48c   :  { %7670 = vmatpush.bf16.msra.mxu1 %v10555_v17  ;;  %7593 = vmatpush.bf16.msra.mxu3 %v11031_v22  ;;  %v10999_v40 = vor.u32 %v12850_v26, %v10998_v2  ;;  %v10966_v29 = vld [vmem:[#allocation8 + $0x710] sm:$0xf]  ;;  %v7342_v50 = vadd.f32 %v7341_v16, %v7329_v45  ;;  %v10683_v25 = vor.u32 %v12766_v10, %v10680_v44  ;;  %v12630_v22 = vld [vmem:[#allocation8 + $0x94] sm:$0xf] }
 0x48d   :  { %7639 = vmatmul.bf16.vlgmr.msrb.gmra.mxu2 %v13529_v20  ;;  %v12842_v15 = vld [vmem:[#allocation8 + $0x72c] sm:$0xf0]  ;;  %v10139_v47 = vor.u32 %v12630_v22, %v10136_v11  ;;  %v10584_v48 = vld [vmem:[#allocation8 + $0x430] sm:$0xf0] }
 0x48e   :  { %7683 = vmatpush.bf16.msra.mxu2 %v10811_v18  ;;  %7658 = vmatpush.bf16.msra.mxu0 %v10267_v63  ;;  %v10967_v55 = vor.u32 %v12842_v15, %v10966_v29  ;;  %v10934_v57 = vld [vmem:[#allocation8 + $0x6d0] sm:$0xf]  ;;  %v7970_v2 = vadd.f32 %v13137_v24, %v7342_v50  ;;  %v10392_v63 = vld [vmem:[#allocation8 + $0x2b0] sm:$0xf0] }
 0x48f   :  { %v12834_v58 = vld [vmem:[#allocation8 + $0x6ec] sm:$0xf0]  ;;  %v12686_v29 = vld [vmem:[#allocation8 + $0x254] sm:$0xf] }
 0x490   :  { %7671 = vmatpush.bf16.msra.mxu1 %v10523_v28  ;;  %7594 = vmatpush.bf16.msra.mxu3 %v10999_v40  ;;  %v10935_v5 = vor.u32 %v12834_v58, %v10934_v57  ;;  %v10902_v17 = vld [vmem:[#allocation8 + $0x690] sm:$0xf]  ;;  %v12758_v28 = vld [vmem:[#allocation8 + $0x494] sm:$0xf]  ;;  %v7408_v31 = vpop.f32.mrf.mxu0  ;;  %7978 = vst [vmem:[#allocation11 + $0x8] sm:$0xff] %v7970_v2  ;;  %v10395_v40 = vor.u32 %v12694_v23, %v10392_v63 }
 0x491   :  { %v12826_v18 = vld [vmem:[#allocation8 + $0x6ac] sm:$0xf0]  ;;  %v12614_v57 = vld [vmem:[#allocation8 + $0x14] sm:$0xf] }
 0x492   :  { %7684 = vmatpush.bf16.msra.mxu2 %v10779_v30  ;;  %7659 = vmatpush.bf16.msra.mxu0 %v10235_v4  ;;  %v10903_v26 = vor.u32 %v12826_v18, %v10902_v17  ;;  %v10648_v30 = vld [vmem:[#allocation8 + $0x4b0] sm:$0xf0]  ;;  %v10870_v32 = vld [vmem:[#allocation8 + $0x650] sm:$0xf]  ;;  %v7343_v34 = vpop.f32.mrf.mxu3 }
 0x493   :  { %v12818_v39 = vld [vmem:[#allocation8 + $0x66c] sm:$0xf0]  ;;  %v10651_v35 = vor.u32 %v12758_v28, %v10648_v30  ;;  %v10360_v4 = vld [vmem:[#allocation8 + $0x270] sm:$0xf0] }
 0x494   :  { %7672 = vmatpush.bf16.msra.mxu1 %v10491_v42  ;;  %7595 = vmatpush.bf16.msra.mxu3 %v10967_v55  ;;  %v10871_v15 = vor.u32 %v12818_v39, %v10870_v32  ;;  %v12750_v42 = vld [vmem:[#allocation8 + $0x454] sm:$0xf]  ;;  %v10838_v43 = vld [vmem:[#allocation8 + $0x610] sm:$0xf]  ;;  %v10107_v55 = vor.u32 %v12622_v36, %v10104_v19  ;;  %v10363_v49 = vor.u32 %v12686_v29, %v10360_v4 }
 0x495   :  { %v12810_v56 = vld [vmem:[#allocation8 + $0x62c] sm:$0xf0]  ;;  %v10072_v58 = vld [vmem:[#allocation8 + $0x30] sm:$0xf0] }
 0x496   :  { %7685 = vmatpush.bf16.msra.mxu2 %v10747_v7  ;;  %7660 = vmatpush.bf16.msra.mxu0 %v10203_v60  ;;  %v10616_v7 = vld [vmem:[#allocation8 + $0x470] sm:$0xf0]  ;;  %v12086_v13 = vld [vmem:[#allocation8 + $0xfd0] sm:$0xf]  ;;  %v10075_v44 = vor.u32 %v12614_v57, %v10072_v58 }
 0x497   :  { %v13122_v46 = vld [vmem:[#allocation8 + $0xfec] sm:$0xf0]  ;;  %v10619_v1 = vor.u32 %v12750_v42, %v10616_v7  ;;  %v12678_v60 = vld [vmem:[#allocation8 + $0x214] sm:$0xf] }
 0x498   :  { %7673 = vmatpush.bf16.msra.mxu1 %v10459_v62  ;;  %7596 = vmatpush.bf16.msra.mxu3 %v10935_v5  ;;  %v7434_v62 = vpop.f32.mrf.mxu2  ;;  %v12087_v5 = vor.u32 %v13122_v46, %v12086_v13  ;;  %v12926_v45 = vld [vmem:[#allocation8 + $0x9d4] sm:$0xf]  ;;  %v10331_v50 = vor.u32 %v12678_v60, %v10328_v0  ;;  %v12022_v32 = vld [vmem:[#allocation8 + $0xf50] sm:$0xf] }
 0x499   :  { %v11320_v9 = vld [vmem:[#allocation8 + $0x9f0] sm:$0xf0]  ;;  %v13106_v39 = vld [vmem:[#allocation8 + $0xf6c] sm:$0xf0] }
 0x49a   :  { %7686 = vmatpush.bf16.msra.mxu2 %v10715_v38  ;;  %7661 = vmatpush.bf16.msra.mxu0 %v10171_v61  ;;  %v10839_v38 = vor.u32 %v12810_v56, %v10838_v43  ;;  %v12990_v10 = vld [vmem:[#allocation8 + $0xbd4] sm:$0xf]  ;;  %v12054_v61 = vld [vmem:[#allocation8 + $0xf90] sm:$0xf]  ;;  %v11323_v22 = vor.u32 %v12926_v45, %v11320_v9  ;;  %v12023_v29 = vor.u32 %v13106_v39, %v12022_v32  ;;  %v4564_v56 = vperm.slane %v13593_v27, 3 }
 0x49b   :  { %v11576_v16 = vld [vmem:[#allocation8 + $0xbf0] sm:$0xf0]  ;;  %v11990_v7 = vld [vmem:[#allocation8 + $0xf10] sm:$0xf] }
 0x49c   :  { %7674 = vmatpush.bf16.msra.mxu1 %v10427_v6  ;;  %7597 = vmatpush.bf16.msra.mxu3 %v10903_v26  ;;  %v13054_v17 = vld [vmem:[#allocation8 + $0xdd4] sm:$0xf]  ;;  %v13114_v6 = vld [vmem:[#allocation8 + $0xfac] sm:$0xf0]  ;;  %v11579_v11 = vor.u32 %v12990_v10, %v11576_v16 }
 0x49d   :  { %v11832_v18 = vld [vmem:[#allocation8 + $0xdf0] sm:$0xf0]  ;;  %v12055_v63 = vor.u32 %v13114_v6, %v12054_v61  ;;  %v13098_v34 = vld [vmem:[#allocation8 + $0xf2c] sm:$0xf0] }
 0x49e   :  { %7687 = vmatpush.bf16.msra.mxu2 %v10683_v25  ;;  %7662 = vmatpush.bf16.msra.mxu0 %v10139_v47  ;;  %v10587_v25 = vor.u32 %v12742_v33, %v10584_v48  ;;  %v11835_v23 = vor.u32 %v13054_v17, %v11832_v18  ;;  %v12918_v24 = vld [vmem:[#allocation8 + $0x994] sm:$0xf]  ;;  %v11991_v57 = vor.u32 %v13098_v34, %v11990_v7  ;;  %v11958_v0 = vld [vmem:[#allocation8 + $0xed0] sm:$0xf] }
 0x49f   :  { %v11288_v2 = vld [vmem:[#allocation8 + $0x9b0] sm:$0xf0]  ;;  %v13090_v33 = vld [vmem:[#allocation8 + $0xeec] sm:$0xf0] }
 0x4a0   :  { %7675 = vmatpush.bf16.msra.mxu1 %v10395_v40  ;;  %7598 = vmatpush.bf16.msra.mxu3 %v10871_v15  ;;  %v12982_v26 = vld [vmem:[#allocation8 + $0xb94] sm:$0xf]  ;;  %v11291_v8 = vor.u32 %v12918_v24, %v11288_v2  ;;  %v11959_v18 = vor.u32 %v13090_v33, %v11958_v0 }
 0x4a1   :  { %v11544_v28 = vld [vmem:[#allocation8 + $0xbb0] sm:$0xf0] }
 0x4a2   :  { %7688 = vmatpush.bf16.msra.mxu2 %v10651_v35  ;;  %7663 = vmatpush.bf16.msra.mxu0 %v10107_v55  ;;  %v13046_v30 = vld [vmem:[#allocation8 + $0xd94] sm:$0xf]  ;;  %v11547_v47 = vor.u32 %v12982_v26, %v11544_v28 }
 0x4a3   :  { %v11800_v31 = vld [vmem:[#allocation8 + $0xdb0] sm:$0xf0] }
 0x4a4   :  { %7676 = vmatpush.bf16.msra.mxu1 %v10363_v49  ;;  %7599 = vmatpush.bf16.msra.mxu3 %v10839_v38  ;;  %v11803_v40 = vor.u32 %v13046_v30, %v11800_v31  ;;  %v12910_v35 = vld [vmem:[#allocation8 + $0x954] sm:$0xf]  ;;  %v7458_v38 = vpop.f32.mrf.mxu0  ;;  %v7484_v30 = vpop.f32.mrf.mxu2 }
 0x4a5   :  { %v11256_v36 = vld [vmem:[#allocation8 + $0x970] sm:$0xf0]  ;;  %v7459_v48 = vadd.f32 %v7458_v38, %v4564_v56 }
 0x4a6   :  { %7689 = vmatpush.bf16.msra.mxu2 %v10619_v1  ;;  %7664 = vmatpush.bf16.msra.mxu0 %v10075_v44  ;;  %v12974_v19 = vld [vmem:[#allocation8 + $0xb54] sm:$0xf]  ;;  %v11259_v43 = vor.u32 %v12910_v35, %v11256_v36  ;;  %v11894_v35 = vld [vmem:[#allocation8 + $0xe50] sm:$0xf] }
 0x4a7   :  { %7600 = vmatmul.bf16.vlgmr.msra.gmra.mxu3 %v13495_v59  ;;  %v11512_v15 = vld [vmem:[#allocation8 + $0xb70] sm:$0xf0]  ;;  %v13074_v36 = vld [vmem:[#allocation8 + $0xe6c] sm:$0xf0] }
 0x4a8   :  { %7644 = vmatpush.bf16.msrb.mxu3 %v12087_v5  ;;  %7677 = vmatpush.bf16.msra.mxu1 %v10331_v50  ;;  %v13038_v4 = vld [vmem:[#allocation8 + $0xd54] sm:$0xf]  ;;  %v11515_v55 = vor.u32 %v12974_v19, %v11512_v15  ;;  %v7471_v5 = vpop.f32.mrf.mxu1  ;;  %v13619_v50 = vpop.f32.mrf.mxu3 }
 0x4a9   :  { %7665 = vmatmul.bf16.vlgmr.msra.gmra.mxu0 %v13489_v12  ;;  %v11768_v42 = vld [vmem:[#allocation8 + $0xd70] sm:$0xf0]  ;;  %v7472_v17 = vadd.f32 %v7471_v5, %v7459_v48 }
 0x4aa   :  { %7690 = vmatpush.bf16.msra.mxu2 %v10587_v25  ;;  %7709 = vmatpush.bf16.msrb.mxu0 %v11323_v22  ;;  %v11771_v13 = vor.u32 %v13038_v4, %v11768_v42  ;;  %v12902_v46 = vld [vmem:[#allocation8 + $0x914] sm:$0xf]  ;;  %v11926_v22 = vld [vmem:[#allocation8 + $0xe90] sm:$0xf] }
 0x4ab   :  { %7678 = vmatmul.bf16.vlgmr.msra.gmra.mxu1 %v13491_v14  ;;  %v11224_v49 = vld [vmem:[#allocation8 + $0x930] sm:$0xf0] }
 0x4ac   :  { %7722 = vmatpush.bf16.msrb.mxu1 %v11579_v11  ;;  %7645 = vmatpush.bf16.msrb.mxu3 %v12055_v63  ;;  %v12966_v1 = vld [vmem:[#allocation8 + $0xb14] sm:$0xf]  ;;  %v11227_v45 = vor.u32 %v12902_v46, %v11224_v49  ;;  %v13082_v11 = vld [vmem:[#allocation8 + $0xeac] sm:$0xf0]  ;;  %v7486_v5 = vpop.f32.mrf.mxu2 }
 0x4ad   :  { %7691 = vmatmul.bf16.vlgmr.msra.gmra.mxu2 %v13493_v52  ;;  %v11480_v58 = vld [vmem:[#allocation8 + $0xb30] sm:$0xf0]  ;;  %v11927_v31 = vor.u32 %v13082_v11, %v11926_v22  ;;  %v11862_v49 = vld [vmem:[#allocation8 + $0xe10] sm:$0xf]  ;;  %v12803_v22 = vld [vmem:[#allocation8 + $0x5f4] sm:$0xf0] }
 0x4ae   :  { %7735 = vmatpush.bf16.msrb.mxu2 %v11835_v23  ;;  %7710 = vmatpush.bf16.msrb.mxu0 %v11291_v8  ;;  %v13030_v60 = vld [vmem:[#allocation8 + $0xd14] sm:$0xf]  ;;  %v11483_v27 = vor.u32 %v12966_v1, %v11480_v58  ;;  %v13066_v1 = vld [vmem:[#allocation8 + $0xe2c] sm:$0xf0]  ;;  %v12779_v5 = vld [vmem:[#allocation8 + $0x534] sm:$0xf0] }
 0x4af   :  { %v11736_v62 = vld [vmem:[#allocation8 + $0xd30] sm:$0xf0] }
 0x4b0   :  { %7723 = vmatpush.bf16.msrb.mxu1 %v11547_v47  ;;  %7646 = vmatpush.bf16.msrb.mxu3 %v12023_v29  ;;  %v11739_v9 = vor.u32 %v13030_v60, %v11736_v62  ;;  %v12894_v10 = vld [vmem:[#allocation8 + $0x8d4] sm:$0xf]  ;;  %v13621_v47 = vadd.f32 %v7484_v30, %v7472_v17  ;;  %v7473_v19 = vpop.f32.mrf.mxu1  ;;  %v7395_v56 = vpop.f32.mrf.mxu3  ;;  %v12675_v17 = vld [vmem:[#allocation8 + $0x1f4] sm:$0xf0] }
 0x4b1   :  { %v11192_v44 = vld [vmem:[#allocation8 + $0x8f0] sm:$0xf0]  ;;  %v12723_v56 = vld [vmem:[#allocation8 + $0x374] sm:$0xf0] }
 0x4b2   :  { %7736 = vmatpush.bf16.msrb.mxu2 %v11803_v40  ;;  %7711 = vmatpush.bf16.msrb.mxu0 %v11259_v43  ;;  %v12958_v16 = vld [vmem:[#allocation8 + $0xad4] sm:$0xf]  ;;  %v11195_v23 = vor.u32 %v12894_v10, %v11192_v44  ;;  %v7460_v40 = vpop.f32.mrf.mxu0  ;;  %v11895_v43 = vor.u32 %v13074_v36, %v11894_v35  ;;  %v10782_v35 = vld [vmem:[#allocation8 + $0x598] sm:$0xf] }
 0x4b3   :  { %v11448_v61 = vld [vmem:[#allocation8 + $0xaf0] sm:$0xf0]  ;;  %v12731_v40 = vld [vmem:[#allocation8 + $0x3b4] sm:$0xf0] }
 0x4b4   :  { %7724 = vmatpush.bf16.msrb.mxu1 %v11515_v55  ;;  %7647 = vmatpush.bf16.msrb.mxu3 %v11991_v57  ;;  %v13022_v6 = vld [vmem:[#allocation8 + $0xcd4] sm:$0xf]  ;;  %v11451_v24 = vor.u32 %v12958_v16, %v11448_v61  ;;  %v10302_v16 = vld [vmem:[#allocation8 + $0x1d8] sm:$0xf] }
 0x4b5   :  { %v11704_v25 = vld [vmem:[#allocation8 + $0xcf0] sm:$0xf0]  ;;  %v12795_v36 = vld [vmem:[#allocation8 + $0x5b4] sm:$0xf0] }
 0x4b6   :  { %7737 = vmatpush.bf16.msrb.mxu2 %v11771_v13  ;;  %7712 = vmatpush.bf16.msrb.mxu0 %v11227_v45  ;;  %v11707_v2 = vor.u32 %v13022_v6, %v11704_v25  ;;  %v12886_v26 = vld [vmem:[#allocation8 + $0x894] sm:$0xf]  ;;  %v11863_v45 = vor.u32 %v13066_v1, %v11862_v49  ;;  %v12739_v6 = vld [vmem:[#allocation8 + $0x3f4] sm:$0xf0] }
 0x4b7   :  { %v11160_v63 = vld [vmem:[#allocation8 + $0x8b0] sm:$0xf0]  ;;  %v10814_v25 = vld [vmem:[#allocation8 + $0x5d8] sm:$0xf] }
 0x4b8   :  { %7725 = vmatpush.bf16.msrb.mxu1 %v11483_v27  ;;  %v12950_v28 = vld [vmem:[#allocation8 + $0xa94] sm:$0xf]  ;;  %7648 = vmatpush.bf16.msrb.mxu3 %v11959_v18  ;;  %v11163_v29 = vor.u32 %v12886_v26, %v11160_v63  ;;  %v10558_v18 = vld [vmem:[#allocation8 + $0x3d8] sm:$0xf]  ;;  %v10303_v26 = vor.u32 %v12675_v17, %v10302_v16  ;;  %v7394_v63 = vadd.f32 %v13619_v50, %v13598_v21 }
 0x4b9   :  { %v11416_v32 = vld [vmem:[#allocation8 + $0xab0] sm:$0xf0]  ;;  %v10815_v30 = vor.u32 %v12803_v22, %v10814_v25 }
 0x4ba   :  { %7738 = vmatpush.bf16.msrb.mxu2 %v11739_v9  ;;  %v13014_v39 = vld [vmem:[#allocation8 + $0xc94] sm:$0xf]  ;;  %7713 = vmatpush.bf16.msrb.mxu0 %v11195_v23  ;;  %v11419_v15 = vor.u32 %v12950_v28, %v11416_v32  ;;  %v10559_v28 = vor.u32 %v12739_v6, %v10558_v18  ;;  %v12667_v32 = vld [vmem:[#allocation8 + $0x1b4] sm:$0xf0]  ;;  %v7407_v21 = vadd.f32 %v13607_v37, %v7394_v63  ;;  %v7445_v22 = vpop.f32.mrf.mxu3 }
 0x4bb   :  { %v11672_v8 = vld [vmem:[#allocation8 + $0xcb0] sm:$0xf0]  ;;  %v10430_v6 = vld [vmem:[#allocation8 + $0x2d8] sm:$0xf] }
 0x4bc   :  { %7726 = vmatpush.bf16.msrb.mxu1 %v11451_v24  ;;  %v11675_v4 = vor.u32 %v13014_v39, %v11672_v8  ;;  %v12878_v42 = vld [vmem:[#allocation8 + $0x854] sm:$0xf]  ;;  %7649 = vmatpush.bf16.msrb.mxu3 %v11927_v31  ;;  %v10270_v31 = vld [vmem:[#allocation8 + $0x198] sm:$0xf] }
 0x4bd   :  { %v11128_v7 = vld [vmem:[#allocation8 + $0x870] sm:$0xf0]  ;;  %v10526_v39 = vld [vmem:[#allocation8 + $0x398] sm:$0xf] }
 0x4be   :  { %7739 = vmatpush.bf16.msrb.mxu2 %v11707_v2  ;;  %v12942_v34 = vld [vmem:[#allocation8 + $0xa54] sm:$0xf]  ;;  %7714 = vmatpush.bf16.msrb.mxu0 %v11163_v29  ;;  %v11131_v57 = vor.u32 %v12878_v42, %v11128_v7  ;;  %v10527_v50 = vor.u32 %v12731_v40, %v10526_v39  ;;  %v10238_v42 = vld [vmem:[#allocation8 + $0x158] sm:$0xf] }
 0x4bf   :  { %v11384_v55 = vld [vmem:[#allocation8 + $0xa70] sm:$0xf0]  ;;  %v12659_v7 = vld [vmem:[#allocation8 + $0x174] sm:$0xf0] }
 0x4c0   :  { %v13006_v13 = vld [vmem:[#allocation8 + $0xc54] sm:$0xf]  ;;  %7727 = vmatpush.bf16.msrb.mxu1 %v11419_v15  ;;  %v11387_v62 = vor.u32 %v12942_v34, %v11384_v55  ;;  %7650 = vmatpush.bf16.msrb.mxu3 %v11895_v43  ;;  %v10271_v15 = vor.u32 %v12667_v32, %v10270_v31  ;;  %v10494_v34 = vld [vmem:[#allocation8 + $0x358] sm:$0xf]  ;;  %v10239_v49 = vor.u32 %v12659_v7, %v10238_v42 }
 0x4c1   :  { %v11640_v46 = vld [vmem:[#allocation8 + $0xc70] sm:$0xf0]  ;;  %v10750_v55 = vld [vmem:[#allocation8 + $0x558] sm:$0xf]  ;;  %v10495_v1 = vor.u32 %v12723_v56, %v10494_v34 }
 0x4c2   :  { %v12862_v58 = vld [vmem:[#allocation8 + $0x7d4] sm:$0xf]  ;;  %7740 = vmatpush.bf16.msrb.mxu2 %v11675_v4  ;;  %v11643_v38 = vor.u32 %v13006_v13, %v11640_v46  ;;  %7715 = vmatpush.bf16.msrb.mxu0 %v11131_v57  ;;  %v10783_v4 = vor.u32 %v12795_v36, %v10782_v35  ;;  %v12787_v13 = vld [vmem:[#allocation8 + $0x574] sm:$0xf0] }
 0x4c3   :  { %v11064_v60 = vld [vmem:[#allocation8 + $0x7f0] sm:$0xf0]  ;;  %v10751_v57 = vor.u32 %v12787_v13, %v10750_v55  ;;  %v10142_v39 = vld [vmem:[#allocation8 + $0x98] sm:$0xf] }
 0x4c4   :  { %v12870_v0 = vld [vmem:[#allocation8 + $0x814] sm:$0xf]  ;;  %v11067_v44 = vor.u32 %v12862_v58, %v11064_v60  ;;  %7728 = vmatpush.bf16.msrb.mxu1 %v11387_v62  ;;  %7651 = vmatpush.bf16.msrb.mxu3 %v11863_v45  ;;  %v10206_v58 = vld [vmem:[#allocation8 + $0x118] sm:$0xf]  ;;  %v13631_v45 = vpop.f32.mrf.mxu0 }
 0x4c5   :  { %v11096_v33 = vld [vmem:[#allocation8 + $0x830] sm:$0xf0]  ;;  %v12651_v60 = vld [vmem:[#allocation8 + $0x134] sm:$0xf0] }
 0x4c6   :  { %v12934_v48 = vld [vmem:[#allocation8 + $0xa14] sm:$0xf]  ;;  %v11099_v61 = vor.u32 %v12870_v0, %v11096_v33  ;;  %7741 = vmatpush.bf16.msrb.mxu2 %v11643_v38  ;;  %v10462_v62 = vld [vmem:[#allocation8 + $0x318] sm:$0xf]  ;;  %v7420_v38 = vadd.f32 %v13609_v41, %v7407_v21 }
 0x4c7   :  { %v11352_v27 = vld [vmem:[#allocation8 + $0xa30] sm:$0xf0]  ;;  %7652 = vmatmul.bf16.vlgmr.msrb.gmra.mxu3 %v13551_v54  ;;  %v12715_v33 = vld [vmem:[#allocation8 + $0x334] sm:$0xf0]  ;;  %v13636_v35 = vpop.f32.mrf.mxu2 }
 0x4c8   :  { %v12998_v9 = vld [vmem:[#allocation8 + $0xc14] sm:$0xf]  ;;  %v11355_v11 = vor.u32 %v12934_v48, %v11352_v27  ;;  %7696 = vmatpush.bf16.msra.mxu3 %v11067_v44  ;;  %7716 = vmatpush.bf16.msrb.mxu0 %v11099_v61  ;;  %v10718_v48 = vld [vmem:[#allocation8 + $0x518] sm:$0xf]  ;;  %v10207_v44 = vor.u32 %v12651_v60, %v10206_v58  ;;  %v10463_v16 = vor.u32 %v12715_v33, %v10462_v62 }
 0x4c9   :  { %v11608_v10 = vld [vmem:[#allocation8 + $0xc30] sm:$0xf0]  ;;  %v10719_v17 = vor.u32 %v12779_v5, %v10718_v48  ;;  %v7433_v18 = vadd.f32 %v13612_v3, %v7420_v38  ;;  %v10174_v41 = vld [vmem:[#allocation8 + $0xd8] sm:$0xf] }
 0x4ca   :  { %v12854_v23 = vld [vmem:[#allocation8 + $0x794] sm:$0xf]  ;;  %v11611_v2 = vor.u32 %v12998_v9, %v11608_v10  ;;  %7729 = vmatpush.bf16.msrb.mxu1 %v11355_v11  ;;  %v13633_v10 = vpop.f32.mrf.mxu1  ;;  %v12643_v61 = vld [vmem:[#allocation8 + $0xf4] sm:$0xf0] }
 0x4cb   :  { %v11032_v24 = vld [vmem:[#allocation8 + $0x7b0] sm:$0xf0]  ;;  %7717 = vmatmul.bf16.vlgmr.msrb.gmra.mxu0 %v13521_v51  ;;  %v12707_v11 = vld [vmem:[#allocation8 + $0x2f4] sm:$0xf0] }
 0x4cc   :  { %v11035_v8 = vor.u32 %v12854_v23, %v11032_v24  ;;  %v12846_v19 = vld [vmem:[#allocation8 + $0x754] sm:$0xf]  ;;  %7742 = vmatpush.bf16.msrb.mxu2 %v11611_v2  ;;  %7761 = vmatpush.bf16.msra.mxu0 %v10303_v26  ;;  %v10686_v23 = vld [vmem:[#allocation8 + $0x4d8] sm:$0xf]  ;;  %v7446_v2 = vadd.f32 %v7445_v22, %v7433_v18  ;;  %v10431_v32 = vor.u32 %v12707_v11, %v10430_v6  ;;  %v7512_v21 = vpop.f32.mrf.mxu0 }
 0x4cd   :  { %v11000_v29 = vld [vmem:[#allocation8 + $0x770] sm:$0xf0]  ;;  %7730 = vmatmul.bf16.vlgmr.msrb.gmra.mxu1 %v13523_v53  ;;  %v12771_v24 = vld [vmem:[#allocation8 + $0x4f4] sm:$0xf0] }
 0x4ce   :  { %7774 = vmatpush.bf16.msra.mxu1 %v10559_v28  ;;  %7697 = vmatpush.bf16.msra.mxu3 %v11035_v8  ;;  %v11003_v43 = vor.u32 %v12846_v19, %v11000_v29  ;;  %v12838_v46 = vld [vmem:[#allocation8 + $0x714] sm:$0xf]  ;;  %v10175_v28 = vor.u32 %v12643_v61, %v10174_v41  ;;  %v10687_v3 = vor.u32 %v12771_v24, %v10686_v23  ;;  %v12635_v8 = vld [vmem:[#allocation8 + $0xb4] sm:$0xf0] }
 0x4cf   :  { %7743 = vmatmul.bf16.vlgmr.msrb.gmra.mxu2 %v13529_v20  ;;  %v10968_v37 = vld [vmem:[#allocation8 + $0x730] sm:$0xf0]  ;;  %v10398_v40 = vld [vmem:[#allocation8 + $0x298] sm:$0xf]  ;;  %v10143_v7 = vor.u32 %v12635_v8, %v10142_v39 }
 0x4d0   :  { %7787 = vmatpush.bf16.msra.mxu2 %v10815_v30  ;;  %7762 = vmatpush.bf16.msra.mxu0 %v10271_v15  ;;  %v10971_v0 = vor.u32 %v12838_v46, %v10968_v37  ;;  %v12830_v27 = vld [vmem:[#allocation8 + $0x6d4] sm:$0xf]  ;;  %v13138_v30 = vld [vmem:[#allocation2 + $0x10] sm:$0xff]  ;;  %v12699_v19 = vld [vmem:[#allocation8 + $0x2b4] sm:$0xf0]  ;;  %v7447_v37 = vpop.f32.mrf.mxu3 }
 0x4d1   :  { %v10936_v9 = vld [vmem:[#allocation8 + $0x6f0] sm:$0xf0]  ;;  %v7971_v31 = vadd.f32 %v13138_v30, %v7446_v2  ;;  %v10654_v29 = vld [vmem:[#allocation8 + $0x498] sm:$0xf]  ;;  %v10399_v34 = vor.u32 %v12699_v19, %v10398_v40 }
 0x4d2   :  { %7775 = vmatpush.bf16.msra.mxu1 %v10527_v50  ;;  %7698 = vmatpush.bf16.msra.mxu3 %v11003_v43  ;;  %v10939_v25 = vor.u32 %v12830_v27, %v10936_v9  ;;  %v12822_v26 = vld [vmem:[#allocation8 + $0x694] sm:$0xf]  ;;  %v12763_v15 = vld [vmem:[#allocation8 + $0x4b4] sm:$0xf0]  ;;  %v7525_v42 = vpop.f32.mrf.mxu1 }
 0x4d3   :  { %v10904_v63 = vld [vmem:[#allocation8 + $0x6b0] sm:$0xf0]  ;;  %7979 = vst [vmem:[#allocation11 + $0x10] sm:$0xff] %v7971_v31  ;;  %v10655_v43 = vor.u32 %v12763_v15, %v10654_v29  ;;  %v10110_v56 = vld [vmem:[#allocation8 + $0x58] sm:$0xf] }
 0x4d4   :  { %7788 = vmatpush.bf16.msra.mxu2 %v10783_v4  ;;  %7763 = vmatpush.bf16.msra.mxu0 %v10239_v49  ;;  %v10907_v36 = vor.u32 %v12822_v26, %v10904_v63  ;;  %v12814_v50 = vld [vmem:[#allocation8 + $0x654] sm:$0xf]  ;;  %v12627_v55 = vld [vmem:[#allocation8 + $0x74] sm:$0xf0] }
 0x4d5   :  { %v10872_v4 = vld [vmem:[#allocation8 + $0x670] sm:$0xf0]  ;;  %v10366_v13 = vld [vmem:[#allocation8 + $0x258] sm:$0xf]  ;;  %v10111_v62 = vor.u32 %v12627_v55, %v10110_v56 }
 0x4d6   :  { %7776 = vmatpush.bf16.msra.mxu1 %v10495_v1  ;;  %7699 = vmatpush.bf16.msra.mxu3 %v10971_v0  ;;  %v10875_v46 = vor.u32 %v12814_v50, %v10872_v4  ;;  %v12691_v49 = vld [vmem:[#allocation8 + $0x274] sm:$0xf0]  ;;  %v12806_v58 = vld [vmem:[#allocation8 + $0x614] sm:$0xf] }
 0x4d7   :  { %v10622_v1 = vld [vmem:[#allocation8 + $0x458] sm:$0xf]  ;;  %v10840_v60 = vld [vmem:[#allocation8 + $0x630] sm:$0xf0]  ;;  %v10367_v33 = vor.u32 %v12691_v49, %v10366_v13 }
 0x4d8   :  { %7789 = vmatpush.bf16.msra.mxu2 %v10751_v57  ;;  %7764 = vmatpush.bf16.msra.mxu0 %v10207_v44  ;;  %v12755_v57 = vld [vmem:[#allocation8 + $0x474] sm:$0xf0]  ;;  %v13118_v38 = vld [vmem:[#allocation8 + $0xfd4] sm:$0xf]  ;;  %v7538_v44 = vpop.f32.mrf.mxu2 }
 0x4d9   :  { %v12088_v0 = vld [vmem:[#allocation8 + $0xff0] sm:$0xf0]  ;;  %v10623_v48 = vor.u32 %v12755_v57, %v10622_v1  ;;  %v10078_v5 = vld [vmem:[#allocation8 + $0x18] sm:$0xf] }
 0x4da   :  { %7777 = vmatpush.bf16.msra.mxu1 %v10463_v16  ;;  %7700 = vmatpush.bf16.msra.mxu3 %v10939_v25  ;;  %v12619_v27 = vld [vmem:[#allocation8 + $0x34] sm:$0xf0]  ;;  %v10843_v16 = vor.u32 %v12806_v58, %v10840_v60  ;;  %v12091_v61 = vor.u32 %v13118_v38, %v12088_v0  ;;  %v13110_v63 = vld [vmem:[#allocation8 + $0xf94] sm:$0xf]  ;;  %v13642_v58 = vld [vmem:[#allocation10] sm:$0xff] }
 0x4db   :  { %v10334_v9 = vld [vmem:[#allocation8 + $0x218] sm:$0xf]  ;;  %v10079_v11 = vor.u32 %v12619_v27, %v10078_v5  ;;  %v13102_v21 = vld [vmem:[#allocation8 + $0xf54] sm:$0xf]  ;;  %v4565_v60 = vperm.slane %v13642_v58, 4 }
 0x4dc   :  { %7790 = vmatpush.bf16.msra.mxu2 %v10719_v17  ;;  %7765 = vmatpush.bf16.msra.mxu0 %v10175_v28  ;;  %v12683_v17 = vld [vmem:[#allocation8 + $0x234] sm:$0xf0]  ;;  %v12056_v28 = vld [vmem:[#allocation8 + $0xfb0] sm:$0xf0] }
 0x4dd   :  { %v10590_v18 = vld [vmem:[#allocation8 + $0x418] sm:$0xf]  ;;  %v10335_v26 = vor.u32 %v12683_v17, %v10334_v9  ;;  %v12024_v50 = vld [vmem:[#allocation8 + $0xf70] sm:$0xf0] }
 0x4de   :  { %7778 = vmatpush.bf16.msra.mxu1 %v10431_v32  ;;  %7701 = vmatpush.bf16.msra.mxu3 %v10907_v36  ;;  %v12747_v41 = vld [vmem:[#allocation8 + $0x434] sm:$0xf0]  ;;  %v12059_v36 = vor.u32 %v13110_v63, %v12056_v28  ;;  %v12027_v55 = vor.u32 %v13102_v21, %v12024_v50  ;;  %v13094_v49 = vld [vmem:[#allocation8 + $0xf14] sm:$0xf] }
 0x4df   :  { %v11326_v6 = vld [vmem:[#allocation8 + $0x9d8] sm:$0xf]  ;;  %v10591_v30 = vor.u32 %v12747_v41, %v10590_v18  ;;  %v11992_v1 = vld [vmem:[#allocation8 + $0xf30] sm:$0xf0] }
 0x4e0   :  { %7791 = vmatpush.bf16.msra.mxu2 %v10687_v3  ;;  %7766 = vmatpush.bf16.msra.mxu0 %v10143_v7  ;;  %v12931_v25 = vld [vmem:[#allocation8 + $0x9f4] sm:$0xf0]  ;;  %v11995_v5 = vor.u32 %v13094_v49, %v11992_v1  ;;  %v13086_v17 = vld [vmem:[#allocation8 + $0xed4] sm:$0xf] }
 0x4e1   :  { %v11582_v22 = vld [vmem:[#allocation8 + $0xbd8] sm:$0xf]  ;;  %v11327_v31 = vor.u32 %v12931_v25, %v11326_v6  ;;  %v11960_v18 = vld [vmem:[#allocation8 + $0xef0] sm:$0xf0]  ;;  %v13645_v63 = vpop.f32.mrf.mxu3 }
 0x4e2   :  { %7779 = vmatpush.bf16.msra.mxu1 %v10399_v34  ;;  %7702 = vmatpush.bf16.msra.mxu3 %v10875_v46  ;;  %v12995_v23 = vld [vmem:[#allocation8 + $0xbf4] sm:$0xf0] }
 0x4e3   :  { %v11838_v24 = vld [vmem:[#allocation8 + $0xdd8] sm:$0xf]  ;;  %v11583_v32 = vor.u32 %v12995_v23, %v11582_v22 }
 0x4e4   :  { %7792 = vmatpush.bf16.msra.mxu2 %v10655_v43  ;;  %7767 = vmatpush.bf16.msra.mxu0 %v10111_v62  ;;  %v13059_v2 = vld [vmem:[#allocation8 + $0xdf4] sm:$0xf0] }
 0x4e5   :  { %v11839_v3 = vor.u32 %v13059_v2, %v11838_v24  ;;  %v11294_v39 = vld [vmem:[#allocation8 + $0x998] sm:$0xf] }
 0x4e6   :  { %7780 = vmatpush.bf16.msra.mxu1 %v10367_v33  ;;  %7703 = vmatpush.bf16.msra.mxu3 %v10843_v16  ;;  %v12923_v8 = vld [vmem:[#allocation8 + $0x9b4] sm:$0xf0]  ;;  %v7562_v16 = vpop.f32.mrf.mxu0 }
 0x4e7   :  { %v11550_v40 = vld [vmem:[#allocation8 + $0xb98] sm:$0xf]  ;;  %v11295_v4 = vor.u32 %v12923_v8, %v11294_v39  ;;  %v7563_v41 = vadd.f32 %v7562_v16, %v4565_v60 }
 0x4e8   :  { %7793 = vmatpush.bf16.msra.mxu2 %v10623_v48  ;;  %7768 = vmatpush.bf16.msra.mxu0 %v10079_v11  ;;  %v12987_v19 = vld [vmem:[#allocation8 + $0xbb4] sm:$0xf0] }
 0x4e9   :  { %v11806_v29 = vld [vmem:[#allocation8 + $0xd98] sm:$0xf]  ;;  %7704 = vmatmul.bf16.vlgmr.msra.gmra.mxu3 %v13495_v59  ;;  %v11551_v42 = vor.u32 %v12987_v19, %v11550_v40 }
 0x4ea   :  { %7748 = vmatpush.bf16.msrb.mxu3 %v12091_v61  ;;  %v13051_v15 = vld [vmem:[#allocation8 + $0xdb4] sm:$0xf0]  ;;  %7781 = vmatpush.bf16.msra.mxu1 %v10335_v26  ;;  %v7575_v61 = vpop.f32.mrf.mxu1  ;;  %v11963_v26 = vor.u32 %v13086_v17, %v11960_v18 }
 0x4eb   :  { %v11807_v7 = vor.u32 %v13051_v15, %v11806_v29  ;;  %v11262_v34 = vld [vmem:[#allocation8 + $0x958] sm:$0xf]  ;;  %7769 = vmatmul.bf16.vlgmr.msra.gmra.mxu0 %v13489_v12  ;;  %v7576_v2 = vadd.f32 %v7575_v61, %v7563_v41  ;;  %v7588_v15 = vpop.f32.mrf.mxu2 }
 0x4ec   :  { %7794 = vmatpush.bf16.msra.mxu2 %v10591_v30  ;;  %7813 = vmatpush.bf16.msrb.mxu0 %v11327_v31  ;;  %v12915_v43 = vld [vmem:[#allocation8 + $0x974] sm:$0xf0] }
 0x4ed   :  { %v11518_v56 = vld [vmem:[#allocation8 + $0xb58] sm:$0xf]  ;;  %7782 = vmatmul.bf16.vlgmr.msra.gmra.mxu1 %v13491_v14  ;;  %v11263_v57 = vor.u32 %v12915_v43, %v11262_v34  ;;  %v13070_v43 = vld [vmem:[#allocation8 + $0xe54] sm:$0xf] }
 0x4ee   :  { %7826 = vmatpush.bf16.msrb.mxu1 %v11583_v32  ;;  %7749 = vmatpush.bf16.msrb.mxu3 %v12059_v36  ;;  %v12979_v13 = vld [vmem:[#allocation8 + $0xb74] sm:$0xf0]  ;;  %v13078_v32 = vld [vmem:[#allocation8 + $0xe94] sm:$0xf]  ;;  %v7564_v34 = vpop.f32.mrf.mxu0 }
 0x4ef   :  { %v11774_v46 = vld [vmem:[#allocation8 + $0xd58] sm:$0xf]  ;;  %7795 = vmatmul.bf16.vlgmr.msra.gmra.mxu2 %v13493_v52  ;;  %v11519_v62 = vor.u32 %v12979_v13, %v11518_v56  ;;  %v11896_v56 = vld [vmem:[#allocation8 + $0xe70] sm:$0xf0] }
 0x4f0   :  { %7839 = vmatpush.bf16.msrb.mxu2 %v11839_v3  ;;  %v13043_v37 = vld [vmem:[#allocation8 + $0xd74] sm:$0xf0]  ;;  %7814 = vmatpush.bf16.msrb.mxu0 %v11295_v4  ;;  %v11928_v3 = vld [vmem:[#allocation8 + $0xeb0] sm:$0xf0]  ;;  %v11899_v60 = vor.u32 %v13070_v43, %v11896_v56  ;;  %v10528_v43 = vld [vmem:[#allocation8 + $0x3b8] sm:$0xf0] }
 0x4f1   :  { %v11775_v38 = vor.u32 %v13043_v37, %v11774_v46  ;;  %v11230_v0 = vld [vmem:[#allocation8 + $0x918] sm:$0xf]  ;;  %v11931_v21 = vor.u32 %v13078_v32, %v11928_v3  ;;  %v12799_v32 = vld [vmem:[#allocation8 + $0x5dc] sm:$0xf] }
 0x4f2   :  { %7827 = vmatpush.bf16.msrb.mxu1 %v11551_v42  ;;  %v12907_v33 = vld [vmem:[#allocation8 + $0x934] sm:$0xf0]  ;;  %7750 = vmatpush.bf16.msrb.mxu3 %v12027_v55  ;;  %v7577_v55 = vpop.f32.mrf.mxu1  ;;  %v10816_v3 = vld [vmem:[#allocation8 + $0x5f8] sm:$0xf0] }
 0x4f3   :  { %v11486_v48 = vld [vmem:[#allocation8 + $0xb18] sm:$0xf]  ;;  %v11231_v6 = vor.u32 %v12907_v33, %v11230_v0  ;;  %v12791_v56 = vld [vmem:[#allocation8 + $0x59c] sm:$0xf] }
 0x4f4   :  { %7840 = vmatpush.bf16.msrb.mxu2 %v11807_v7  ;;  %v12971_v27 = vld [vmem:[#allocation8 + $0xb34] sm:$0xf0]  ;;  %7815 = vmatpush.bf16.msrb.mxu0 %v11263_v57  ;;  %v13647_v7 = vadd.f32 %v7588_v15, %v7576_v2  ;;  %v12671_v2 = vld [vmem:[#allocation8 + $0x1dc] sm:$0xf] }
 0x4f5   :  { %v11742_v9 = vld [vmem:[#allocation8 + $0xd18] sm:$0xf]  ;;  %v11487_v25 = vor.u32 %v12971_v27, %v11486_v48  ;;  %v13062_v48 = vld [vmem:[#allocation8 + $0xe14] sm:$0xf]  ;;  %v10784_v55 = vld [vmem:[#allocation8 + $0x5b8] sm:$0xf0] }
 0x4f6   :  { %v13035_v44 = vld [vmem:[#allocation8 + $0xd34] sm:$0xf0]  ;;  %7828 = vmatpush.bf16.msrb.mxu1 %v11519_v62  ;;  %7751 = vmatpush.bf16.msrb.mxu3 %v11995_v5  ;;  %v7499_v62 = vpop.f32.mrf.mxu3  ;;  %v11864_v5 = vld [vmem:[#allocation8 + $0xe30] sm:$0xf0] }
 0x4f7   :  { %v11743_v22 = vor.u32 %v13035_v44, %v11742_v9  ;;  %v11198_v11 = vld [vmem:[#allocation8 + $0x8d8] sm:$0xf] }
 0x4f8   :  { %7841 = vmatpush.bf16.msrb.mxu2 %v11775_v38  ;;  %v12899_v23 = vld [vmem:[#allocation8 + $0x8f4] sm:$0xf0]  ;;  %7816 = vmatpush.bf16.msrb.mxu0 %v11231_v6  ;;  %v7590_v6 = vpop.f32.mrf.mxu2 }
 0x4f9   :  { %v11454_v24 = vld [vmem:[#allocation8 + $0xad8] sm:$0xf]  ;;  %v11199_v39 = vor.u32 %v12899_v23, %v11198_v11  ;;  %v12775_v6 = vld [vmem:[#allocation8 + $0x51c] sm:$0xf] }
 0x4fa   :  { %v12963_v28 = vld [vmem:[#allocation8 + $0xaf4] sm:$0xf0]  ;;  %7829 = vmatpush.bf16.msrb.mxu1 %v11487_v25  ;;  %7752 = vmatpush.bf16.msrb.mxu3 %v11963_v26  ;;  %v11867_v25 = vor.u32 %v13062_v48, %v11864_v5  ;;  %v10304_v26 = vld [vmem:[#allocation8 + $0x1f8] sm:$0xf0] }
 0x4fb   :  { %v11710_v30 = vld [vmem:[#allocation8 + $0xcd8] sm:$0xf]  ;;  %v11455_v8 = vor.u32 %v12963_v28, %v11454_v24  ;;  %v12735_v28 = vld [vmem:[#allocation8 + $0x3dc] sm:$0xf] }
 0x4fc   :  { %v13027_v31 = vld [vmem:[#allocation8 + $0xcf4] sm:$0xf0]  ;;  %7842 = vmatpush.bf16.msrb.mxu2 %v11743_v22  ;;  %7817 = vmatpush.bf16.msrb.mxu0 %v11199_v39 }
 0x4fd   :  { %v11711_v40 = vor.u32 %v13027_v31, %v11710_v30  ;;  %v11166_v36 = vld [vmem:[#allocation8 + $0x898] sm:$0xf]  ;;  %v10560_v31 = vld [vmem:[#allocation8 + $0x3f8] sm:$0xf0] }
 0x4fe   :  { %v12891_v19 = vld [vmem:[#allocation8 + $0x8b4] sm:$0xf0]  ;;  %7830 = vmatpush.bf16.msrb.mxu1 %v11455_v8  ;;  %7753 = vmatpush.bf16.msrb.mxu3 %v11931_v21  ;;  %v10563_v15 = vor.u32 %v12735_v28, %v10560_v31  ;;  %v10819_v21 = vor.u32 %v12799_v32, %v10816_v3  ;;  %v10176_v31 = vld [vmem:[#allocation8 + $0xf8] sm:$0xf0] }
 0x4ff   :  { %v11422_v29 = vld [vmem:[#allocation8 + $0xa98] sm:$0xf]  ;;  %v11167_v13 = vor.u32 %v12891_v19, %v11166_v36  ;;  %v10307_v19 = vor.u32 %v12671_v2, %v10304_v26  ;;  %v12703_v32 = vld [vmem:[#allocation8 + $0x2dc] sm:$0xf] }
 0x500   :  { %v12955_v50 = vld [vmem:[#allocation8 + $0xab4] sm:$0xf0]  ;;  %7843 = vmatpush.bf16.msrb.mxu2 %v11711_v40 }
 0x501   :  { %v11678_v4 = vld [vmem:[#allocation8 + $0xc98] sm:$0xf]  ;;  %v11423_v46 = vor.u32 %v12955_v50, %v11422_v29  ;;  %7818 = vmatpush.bf16.msrb.mxu0 %v11167_v13  ;;  %v7498_v29 = vadd.f32 %v13645_v63, %v13621_v47  ;;  %v12663_v50 = vld [vmem:[#allocation8 + $0x19c] sm:$0xf] }
 0x502   :  { %v13019_v42 = vld [vmem:[#allocation8 + $0xcb4] sm:$0xf0]  ;;  %7754 = vmatpush.bf16.msrb.mxu3 %v11899_v60  ;;  %v12719_v60 = vld [vmem:[#allocation8 + $0x35c] sm:$0xf] }
 0x503   :  { %v11679_v37 = vor.u32 %v13019_v42, %v11678_v4  ;;  %v11134_v49 = vld [vmem:[#allocation8 + $0x858] sm:$0xf]  ;;  %7831 = vmatpush.bf16.msrb.mxu1 %v11423_v46  ;;  %v10272_v4 = vld [vmem:[#allocation8 + $0x1b8] sm:$0xf0]  ;;  %v7511_v47 = vadd.f32 %v13631_v45, %v7498_v29 }
 0x504   :  { %v12883_v1 = vld [vmem:[#allocation8 + $0x874] sm:$0xf0]  ;;  %v12727_v42 = vld [vmem:[#allocation8 + $0x39c] sm:$0xf] }
 0x505   :  { %v11390_v57 = vld [vmem:[#allocation8 + $0xa58] sm:$0xf]  ;;  %v11135_v27 = vor.u32 %v12883_v1, %v11134_v49  ;;  %7844 = vmatpush.bf16.msrb.mxu2 %v11679_v37  ;;  %v10275_v37 = vor.u32 %v12663_v50, %v10272_v4  ;;  %v10531_v63 = vor.u32 %v12727_v42, %v10528_v43  ;;  %v10787_v49 = vor.u32 %v12791_v56, %v10784_v55  ;;  %v12655_v1 = vld [vmem:[#allocation8 + $0x15c] sm:$0xf]  ;;  %v13140_v50 = vld [vmem:[#allocation2 + $0x18] sm:$0xff] }
 0x506   :  { %v12947_v38 = vld [vmem:[#allocation8 + $0xa74] sm:$0xf0]  ;;  %7755 = vmatpush.bf16.msrb.mxu3 %v11867_v25  ;;  %v10720_v25 = vld [vmem:[#allocation8 + $0x538] sm:$0xf0] }
 0x507   :  { %v11646_v0 = vld [vmem:[#allocation8 + $0xc58] sm:$0xf]  ;;  %v11391_v16 = vor.u32 %v12947_v38, %v11390_v57  ;;  %7819 = vmatpush.bf16.msrb.mxu0 %v11135_v27  ;;  %v10240_v57 = vld [vmem:[#allocation8 + $0x178] sm:$0xf0]  ;;  %v10723_v28 = vor.u32 %v12775_v6, %v10720_v25 }
 0x508   :  { %v13011_v33 = vld [vmem:[#allocation8 + $0xc74] sm:$0xf0]  ;;  %v10496_v38 = vld [vmem:[#allocation8 + $0x378] sm:$0xf0]  ;;  %v10243_v5 = vor.u32 %v12655_v1, %v10240_v57 }
 0x509   :  { %v11070_v9 = vld [vmem:[#allocation8 + $0x7d8] sm:$0xf]  ;;  %v11647_v17 = vor.u32 %v13011_v33, %v11646_v0  ;;  %7832 = vmatpush.bf16.msrb.mxu1 %v11391_v16  ;;  %7756 = vmatmul.bf16.vlgmr.msrb.gmra.mxu3 %v13551_v54  ;;  %v12783_v0 = vld [vmem:[#allocation8 + $0x55c] sm:$0xf]  ;;  %v10499_v27 = vor.u32 %v12719_v60, %v10496_v38 }
 0x50a   :  { %v12867_v44 = vld [vmem:[#allocation8 + $0x7f4] sm:$0xf0]  ;;  %v10752_v33 = vld [vmem:[#allocation8 + $0x578] sm:$0xf0] }
 0x50b   :  { %v11102_v18 = vld [vmem:[#allocation8 + $0x818] sm:$0xf]  ;;  %v11071_v24 = vor.u32 %v12867_v44, %v11070_v9  ;;  %7845 = vmatpush.bf16.msrb.mxu2 %v11647_v17  ;;  %v10755_v9 = vor.u32 %v12783_v0, %v10752_v33  ;;  %v12647_v44 = vld [vmem:[#allocation8 + $0x11c] sm:$0xf] }
 0x50c   :  { %v12875_v41 = vld [vmem:[#allocation8 + $0x834] sm:$0xf0]  ;;  %v10208_v16 = vld [vmem:[#allocation8 + $0x138] sm:$0xf0] }
 0x50d   :  { %v11358_v61 = vld [vmem:[#allocation8 + $0xa18] sm:$0xf]  ;;  %v11103_v30 = vor.u32 %v12875_v41, %v11102_v18  ;;  %7800 = vmatpush.bf16.msra.mxu3 %v11071_v24  ;;  %v12711_v17 = vld [vmem:[#allocation8 + $0x31c] sm:$0xf]  ;;  %v7524_v18 = vadd.f32 %v13633_v10, %v7511_v47  ;;  %v13659_v24 = vpop.f32.mrf.mxu1  ;;  %v10211_v2 = vor.u32 %v12647_v44, %v10208_v16 }
 0x50e   :  { %v12939_v22 = vld [vmem:[#allocation8 + $0xa34] sm:$0xf0]  ;;  %v12639_v10 = vld [vmem:[#allocation8 + $0xdc] sm:$0xf] }
 0x50f   :  { %v11614_v11 = vld [vmem:[#allocation8 + $0xc18] sm:$0xf]  ;;  %v11359_v39 = vor.u32 %v12939_v22, %v11358_v61  ;;  %7820 = vmatpush.bf16.msrb.mxu0 %v11103_v30  ;;  %v10464_v61 = vld [vmem:[#allocation8 + $0x338] sm:$0xf0]  ;;  %v13657_v22 = vpop.f32.mrf.mxu0  ;;  %v7537_v30 = vadd.f32 %v13636_v35, %v7524_v18 }
 0x510   :  { %v13003_v23 = vld [vmem:[#allocation8 + $0xc34] sm:$0xf0]  ;;  %v10467_v26 = vor.u32 %v12711_v17, %v10464_v61  ;;  %v10144_v43 = vld [vmem:[#allocation8 + $0xb8] sm:$0xf0]  ;;  %v13662_v55 = vpop.f32.mrf.mxu2 }
 0x511   :  { %v11038_v8 = vld [vmem:[#allocation8 + $0x798] sm:$0xf]  ;;  %v11615_v36 = vor.u32 %v13003_v23, %v11614_v11  ;;  %7833 = vmatpush.bf16.msrb.mxu1 %v11359_v39  ;;  %v7549_v39 = vpop.f32.mrf.mxu3  ;;  %v12695_v56 = vld [vmem:[#allocation8 + $0x29c] sm:$0xf] }
 0x512   :  { %v12859_v40 = vld [vmem:[#allocation8 + $0x7b4] sm:$0xf0]  ;;  %7821 = vmatmul.bf16.vlgmr.msrb.gmra.mxu0 %v13521_v51  ;;  %v10656_v47 = vld [vmem:[#allocation8 + $0x4b8] sm:$0xf0] }
 0x513   :  { %v11039_v34 = vor.u32 %v12859_v40, %v11038_v8  ;;  %v11006_v13 = vld [vmem:[#allocation8 + $0x758] sm:$0xf]  ;;  %7846 = vmatpush.bf16.msrb.mxu2 %v11615_v36  ;;  %7865 = vmatpush.bf16.msra.mxu0 %v10307_v19  ;;  %v10432_v8 = vld [vmem:[#allocation8 + $0x2f8] sm:$0xf0]  ;;  %v7550_v19 = vadd.f32 %v7549_v39, %v7537_v30 }
 0x514   :  { %v12851_v46 = vld [vmem:[#allocation8 + $0x774] sm:$0xf0]  ;;  %7834 = vmatmul.bf16.vlgmr.msrb.gmra.mxu1 %v13523_v53  ;;  %v12767_v40 = vld [vmem:[#allocation8 + $0x4dc] sm:$0xf]  ;;  %v10435_v42 = vor.u32 %v12703_v32, %v10432_v8 }
 0x515   :  { %7878 = vmatpush.bf16.msra.mxu1 %v10563_v15  ;;  %7801 = vmatpush.bf16.msra.mxu3 %v11039_v34  ;;  %v11007_v62 = vor.u32 %v12851_v46, %v11006_v13  ;;  %v10974_v48 = vld [vmem:[#allocation8 + $0x718] sm:$0xf]  ;;  %v10688_v36 = vld [vmem:[#allocation8 + $0x4f8] sm:$0xf0]  ;;  %v7972_v4 = vadd.f32 %v13140_v50, %v7550_v19  ;;  %v7629_v57 = vpop.f32.mrf.mxu1 }
 0x516   :  { %7847 = vmatmul.bf16.vlgmr.msrb.gmra.mxu2 %v13529_v20  ;;  %v12843_v45 = vld [vmem:[#allocation8 + $0x734] sm:$0xf0]  ;;  %v10691_v35 = vor.u32 %v12767_v40, %v10688_v36  ;;  %v12631_v34 = vld [vmem:[#allocation8 + $0x9c] sm:$0xf] }
 0x517   :  { %7891 = vmatpush.bf16.msra.mxu2 %v10819_v21  ;;  %7866 = vmatpush.bf16.msra.mxu0 %v10275_v37  ;;  %v10975_v41 = vor.u32 %v12843_v45, %v10974_v48  ;;  %v10942_v11 = vld [vmem:[#allocation8 + $0x6d8] sm:$0xf]  ;;  %v10179_v21 = vor.u32 %v12639_v10, %v10176_v31  ;;  %v10400_v46 = vld [vmem:[#allocation8 + $0x2b8] sm:$0xf0]  ;;  %7980 = vst [vmem:[#allocation11 + $0x18] sm:$0xff] %v7972_v4 }
 0x518   :  { %v12835_v23 = vld [vmem:[#allocation8 + $0x6f4] sm:$0xf0]  ;;  %v12759_v37 = vld [vmem:[#allocation8 + $0x49c] sm:$0xf]  ;;  %v10147_v60 = vor.u32 %v12631_v34, %v10144_v43 }
 0x519   :  { %7879 = vmatpush.bf16.msra.mxu1 %v10531_v63  ;;  %7802 = vmatpush.bf16.msra.mxu3 %v11007_v62  ;;  %v10943_v3 = vor.u32 %v12835_v23, %v10942_v11  ;;  %v10910_v29 = vld [vmem:[#allocation8 + $0x698] sm:$0xf]  ;;  %v7616_v63 = vpop.f32.mrf.mxu0  ;;  %v10403_v62 = vor.u32 %v12695_v56, %v10400_v46  ;;  %v10659_v38 = vor.u32 %v12759_v37, %v10656_v47  ;;  %v12623_v0 = vld [vmem:[#allocation8 + $0x5c] sm:$0xf] }
 0x51a   :  { %v12827_v15 = vld [vmem:[#allocation8 + $0x6b4] sm:$0xf0]  ;;  %v10112_v33 = vld [vmem:[#allocation8 + $0x78] sm:$0xf0] }
 0x51b   :  { %7892 = vmatpush.bf16.msra.mxu2 %v10787_v49  ;;  %7867 = vmatpush.bf16.msra.mxu0 %v10243_v5  ;;  %v10911_v13 = vor.u32 %v12827_v15, %v10910_v29  ;;  %v10878_v49 = vld [vmem:[#allocation8 + $0x658] sm:$0xf]  ;;  %v12687_v48 = vld [vmem:[#allocation8 + $0x25c] sm:$0xf]  ;;  %v7551_v5 = vpop.f32.mrf.mxu3  ;;  %v10115_v18 = vor.u32 %v12623_v0, %v10112_v33 }
 0x51c   :  { %v12819_v1 = vld [vmem:[#allocation8 + $0x674] sm:$0xf0]  ;;  %v10624_v44 = vld [vmem:[#allocation8 + $0x478] sm:$0xf0] }
 0x51d   :  { %7880 = vmatpush.bf16.msra.mxu1 %v10499_v27  ;;  %7803 = vmatpush.bf16.msra.mxu3 %v10975_v41  ;;  %v10879_v45 = vor.u32 %v12819_v1, %v10878_v49  ;;  %v10368_v27 = vld [vmem:[#allocation8 + $0x278] sm:$0xf0]  ;;  %v10846_v16 = vld [vmem:[#allocation8 + $0x618] sm:$0xf] }
 0x51e   :  { %v12811_v17 = vld [vmem:[#allocation8 + $0x634] sm:$0xf0]  ;;  %v10371_v6 = vor.u32 %v12687_v48, %v10368_v27  ;;  %v12615_v11 = vld [vmem:[#allocation8 + $0x1c] sm:$0xf] }
 0x51f   :  { %7893 = vmatpush.bf16.msra.mxu2 %v10755_v9  ;;  %7868 = vmatpush.bf16.msra.mxu0 %v10211_v2  ;;  %v12751_v9 = vld [vmem:[#allocation8 + $0x45c] sm:$0xf]  ;;  %v12094_v41 = vld [vmem:[#allocation8 + $0xfd8] sm:$0xf] }
 0x520   :  { %v13123_v61 = vld [vmem:[#allocation8 + $0xff4] sm:$0xf0]  ;;  %v10627_v25 = vor.u32 %v12751_v9, %v10624_v44  ;;  %v10080_v23 = vld [vmem:[#allocation8 + $0x38] sm:$0xf0] }
 0x521   :  { %7881 = vmatpush.bf16.msra.mxu1 %v10467_v26  ;;  %7804 = vmatpush.bf16.msra.mxu3 %v10943_v3  ;;  %v12679_v2 = vld [vmem:[#allocation8 + $0x21c] sm:$0xf]  ;;  %v7642_v26 = vpop.f32.mrf.mxu2  ;;  %v12095_v32 = vor.u32 %v13123_v61, %v12094_v41  ;;  %v10083_v40 = vor.u32 %v12615_v11, %v10080_v23  ;;  %v13115_v50 = vld [vmem:[#allocation8 + $0xfb4] sm:$0xf0] }
 0x522   :  { %v10336_v30 = vld [vmem:[#allocation8 + $0x238] sm:$0xf0]  ;;  %v12030_v49 = vld [vmem:[#allocation8 + $0xf58] sm:$0xf] }
 0x523   :  { %7894 = vmatpush.bf16.msra.mxu2 %v10723_v28  ;;  %7869 = vmatpush.bf16.msra.mxu0 %v10179_v21  ;;  %v10847_v28 = vor.u32 %v12811_v17, %v10846_v16  ;;  %v12743_v10 = vld [vmem:[#allocation8 + $0x41c] sm:$0xf]  ;;  %v10339_v15 = vor.u32 %v12679_v2, %v10336_v30  ;;  %v12062_v21 = vld [vmem:[#allocation8 + $0xf98] sm:$0xf]  ;;  %v4566_v17 = vperm.slane %v13642_v58, 5 }
 0x524   :  { %v10592_v31 = vld [vmem:[#allocation8 + $0x438] sm:$0xf0]  ;;  %v12063_v46 = vor.u32 %v13115_v50, %v12062_v21  ;;  %v13107_v1 = vld [vmem:[#allocation8 + $0xf74] sm:$0xf0] }
 0x525   :  { %7882 = vmatpush.bf16.msra.mxu1 %v10435_v42  ;;  %7805 = vmatpush.bf16.msra.mxu3 %v10911_v13  ;;  %v12927_v3 = vld [vmem:[#allocation8 + $0x9dc] sm:$0xf]  ;;  %v10595_v4 = vor.u32 %v12743_v10, %v10592_v31  ;;  %v12031_v48 = vor.u32 %v13107_v1, %v12030_v49  ;;  %v11998_v9 = vld [vmem:[#allocation8 + $0xf18] sm:$0xf] }
 0x526   :  { %v11328_v39 = vld [vmem:[#allocation8 + $0x9f8] sm:$0xf0]  ;;  %v13099_v44 = vld [vmem:[#allocation8 + $0xf34] sm:$0xf0]  ;;  %v7666_v2 = vpop.f32.mrf.mxu0 }
 0x527   :  { %7895 = vmatpush.bf16.msra.mxu2 %v10691_v35  ;;  %7870 = vmatpush.bf16.msra.mxu0 %v10147_v60  ;;  %v12991_v8 = vld [vmem:[#allocation8 + $0xbdc] sm:$0xf]  ;;  %v11331_v42 = vor.u32 %v12927_v3, %v11328_v39  ;;  %v13091_v26 = vld [vmem:[#allocation8 + $0xef4] sm:$0xf0] }
 0x528   :  { %v11584_v36 = vld [vmem:[#allocation8 + $0xbf8] sm:$0xf0]  ;;  %v7679_v30 = vpop.f32.mrf.mxu1  ;;  %v11934_v50 = vld [vmem:[#allocation8 + $0xe98] sm:$0xf] }
 0x529   :  { %7883 = vmatpush.bf16.msra.mxu1 %v10403_v62  ;;  %7806 = vmatpush.bf16.msra.mxu3 %v10879_v45  ;;  %v13055_v19 = vld [vmem:[#allocation8 + $0xddc] sm:$0xf]  ;;  %v11587_v35 = vor.u32 %v12991_v8, %v11584_v36 }
 0x52a   :  { %v11840_v29 = vld [vmem:[#allocation8 + $0xdf8] sm:$0xf0] }
 0x52b   :  { %7896 = vmatpush.bf16.msra.mxu2 %v10659_v38  ;;  %7871 = vmatpush.bf16.msra.mxu0 %v10115_v18  ;;  %v11843_v34 = vor.u32 %v13055_v19, %v11840_v29  ;;  %v12919_v43 = vld [vmem:[#allocation8 + $0x99c] sm:$0xf]  ;;  %v13669_v19 = vpop.f32.mrf.mxu3 }
 0x52c   :  { %v11296_v56 = vld [vmem:[#allocation8 + $0x9b8] sm:$0xf0] }
 0x52d   :  { %7884 = vmatpush.bf16.msra.mxu1 %v10371_v6  ;;  %7807 = vmatpush.bf16.msra.mxu3 %v10847_v28  ;;  %v12983_v13 = vld [vmem:[#allocation8 + $0xb9c] sm:$0xf]  ;;  %v11299_v57 = vor.u32 %v12919_v43, %v11296_v56  ;;  %v7667_v28 = vadd.f32 %v7666_v2, %v4566_v17 }
 0x52e   :  { %v11552_v37 = vld [vmem:[#allocation8 + $0xbb8] sm:$0xf0] }
 0x52f   :  { %7897 = vmatpush.bf16.msra.mxu2 %v10627_v25  ;;  %7872 = vmatpush.bf16.msra.mxu0 %v10083_v40  ;;  %v13047_v47 = vld [vmem:[#allocation8 + $0xd9c] sm:$0xf]  ;;  %v11555_v60 = vor.u32 %v12983_v13, %v11552_v37  ;;  %v11999_v25 = vor.u32 %v13099_v44, %v11998_v9  ;;  %v7680_v40 = vadd.f32 %v7679_v30, %v7667_v28 }
 0x530   :  { %v11808_v63 = vld [vmem:[#allocation8 + $0xdb8] sm:$0xf0]  ;;  %7808 = vmatmul.bf16.vlgmr.msra.gmra.mxu3 %v13495_v59 }
 0x531   :  { %7852 = vmatpush.bf16.msrb.mxu3 %v12095_v32  ;;  %7885 = vmatpush.bf16.msra.mxu1 %v10339_v15  ;;  %v11811_v62 = vor.u32 %v13047_v47, %v11808_v63  ;;  %v12911_v38 = vld [vmem:[#allocation8 + $0x95c] sm:$0xf] }
 0x532   :  { %v11264_v0 = vld [vmem:[#allocation8 + $0x978] sm:$0xf0]  ;;  %7873 = vmatmul.bf16.vlgmr.msra.gmra.mxu0 %v13489_v12 }
 0x533   :  { %7898 = vmatpush.bf16.msra.mxu2 %v10595_v4  ;;  %7917 = vmatpush.bf16.msrb.mxu0 %v11331_v42  ;;  %v12975_v33 = vld [vmem:[#allocation8 + $0xb5c] sm:$0xf]  ;;  %v11267_v16 = vor.u32 %v12911_v38, %v11264_v0  ;;  %v13083_v4 = vld [vmem:[#allocation8 + $0xeb4] sm:$0xf0]  ;;  %v7681_v38 = vpop.f32.mrf.mxu1  ;;  %v7603_v44 = vpop.f32.mrf.mxu3 }
 0x534   :  { %v11520_v45 = vld [vmem:[#allocation8 + $0xb78] sm:$0xf0]  ;;  %7886 = vmatmul.bf16.vlgmr.msra.gmra.mxu1 %v13491_v14  ;;  %v11935_v37 = vor.u32 %v13083_v4, %v11934_v50 }
 0x535   :  { %7930 = vmatpush.bf16.msrb.mxu1 %v11587_v35  ;;  %7853 = vmatpush.bf16.msrb.mxu3 %v12063_v46  ;;  %v13039_v5 = vld [vmem:[#allocation8 + $0xd5c] sm:$0xf]  ;;  %v11523_v18 = vor.u32 %v12975_v33, %v11520_v45  ;;  %v7692_v46 = vpop.f32.mrf.mxu2 }
 0x536   :  { %v11776_v27 = vld [vmem:[#allocation8 + $0xd78] sm:$0xf0]  ;;  %7899 = vmatmul.bf16.vlgmr.msra.gmra.mxu2 %v13493_v52  ;;  %v11966_v52 = vld [vmem:[#allocation8 + $0xed8] sm:$0xf]  ;;  %v13671_v1 = vadd.f32 %v7692_v46, %v7680_v40 }
 0x537   :  { %7943 = vmatpush.bf16.msrb.mxu2 %v11843_v34  ;;  %7918 = vmatpush.bf16.msrb.mxu0 %v11299_v57  ;;  %v11779_v41 = vor.u32 %v13039_v5, %v11776_v27  ;;  %v12903_v61 = vld [vmem:[#allocation8 + $0x91c] sm:$0xf]  ;;  %v11967_v36 = vor.u32 %v13091_v26, %v11966_v52  ;;  %v7668_v57 = vpop.f32.mrf.mxu0 }
 0x538   :  { %v11232_v12 = vld [vmem:[#allocation8 + $0x938] sm:$0xf0] }
 0x539   :  { %7931 = vmatpush.bf16.msrb.mxu1 %v11555_v60  ;;  %v12967_v6 = vld [vmem:[#allocation8 + $0xb1c] sm:$0xf]  ;;  %7854 = vmatpush.bf16.msrb.mxu3 %v12031_v48  ;;  %v11235_v10 = vor.u32 %v12903_v61, %v11232_v12  ;;  %v11902_v60 = vld [vmem:[#allocation8 + $0xe58] sm:$0xf] }
 0x53a   :  { %v11488_v11 = vld [vmem:[#allocation8 + $0xb38] sm:$0xf0]  ;;  %v13067_v61 = vld [vmem:[#allocation8 + $0xe34] sm:$0xf0] }
 0x53b   :  { %7944 = vmatpush.bf16.msrb.mxu2 %v11811_v62  ;;  %v13031_v23 = vld [vmem:[#allocation8 + $0xd1c] sm:$0xf]  ;;  %7919 = vmatpush.bf16.msrb.mxu0 %v11267_v16  ;;  %v11491_v31 = vor.u32 %v12967_v6, %v11488_v11  ;;  %v13075_v62 = vld [vmem:[#allocation8 + $0xe74] sm:$0xf0] }
 0x53c   :  { %v11744_v14 = vld [vmem:[#allocation8 + $0xd38] sm:$0xf0]  ;;  %v11903_v9 = vor.u32 %v13075_v62, %v11902_v60 }
 0x53d   :  { %7932 = vmatpush.bf16.msrb.mxu1 %v11523_v18  ;;  %v11747_v32 = vor.u32 %v13031_v23, %v11744_v14  ;;  %v12895_v3 = vld [vmem:[#allocation8 + $0x8dc] sm:$0xf]  ;;  %7855 = vmatpush.bf16.msrb.mxu3 %v11999_v25  ;;  %v7694_v52 = vpop.f32.mrf.mxu2 }
 0x53e   :  { %v11200_v39 = vld [vmem:[#allocation8 + $0x8f8] sm:$0xf0] }
 0x53f   :  { %7945 = vmatpush.bf16.msrb.mxu2 %v11779_v41  ;;  %v12959_v8 = vld [vmem:[#allocation8 + $0xadc] sm:$0xf]  ;;  %7920 = vmatpush.bf16.msrb.mxu0 %v11235_v10  ;;  %v11203_v42 = vor.u32 %v12895_v3, %v11200_v39  ;;  %v11870_v41 = vld [vmem:[#allocation8 + $0xe18] sm:$0xf] }
 0x540   :  { %v11456_v29 = vld [vmem:[#allocation8 + $0xaf8] sm:$0xf0]  ;;  %v11871_v26 = vor.u32 %v13067_v61, %v11870_v41 }
 0x541   :  { %v13023_v15 = vld [vmem:[#allocation8 + $0xcdc] sm:$0xf]  ;;  %7933 = vmatpush.bf16.msrb.mxu1 %v11491_v31  ;;  %v11459_v35 = vor.u32 %v12959_v8, %v11456_v29  ;;  %7856 = vmatpush.bf16.msrb.mxu3 %v11967_v36  ;;  %v7602_v29 = vadd.f32 %v13669_v19, %v13647_v7 }
 0x542   :  { %v11712_v21 = vld [vmem:[#allocation8 + $0xcf8] sm:$0xf0] }
 0x543   :  { %7946 = vmatpush.bf16.msrb.mxu2 %v11747_v32  ;;  %v11715_v34 = vor.u32 %v13023_v15, %v11712_v21  ;;  %v12887_v43 = vld [vmem:[#allocation8 + $0x89c] sm:$0xf]  ;;  %7921 = vmatpush.bf16.msrb.mxu0 %v11203_v42  ;;  %v7615_v4 = vadd.f32 %v13657_v22, %v7602_v29 }
 0x544   :  { %v11168_v56 = vld [vmem:[#allocation8 + $0x8b8] sm:$0xf0] }
 0x545   :  { %v12951_v13 = vld [vmem:[#allocation8 + $0xa9c] sm:$0xf]  ;;  %v11171_v0 = vor.u32 %v12887_v43, %v11168_v56  ;;  %7934 = vmatpush.bf16.msrb.mxu1 %v11459_v35  ;;  %7857 = vmatpush.bf16.msrb.mxu3 %v11935_v37  ;;  %v7628_v19 = vadd.f32 %v13659_v24, %v7615_v4 }
 0x546   :  { %v11424_v47 = vld [vmem:[#allocation8 + $0xab8] sm:$0xf0] }
 0x547   :  { %v13015_v63 = vld [vmem:[#allocation8 + $0xc9c] sm:$0xf]  ;;  %7947 = vmatpush.bf16.msrb.mxu2 %v11715_v34  ;;  %v11427_v33 = vor.u32 %v12951_v13, %v11424_v47  ;;  %7922 = vmatpush.bf16.msrb.mxu0 %v11171_v0 }
 0x548   :  { %v11680_v49 = vld [vmem:[#allocation8 + $0xcb8] sm:$0xf0]  ;;  %v13681_v13 = vpop.f32.mrf.mxu0 }
 0x549   :  { %v11683_v48 = vor.u32 %v13015_v63, %v11680_v49  ;;  %v12879_v45 = vld [vmem:[#allocation8 + $0x85c] sm:$0xf]  ;;  %7935 = vmatpush.bf16.msrb.mxu1 %v11427_v33  ;;  %7858 = vmatpush.bf16.msrb.mxu3 %v11903_v9 }
 0x54a   :  { %v11136_v5 = vld [vmem:[#allocation8 + $0x878] sm:$0xf0]  ;;  %v13683_v46 = vpop.f32.mrf.mxu1  ;;  %v7653_v37 = vpop.f32.mrf.mxu3 }
 0x54b   :  { %v12943_v27 = vld [vmem:[#allocation8 + $0xa5c] sm:$0xf]  ;;  %v11139_v12 = vor.u32 %v12879_v45, %v11136_v5  ;;  %7948 = vmatpush.bf16.msrb.mxu2 %v11683_v48 }
 0x54c   :  { %v11392_v16 = vld [vmem:[#allocation8 + $0xa78] sm:$0xf0] }
 0x54d   :  { %v13007_v17 = vld [vmem:[#allocation8 + $0xc5c] sm:$0xf]  ;;  %v11395_v11 = vor.u32 %v12943_v27, %v11392_v16  ;;  %7923 = vmatpush.bf16.msrb.mxu0 %v11139_v12  ;;  %7859 = vmatpush.bf16.msrb.mxu3 %v11871_v26 }
 0x54e   :  { %v11648_v18 = vld [vmem:[#allocation8 + $0xc78] sm:$0xf0] }
 0x54f   :  { %v12863_v6 = vld [vmem:[#allocation8 + $0x7dc] sm:$0xf]  ;;  %v11651_v23 = vor.u32 %v13007_v17, %v11648_v18  ;;  %7936 = vmatpush.bf16.msrb.mxu1 %v11395_v11 }
 0x550   :  { %v11072_v25 = vld [vmem:[#allocation8 + $0x7f8] sm:$0xf0]  ;;  %7860 = vmatmul.bf16.vlgmr.msrb.gmra.mxu3 %v13551_v54  ;;  %v7720_v38 = vpop.f32.mrf.mxu0 }
 0x551   :  { %v12871_v14 = vld [vmem:[#allocation8 + $0x81c] sm:$0xf]  ;;  %v11075_v10 = vor.u32 %v12863_v6, %v11072_v25  ;;  %7949 = vmatpush.bf16.msrb.mxu2 %v11651_v23 }
 0x552   :  { %v11104_v2 = vld [vmem:[#allocation8 + $0x838] sm:$0xf0]  ;;  %v13686_v60 = vpop.f32.mrf.mxu2  ;;  %v7733_v0 = vpop.f32.mrf.mxu1 }
 0x553   :  { %v12935_v28 = vld [vmem:[#allocation8 + $0xa1c] sm:$0xf]  ;;  %v11107_v3 = vor.u32 %v12871_v14, %v11104_v2  ;;  %7904 = vmatpush.bf16.msra.mxu3 %v11075_v10  ;;  %v7655_v48 = vpop.f32.mrf.mxu3  ;;  %v4567_v14 = vperm.slane %v13642_v58, 6 }
 0x554   :  { %v11360_v30 = vld [vmem:[#allocation8 + $0xa38] sm:$0xf0] }
 0x555   :  { %v12999_v31 = vld [vmem:[#allocation8 + $0xc1c] sm:$0xf]  ;;  %v11363_v40 = vor.u32 %v12935_v28, %v11360_v30  ;;  %7924 = vmatpush.bf16.msrb.mxu0 %v11107_v3 }
 0x556   :  { %v11616_v32 = vld [vmem:[#allocation8 + $0xc38] sm:$0xf0] }
 0x557   :  { %v12855_v39 = vld [vmem:[#allocation8 + $0x79c] sm:$0xf]  ;;  %v11619_v36 = vor.u32 %v12999_v31, %v11616_v32  ;;  %7937 = vmatpush.bf16.msrb.mxu1 %v11363_v40 }
 0x558   :  { %v11040_v8 = vld [vmem:[#allocation8 + $0x7b8] sm:$0xf0]  ;;  %7925 = vmatmul.bf16.vlgmr.msrb.gmra.mxu0 %v13521_v51  ;;  %v7641_v51 = vadd.f32 %v13662_v55, %v7628_v19 }
 0x559   :  { %v11043_v15 = vor.u32 %v12855_v39, %v11040_v8  ;;  %v12847_v21 = vld [vmem:[#allocation8 + $0x75c] sm:$0xf]  ;;  %7950 = vmatpush.bf16.msrb.mxu2 %v11619_v36 }
 0x55a   :  { %v11008_v50 = vld [vmem:[#allocation8 + $0x778] sm:$0xf0]  ;;  %7938 = vmatmul.bf16.vlgmr.msrb.gmra.mxu1 %v13523_v53  ;;  %v7654_v63 = vadd.f32 %v7653_v37, %v7641_v51  ;;  %v7746_v44 = vpop.f32.mrf.mxu2 }
 0x55b   :  { %7905 = vmatpush.bf16.msra.mxu3 %v11043_v15  ;;  %v11011_v42 = vor.u32 %v12847_v21, %v11008_v50  ;;  %v12839_v35 = vld [vmem:[#allocation8 + $0x71c] sm:$0xf] }
 0x55c   :  { %v10976_v34 = vld [vmem:[#allocation8 + $0x738] sm:$0xf0]  ;;  %7951 = vmatmul.bf16.vlgmr.msrb.gmra.mxu2 %v13529_v20 }
 0x55d   :  { %v10979_v7 = vor.u32 %v12839_v35, %v10976_v34  ;;  %v12831_v43 = vld [vmem:[#allocation8 + $0x6dc] sm:$0xf] }
 0x55e   :  { %v10944_v56 = vld [vmem:[#allocation8 + $0x6f8] sm:$0xf0] }
 0x55f   :  { %7906 = vmatpush.bf16.msra.mxu3 %v11011_v42  ;;  %v10947_v22 = vor.u32 %v12831_v43, %v10944_v56  ;;  %v12823_v53 = vld [vmem:[#allocation8 + $0x69c] sm:$0xf] }
 0x560   :  { %v10912_v47 = vld [vmem:[#allocation8 + $0x6b8] sm:$0xf0] }
 0x561   :  { %v13141_v20 = vld [vmem:[#allocation2 + $0x20] sm:$0xff]  ;;  %v10915_v57 = vor.u32 %v12823_v53, %v10912_v47 }
 0x562   :  { %v7973_v49 = vadd.f32 %v13141_v20, %v7654_v63  ;;  %v12815_v24 = vld [vmem:[#allocation8 + $0x65c] sm:$0xf]  ;;  %v13142_v63 = vld [vmem:[#allocation2 + $0x28] sm:$0xff] }
 0x563   :  { %7907 = vmatpush.bf16.msra.mxu3 %v10979_v7  ;;  %v10880_v62 = vld [vmem:[#allocation8 + $0x678] sm:$0xf0] }
 0x564   :  { %7981 = vst [vmem:[#allocation11 + $0x20] sm:$0xff] %v7973_v49  ;;  %v10883_v33 = vor.u32 %v12815_v24, %v10880_v62  ;;  %v12807_v45 = vld [vmem:[#allocation8 + $0x61c] sm:$0xf] }
 0x565   :  { %v10848_v55 = vld [vmem:[#allocation8 + $0x638] sm:$0xf0] }
 0x566   :  { %v13119_v5 = vld [vmem:[#allocation8 + $0xfdc] sm:$0xf]  ;;  %v10851_v9 = vor.u32 %v12807_v45, %v10848_v55 }
 0x567   :  { %7908 = vmatpush.bf16.msra.mxu3 %v10947_v22  ;;  %v12096_v27 = vld [vmem:[#allocation8 + $0xff8] sm:$0xf0] }
 0x568   :  { %v12099_v16 = vor.u32 %v13119_v5, %v12096_v27  ;;  %v13111_v17 = vld [vmem:[#allocation8 + $0xf9c] sm:$0xf]  ;;  %v7770_v26 = vpop.f32.mrf.mxu0 }
 0x569   :  { %v12064_v18 = vld [vmem:[#allocation8 + $0xfb8] sm:$0xf0]  ;;  %v7771_v28 = vadd.f32 %v7770_v26, %v4567_v14 }
 0x56a   :  { %v12067_v41 = vor.u32 %v13111_v17, %v12064_v18  ;;  %v13103_v61 = vld [vmem:[#allocation8 + $0xf5c] sm:$0xf]  ;;  %v7783_v30 = vpop.f32.mrf.mxu1 }
 0x56b   :  { %7909 = vmatpush.bf16.msra.mxu3 %v10915_v57  ;;  %v12032_v12 = vld [vmem:[#allocation8 + $0xf78] sm:$0xf0]  ;;  %v7784_v3 = vadd.f32 %v7783_v30, %v7771_v28 }
 0x56c   :  { %v12035_v6 = vor.u32 %v13103_v61, %v12032_v12  ;;  %v13095_v25 = vld [vmem:[#allocation8 + $0xf1c] sm:$0xf]  ;;  %v7705_v39 = vpop.f32.mrf.mxu3 }
 0x56d   :  { %v12000_v11 = vld [vmem:[#allocation8 + $0xf38] sm:$0xf0]  ;;  %v7706_v19 = vadd.f32 %v7705_v39, %v13671_v1  ;;  %v13144_v39 = vld [vmem:[#allocation2 + $0x38] sm:$0xff] }
 0x56e   :  { %v12003_v23 = vor.u32 %v13095_v25, %v12000_v11  ;;  %v13087_v2 = vld [vmem:[#allocation8 + $0xedc] sm:$0xf] }
 0x56f   :  { %7910 = vmatpush.bf16.msra.mxu3 %v10883_v33  ;;  %v11968_v52 = vld [vmem:[#allocation8 + $0xef8] sm:$0xf0]  ;;  %v7719_v43 = vadd.f32 %v13681_v13, %v7706_v19 }
 0x570   :  { %v11971_v10 = vor.u32 %v13087_v2, %v11968_v52  ;;  %v13079_v31 = vld [vmem:[#allocation8 + $0xe9c] sm:$0xf]  ;;  %v7772_v15 = vpop.f32.mrf.mxu0 }
 0x571   :  { %v11936_v32 = vld [vmem:[#allocation8 + $0xeb8] sm:$0xf0]  ;;  %v7732_v56 = vadd.f32 %v13683_v46, %v7719_v43 }
 0x572   :  { %v13071_v8 = vld [vmem:[#allocation8 + $0xe5c] sm:$0xf]  ;;  %v7796_v36 = vpop.f32.mrf.mxu2  ;;  %v7785_v21 = vpop.f32.mrf.mxu1 }
 0x573   :  { %7911 = vmatpush.bf16.msra.mxu3 %v10851_v9  ;;  %v11904_v40 = vld [vmem:[#allocation8 + $0xe78] sm:$0xf0]  ;;  %v7797_v29 = vadd.f32 %v7796_v36, %v7784_v3  ;;  %v7745_v37 = vadd.f32 %v13686_v60, %v7732_v56 }
 0x574   :  { %v11907_v50 = vor.u32 %v13071_v8, %v11904_v40  ;;  %v13063_v4 = vld [vmem:[#allocation8 + $0xe1c] sm:$0xf]  ;;  %v7707_v35 = vpop.f32.mrf.mxu3 }
 0x575   :  { %v11872_v42 = vld [vmem:[#allocation8 + $0xe38] sm:$0xf0] }
 0x576   :  { %7912 = vmatmul.bf16.vlgmr.msra.gmra.mxu3 %v13495_v59  ;;  %v11939_v59 = vor.u32 %v13079_v31, %v11936_v32  ;;  %v11875_v34 = vor.u32 %v13063_v4, %v11872_v42 }
 0x577   :  { %7956 = vmatpush.bf16.msrb.mxu3 %v12099_v16 }
 0x57a   :  { %v7798_v7 = vpop.f32.mrf.mxu2 }
 0x57b   :  { %7957 = vmatpush.bf16.msrb.mxu3 %v12067_v41 }
 0x57f   :  { %7958 = vmatpush.bf16.msrb.mxu3 %v12035_v6 }
 0x583   :  { %7959 = vmatpush.bf16.msrb.mxu3 %v12003_v23 }
 0x587   :  { %7960 = vmatpush.bf16.msrb.mxu3 %v11971_v10 }
 0x58b   :  { %7961 = vmatpush.bf16.msrb.mxu3 %v11939_v59 }
 0x58c   :  { %v7757_v53 = vpop.f32.mrf.mxu3 }
 0x58d   :  { %v7758_v47 = vadd.f32 %v7757_v53, %v7745_v37 }
 0x58f   :  { %7962 = vmatpush.bf16.msrb.mxu3 %v11907_v50  ;;  %v7822_v22 = vpop.f32.mrf.mxu0  ;;  %v7974_v20 = vadd.f32 %v13142_v63, %v7758_v47 }
 0x591   :  { %v7835_v51 = vpop.f32.mrf.mxu1  ;;  %7982 = vst [vmem:[#allocation11 + $0x28] sm:$0xff] %v7974_v20 }
 0x593   :  { %7963 = vmatpush.bf16.msrb.mxu3 %v11875_v34 }
 0x594   :  { %v7759_v62 = vpop.f32.mrf.mxu3 }
 0x596   :  { %7964 = vmatmul.bf16.vlgmr.msrb.gmra.mxu3 %v13551_v54  ;;  %v4568_v54 = vperm.slane %v13642_v58, 7  ;;  %v13143_v58 = vld [vmem:[#allocation2 + $0x30] sm:$0xff] }
 0x597   :  { %v7824_v57 = vpop.f32.mrf.mxu0 }
 0x599   :  { %v7848_v49 = vpop.f32.mrf.mxu2  ;;  %v7837_v24 = vpop.f32.mrf.mxu1 }
 0x5a1   :  { %v7850_v1 = vpop.f32.mrf.mxu2 }
 0x5af   :  { %v7874_v38 = vpop.f32.mrf.mxu0 }
 0x5b0   :  { %v7875_v13 = vadd.f32 %v7874_v38, %v4568_v54 }
 0x5b1   :  { %v7887_v0 = vpop.f32.mrf.mxu1 }
 0x5b2   :  { %v7888_v46 = vadd.f32 %v7887_v0, %v7875_v13 }
 0x5b3   :  { %v7809_v33 = vpop.f32.mrf.mxu3 }
 0x5b4   :  { %v7810_v9 = vadd.f32 %v7809_v33, %v7797_v29 }
 0x5b6   :  { %v7823_v44 = vadd.f32 %v7822_v22, %v7810_v9 }
 0x5b7   :  { %v7876_v60 = vpop.f32.mrf.mxu0 }
 0x5b8   :  { %v7836_v16 = vadd.f32 %v7835_v51, %v7823_v44 }
 0x5b9   :  { %v7900_v48 = vpop.f32.mrf.mxu2  ;;  %v7889_v55 = vpop.f32.mrf.mxu1 }
 0x5ba   :  { %v7901_v45 = vadd.f32 %v7900_v48, %v7888_v46  ;;  %v7849_v41 = vadd.f32 %v7848_v49, %v7836_v16 }
 0x5bb   :  { %v7811_v5 = vpop.f32.mrf.mxu3 }
 0x5c1   :  { %v7902_v27 = vpop.f32.mrf.mxu2 }
 0x5d3   :  { %v7861_v61 = vpop.f32.mrf.mxu3 }
 0x5d4   :  { %v7862_v12 = vadd.f32 %v7861_v61, %v7849_v41 }
 0x5d5   :  { %v7926_v17 = vpop.f32.mrf.mxu0 }
 0x5d6   :  { %v7975_v6 = vadd.f32 %v13143_v58, %v7862_v12 }
 0x5d7   :  { %v7939_v18 = vpop.f32.mrf.mxu1 }
 0x5d8   :  { %7983 = vst [vmem:[#allocation11 + $0x30] sm:$0xff] %v7975_v6 }
 0x5db   :  { %v7863_v14 = vpop.f32.mrf.mxu3 }
 0x5dd   :  { %v7928_v11 = vpop.f32.mrf.mxu0 }
 0x5df   :  { %v7952_v25 = vpop.f32.mrf.mxu2  ;;  %v7941_v23 = vpop.f32.mrf.mxu1 }
 0x5e7   :  { %v7954_v2 = vpop.f32.mrf.mxu2 }
 0x5f9   :  { %v7913_v52 = vpop.f32.mrf.mxu3 }
 0x5fa   :  { %v7914_v28 = vadd.f32 %v7913_v52, %v7901_v45 }
 0x5fc   :  { %v7927_v30 = vadd.f32 %v7926_v17, %v7914_v28 }
 0x5fe   :  { %v7940_v10 = vadd.f32 %v7939_v18, %v7927_v30 }
 0x600   :  { %v7953_v31 = vadd.f32 %v7952_v25, %v7940_v10 }
 0x601   :  { %v7915_v26 = vpop.f32.mrf.mxu3 }
 0x619   :  { %v7965_v32 = vpop.f32.mrf.mxu3 }
 0x61a   :  { %v7966_v3 = vadd.f32 %v7965_v32, %v7953_v31 }
 0x61c   :  { %v7976_v59 = vadd.f32 %v13144_v39, %v7966_v3 }
 0x61e   :  { %7984 = vst [vmem:[#allocation11 + $0x38] sm:$0xff] %v7976_v59 }
 0x61f   :  { %7995 = dma.vmem_to_hbm [thread:$0]  %s7991_s4, 1024, %s7993_s19, [#allocation4]  }
 0x621   :  { %v7967_v8 = vpop.f32.mrf.mxu3 }
 0x622   :  { %13295 = dma.done.wait [#allocation4], 1024  }
 0x623   :  { %13296 = vsyncadd [#allocation4], 4294966272 }
 0x624   :  { %8000 = vsyncpa [#allocation3], 1 }
 0x625   :  { %8001 = vsyncpa [#allocation6], 1 }
 0x626   :  { %8002 = vsyncpa [#allocation9], 1 }
 0x627   :  { %8003 = vsyncpa [#allocation4], 1 }

</bundles_post_ra>
